<compile_context>
chip_gen: v5e
topology: v5e:2x2
jax: 0.10.0
libtpu: 0.0.40
codegen_flags: <defaults>
</compile_context>

<pallas_src>
import functools

import jax
import jax.numpy as jnp
from jax import lax
from jax.experimental import pallas as pl
from jax.experimental.pallas import tpu as pltpu


def _conv_out(size, k, s):
    return (size - k) // s + 1


# ---------------------------------------------------------------------------
# In-kernel helpers (operate on VMEM-resident values)
# ---------------------------------------------------------------------------
def _pad_hw(x, mult):
    """Zero-pad the leading H, W dims of (H, W, BT, C) up to multiples of `mult`."""
    h, w, bt, c = x.shape
    ph, pw = (-h) % mult, (-w) % mult
    if ph:
        x = jnp.concatenate([x, jnp.zeros((ph, w, bt, c), x.dtype)], axis=0)
    if pw:
        x = jnp.concatenate([x, jnp.zeros((h + ph, pw, bt, c), x.dtype)], axis=1)
    return x


def _im2col(x, k, stride, oh, ow):
    """x: (H, W, BT, C) -> (oh*ow*BT, k*k*C) patch matrix.

    Row order: (oy*ow + ox)*BT + b.   Column order: (i*k + j)*C + c, matching
    an HWIO conv weight reshaped to (k*k*C, Cout).  For stride > 1 a
    phase-split reshape (h = (oy + i//s)*s + i%s) is used so only unit-stride
    slices / integer indexing on leading (untiled) dims are needed.
    """
    h, w, bt, c = x.shape
    slabs = []
    if stride == 1:
        for i in range(k):
            for j in range(k):
                slabs.append(x[i:i + oh, j:j + ow])            # (oh, ow, BT, C)
    else:
        assert h % stride == 0 and w % stride == 0
        xh = x.reshape(h // stride, stride, w, bt, c)
        for i in range(k):
            qi, ri = divmod(i, stride)
            row = xh[qi:qi + oh, ri]                           # (oh, W, BT, C)
            roww = row.reshape(oh, w // stride, stride, bt, c)
            for j in range(k):
                qj, rj = divmod(j, stride)
                slabs.append(roww[:, qj:qj + ow, rj])          # (oh, ow, BT, C)
    patches = jnp.concatenate(slabs, axis=-1)                  # (oh, ow, BT, k*k*C)
    return patches.reshape(oh * ow * bt, k * k * c)


def _conv_relu(x, w_ref, b_ref, k, stride, oh, ow):
    """Valid conv + bias + ReLU. Returns (oh*ow*BT, Cout), rows (oy*ow+ox)*BT+b."""
    if stride > 1:
        x = _pad_hw(x, stride)
    patches = _im2col(x, k, stride, oh, ow)
    y = jnp.dot(patches, w_ref[...], preferred_element_type=jnp.float32)
    y = y + b_ref[...]
    return jnp.maximum(y, 0.0)


# ---------------------------------------------------------------------------
# Fused DQN kernel: conv1 -> conv2 -> conv3 -> FC1 -> FC2, all in VMEM
# ---------------------------------------------------------------------------
def _dqn_kernel(x_ref, w1, b1, w2, b2, w3, b3, wf1, bf1, wf2, bf2, o_ref,
                *, conv_cfg):
    (k1, s1, oh1, ow1), (k2, s2, oh2, ow2), (k3, s3, oh3, ow3) = conv_cfg
    bt = x_ref.shape[2]

    x = x_ref[...].astype(jnp.float32)                         # (H, W, BT, Cin)
    a = _conv_relu(x, w1, b1, k1, s1, oh1, ow1)
    a = a.reshape(oh1, ow1, bt, w1.shape[-1])                  # (oh1, ow1, BT, 32)
    a = _conv_relu(a, w2, b2, k2, s2, oh2, ow2)
    a = a.reshape(oh2, ow2, bt, w2.shape[-1])                  # (oh2, ow2, BT, 64)
    y3 = _conv_relu(a, w3, b3, k3, s3, oh3, ow3)               # (P*BT, 64)

    # FC1, folded over conv3's P = oh3*ow3 output positions.  wf1 is stored as
    # (P, C3, 512) with rows permuted from PyTorch's NCHW-flatten order, so no
    # activation transpose is needed.
    npos = oh3 * ow3
    acc = jnp.zeros((bt, wf1.shape[-1]), jnp.float32) + bf1[...]
    for p in range(npos):
        acc = acc + jnp.dot(y3[p * bt:(p + 1) * bt, :], wf1[p],
                            preferred_element_type=jnp.float32)
    hdn = jnp.maximum(acc, 0.0)                                # (BT, 512)

    # FC2: N padded to a 128-lane multiple -> unmasked full-vreg stores.
    out = jnp.dot(hdn, wf2[...], preferred_element_type=jnp.float32) + bf2[...]
    o_ref[...] = out.astype(o_ref.dtype)


# ---------------------------------------------------------------------------
# Parameters (logical layout) + packing to kernel layout
# ---------------------------------------------------------------------------
def init_dqn_params(key, in_channels=4, nactions=2, spatial=16):
    """Synthetic init; shapes mirror the PyTorch module (HWIO conv weights)."""
    ks = jax.random.split(key, 10)

    def w(k, shape, fan_in):
        return jax.random.normal(k, shape, jnp.float32) / jnp.sqrt(fan_in)

    s = _conv_out(spatial, 4, 2)
    s = _conv_out(s, 3, 2)
    s = _conv_out(s, 2, 1)
    conv_out_size = 64 * s * s                      # == _get_conv_out(...)
    return {
        "w1": w(ks[0], (4, 4, in_channels, 32), 4 * 4 * in_channels),
        "b1": 0.1 * jax.random.normal(ks[1], (32,), jnp.float32),
        "w2": w(ks[2], (3, 3, 32, 64), 3 * 3 * 32),
        "b2": 0.1 * jax.random.normal(ks[3], (64,), jnp.float32),
        "w3": w(ks[4], (2, 2, 64, 64), 2 * 2 * 64),
        "b3": 0.1 * jax.random.normal(ks[5], (64,), jnp.float32),
        # FC1 rows are in PyTorch NCHW-flatten order (c * P + pos).
        "wf1": w(ks[6], (conv_out_size, 512), conv_out_size),
        "bf1": 0.1 * jax.random.normal(ks[7], (512,), jnp.float32),
        "wf2": w(ks[8], (512, nactions), 512),
        "bf2": 0.1 * jax.random.normal(ks[9], (nactions,), jnp.float32),
    }


def pack_params(params, *, nactions, lane=128):
    """One-time conversion of logical params into kernel-ready layouts."""
    c1 = params["w1"].shape[-1]
    c2 = params["w2"].shape[-1]
    c3 = params["w3"].shape[-1]
    conv_out, n_hidden = params["wf1"].shape
    npos = conv_out // c3
    n_pad = ((nactions + lane - 1) // lane) * lane
    return {
        "w1": params["w1"].reshape(-1, c1),
        "b1": params["b1"].reshape(1, -1),
        "w2": params["w2"].reshape(-1, c2),
        "b2": params["b2"].reshape(1, -1),
        "w3": params["w3"].reshape(-1, c3),
        "b3": params["b3"].reshape(1, -1),
        # permute FC1 rows (c*npos + p) -> (p, c) once, offline
        "wf1": params["wf1"].reshape(c3, npos, n_hidden).transpose(1, 0, 2),
        "bf1": params["bf1"].reshape(1, -1),
        # FC2 zero-padded to 128 lanes (padding sliced off in the wrapper)
        "wf2": jnp.pad(params["wf2"], ((0, 0), (0, n_pad - nactions))),
        "bf2": jnp.pad(params["bf2"], (0, n_pad - nactions)).reshape(1, -1),
    }


# ---------------------------------------------------------------------------
# Forward wrapper
# ---------------------------------------------------------------------------
def dqn_forward(packed, x_nchw, *, nactions, bt=8):
    """x_nchw: (N, C, H, W) float32, same convention as the PyTorch module."""
    b, cin, hh, ww = x_nchw.shape
    k1, s1, k2, s2, k3, s3 = 4, 2, 3, 2, 2, 1
    oh1, ow1 = _conv_out(hh, k1, s1), _conv_out(ww, k1, s1)
    oh2, ow2 = _conv_out(oh1, k2, s2), _conv_out(ow1, k2, s2)
    oh3, ow3 = _conv_out(oh2, k3, s3), _conv_out(ow2, k3, s3)
    conv_cfg = ((k1, s1, oh1, ow1), (k2, s2, oh2, ow2), (k3, s3, oh3, ow3))

    bp = ((b + bt - 1) // bt) * bt                     # pad batch to >= 8 rows
    x = jnp.transpose(x_nchw, (2, 3, 0, 1)).astype(jnp.float32)   # (H, W, B, C)
    if bp != b:
        x = jnp.pad(x, ((0, 0), (0, 0), (0, bp - b), (0, 0)))

    n_pad = packed["wf2"].shape[-1]
    weight_names = ("w1", "b1", "w2", "b2", "w3", "b3",
                    "wf1", "bf1", "wf2", "bf2")
    weight_specs = [
        pl.BlockSpec(packed[name].shape,
                     (lambda g: (0, 0, 0)) if packed[name].ndim == 3
                     else (lambda g: (0, 0)))
        for name in weight_names
    ]

    out = pl.pallas_call(
        functools.partial(_dqn_kernel, conv_cfg=conv_cfg),
        out_shape=jax.ShapeDtypeStruct((bp, n_pad), jnp.float32),
        grid=(bp // bt,),
        in_specs=[pl.BlockSpec((hh, ww, bt, cin), lambda g: (0, 0, g, 0))]
        + weight_specs,
        out_specs=pl.BlockSpec((bt, n_pad), lambda g: (g, 0)),
        compiler_params=pltpu.CompilerParams(
            dimension_semantics=("parallel",)),
    )(x, *(packed[name] for name in weight_names))
    return out[:b, :nactions]


# ---------------------------------------------------------------------------
# Pure-JAX (XLA) reference with identical semantics to the PyTorch module
# ---------------------------------------------------------------------------
def dqn_reference(params, x_nchw):
    dn = ("NCHW", "HWIO", "NCHW")
    hp = lax.Precision.HIGHEST
    y = x_nchw
    for wn, bn, s in (("w1", "b1", 2), ("w2", "b2", 2), ("w3", "b3", 1)):
        y = lax.conv_general_dilated(y, params[wn], (s, s), "VALID",
                                     dimension_numbers=dn, precision=hp)
        y = jnp.maximum(y + params[bn].reshape(1, -1, 1, 1), 0.0)
    y = y.reshape(y.shape[0], -1)                       # NCHW flatten (.view(N,-1))
    y = jnp.maximum(jnp.dot(y, params["wf1"], precision=hp) + params["bf1"], 0.0)
    return jnp.dot(y, params["wf2"], precision=hp) + params["bf2"]


if __name__ == "__main__":
    key = jax.random.PRNGKey(0)
    k_param, k_x = jax.random.split(key)

    batch, channels, spatial, nactions = 2, 4, 16, 2
    params = init_dqn_params(k_param, in_channels=channels,
                             nactions=nactions, spatial=spatial)
    packed = pack_params(params, nactions=nactions)
    x = jax.random.normal(k_x, (batch, channels, spatial, spatial), jnp.float32)

    fwd = jax.jit(functools.partial(dqn_forward, nactions=nactions))
    out = jax.block_until_ready(fwd(packed, x))
    assert out.shape == (batch, nactions), out.shape

    ref = jax.block_until_ready(dqn_reference(params, x))
    max_err = float(jnp.max(jnp.abs(out - ref)))
    assert max_err < 2e-2, f"mismatch vs reference: max abs err = {max_err}"
    print("KERNEL_OK")
</pallas_src>

<mosaic_0001>
module attributes {stable_mosaic.version = 11 : i64} {
  func.func @_dqn_kernel(%arg0: i32, %arg1: memref<16x16x8x4xf32, #tpu.memory_space<vmem>>, %arg2: memref<64x32xf32, #tpu.memory_space<vmem>>, %arg3: memref<1x32xf32, #tpu.memory_space<vmem>>, %arg4: memref<288x64xf32, #tpu.memory_space<vmem>>, %arg5: memref<1x64xf32, #tpu.memory_space<vmem>>, %arg6: memref<256x64xf32, #tpu.memory_space<vmem>>, %arg7: memref<1x64xf32, #tpu.memory_space<vmem>>, %arg8: memref<4x64x512xf32, #tpu.memory_space<vmem>>, %arg9: memref<1x512xf32, #tpu.memory_space<vmem>>, %arg10: memref<512x128xf32, #tpu.memory_space<vmem>>, %arg11: memref<1x128xf32, #tpu.memory_space<vmem>>, %arg12: memref<8x128xf32, #tpu.memory_space<vmem>>) attributes {dimension_semantics = [#tpu.dimension_semantics<parallel>], iteration_bounds = array<i64: 1>, scalar_prefetch = 0 : i64, scratch_operands = 0 : i64, tpu.core_type = #tpu.core_type<tc>, window_params = [{transform_indices = @transform_0, window_bounds = array<i64: 16, 16, 8, 4>}, {pipeline_mode = #tpu.pipeline_mode<synchronous>, transform_indices = @transform_1, window_bounds = array<i64: 64, 32>}, {pipeline_mode = #tpu.pipeline_mode<synchronous>, transform_indices = @transform_2, window_bounds = array<i64: 1, 32>}, {pipeline_mode = #tpu.pipeline_mode<synchronous>, transform_indices = @transform_3, window_bounds = array<i64: 288, 64>}, {pipeline_mode = #tpu.pipeline_mode<synchronous>, transform_indices = @transform_4, window_bounds = array<i64: 1, 64>}, {pipeline_mode = #tpu.pipeline_mode<synchronous>, transform_indices = @transform_5, window_bounds = array<i64: 256, 64>}, {pipeline_mode = #tpu.pipeline_mode<synchronous>, transform_indices = @transform_6, window_bounds = array<i64: 1, 64>}, {pipeline_mode = #tpu.pipeline_mode<synchronous>, transform_indices = @transform_7, window_bounds = array<i64: 4, 64, 512>}, {pipeline_mode = #tpu.pipeline_mode<synchronous>, transform_indices = @transform_8, window_bounds = array<i64: 1, 512>}, {pipeline_mode = #tpu.pipeline_mode<synchronous>, transform_indices = @transform_9, window_bounds = array<i64: 512, 128>}, {pipeline_mode = #tpu.pipeline_mode<synchronous>, transform_indices = @transform_10, window_bounds = array<i64: 1, 128>}, {transform_indices = @transform_11, window_bounds = array<i64: 8, 128>}]} {
    %c0 = arith.constant 0 : index
    %c0_0 = arith.constant 0 : index
    %c0_1 = arith.constant 0 : index
    %c0_2 = arith.constant 0 : index
    %0 = vector.load %arg1[%c0, %c0_0, %c0_1, %c0_2] : memref<16x16x8x4xf32, #tpu.memory_space<vmem>>, vector<16x16x8x4xf32>
    %1 = vector.shape_cast %0 : vector<16x16x8x4xf32> to vector<8x2x16x8x4xf32>
    %2 = vector.extract_strided_slice %1 {offsets = [0, 0, 0, 0, 0], sizes = [7, 1, 16, 8, 4], strides = [1, 1, 1, 1, 1]} : vector<8x2x16x8x4xf32> to vector<7x1x16x8x4xf32>
    %3 = vector.shape_cast %2 : vector<7x1x16x8x4xf32> to vector<7x16x8x4xf32>
    %4 = vector.shape_cast %3 : vector<7x16x8x4xf32> to vector<7x8x2x8x4xf32>
    %5 = vector.extract_strided_slice %4 {offsets = [0, 0, 0, 0, 0], sizes = [7, 7, 1, 8, 4], strides = [1, 1, 1, 1, 1]} : vector<7x8x2x8x4xf32> to vector<7x7x1x8x4xf32>
    %6 = vector.shape_cast %5 : vector<7x7x1x8x4xf32> to vector<7x7x8x4xf32>
    %7 = vector.extract_strided_slice %4 {offsets = [0, 0, 1, 0, 0], sizes = [7, 7, 1, 8, 4], strides = [1, 1, 1, 1, 1]} : vector<7x8x2x8x4xf32> to vector<7x7x1x8x4xf32>
    %8 = vector.shape_cast %7 : vector<7x7x1x8x4xf32> to vector<7x7x8x4xf32>
    %9 = vector.extract_strided_slice %4 {offsets = [0, 1, 0, 0, 0], sizes = [7, 7, 1, 8, 4], strides = [1, 1, 1, 1, 1]} : vector<7x8x2x8x4xf32> to vector<7x7x1x8x4xf32>
    %10 = vector.shape_cast %9 : vector<7x7x1x8x4xf32> to vector<7x7x8x4xf32>
    %11 = vector.extract_strided_slice %4 {offsets = [0, 1, 1, 0, 0], sizes = [7, 7, 1, 8, 4], strides = [1, 1, 1, 1, 1]} : vector<7x8x2x8x4xf32> to vector<7x7x1x8x4xf32>
    %12 = vector.shape_cast %11 : vector<7x7x1x8x4xf32> to vector<7x7x8x4xf32>
    %13 = vector.extract_strided_slice %1 {offsets = [0, 1, 0, 0, 0], sizes = [7, 1, 16, 8, 4], strides = [1, 1, 1, 1, 1]} : vector<8x2x16x8x4xf32> to vector<7x1x16x8x4xf32>
    %14 = vector.shape_cast %13 : vector<7x1x16x8x4xf32> to vector<7x16x8x4xf32>
    %15 = vector.shape_cast %14 : vector<7x16x8x4xf32> to vector<7x8x2x8x4xf32>
    %16 = vector.extract_strided_slice %15 {offsets = [0, 0, 0, 0, 0], sizes = [7, 7, 1, 8, 4], strides = [1, 1, 1, 1, 1]} : vector<7x8x2x8x4xf32> to vector<7x7x1x8x4xf32>
    %17 = vector.shape_cast %16 : vector<7x7x1x8x4xf32> to vector<7x7x8x4xf32>
    %18 = vector.extract_strided_slice %15 {offsets = [0, 0, 1, 0, 0], sizes = [7, 7, 1, 8, 4], strides = [1, 1, 1, 1, 1]} : vector<7x8x2x8x4xf32> to vector<7x7x1x8x4xf32>
    %19 = vector.shape_cast %18 : vector<7x7x1x8x4xf32> to vector<7x7x8x4xf32>
    %20 = vector.extract_strided_slice %15 {offsets = [0, 1, 0, 0, 0], sizes = [7, 7, 1, 8, 4], strides = [1, 1, 1, 1, 1]} : vector<7x8x2x8x4xf32> to vector<7x7x1x8x4xf32>
    %21 = vector.shape_cast %20 : vector<7x7x1x8x4xf32> to vector<7x7x8x4xf32>
    %22 = vector.extract_strided_slice %15 {offsets = [0, 1, 1, 0, 0], sizes = [7, 7, 1, 8, 4], strides = [1, 1, 1, 1, 1]} : vector<7x8x2x8x4xf32> to vector<7x7x1x8x4xf32>
    %23 = vector.shape_cast %22 : vector<7x7x1x8x4xf32> to vector<7x7x8x4xf32>
    %24 = vector.extract_strided_slice %1 {offsets = [1, 0, 0, 0, 0], sizes = [7, 1, 16, 8, 4], strides = [1, 1, 1, 1, 1]} : vector<8x2x16x8x4xf32> to vector<7x1x16x8x4xf32>
    %25 = vector.shape_cast %24 : vector<7x1x16x8x4xf32> to vector<7x16x8x4xf32>
    %26 = vector.shape_cast %25 : vector<7x16x8x4xf32> to vector<7x8x2x8x4xf32>
    %27 = vector.extract_strided_slice %26 {offsets = [0, 0, 0, 0, 0], sizes = [7, 7, 1, 8, 4], strides = [1, 1, 1, 1, 1]} : vector<7x8x2x8x4xf32> to vector<7x7x1x8x4xf32>
    %28 = vector.shape_cast %27 : vector<7x7x1x8x4xf32> to vector<7x7x8x4xf32>
    %29 = vector.extract_strided_slice %26 {offsets = [0, 0, 1, 0, 0], sizes = [7, 7, 1, 8, 4], strides = [1, 1, 1, 1, 1]} : vector<7x8x2x8x4xf32> to vector<7x7x1x8x4xf32>
    %30 = vector.shape_cast %29 : vector<7x7x1x8x4xf32> to vector<7x7x8x4xf32>
    %31 = vector.extract_strided_slice %26 {offsets = [0, 1, 0, 0, 0], sizes = [7, 7, 1, 8, 4], strides = [1, 1, 1, 1, 1]} : vector<7x8x2x8x4xf32> to vector<7x7x1x8x4xf32>
    %32 = vector.shape_cast %31 : vector<7x7x1x8x4xf32> to vector<7x7x8x4xf32>
    %33 = vector.extract_strided_slice %26 {offsets = [0, 1, 1, 0, 0], sizes = [7, 7, 1, 8, 4], strides = [1, 1, 1, 1, 1]} : vector<7x8x2x8x4xf32> to vector<7x7x1x8x4xf32>
    %34 = vector.shape_cast %33 : vector<7x7x1x8x4xf32> to vector<7x7x8x4xf32>
    %35 = vector.extract_strided_slice %1 {offsets = [1, 1, 0, 0, 0], sizes = [7, 1, 16, 8, 4], strides = [1, 1, 1, 1, 1]} : vector<8x2x16x8x4xf32> to vector<7x1x16x8x4xf32>
    %36 = vector.shape_cast %35 : vector<7x1x16x8x4xf32> to vector<7x16x8x4xf32>
    %37 = vector.shape_cast %36 : vector<7x16x8x4xf32> to vector<7x8x2x8x4xf32>
    %38 = vector.extract_strided_slice %37 {offsets = [0, 0, 0, 0, 0], sizes = [7, 7, 1, 8, 4], strides = [1, 1, 1, 1, 1]} : vector<7x8x2x8x4xf32> to vector<7x7x1x8x4xf32>
    %39 = vector.shape_cast %38 : vector<7x7x1x8x4xf32> to vector<7x7x8x4xf32>
    %40 = vector.extract_strided_slice %37 {offsets = [0, 0, 1, 0, 0], sizes = [7, 7, 1, 8, 4], strides = [1, 1, 1, 1, 1]} : vector<7x8x2x8x4xf32> to vector<7x7x1x8x4xf32>
    %41 = vector.shape_cast %40 : vector<7x7x1x8x4xf32> to vector<7x7x8x4xf32>
    %42 = vector.extract_strided_slice %37 {offsets = [0, 1, 0, 0, 0], sizes = [7, 7, 1, 8, 4], strides = [1, 1, 1, 1, 1]} : vector<7x8x2x8x4xf32> to vector<7x7x1x8x4xf32>
    %43 = vector.shape_cast %42 : vector<7x7x1x8x4xf32> to vector<7x7x8x4xf32>
    %44 = vector.extract_strided_slice %37 {offsets = [0, 1, 1, 0, 0], sizes = [7, 7, 1, 8, 4], strides = [1, 1, 1, 1, 1]} : vector<7x8x2x8x4xf32> to vector<7x7x1x8x4xf32>
    %45 = vector.shape_cast %44 : vector<7x7x1x8x4xf32> to vector<7x7x8x4xf32>
    %46 = tpu.concatenate %6, %8, %10, %12, %17, %19, %21, %23, %28, %30, %32, %34, %39, %41, %43, %45 in 3 : vector<7x7x8x4xf32>, vector<7x7x8x4xf32>, vector<7x7x8x4xf32>, vector<7x7x8x4xf32>, vector<7x7x8x4xf32>, vector<7x7x8x4xf32>, vector<7x7x8x4xf32>, vector<7x7x8x4xf32>, vector<7x7x8x4xf32>, vector<7x7x8x4xf32>, vector<7x7x8x4xf32>, vector<7x7x8x4xf32>, vector<7x7x8x4xf32>, vector<7x7x8x4xf32>, vector<7x7x8x4xf32>, vector<7x7x8x4xf32> -> vector<7x7x8x64xf32>
    %47 = vector.shape_cast %46 : vector<7x7x8x64xf32> to vector<392x64xf32>
    %c0_3 = arith.constant 0 : index
    %c0_4 = arith.constant 0 : index
    %48 = vector.load %arg2[%c0_3, %c0_4] : memref<64x32xf32, #tpu.memory_space<vmem>>, vector<64x32xf32>
    %cst = arith.constant dense<0.000000e+00> : vector<392x32xf32>
    %49 = tpu.matmul %47, %48, %cst {dimension_numbers = #tpu.dot_dimension_numbers<[1], [0], [0], [1], [0, 0, 1, 1], [], []>} : vector<392x64xf32>, vector<64x32xf32>, vector<392x32xf32> -> vector<392x32xf32>
    %c0_5 = arith.constant 0 : index
    %c0_6 = arith.constant 0 : index
    %50 = vector.load %arg3[%c0_5, %c0_6] : memref<1x32xf32, #tpu.memory_space<vmem>>, vector<1x32xf32>
    %51 = vector.broadcast %50 : vector<1x32xf32> to vector<392x32xf32>
    %52 = arith.addf %49, %51 : vector<392x32xf32>
    %cst_7 = arith.constant 0.000000e+00 : f32
    %53 = vector.broadcast %cst_7 : f32 to vector<392x32xf32>
    %54 = arith.maximumf %52, %53 : vector<392x32xf32>
    %55 = vector.shape_cast %54 : vector<392x32xf32> to vector<7x7x8x32xf32>
    %cst_8 = arith.constant 0.000000e+00 : f32
    %56 = vector.broadcast %cst_8 : f32 to vector<1x7x8x32xf32>
    %57 = tpu.concatenate %55, %56 in 0 : vector<7x7x8x32xf32>, vector<1x7x8x32xf32> -> vector<8x7x8x32xf32>
    %cst_9 = arith.constant 0.000000e+00 : f32
    %58 = vector.broadcast %cst_9 : f32 to vector<8x1x8x32xf32>
    %59 = tpu.concatenate %57, %58 in 1 : vector<8x7x8x32xf32>, vector<8x1x8x32xf32> -> vector<8x8x8x32xf32>
    %60 = vector.shape_cast %59 : vector<8x8x8x32xf32> to vector<4x2x8x8x32xf32>
    %61 = vector.extract_strided_slice %60 {offsets = [0, 0, 0, 0, 0], sizes = [3, 1, 8, 8, 32], strides = [1, 1, 1, 1, 1]} : vector<4x2x8x8x32xf32> to vector<3x1x8x8x32xf32>
    %62 = vector.shape_cast %61 : vector<3x1x8x8x32xf32> to vector<3x8x8x32xf32>
    %63 = vector.shape_cast %62 : vector<3x8x8x32xf32> to vector<3x4x2x8x32xf32>
    %64 = vector.extract_strided_slice %63 {offsets = [0, 0, 0, 0, 0], sizes = [3, 3, 1, 8, 32], strides = [1, 1, 1, 1, 1]} : vector<3x4x2x8x32xf32> to vector<3x3x1x8x32xf32>
    %65 = vector.shape_cast %64 : vector<3x3x1x8x32xf32> to vector<3x3x8x32xf32>
    %66 = vector.extract_strided_slice %63 {offsets = [0, 0, 1, 0, 0], sizes = [3, 3, 1, 8, 32], strides = [1, 1, 1, 1, 1]} : vector<3x4x2x8x32xf32> to vector<3x3x1x8x32xf32>
    %67 = vector.shape_cast %66 : vector<3x3x1x8x32xf32> to vector<3x3x8x32xf32>
    %68 = vector.extract_strided_slice %63 {offsets = [0, 1, 0, 0, 0], sizes = [3, 3, 1, 8, 32], strides = [1, 1, 1, 1, 1]} : vector<3x4x2x8x32xf32> to vector<3x3x1x8x32xf32>
    %69 = vector.shape_cast %68 : vector<3x3x1x8x32xf32> to vector<3x3x8x32xf32>
    %70 = vector.extract_strided_slice %60 {offsets = [0, 1, 0, 0, 0], sizes = [3, 1, 8, 8, 32], strides = [1, 1, 1, 1, 1]} : vector<4x2x8x8x32xf32> to vector<3x1x8x8x32xf32>
    %71 = vector.shape_cast %70 : vector<3x1x8x8x32xf32> to vector<3x8x8x32xf32>
    %72 = vector.shape_cast %71 : vector<3x8x8x32xf32> to vector<3x4x2x8x32xf32>
    %73 = vector.extract_strided_slice %72 {offsets = [0, 0, 0, 0, 0], sizes = [3, 3, 1, 8, 32], strides = [1, 1, 1, 1, 1]} : vector<3x4x2x8x32xf32> to vector<3x3x1x8x32xf32>
    %74 = vector.shape_cast %73 : vector<3x3x1x8x32xf32> to vector<3x3x8x32xf32>
    %75 = vector.extract_strided_slice %72 {offsets = [0, 0, 1, 0, 0], sizes = [3, 3, 1, 8, 32], strides = [1, 1, 1, 1, 1]} : vector<3x4x2x8x32xf32> to vector<3x3x1x8x32xf32>
    %76 = vector.shape_cast %75 : vector<3x3x1x8x32xf32> to vector<3x3x8x32xf32>
    %77 = vector.extract_strided_slice %72 {offsets = [0, 1, 0, 0, 0], sizes = [3, 3, 1, 8, 32], strides = [1, 1, 1, 1, 1]} : vector<3x4x2x8x32xf32> to vector<3x3x1x8x32xf32>
    %78 = vector.shape_cast %77 : vector<3x3x1x8x32xf32> to vector<3x3x8x32xf32>
    %79 = vector.extract_strided_slice %60 {offsets = [1, 0, 0, 0, 0], sizes = [3, 1, 8, 8, 32], strides = [1, 1, 1, 1, 1]} : vector<4x2x8x8x32xf32> to vector<3x1x8x8x32xf32>
    %80 = vector.shape_cast %79 : vector<3x1x8x8x32xf32> to vector<3x8x8x32xf32>
    %81 = vector.shape_cast %80 : vector<3x8x8x32xf32> to vector<3x4x2x8x32xf32>
    %82 = vector.extract_strided_slice %81 {offsets = [0, 0, 0, 0, 0], sizes = [3, 3, 1, 8, 32], strides = [1, 1, 1, 1, 1]} : vector<3x4x2x8x32xf32> to vector<3x3x1x8x32xf32>
    %83 = vector.shape_cast %82 : vector<3x3x1x8x32xf32> to vector<3x3x8x32xf32>
    %84 = vector.extract_strided_slice %81 {offsets = [0, 0, 1, 0, 0], sizes = [3, 3, 1, 8, 32], strides = [1, 1, 1, 1, 1]} : vector<3x4x2x8x32xf32> to vector<3x3x1x8x32xf32>
    %85 = vector.shape_cast %84 : vector<3x3x1x8x32xf32> to vector<3x3x8x32xf32>
    %86 = vector.extract_strided_slice %81 {offsets = [0, 1, 0, 0, 0], sizes = [3, 3, 1, 8, 32], strides = [1, 1, 1, 1, 1]} : vector<3x4x2x8x32xf32> to vector<3x3x1x8x32xf32>
    %87 = vector.shape_cast %86 : vector<3x3x1x8x32xf32> to vector<3x3x8x32xf32>
    %88 = tpu.concatenate %65, %67, %69, %74, %76, %78, %83, %85, %87 in 3 : vector<3x3x8x32xf32>, vector<3x3x8x32xf32>, vector<3x3x8x32xf32>, vector<3x3x8x32xf32>, vector<3x3x8x32xf32>, vector<3x3x8x32xf32>, vector<3x3x8x32xf32>, vector<3x3x8x32xf32>, vector<3x3x8x32xf32> -> vector<3x3x8x288xf32>
    %89 = vector.shape_cast %88 : vector<3x3x8x288xf32> to vector<72x288xf32>
    %c0_10 = arith.constant 0 : index
    %c0_11 = arith.constant 0 : index
    %90 = vector.load %arg4[%c0_10, %c0_11] : memref<288x64xf32, #tpu.memory_space<vmem>>, vector<288x64xf32>
    %cst_12 = arith.constant dense<0.000000e+00> : vector<72x64xf32>
    %91 = tpu.matmul %89, %90, %cst_12 {dimension_numbers = #tpu.dot_dimension_numbers<[1], [0], [0], [1], [0, 0, 1, 1], [], []>} : vector<72x288xf32>, vector<288x64xf32>, vector<72x64xf32> -> vector<72x64xf32>
    %c0_13 = arith.constant 0 : index
    %c0_14 = arith.constant 0 : index
    %92 = vector.load %arg5[%c0_13, %c0_14] : memref<1x64xf32, #tpu.memory_space<vmem>>, vector<1x64xf32>
    %93 = vector.broadcast %92 : vector<1x64xf32> to vector<72x64xf32>
    %94 = arith.addf %91, %93 : vector<72x64xf32>
    %cst_15 = arith.constant 0.000000e+00 : f32
    %95 = vector.broadcast %cst_15 : f32 to vector<72x64xf32>
    %96 = arith.maximumf %94, %95 : vector<72x64xf32>
    %97 = vector.shape_cast %96 : vector<72x64xf32> to vector<3x3x8x64xf32>
    %98 = vector.extract_strided_slice %97 {offsets = [0, 0, 0, 0], sizes = [2, 2, 8, 64], strides = [1, 1, 1, 1]} : vector<3x3x8x64xf32> to vector<2x2x8x64xf32>
    %99 = vector.extract_strided_slice %97 {offsets = [0, 1, 0, 0], sizes = [2, 2, 8, 64], strides = [1, 1, 1, 1]} : vector<3x3x8x64xf32> to vector<2x2x8x64xf32>
    %100 = vector.extract_strided_slice %97 {offsets = [1, 0, 0, 0], sizes = [2, 2, 8, 64], strides = [1, 1, 1, 1]} : vector<3x3x8x64xf32> to vector<2x2x8x64xf32>
    %101 = vector.extract_strided_slice %97 {offsets = [1, 1, 0, 0], sizes = [2, 2, 8, 64], strides = [1, 1, 1, 1]} : vector<3x3x8x64xf32> to vector<2x2x8x64xf32>
    %102 = tpu.concatenate %98, %99, %100, %101 in 3 : vector<2x2x8x64xf32>, vector<2x2x8x64xf32>, vector<2x2x8x64xf32>, vector<2x2x8x64xf32> -> vector<2x2x8x256xf32>
    %103 = vector.shape_cast %102 : vector<2x2x8x256xf32> to vector<32x256xf32>
    %c0_16 = arith.constant 0 : index
    %c0_17 = arith.constant 0 : index
    %104 = vector.load %arg6[%c0_16, %c0_17] : memref<256x64xf32, #tpu.memory_space<vmem>>, vector<256x64xf32>
    %cst_18 = arith.constant dense<0.000000e+00> : vector<32x64xf32>
    %105 = tpu.matmul %103, %104, %cst_18 {dimension_numbers = #tpu.dot_dimension_numbers<[1], [0], [0], [1], [0, 0, 1, 1], [], []>} : vector<32x256xf32>, vector<256x64xf32>, vector<32x64xf32> -> vector<32x64xf32>
    %c0_19 = arith.constant 0 : index
    %c0_20 = arith.constant 0 : index
    %106 = vector.load %arg7[%c0_19, %c0_20] : memref<1x64xf32, #tpu.memory_space<vmem>>, vector<1x64xf32>
    %107 = vector.broadcast %106 : vector<1x64xf32> to vector<32x64xf32>
    %108 = arith.addf %105, %107 : vector<32x64xf32>
    %cst_21 = arith.constant 0.000000e+00 : f32
    %109 = vector.broadcast %cst_21 : f32 to vector<32x64xf32>
    %110 = arith.maximumf %108, %109 : vector<32x64xf32>
    %cst_22 = arith.constant 0.000000e+00 : f32
    %111 = vector.broadcast %cst_22 : f32 to vector<8x512xf32>
    %c0_23 = arith.constant 0 : index
    %c0_24 = arith.constant 0 : index
    %112 = vector.load %arg9[%c0_23, %c0_24] : memref<1x512xf32, #tpu.memory_space<vmem>>, vector<1x512xf32>
    %113 = vector.broadcast %112 : vector<1x512xf32> to vector<8x512xf32>
    %114 = arith.addf %111, %113 : vector<8x512xf32>
    %115 = vector.extract_strided_slice %110 {offsets = [0, 0], sizes = [8, 64], strides = [1, 1]} : vector<32x64xf32> to vector<8x64xf32>
    %c0_25 = arith.constant 0 : index
    %c0_26 = arith.constant 0 : index
    %c0_27 = arith.constant 0 : index
    %116 = vector.load %arg8[%c0_25, %c0_26, %c0_27] : memref<4x64x512xf32, #tpu.memory_space<vmem>>, vector<1x64x512xf32>
    %117 = vector.shape_cast %116 : vector<1x64x512xf32> to vector<64x512xf32>
    %cst_28 = arith.constant dense<0.000000e+00> : vector<8x512xf32>
    %118 = tpu.matmul %115, %117, %cst_28 {dimension_numbers = #tpu.dot_dimension_numbers<[1], [0], [0], [1], [0, 0, 1, 1], [], []>} : vector<8x64xf32>, vector<64x512xf32>, vector<8x512xf32> -> vector<8x512xf32>
    %119 = arith.addf %114, %118 : vector<8x512xf32>
    %120 = vector.extract_strided_slice %110 {offsets = [8, 0], sizes = [8, 64], strides = [1, 1]} : vector<32x64xf32> to vector<8x64xf32>
    %c1 = arith.constant 1 : index
    %c0_29 = arith.constant 0 : index
    %c0_30 = arith.constant 0 : index
    %121 = vector.load %arg8[%c1, %c0_29, %c0_30] : memref<4x64x512xf32, #tpu.memory_space<vmem>>, vector<1x64x512xf32>
    %122 = vector.shape_cast %121 : vector<1x64x512xf32> to vector<64x512xf32>
    %cst_31 = arith.constant dense<0.000000e+00> : vector<8x512xf32>
    %123 = tpu.matmul %120, %122, %cst_31 {dimension_numbers = #tpu.dot_dimension_numbers<[1], [0], [0], [1], [0, 0, 1, 1], [], []>} : vector<8x64xf32>, vector<64x512xf32>, vector<8x512xf32> -> vector<8x512xf32>
    %124 = arith.addf %119, %123 : vector<8x512xf32>
    %125 = vector.extract_strided_slice %110 {offsets = [16, 0], sizes = [8, 64], strides = [1, 1]} : vector<32x64xf32> to vector<8x64xf32>
    %c2 = arith.constant 2 : index
    %c0_32 = arith.constant 0 : index
    %c0_33 = arith.constant 0 : index
    %126 = vector.load %arg8[%c2, %c0_32, %c0_33] : memref<4x64x512xf32, #tpu.memory_space<vmem>>, vector<1x64x512xf32>
    %127 = vector.shape_cast %126 : vector<1x64x512xf32> to vector<64x512xf32>
    %cst_34 = arith.constant dense<0.000000e+00> : vector<8x512xf32>
    %128 = tpu.matmul %125, %127, %cst_34 {dimension_numbers = #tpu.dot_dimension_numbers<[1], [0], [0], [1], [0, 0, 1, 1], [], []>} : vector<8x64xf32>, vector<64x512xf32>, vector<8x512xf32> -> vector<8x512xf32>
    %129 = arith.addf %124, %128 : vector<8x512xf32>
    %130 = vector.extract_strided_slice %110 {offsets = [24, 0], sizes = [8, 64], strides = [1, 1]} : vector<32x64xf32> to vector<8x64xf32>
    %c3 = arith.constant 3 : index
    %c0_35 = arith.constant 0 : index
    %c0_36 = arith.constant 0 : index
    %131 = vector.load %arg8[%c3, %c0_35, %c0_36] : memref<4x64x512xf32, #tpu.memory_space<vmem>>, vector<1x64x512xf32>
    %132 = vector.shape_cast %131 : vector<1x64x512xf32> to vector<64x512xf32>
    %cst_37 = arith.constant dense<0.000000e+00> : vector<8x512xf32>
    %133 = tpu.matmul %130, %132, %cst_37 {dimension_numbers = #tpu.dot_dimension_numbers<[1], [0], [0], [1], [0, 0, 1, 1], [], []>} : vector<8x64xf32>, vector<64x512xf32>, vector<8x512xf32> -> vector<8x512xf32>
    %134 = arith.addf %129, %133 : vector<8x512xf32>
    %cst_38 = arith.constant 0.000000e+00 : f32
    %135 = vector.broadcast %cst_38 : f32 to vector<8x512xf32>
    %136 = arith.maximumf %134, %135 : vector<8x512xf32>
    %c0_39 = arith.constant 0 : index
    %c0_40 = arith.constant 0 : index
    %137 = vector.load %arg10[%c0_39, %c0_40] : memref<512x128xf32, #tpu.memory_space<vmem>>, vector<512x128xf32>
    %cst_41 = arith.constant dense<0.000000e+00> : vector<8x128xf32>
    %138 = tpu.matmul %136, %137, %cst_41 {dimension_numbers = #tpu.dot_dimension_numbers<[1], [0], [0], [1], [0, 0, 1, 1], [], []>} : vector<8x512xf32>, vector<512x128xf32>, vector<8x128xf32> -> vector<8x128xf32>
    %c0_42 = arith.constant 0 : index
    %c0_43 = arith.constant 0 : index
    %139 = vector.load %arg11[%c0_42, %c0_43] : memref<1x128xf32, #tpu.memory_space<vmem>>, vector<1x128xf32>
    %140 = vector.broadcast %139 : vector<1x128xf32> to vector<8x128xf32>
    %141 = arith.addf %138, %140 : vector<8x128xf32>
    %c0_44 = arith.constant 0 : index
    %c0_45 = arith.constant 0 : index
    %142 = vector.load %arg12[%c0_44, %c0_45] : memref<8x128xf32, #tpu.memory_space<vmem>>, vector<8x128xf32>
    tpu.vector_store %arg12[%c0_44, %c0_45], %141 {strides = array<i32>} : memref<8x128xf32, #tpu.memory_space<vmem>>, vector<8x128xf32>,
    return
  }
  func.func @transform_0(%arg0: i32) -> (i32, i32, i32, i32) {
    %c0_i32 = arith.constant 0 : i32
    %c0_i32_0 = arith.constant 0 : i32
    %c0_i32_1 = arith.constant 0 : i32
    %c0_i32_2 = arith.constant 0 : i32
    return %c0_i32, %c0_i32_0, %arg0, %c0_i32_1 : i32, i32, i32, i32
  }
  func.func @transform_1(%arg0: i32) -> (i32, i32) {
    %c0_i32 = arith.constant 0 : i32
    %c0_i32_0 = arith.constant 0 : i32
    %c0_i32_1 = arith.constant 0 : i32
    return %c0_i32, %c0_i32_0 : i32, i32
  }
  func.func @transform_2(%arg0: i32) -> (i32, i32) {
    %c0_i32 = arith.constant 0 : i32
    %c0_i32_0 = arith.constant 0 : i32
    %c0_i32_1 = arith.constant 0 : i32
    return %c0_i32, %c0_i32_0 : i32, i32
  }
  func.func @transform_3(%arg0: i32) -> (i32, i32) {
    %c0_i32 = arith.constant 0 : i32
    %c0_i32_0 = arith.constant 0 : i32
    %c0_i32_1 = arith.constant 0 : i32
    return %c0_i32, %c0_i32_0 : i32, i32
  }
  func.func @transform_4(%arg0: i32) -> (i32, i32) {
    %c0_i32 = arith.constant 0 : i32
    %c0_i32_0 = arith.constant 0 : i32
    %c0_i32_1 = arith.constant 0 : i32
    return %c0_i32, %c0_i32_0 : i32, i32
  }
  func.func @transform_5(%arg0: i32) -> (i32, i32) {
    %c0_i32 = arith.constant 0 : i32
    %c0_i32_0 = arith.constant 0 : i32
    %c0_i32_1 = arith.constant 0 : i32
    return %c0_i32, %c0_i32_0 : i32, i32
  }
  func.func @transform_6(%arg0: i32) -> (i32, i32) {
    %c0_i32 = arith.constant 0 : i32
    %c0_i32_0 = arith.constant 0 : i32
    %c0_i32_1 = arith.constant 0 : i32
    return %c0_i32, %c0_i32_0 : i32, i32
  }
  func.func @transform_7(%arg0: i32) -> (i32, i32, i32) {
    %c0_i32 = arith.constant 0 : i32
    %c0_i32_0 = arith.constant 0 : i32
    %c0_i32_1 = arith.constant 0 : i32
    %c0_i32_2 = arith.constant 0 : i32
    return %c0_i32, %c0_i32_0, %c0_i32_1 : i32, i32, i32
  }
  func.func @transform_8(%arg0: i32) -> (i32, i32) {
    %c0_i32 = arith.constant 0 : i32
    %c0_i32_0 = arith.constant 0 : i32
    %c0_i32_1 = arith.constant 0 : i32
    return %c0_i32, %c0_i32_0 : i32, i32
  }
  func.func @transform_9(%arg0: i32) -> (i32, i32) {
    %c0_i32 = arith.constant 0 : i32
    %c0_i32_0 = arith.constant 0 : i32
    %c0_i32_1 = arith.constant 0 : i32
    return %c0_i32, %c0_i32_0 : i32, i32
  }
  func.func @transform_10(%arg0: i32) -> (i32, i32) {
    %c0_i32 = arith.constant 0 : i32
    %c0_i32_0 = arith.constant 0 : i32
    %c0_i32_1 = arith.constant 0 : i32
    return %c0_i32, %c0_i32_0 : i32, i32
  }
  func.func @transform_11(%arg0: i32) -> (i32, i32) {
    %c0_i32 = arith.constant 0 : i32
    %c0_i32_0 = arith.constant 0 : i32
    return %arg0, %c0_i32 : i32, i32
  }
}

</mosaic_0001>

<bundles_post_ra>
// kernel: dqn_forward.1
= control target key start
LH: loop header
LB: loop body
LE: loop exit
PB: predicated region body
PF: predicated region fallthrough
CT: control target
= control target key end

     0   :  { %s5684_s23 = smov 4   ;;  %s5685_s30 = smov 8   ;;  %vm2754_vm0 = vcmask 31744   ;;  %vm2854_vm1 = vcmask 97280   ;;  %vm2804_vm2 = vcmask 64512   ;;  %vm2904_vm3 = vcmask 130048   ;;  %s12507_s0 = inlined_call_operand.vmem [shape: f32[16,16,8,4], index: 0, kind: input, shape index: {}]   ;;  %s12508_s1 = inlined_call_operand.vmem [shape: f32[64,32], index: 1, kind: input, shape index: {}]   ;;  %s12509_s2 = inlined_call_operand.vmem [shape: f32[1,32], index: 2, kind: input, shape index: {}]   ;;  %s12510_s3 = inlined_call_operand.vmem [shape: f32[288,64], index: 3, kind: input, shape index: {}]   ;;  %s12511_s4 = inlined_call_operand.vmem [shape: f32[1,64], index: 4, kind: input, shape index: {}]   ;;  %s12512_s5 = inlined_call_operand.vmem [shape: f32[256,64], index: 5, kind: input, shape index: {}]   ;;  %s12513_s6 = inlined_call_operand.vmem [shape: f32[1,64], index: 6, kind: input, shape index: {}]   ;;  %s12514_s7 = inlined_call_operand.vmem [shape: f32[4,64,512], index: 7, kind: input, shape index: {}]   ;;  %s12515_s10 = inlined_call_operand.vmem [shape: f32[1,128], index: 10, kind: input, shape index: {}]   ;;  %s12516_s9 = inlined_call_operand.vmem [shape: f32[512,128], index: 9, kind: input, shape index: {}]   ;;  %s12517_s8 = inlined_call_operand.vmem [shape: f32[1,512], index: 8, kind: input, shape index: {}]   ;;  %s12518_s11 = inlined_call_operand.vmem [shape: f32[8,128], index: 11, kind: output, shape index: {}]  }
   0x1   :  { %v5764_v0 = vld [vmem:[%s12507_s0 + $0x48] sm:$0xff]  ;;  %v5782_v3 = vld [vmem:[%s12507_s0 + $0x58] sm:$0xff]  ;;  %v42_v58 = vld [vmem:[%s12507_s0 + $0x20] sm:$0xff]  ;;  %s5686_s16 = smov 12   ;;  %s5688_s24 = smov 20   ;;  %vm3004_vm4 = vcmask 195584  }
   0x2   :  { %v5769_v1 = vld [vmem:[%s12507_s0 + $0x28] sm:$0xff]  ;;  %351 = vrot.lane.b32.xlu2 %v5764_v0, %s5684_s23  ;;  %v5787_v4 = vld [vmem:[%s12507_s0 + $0x38] sm:$0xff]  ;;  %v40_v59 = vld [vmem:[%s12507_s0 + $0x10] sm:$0xff]  ;;  %s5689_s29 = smov 24   ;;  %s5690_s25 = smov 28   ;;  %vm2954_vm5 = vcmask 162816  }
   0x3   :  { %v39_v2 = vld [vmem:[%s12507_s0 + $0x8] sm:$0xff]  ;;  %347 = vrot.lane.b32.xlu1 %v5769_v1, %s5684_s23  ;;  %v5792_v5 = vld [vmem:[%s12507_s0 + $0x18] sm:$0xff]  ;;  %v46_v63 = vld [vmem:[%s12507_s0 + $0x40] sm:$0xff]  ;;  %s5691_s26 = smov 32   ;;  %s5693_s17 = smov 44   ;;  %vm3054_vm6 = vcmask 228352  }
   0x4   :  { %343 = vrot.lane.b32.xlu0 %v39_v2, %s5684_s23  ;;  %v5803_v6 = vld [vmem:[%s12507_s0 + $0x118] sm:$0xff]  ;;  %v71_v7 = vld [vmem:[%s12507_s0 + $0x108] sm:$0xff]  ;;  %v48_v2 = vld [vmem:[%s12507_s0 + $0x50] sm:$0xff]  ;;  %s5695_s22 = smov 56   ;;  %s5697_s12 = smov 48   ;;  %vm3154_vm7 = vcmask 293888  }
   0x5   :  { %v5811_v8 = vld [vmem:[%s12507_s0 + $0x68] sm:$0xff]  ;;  %v5826_v10 = vld [vmem:[%s12507_s0 + $0x138] sm:$0xff]  ;;  %s5698_s15 = smov 60   ;;  %vm3104_vm8 = vcmask 261120   ;;  %vm3204_vm9 = vcmask 326656   ;;  %vm3254_vm10 = vcmask 359424  }
   0x6   :  { %v5821_v9 = vld [vmem:[%s12507_s0 + $0x148] sm:$0xff]  ;;  %v5850_v14 = vld [vmem:[%s12507_s0 + $0x158] sm:$0xff]  ;;  %vm3304_vm11 = vcmask 392192   ;;  %vm3354_vm12 = vcmask 424960   ;;  %vm3404_vm13 = vcmask 457728   ;;  %vm3454_vm14 = vcmask 490496  }
   0x7   :  { %v5831_v11 = vld [vmem:[%s12507_s0 + $0x128] sm:$0xff]  ;;  %v5860_v15 = vld [vmem:[%s12507_s0 + $0x238] sm:$0xff]  ;;  %vm3516_vm15 = vcmask 523264  }
   0x8   :  { %v103_v12 = vld [vmem:[%s12507_s0 + $0x208] sm:$0xff]  ;;  %v5870_v17 = vld [vmem:[%s12507_s0 + $0x218] sm:$0xff] }
   0x9   :  { %v5845_v13 = vld [vmem:[%s12507_s0 + $0x168] sm:$0xff]  ;;  %v5886_v19 = vld [vmem:[%s12507_s0 + $0x258] sm:$0xff] }
   0xa   :  { %353 = vrot.lane.b32.xlu2 %v5782_v3, %s5684_s23  ;;  %v5865_v16 = vld [vmem:[%s12507_s0 + $0x228] sm:$0xff]  ;;  %v5907_v22 = vld [vmem:[%s12507_s0 + $0x318] sm:$0xff] }
   0xb   :  { %349 = vrot.lane.b32.xlu1 %v5787_v4, %s5684_s23  ;;  %v5881_v18 = vld [vmem:[%s12507_s0 + $0x268] sm:$0xff]  ;;  %v5920_v24 = vld [vmem:[%s12507_s0 + $0x358] sm:$0xff] }
   0xc   :  { %345 = vrot.lane.b32.xlu0 %v5792_v5, %s5684_s23  ;;  %v5891_v20 = vld [vmem:[%s12507_s0 + $0x248] sm:$0xff]  ;;  %v5930_v26 = vld [vmem:[%s12507_s0 + $0x338] sm:$0xff] }
   0xd   :  { %v5902_v21 = vld [vmem:[%s12507_s0 + $0x328] sm:$0xff]  ;;  %v5941_v27 = vld [vmem:[%s12507_s0 + $0x418] sm:$0xff] }
   0xe   :  { %v135_v23 = vld [vmem:[%s12507_s0 + $0x308] sm:$0xff]  ;;  %v5964_v31 = vld [vmem:[%s12507_s0 + $0x438] sm:$0xff] }
   0xf   :  { %v5925_v25 = vld [vmem:[%s12507_s0 + $0x348] sm:$0xff]  ;;  %v5988_v35 = vld [vmem:[%s12507_s0 + $0x458] sm:$0xff] }
  0x10   :  { %v167_v28 = vld [vmem:[%s12507_s0 + $0x408] sm:$0xff]  ;;  %v6000_v37 = vld [vmem:[%s12507_s0 + $0x538] sm:$0xff] }
  0x11   :  { %v5949_v29 = vld [vmem:[%s12507_s0 + $0x368] sm:$0xff]  ;;  %v6010_v39 = vld [vmem:[%s12507_s0 + $0x518] sm:$0xff] }
  0x12   :  { %359 = vrot.lane.b32.xlu2 %v5803_v6, %s5684_s23  ;;  %v5959_v30 = vld [vmem:[%s12507_s0 + $0x448] sm:$0xff]  ;;  %v6028_v42 = vld [vmem:[%s12507_s0 + $0x558] sm:$0xff] }
  0x13   :  { %357 = vrot.lane.b32.xlu1 %v71_v7, %s5684_s23  ;;  %v5969_v32 = vld [vmem:[%s12507_s0 + $0x428] sm:$0xff]  ;;  %v6051_v46 = vld [vmem:[%s12507_s0 + $0x618] sm:$0xff]  ;;  %v44_v7 = vld [vmem:[%s12507_s0 + $0x30] sm:$0xff] }
  0x14   :  { %355 = vrot.lane.b32.xlu0 %v5811_v8, %s5684_s23  ;;  %v199_v33 = vld [vmem:[%s12507_s0 + $0x508] sm:$0xff]  ;;  %v6070_v51 = vld [vmem:[%s12507_s0 + $0x658] sm:$0xff] }
  0x15   :  { %v5983_v34 = vld [vmem:[%s12507_s0 + $0x468] sm:$0xff]  ;;  %v6080_v53 = vld [vmem:[%s12507_s0 + $0x638] sm:$0xff] }
  0x16   :  { %v6005_v38 = vld [vmem:[%s12507_s0 + $0x528] sm:$0xff] }
  0x17   :  { %v6023_v41 = vld [vmem:[%s12507_s0 + $0x568] sm:$0xff] }
  0x18   :  { %v6033_v43 = vld [vmem:[%s12507_s0 + $0x548] sm:$0xff] }
  0x19   :  { %v6046_v45 = vld [vmem:[%s12507_s0 + $0x628] sm:$0xff] }
  0x1a   :  { %365 = vrot.lane.b32.xlu2 %v5821_v9, %s5684_s23  ;;  %v231_v47 = vld [vmem:[%s12507_s0 + $0x608] sm:$0xff] }
  0x1b   :  { %363 = vrot.lane.b32.xlu1 %v5826_v10, %s5684_s23  ;;  %v6075_v52 = vld [vmem:[%s12507_s0 + $0x648] sm:$0xff] }
  0x1c   :  { %361 = vrot.lane.b32.xlu0 %v5831_v11, %s5684_s23  ;;  %v6097_v57 = vld [vmem:[%s12507_s0 + $0x668] sm:$0xff] }
  0x22   :  { %371 = vrot.lane.b32.xlu2 %v103_v12, %s5684_s23 }
  0x23   :  { %369 = vrot.lane.b32.xlu1 %v5845_v13, %s5684_s23 }
  0x24   :  { %367 = vrot.lane.b32.xlu0 %v5850_v14, %s5684_s23 }
  0x2a   :  { %377 = vrot.lane.b32.xlu2 %v5860_v15, %s5684_s23 }
  0x2b   :  { %375 = vrot.lane.b32.xlu1 %v5865_v16, %s5684_s23 }
  0x2c   :  { %373 = vrot.lane.b32.xlu0 %v5870_v17, %s5684_s23 }
  0x32   :  { %383 = vrot.lane.b32.xlu2 %v5881_v18, %s5684_s23 }
  0x33   :  { %381 = vrot.lane.b32.xlu1 %v5886_v19, %s5684_s23 }
  0x34   :  { %379 = vrot.lane.b32.xlu0 %v5891_v20, %s5684_s23 }
  0x3a   :  { %389 = vrot.lane.b32.xlu2 %v5902_v21, %s5684_s23 }
  0x3b   :  { %387 = vrot.lane.b32.xlu1 %v5907_v22, %s5684_s23 }
  0x3c   :  { %385 = vrot.lane.b32.xlu0 %v135_v23, %s5684_s23 }
  0x42   :  { %395 = vrot.lane.b32.xlu2 %v5920_v24, %s5684_s23 }
  0x43   :  { %393 = vrot.lane.b32.xlu1 %v5925_v25, %s5684_s23 }
  0x44   :  { %391 = vrot.lane.b32.xlu0 %v5930_v26, %s5684_s23 }
  0x4a   :  { %401 = vrot.lane.b32.xlu2 %v5941_v27, %s5684_s23 }
  0x4b   :  { %399 = vrot.lane.b32.xlu1 %v167_v28, %s5684_s23 }
  0x4c   :  { %397 = vrot.lane.b32.xlu0 %v5949_v29, %s5684_s23 }
  0x52   :  { %407 = vrot.lane.b32.xlu2 %v5959_v30, %s5684_s23 }
  0x53   :  { %405 = vrot.lane.b32.xlu1 %v5964_v31, %s5684_s23 }
  0x54   :  { %403 = vrot.lane.b32.xlu0 %v5969_v32, %s5684_s23 }
  0x5a   :  { %413 = vrot.lane.b32.xlu2 %v199_v33, %s5684_s23  ;;  %v52_v33 = vld [vmem:[%s12507_s0 + $0x70] sm:$0xff] }
  0x5b   :  { %411 = vrot.lane.b32.xlu1 %v5983_v34, %s5684_s23 }
  0x5c   :  { %409 = vrot.lane.b32.xlu0 %v5988_v35, %s5684_s23  ;;  %v5995_v36 = vpop.permute.xlu2 %351 }
  0x5d   :  { %12553 = vst [vmem:[#allocation2_spill] sm:$0xff] %v5995_v36  ;;  %v7045_v36 = vld [vmem:[%s12507_s0 + $0xc8] sm:$0xff] }
  0x62   :  { %419 = vrot.lane.b32.xlu2 %v6000_v37, %s5684_s23 }
  0x63   :  { %417 = vrot.lane.b32.xlu1 %v6005_v38, %s5684_s23 }
  0x64   :  { %415 = vrot.lane.b32.xlu0 %v6010_v39, %s5684_s23  ;;  %v6018_v40 = vpop.permute.xlu2 %353 }
  0x65   :  { %12554 = vst [vmem:[#allocation3_spill] sm:$0xff] %v6018_v40  ;;  %v55_v40 = vld [vmem:[%s12507_s0 + $0x88] sm:$0xff] }
  0x6a   :  { %425 = vrot.lane.b32.xlu2 %v6023_v41, %s5684_s23 }
  0x6b   :  { %423 = vrot.lane.b32.xlu1 %v6028_v42, %s5684_s23 }
  0x6c   :  { %421 = vrot.lane.b32.xlu0 %v6033_v43, %s5684_s23  ;;  %v6041_v44 = vpop.permute.xlu2 %359 }
  0x6d   :  { %12555 = vst [vmem:[#allocation4_spill] sm:$0xff] %v6041_v44  ;;  %v6953_v44 = vld [vmem:[%s12507_s0 + $0x5c0] sm:$0xff] }
  0x72   :  { %431 = vrot.lane.b32.xlu2 %v6046_v45, %s5684_s23 }
  0x73   :  { %429 = vrot.lane.b32.xlu1 %v6051_v46, %s5684_s23 }
  0x74   :  { %427 = vrot.lane.b32.xlu0 %v231_v47, %s5684_s23  ;;  %v6061_v48 = vpop.permute.xlu2 %365  ;;  %v72_v47 = vld [vmem:[%s12507_s0 + $0x110] sm:$0xff] }
  0x75   :  { %12556 = vst [vmem:[#allocation5_spill] sm:$0xff] %v6061_v48  ;;  %v6063_v49 = vpop.permute.xlu1 %347  ;;  %v238_v48 = vld [vmem:[%s12507_s0 + $0x640] sm:$0xff] }
  0x76   :  { %12557 = vst [vmem:[#allocation6_spill] sm:$0xff] %v6063_v49  ;;  %v6065_v50 = vpop.permute.xlu0 %343  ;;  %v7128_v49 = vld [vmem:[%s12507_s0 + $0x1d8] sm:$0xff] }
  0x77   :  { %12558 = vst [vmem:[#allocation7_spill] sm:$0xff] %v6065_v50  ;;  %v151_v50 = vld [vmem:[%s12507_s0 + $0x388] sm:$0xff] }
  0x7a   :  { %437 = vrot.lane.b32.xlu2 %v6070_v51, %s5684_s23 }
  0x7b   :  { %435 = vrot.lane.b32.xlu1 %v6075_v52, %s5684_s23 }
  0x7c   :  { %433 = vrot.lane.b32.xlu0 %v6080_v53, %s5684_s23  ;;  %v6088_v54 = vpop.permute.xlu2 %371 }
  0x7d   :  { %12559 = vst [vmem:[#allocation8_spill] sm:$0xff] %v6088_v54  ;;  %v6090_v55 = vpop.permute.xlu1 %349  ;;  %v82_v54 = vld [vmem:[%s12507_s0 + $0x160] sm:$0xff] }
  0x7e   :  { %12560 = vst [vmem:[#allocation9_spill] sm:$0xff] %v6090_v55  ;;  %v6092_v56 = vpop.permute.xlu0 %345  ;;  %v7080_v55 = vld [vmem:[%s12507_s0 + $0xd8] sm:$0xff] }
  0x7f   :  { %12561 = vst [vmem:[#allocation10_spill] sm:$0xff] %v6092_v56  ;;  %v119_v56 = vld [vmem:[%s12507_s0 + $0x288] sm:$0xff] }
  0x82   :  { %541 = vrot.lane.b32.xlu2 %v42_v58, %s5685_s30  ;;  %v50_v58 = vld [vmem:[%s12507_s0 + $0x60] sm:$0xff] }
  0x83   :  { %539 = vrot.lane.b32.xlu1 %v40_v59, %s5685_s30 }
  0x84   :  { %439 = vrot.lane.b32.xlu0 %v6097_v57, %s5684_s23  ;;  %v6109_v60 = vpop.permute.xlu2 %377  ;;  %s5694_s23 = smov 40  }
  0x85   :  { %12562 = vst [vmem:[#allocation11_spill] sm:$0xff] %v6109_v60  ;;  %v6111_v61 = vpop.permute.xlu1 %357  ;;  %v84_v60 = vld [vmem:[%s12507_s0 + $0x170] sm:$0xff] }
  0x86   :  { %12563 = vst [vmem:[#allocation12_spill] sm:$0xff] %v6111_v61  ;;  %v6113_v62 = vpop.permute.xlu0 %355  ;;  %v6975_v61 = vld [vmem:[%s12507_s0 + $0x690] sm:$0xff] }
  0x87   :  { %12564 = vst [vmem:[#allocation13_spill] sm:$0xff] %v6113_v62  ;;  %v6999_v62 = vld [vmem:[%s12507_s0 + $0x6c0] sm:$0xff] }
  0x8a   :  { %547 = vrot.lane.b32.xlu2 %v48_v2, %s5685_s30 }
  0x8b   :  { %545 = vrot.lane.b32.xlu1 %v46_v63, %s5685_s30 }
  0x8c   :  { %543 = vrot.lane.b32.xlu0 %v44_v7, %s5685_s30  ;;  %v6127_v12 = vpop.permute.xlu2 %383  ;;  %v78_v7 = vld [vmem:[%s12507_s0 + $0x140] sm:$0xff] }
  0x8d   :  { %12565 = vst [vmem:[#allocation14_spill] sm:$0xff] %v6127_v12  ;;  %v6129_v23 = vpop.permute.xlu1 %363  ;;  %v76_v12 = vld [vmem:[%s12507_s0 + $0x130] sm:$0xff] }
  0x8e   :  { %12566 = vst [vmem:[#allocation15_spill] sm:$0xff] %v6129_v23  ;;  %v6131_v28 = vpop.permute.xlu0 %361  ;;  %v242_v23 = vld [vmem:[%s12507_s0 + $0x660] sm:$0xff] }
  0x8f   :  { %12567 = vst [vmem:[#allocation16_spill] sm:$0xff] %v6131_v28 }
  0x92   :  { %553 = vrot.lane.b32.xlu2 %v72_v47, %s5685_s30 }
  0x93   :  { %551 = vrot.lane.b32.xlu1 %v52_v33, %s5685_s30  ;;  %v74_v33 = vld [vmem:[%s12507_s0 + $0x120] sm:$0xff] }
  0x94   :  { %549 = vrot.lane.b32.xlu0 %v50_v58, %s5685_s30  ;;  %v6145_v59 = vpop.permute.xlu2 %389 }
  0x95   :  { %12568 = vst [vmem:[#allocation17_spill] sm:$0xff] %v6145_v59  ;;  %v6147_v63 = vpop.permute.xlu1 %369 }
  0x96   :  { %12569 = vst [vmem:[#allocation18_spill] sm:$0xff] %v6147_v63  ;;  %v6149_v2 = vpop.permute.xlu0 %367  ;;  %v208_v63 = vld [vmem:[%s12507_s0 + $0x550] sm:$0xff] }
  0x97   :  { %12570 = vst [vmem:[#allocation19_spill] sm:$0xff] %v6149_v2  ;;  %v234_v2 = vld [vmem:[%s12507_s0 + $0x620] sm:$0xff] }
  0x9a   :  { %559 = vrot.lane.b32.xlu2 %v78_v7, %s5685_s30 }
  0x9b   :  { %557 = vrot.lane.b32.xlu1 %v76_v12, %s5685_s30  ;;  %v80_v12 = vld [vmem:[%s12507_s0 + $0x150] sm:$0xff] }
  0x9c   :  { %555 = vrot.lane.b32.xlu0 %v74_v33, %s5685_s30  ;;  %v6163_v47 = vpop.permute.xlu2 %395 }
  0x9d   :  { %12571 = vst [vmem:[#allocation20_spill] sm:$0xff] %v6163_v47  ;;  %v6165_v58 = vpop.permute.xlu1 %375 }
  0x9e   :  { %12572 = vst [vmem:[#allocation21_spill] sm:$0xff] %v6165_v58  ;;  %v6167_v59 = vpop.permute.xlu0 %373  ;;  %v108_v58 = vld [vmem:[%s12507_s0 + $0x230] sm:$0xff] }
  0x9f   :  { %12573 = vst [vmem:[#allocation22_spill] sm:$0xff] %v6167_v59  ;;  %v106_v59 = vld [vmem:[%s12507_s0 + $0x220] sm:$0xff] }
  0xa2   :  { %565 = vrot.lane.b32.xlu2 %v84_v60, %s5685_s30 }
  0xa3   :  { %563 = vrot.lane.b32.xlu1 %v82_v54, %s5685_s30  ;;  %v104_v54 = vld [vmem:[%s12507_s0 + $0x210] sm:$0xff] }
  0xa4   :  { %561 = vrot.lane.b32.xlu0 %v80_v12, %s5685_s30  ;;  %v6181_v7 = vpop.permute.xlu2 %401 }
  0xa5   :  { %12574 = vst [vmem:[#allocation23_spill] sm:$0xff] %v6181_v7  ;;  %v6183_v33 = vpop.permute.xlu1 %381 }
  0xa6   :  { %12575 = vst [vmem:[#allocation24_spill] sm:$0xff] %v6183_v33  ;;  %v6185_v47 = vpop.permute.xlu0 %379  ;;  %v114_v33 = vld [vmem:[%s12507_s0 + $0x260] sm:$0xff] }
  0xa7   :  { %12576 = vst [vmem:[#allocation25_spill] sm:$0xff] %v6185_v47  ;;  %v112_v47 = vld [vmem:[%s12507_s0 + $0x250] sm:$0xff] }
  0xaa   :  { %571 = vrot.lane.b32.xlu2 %v108_v58, %s5685_s30 }
  0xab   :  { %569 = vrot.lane.b32.xlu1 %v106_v59, %s5685_s30  ;;  %v110_v59 = vld [vmem:[%s12507_s0 + $0x240] sm:$0xff] }
  0xac   :  { %567 = vrot.lane.b32.xlu0 %v104_v54, %s5685_s30  ;;  %v6199_v60 = vpop.permute.xlu2 %407 }
  0xad   :  { %12577 = vst [vmem:[#allocation26_spill] sm:$0xff] %v6199_v60  ;;  %v6201_v12 = vpop.permute.xlu1 %387 }
  0xae   :  { %12578 = vst [vmem:[#allocation27_spill] sm:$0xff] %v6201_v12  ;;  %v6203_v7 = vpop.permute.xlu0 %385  ;;  %v116_v12 = vld [vmem:[%s12507_s0 + $0x270] sm:$0xff] }
  0xaf   :  { %12579 = vst [vmem:[#allocation28_spill] sm:$0xff] %v6203_v7  ;;  %v138_v7 = vld [vmem:[%s12507_s0 + $0x320] sm:$0xff] }
  0xb2   :  { %577 = vrot.lane.b32.xlu2 %v114_v33, %s5685_s30 }
  0xb3   :  { %575 = vrot.lane.b32.xlu1 %v112_v47, %s5685_s30  ;;  %v136_v47 = vld [vmem:[%s12507_s0 + $0x310] sm:$0xff] }
  0xb4   :  { %573 = vrot.lane.b32.xlu0 %v110_v59, %s5685_s30  ;;  %v6217_v58 = vpop.permute.xlu2 %413 }
  0xb5   :  { %12580 = vst [vmem:[#allocation29_spill] sm:$0xff] %v6217_v58  ;;  %v6219_v54 = vpop.permute.xlu1 %393 }
  0xb6   :  { %12581 = vst [vmem:[#allocation30_spill] sm:$0xff] %v6219_v54  ;;  %v6221_v60 = vpop.permute.xlu0 %391  ;;  %v144_v54 = vld [vmem:[%s12507_s0 + $0x350] sm:$0xff] }
  0xb7   :  { %12582 = vst [vmem:[#allocation31_spill] sm:$0xff] %v6221_v60  ;;  %v142_v60 = vld [vmem:[%s12507_s0 + $0x340] sm:$0xff] }
  0xba   :  { %583 = vrot.lane.b32.xlu2 %v138_v7, %s5685_s30  ;;  %v140_v7 = vld [vmem:[%s12507_s0 + $0x330] sm:$0xff] }
  0xbb   :  { %581 = vrot.lane.b32.xlu1 %v136_v47, %s5685_s30 }
  0xbc   :  { %579 = vrot.lane.b32.xlu0 %v116_v12, %s5685_s30  ;;  %v6235_v33 = vpop.permute.xlu2 %419 }
  0xbd   :  { %12583 = vst [vmem:[#allocation32_spill] sm:$0xff] %v6235_v33  ;;  %v6237_v59 = vpop.permute.xlu1 %399 }
  0xbe   :  { %12584 = vst [vmem:[#allocation33_spill] sm:$0xff] %v6237_v59  ;;  %v6239_v58 = vpop.permute.xlu0 %397  ;;  %v148_v59 = vld [vmem:[%s12507_s0 + $0x370] sm:$0xff] }
  0xbf   :  { %12585 = vst [vmem:[#allocation34_spill] sm:$0xff] %v6239_v58  ;;  %v168_v58 = vld [vmem:[%s12507_s0 + $0x410] sm:$0xff] }
  0xc2   :  { %589 = vrot.lane.b32.xlu2 %v144_v54, %s5685_s30 }
  0xc3   :  { %587 = vrot.lane.b32.xlu1 %v142_v60, %s5685_s30  ;;  %v146_v60 = vld [vmem:[%s12507_s0 + $0x360] sm:$0xff] }
  0xc4   :  { %585 = vrot.lane.b32.xlu0 %v140_v7, %s5685_s30  ;;  %v6253_v12 = vpop.permute.xlu2 %425 }
  0xc5   :  { %12586 = vst [vmem:[#allocation35_spill] sm:$0xff] %v6253_v12  ;;  %v6255_v47 = vpop.permute.xlu1 %405 }
  0xc6   :  { %12587 = vst [vmem:[#allocation36_spill] sm:$0xff] %v6255_v47  ;;  %v6257_v33 = vpop.permute.xlu0 %403  ;;  %v174_v47 = vld [vmem:[%s12507_s0 + $0x440] sm:$0xff] }
  0xc7   :  { %12588 = vst [vmem:[#allocation37_spill] sm:$0xff] %v6257_v33  ;;  %v172_v33 = vld [vmem:[%s12507_s0 + $0x430] sm:$0xff] }
  0xca   :  { %595 = vrot.lane.b32.xlu2 %v168_v58, %s5685_s30  ;;  %v170_v58 = vld [vmem:[%s12507_s0 + $0x420] sm:$0xff] }
  0xcb   :  { %593 = vrot.lane.b32.xlu1 %v148_v59, %s5685_s30 }
  0xcc   :  { %591 = vrot.lane.b32.xlu0 %v146_v60, %s5685_s30  ;;  %v6271_v54 = vpop.permute.xlu2 %431 }
  0xcd   :  { %12589 = vst [vmem:[#allocation38_spill] sm:$0xff] %v6271_v54  ;;  %v6273_v7 = vpop.permute.xlu1 %411 }
  0xce   :  { %12590 = vst [vmem:[#allocation39_spill] sm:$0xff] %v6273_v7  ;;  %v6275_v12 = vpop.permute.xlu0 %409  ;;  %v180_v7 = vld [vmem:[%s12507_s0 + $0x470] sm:$0xff] }
  0xcf   :  { %12591 = vst [vmem:[#allocation40_spill] sm:$0xff] %v6275_v12  ;;  %v178_v12 = vld [vmem:[%s12507_s0 + $0x460] sm:$0xff] }
  0xd2   :  { %601 = vrot.lane.b32.xlu2 %v174_v47, %s5685_s30 }
  0xd3   :  { %599 = vrot.lane.b32.xlu1 %v172_v33, %s5685_s30  ;;  %v176_v33 = vld [vmem:[%s12507_s0 + $0x450] sm:$0xff] }
  0xd4   :  { %597 = vrot.lane.b32.xlu0 %v170_v58, %s5685_s30  ;;  %v6289_v59 = vpop.permute.xlu2 %437 }
  0xd5   :  { %12592 = vst [vmem:[#allocation41_spill] sm:$0xff] %v6289_v59  ;;  %v6291_v60 = vpop.permute.xlu1 %417 }
  0xd6   :  { %12593 = vst [vmem:[#allocation42_spill] sm:$0xff] %v6291_v60  ;;  %v6293_v54 = vpop.permute.xlu0 %415  ;;  %v204_v60 = vld [vmem:[%s12507_s0 + $0x530] sm:$0xff] }
  0xd7   :  { %12594 = vst [vmem:[#allocation43_spill] sm:$0xff] %v6293_v54  ;;  %v202_v54 = vld [vmem:[%s12507_s0 + $0x520] sm:$0xff] }
  0xda   :  { %607 = vrot.lane.b32.xlu2 %v180_v7, %s5685_s30 }
  0xdb   :  { %605 = vrot.lane.b32.xlu1 %v178_v12, %s5685_s30  ;;  %v200_v12 = vld [vmem:[%s12507_s0 + $0x510] sm:$0xff] }
  0xdc   :  { %603 = vrot.lane.b32.xlu0 %v176_v33, %s5685_s30  ;;  %v6309_v58 = vpop.permute.xlu2 %541 }
  0xdd   :  { %v6307_v47 = vpop.permute.xlu1 %423  ;;  %12596 = vst [vmem:[#allocation45_spill] sm:$0xff] %v6309_v58  ;;  %v7155_v58 = vld [vmem:[%s12507_s0 + $0x298] sm:$0xff] }
  0xde   :  { %12595 = vst [vmem:[#allocation44_spill] sm:$0xff] %v6307_v47  ;;  %v6311_v59 = vpop.permute.xlu0 %421 }
  0xdf   :  { %12597 = vst [vmem:[#allocation46_spill] sm:$0xff] %v6311_v59  ;;  %v210_v59 = vld [vmem:[%s12507_s0 + $0x560] sm:$0xff] }
  0xe2   :  { %613 = vrot.lane.b32.xlu2 %v204_v60, %s5685_s30 }
  0xe3   :  { %611 = vrot.lane.b32.xlu1 %v202_v54, %s5685_s30  ;;  %v206_v54 = vld [vmem:[%s12507_s0 + $0x540] sm:$0xff] }
  0xe4   :  { %609 = vrot.lane.b32.xlu0 %v200_v12, %s5685_s30  ;;  %v6327_v33 = vpop.permute.xlu2 %547 }
  0xe5   :  { %v6325_v7 = vpop.permute.xlu1 %429  ;;  %12599 = vst [vmem:[#allocation48_spill] sm:$0xff] %v6327_v33 }
  0xe6   :  { %12598 = vst [vmem:[#allocation47_spill] sm:$0xff] %v6325_v7  ;;  %v6329_v47 = vpop.permute.xlu0 %427 }
  0xe7   :  { %12600 = vst [vmem:[#allocation49_spill] sm:$0xff] %v6329_v47  ;;  %v212_v47 = vld [vmem:[%s12507_s0 + $0x570] sm:$0xff] }
  0xea   :  { %619 = vrot.lane.b32.xlu2 %v210_v59, %s5685_s30 }
  0xeb   :  { %617 = vrot.lane.b32.xlu1 %v208_v63, %s5685_s30  ;;  %v232_v63 = vld [vmem:[%s12507_s0 + $0x610] sm:$0xff] }
  0xec   :  { %615 = vrot.lane.b32.xlu0 %v206_v54, %s5685_s30  ;;  %v6345_v12 = vpop.permute.xlu2 %553 }
  0xed   :  { %v6343_v60 = vpop.permute.xlu1 %435  ;;  %12602 = vst [vmem:[#allocation51_spill] sm:$0xff] %v6345_v12  ;;  %v6970_v12 = vld [vmem:[%s12507_s0 + $0x6a0] sm:$0xff] }
  0xee   :  { %12601 = vst [vmem:[#allocation50_spill] sm:$0xff] %v6343_v60  ;;  %v6347_v7 = vpop.permute.xlu0 %433 }
  0xef   :  { %12603 = vst [vmem:[#allocation52_spill] sm:$0xff] %v6347_v7  ;;  %v240_v7 = vld [vmem:[%s12507_s0 + $0x650] sm:$0xff] }
  0xf2   :  { %625 = vrot.lane.b32.xlu2 %v234_v2, %s5685_s30  ;;  %v236_v2 = vld [vmem:[%s12507_s0 + $0x630] sm:$0xff] }
  0xf3   :  { %623 = vrot.lane.b32.xlu1 %v232_v63, %s5685_s30 }
  0xf4   :  { %621 = vrot.lane.b32.xlu0 %v212_v47, %s5685_s30  ;;  %v6361_v59 = vpop.permute.xlu2 %559 }
  0xf5   :  { %12604 = vst [vmem:[#allocation53_spill] sm:$0xff] %v6361_v59  ;;  %v6363_v54 = vpop.permute.xlu1 %539  ;;  %v244_v59 = vld [vmem:[%s12507_s0 + $0x670] sm:$0xff] }
  0xf6   :  { %12605 = vst [vmem:[#allocation54_spill] sm:$0xff] %v6363_v54  ;;  %v6365_v60 = vpop.permute.xlu0 %439  ;;  %v7201_v54 = vld [vmem:[%s12507_s0 + $0x398] sm:$0xff] }
  0xf7   :  { %12606 = vst [vmem:[#allocation55_spill] sm:$0xff] %v6365_v60 }
  0xf8   :  { %12732 = vst [vmem:[#allocation181_spill] sm:$0xff] %v7201_v54 }
  0xfa   :  { %631 = vrot.lane.b32.xlu2 %v240_v7, %s5685_s30 }
  0xfb   :  { %629 = vrot.lane.b32.xlu1 %v238_v48, %s5685_s30 }
  0xfc   :  { %627 = vrot.lane.b32.xlu0 %v236_v2, %s5685_s30  ;;  %v6379_v47 = vpop.permute.xlu2 %565 }
  0xfd   :  { %12607 = vst [vmem:[#allocation56_spill] sm:$0xff] %v6379_v47  ;;  %v6381_v63 = vpop.permute.xlu1 %545  ;;  %v6849_v47 = vld [vmem:[%s12507_s0 + $0x3e0] sm:$0xff] }
  0xfe   :  { %12608 = vst [vmem:[#allocation57_spill] sm:$0xff] %v6381_v63  ;;  %v6383_v60 = vpop.permute.xlu0 %543  ;;  %v7075_v63 = vld [vmem:[%s12507_s0 + $0xe8] sm:$0xff] }
  0xff   :  { %12609 = vst [vmem:[#allocation58_spill] sm:$0xff] %v6383_v60  ;;  %v7123_v60 = vld [vmem:[%s12507_s0 + $0x1e8] sm:$0xff] }
 0x102   :  { %693 = vrot.lane.b32.xlu2 %v5792_v5, %s5686_s16 }
 0x103   :  { %635 = vrot.lane.b32.xlu1 %v244_v59, %s5685_s30 }
 0x104   :  { %633 = vrot.lane.b32.xlu0 %v242_v23, %s5685_s30  ;;  %v6395_v48 = vpop.permute.xlu2 %571 }
 0x105   :  { %12610 = vst [vmem:[#allocation59_spill] sm:$0xff] %v6395_v48  ;;  %v6397_v7 = vpop.permute.xlu1 %551  ;;  %v53_v48 = vld [vmem:[%s12507_s0 + $0x78] sm:$0xff] }
 0x106   :  { %12611 = vst [vmem:[#allocation60_spill] sm:$0xff] %v6397_v7  ;;  %v6399_v2 = vpop.permute.xlu0 %549  ;;  %v6994_v7 = vld [vmem:[%s12507_s0 + $0x6d0] sm:$0xff] }
 0x107   :  { %12612 = vst [vmem:[#allocation61_spill] sm:$0xff] %v6399_v2  ;;  %v7021_v2 = vld [vmem:[%s12507_s0 + $0x98] sm:$0xff] }
 0x10a   :  { %699 = vrot.lane.b32.xlu2 %v5764_v0, %s5686_s16 }
 0x10b   :  { %697 = vrot.lane.b32.xlu1 %v5787_v4, %s5686_s16 }
 0x10c   :  { %695 = vrot.lane.b32.xlu0 %v5769_v1, %s5686_s16  ;;  %v6407_v5 = vpop.permute.xlu2 %577 }
 0x10d   :  { %12613 = vst [vmem:[#allocation62_spill] sm:$0xff] %v6407_v5  ;;  %v6409_v59 = vpop.permute.xlu1 %557  ;;  %v6746_v5 = vld [vmem:[%s12507_s0 + $0x290] sm:$0xff] }
 0x10e   :  { %12614 = vst [vmem:[#allocation63_spill] sm:$0xff] %v6409_v59  ;;  %v6411_v23 = vpop.permute.xlu0 %555  ;;  %v6926_v59 = vld [vmem:[%s12507_s0 + $0x590] sm:$0xff] }
 0x10f   :  { %12615 = vst [vmem:[#allocation64_spill] sm:$0xff] %v6411_v23  ;;  %v6948_v23 = vld [vmem:[%s12507_s0 + $0x5d0] sm:$0xff] }
 0x112   :  { %705 = vrot.lane.b32.xlu2 %v53_v48, %s5686_s16 }
 0x113   :  { %703 = vrot.lane.b32.xlu1 %v5811_v8, %s5686_s16 }
 0x114   :  { %701 = vrot.lane.b32.xlu0 %v5782_v3, %s5686_s16  ;;  %v6421_v0 = vpop.permute.xlu2 %583 }
 0x115   :  { %12616 = vst [vmem:[#allocation65_spill] sm:$0xff] %v6421_v0  ;;  %v6423_v1 = vpop.permute.xlu1 %563  ;;  %v6720_v0 = vld [vmem:[%s12507_s0 + $0x1d0] sm:$0xff] }
 0x116   :  { %12617 = vst [vmem:[#allocation66_spill] sm:$0xff] %v6423_v1  ;;  %v6425_v4 = vpop.permute.xlu0 %561  ;;  %v6870_v1 = vld [vmem:[%s12507_s0 + $0x4b0] sm:$0xff] }
 0x117   :  { %12618 = vst [vmem:[#allocation67_spill] sm:$0xff] %v6425_v4  ;;  %v6895_v4 = vld [vmem:[%s12507_s0 + $0x4e0] sm:$0xff] }
 0x11a   :  { %711 = vrot.lane.b32.xlu2 %v5826_v10, %s5686_s16 }
 0x11b   :  { %709 = vrot.lane.b32.xlu1 %v5831_v11, %s5686_s16 }
 0x11c   :  { %707 = vrot.lane.b32.xlu0 %v5803_v6, %s5686_s16  ;;  %v6433_v48 = vpop.permute.xlu2 %589 }
 0x11d   :  { %12619 = vst [vmem:[#allocation68_spill] sm:$0xff] %v6433_v48  ;;  %v6435_v8 = vpop.permute.xlu1 %569  ;;  %v85_v48 = vld [vmem:[%s12507_s0 + $0x178] sm:$0xff] }
 0x11e   :  { %12620 = vst [vmem:[#allocation69_spill] sm:$0xff] %v6435_v8  ;;  %v6437_v3 = vpop.permute.xlu0 %567  ;;  %v6814_v8 = vld [vmem:[%s12507_s0 + $0x3d0] sm:$0xff] }
 0x11f   :  { %12621 = vst [vmem:[#allocation70_spill] sm:$0xff] %v6437_v3  ;;  %v6841_v3 = vld [vmem:[%s12507_s0 + $0x490] sm:$0xff] }
 0x122   :  { %717 = vrot.lane.b32.xlu2 %v5845_v13, %s5686_s16 }
 0x123   :  { %715 = vrot.lane.b32.xlu1 %v5850_v14, %s5686_s16 }
 0x124   :  { %713 = vrot.lane.b32.xlu0 %v5821_v9, %s5686_s16  ;;  %v6445_v10 = vpop.permute.xlu2 %595 }
 0x125   :  { %12622 = vst [vmem:[#allocation71_spill] sm:$0xff] %v6445_v10  ;;  %v6447_v11 = vpop.permute.xlu1 %575  ;;  %v6685_v10 = vld [vmem:[%s12507_s0 + $0x1c0] sm:$0xff] }
 0x126   :  { %12623 = vst [vmem:[#allocation72_spill] sm:$0xff] %v6447_v11  ;;  %v6449_v6 = vpop.permute.xlu0 %573  ;;  %v6768_v11 = vld [vmem:[%s12507_s0 + $0x2d0] sm:$0xff] }
 0x127   :  { %12624 = vst [vmem:[#allocation73_spill] sm:$0xff] %v6449_v6  ;;  %v6790_v6 = vld [vmem:[%s12507_s0 + $0x3a0] sm:$0xff] }
 0x12a   :  { %723 = vrot.lane.b32.xlu2 %v5865_v16, %s5686_s16 }
 0x12b   :  { %721 = vrot.lane.b32.xlu1 %v5870_v17, %s5686_s16 }
 0x12c   :  { %719 = vrot.lane.b32.xlu0 %v85_v48, %s5686_s16  ;;  %v6459_v13 = vpop.permute.xlu2 %601 }
 0x12d   :  { %12625 = vst [vmem:[#allocation74_spill] sm:$0xff] %v6459_v13  ;;  %v6461_v9 = vpop.permute.xlu1 %581  ;;  %v117_v13 = vld [vmem:[%s12507_s0 + $0x278] sm:$0xff] }
 0x12e   :  { %12626 = vst [vmem:[#allocation75_spill] sm:$0xff] %v6461_v9  ;;  %v6463_v14 = vpop.permute.xlu0 %579 }
 0x12f   :  { %12627 = vst [vmem:[#allocation76_spill] sm:$0xff] %v6463_v14  ;;  %v6736_v14 = vld [vmem:[%s12507_s0 + $0x2b0] sm:$0xff] }
 0x132   :  { %729 = vrot.lane.b32.xlu2 %v5886_v19, %s5686_s16 }
 0x133   :  { %727 = vrot.lane.b32.xlu1 %v5891_v20, %s5686_s16 }
 0x134   :  { %725 = vrot.lane.b32.xlu0 %v5860_v15, %s5686_s16  ;;  %v6471_v16 = vpop.permute.xlu2 %607 }
 0x135   :  { %12628 = vst [vmem:[#allocation77_spill] sm:$0xff] %v6471_v16  ;;  %v6473_v17 = vpop.permute.xlu1 %587 }
 0x136   :  { %12629 = vst [vmem:[#allocation78_spill] sm:$0xff] %v6473_v17  ;;  %v6475_v48 = vpop.permute.xlu0 %585  ;;  %v118_v17 = vld [vmem:[%s12507_s0 + $0x280] sm:$0xff] }
 0x137   :  { %12630 = vst [vmem:[#allocation79_spill] sm:$0xff] %v6475_v48  ;;  %v6715_v48 = vld [vmem:[%s12507_s0 + $0x1e0] sm:$0xff] }
 0x13a   :  { %735 = vrot.lane.b32.xlu2 %v5907_v22, %s5686_s16 }
 0x13b   :  { %733 = vrot.lane.b32.xlu1 %v117_v13, %s5686_s16 }
 0x13c   :  { %731 = vrot.lane.b32.xlu0 %v5881_v18, %s5686_s16  ;;  %v6485_v19 = vpop.permute.xlu2 %613 }
 0x13d   :  { %12631 = vst [vmem:[#allocation80_spill] sm:$0xff] %v6485_v19  ;;  %v6487_v15 = vpop.permute.xlu1 %593  ;;  %v149_v19 = vld [vmem:[%s12507_s0 + $0x378] sm:$0xff] }
 0x13e   :  { %12632 = vst [vmem:[#allocation81_spill] sm:$0xff] %v6487_v15  ;;  %v6489_v20 = vpop.permute.xlu0 %591 }
 0x13f   :  { %12633 = vst [vmem:[#allocation82_spill] sm:$0xff] %v6489_v20 }
 0x142   :  { %741 = vrot.lane.b32.xlu2 %v5925_v25, %s5686_s16 }
 0x143   :  { %739 = vrot.lane.b32.xlu1 %v5930_v26, %s5686_s16 }
 0x144   :  { %737 = vrot.lane.b32.xlu0 %v5902_v21, %s5686_s16  ;;  %v6497_v22 = vpop.permute.xlu2 %619 }
 0x145   :  { %12634 = vst [vmem:[#allocation83_spill] sm:$0xff] %v6497_v22  ;;  %v6499_v13 = vpop.permute.xlu1 %599  ;;  %v213_v22 = vld [vmem:[%s12507_s0 + $0x578] sm:$0xff] }
 0x146   :  { %12635 = vst [vmem:[#allocation84_spill] sm:$0xff] %v6499_v13  ;;  %v6501_v18 = vpop.permute.xlu0 %597  ;;  %v86_v13 = vld [vmem:[%s12507_s0 + $0x180] sm:$0xff] }
 0x147   :  { %12636 = vst [vmem:[#allocation85_spill] sm:$0xff] %v6501_v18 }
 0x14a   :  { %747 = vrot.lane.b32.xlu2 %v149_v19, %s5686_s16 }
 0x14b   :  { %745 = vrot.lane.b32.xlu1 %v5949_v29, %s5686_s16 }
 0x14c   :  { %743 = vrot.lane.b32.xlu0 %v5920_v24, %s5686_s16  ;;  %v6511_v25 = vpop.permute.xlu2 %625 }
 0x14d   :  { %12637 = vst [vmem:[#allocation86_spill] sm:$0xff] %v6511_v25  ;;  %v6513_v21 = vpop.permute.xlu1 %605 }
 0x14e   :  { %12638 = vst [vmem:[#allocation87_spill] sm:$0xff] %v6513_v21  ;;  %v6515_v26 = vpop.permute.xlu0 %603  ;;  %v6690_v21 = vld [vmem:[%s12507_s0 + $0x1b0] sm:$0xff] }
 0x14f   :  { %12639 = vst [vmem:[#allocation88_spill] sm:$0xff] %v6515_v26 }
 0x152   :  { %753 = vrot.lane.b32.xlu2 %v5964_v31, %s5686_s16 }
 0x153   :  { %751 = vrot.lane.b32.xlu1 %v5969_v32, %s5686_s16 }
 0x154   :  { %749 = vrot.lane.b32.xlu0 %v5941_v27, %s5686_s16  ;;  %v6523_v19 = vpop.permute.xlu2 %631 }
 0x155   :  { %12640 = vst [vmem:[#allocation89_spill] sm:$0xff] %v6523_v19  ;;  %v6525_v29 = vpop.permute.xlu1 %611  ;;  %v181_v19 = vld [vmem:[%s12507_s0 + $0x478] sm:$0xff] }
 0x156   :  { %12641 = vst [vmem:[#allocation90_spill] sm:$0xff] %v6525_v29  ;;  %v6527_v24 = vpop.permute.xlu0 %609  ;;  %v6669_v29 = vld [vmem:[%s12507_s0 + $0xe0] sm:$0xff] }
 0x157   :  { %12642 = vst [vmem:[#allocation91_spill] sm:$0xff] %v6527_v24 }
 0x15a   :  { %759 = vrot.lane.b32.xlu2 %v5983_v34, %s5686_s16 }
 0x15b   :  { %757 = vrot.lane.b32.xlu1 %v5988_v35, %s5686_s16 }
 0x15c   :  { %755 = vrot.lane.b32.xlu0 %v5959_v30, %s5686_s16  ;;  %v6535_v31 = vpop.permute.xlu2 %693 }
 0x15d   :  { %12643 = vst [vmem:[#allocation92_spill] sm:$0xff] %v6535_v31  ;;  %v6537_v32 = vpop.permute.xlu1 %617  ;;  %v7179_v31 = vld [vmem:[%s12507_s0 + $0x2c8] sm:$0xff] }
 0x15e   :  { %12644 = vst [vmem:[#allocation93_spill] sm:$0xff] %v6537_v32  ;;  %v6539_v27 = vpop.permute.xlu0 %615  ;;  %v6634_v32 = vld [vmem:[%s12507_s0 + $0xd0] sm:$0xff] }
 0x15f   :  { %12645 = vst [vmem:[#allocation94_spill] sm:$0xff] %v6539_v27 }
 0x162   :  { %765 = vrot.lane.b32.xlu2 %v6005_v38, %s5686_s16 }
 0x163   :  { %763 = vrot.lane.b32.xlu1 %v6010_v39, %s5686_s16 }
 0x164   :  { %761 = vrot.lane.b32.xlu0 %v181_v19, %s5686_s16  ;;  %v6549_v34 = vpop.permute.xlu2 %699 }
 0x165   :  { %12646 = vst [vmem:[#allocation95_spill] sm:$0xff] %v6549_v34  ;;  %v6551_v30 = vpop.permute.xlu1 %623  ;;  %v87_v34 = vld [vmem:[%s12507_s0 + $0x188] sm:$0xff] }
 0x166   :  { %12647 = vst [vmem:[#allocation96_spill] sm:$0xff] %v6551_v30  ;;  %v6553_v35 = vpop.permute.xlu0 %621  ;;  %v6661_v30 = vld [vmem:[%s12507_s0 + $0x190] sm:$0xff] }
 0x167   :  { %12648 = vst [vmem:[#allocation97_spill] sm:$0xff] %v6553_v35 }
 0x16a   :  { %771 = vrot.lane.b32.xlu2 %v6028_v42, %s5686_s16 }
 0x16b   :  { %769 = vrot.lane.b32.xlu1 %v6033_v43, %s5686_s16 }
 0x16c   :  { %767 = vrot.lane.b32.xlu0 %v6000_v37, %s5686_s16  ;;  %v6561_v38 = vpop.permute.xlu2 %705 }
 0x16d   :  { %12649 = vst [vmem:[#allocation98_spill] sm:$0xff] %v6561_v38  ;;  %v6563_v39 = vpop.permute.xlu1 %629  ;;  %v246_v38 = vld [vmem:[%s12507_s0 + $0x680] sm:$0xff] }
 0x16e   :  { %12650 = vst [vmem:[#allocation99_spill] sm:$0xff] %v6563_v39  ;;  %v6565_v19 = vpop.permute.xlu0 %627 }
 0x16f   :  { %12651 = vst [vmem:[#allocation100_spill] sm:$0xff] %v6565_v19  ;;  %v6639_v19 = vld [vmem:[%s12507_s0 + $0xc0] sm:$0xff] }
 0x172   :  { %777 = vrot.lane.b32.xlu2 %v6051_v46, %s5686_s16 }
 0x173   :  { %775 = vrot.lane.b32.xlu1 %v213_v22, %s5686_s16 }
 0x174   :  { %773 = vrot.lane.b32.xlu0 %v6023_v41, %s5686_s16  ;;  %v6575_v42 = vpop.permute.xlu2 %711 }
 0x175   :  { %12652 = vst [vmem:[#allocation101_spill] sm:$0xff] %v6575_v42  ;;  %v6577_v37 = vpop.permute.xlu1 %635  ;;  %v6916_v42 = vld [vmem:[%s12507_s0 + $0x5b0] sm:$0xff] }
 0x176   :  { %12653 = vst [vmem:[#allocation102_spill] sm:$0xff] %v6577_v37  ;;  %v6579_v43 = vpop.permute.xlu0 %633  ;;  %v245_v37 = vld [vmem:[%s12507_s0 + $0x678] sm:$0xff] }
 0x177   :  { %12654 = vst [vmem:[#allocation103_spill] sm:$0xff] %v6579_v43  ;;  %v6610_v43 = vld [vmem:[%s12507_s0 + $0xa0] sm:$0xff] }
 0x17a   :  { %783 = vrot.lane.b32.xlu2 %v6075_v52, %s5686_s16 }
 0x17b   :  { %781 = vrot.lane.b32.xlu1 %v6080_v53, %s5686_s16 }
 0x17c   :  { %779 = vrot.lane.b32.xlu0 %v6046_v45, %s5686_s16  ;;  %v6587_v46 = vpop.permute.xlu2 %717 }
 0x17d   :  { %12655 = vst [vmem:[#allocation104_spill] sm:$0xff] %v6587_v46  ;;  %v6589_v22 = vpop.permute.xlu1 %697  ;;  %v6865_v46 = vld [vmem:[%s12507_s0 + $0x4c0] sm:$0xff] }
 0x17e   :  { %12656 = vst [vmem:[#allocation105_spill] sm:$0xff] %v6589_v22  ;;  %v6591_v41 = vpop.permute.xlu0 %695  ;;  %v7106_v22 = vld [vmem:[%s12507_s0 + $0x198] sm:$0xff] }
 0x17f   :  { %12657 = vst [vmem:[#allocation106_spill] sm:$0xff] %v6591_v41  ;;  %v7150_v41 = vld [vmem:[%s12507_s0 + $0x2a8] sm:$0xff] }
 0x180   :  { %12724 = vst [vmem:[#allocation173_spill] sm:$0xff] %v7150_v41 }
 0x182   :  { %789 = vrot.lane.b32.xlu2 %v245_v37, %s5686_s16  ;;  %v6615_v37 = vld [vmem:[%s12507_s0 + $0x90] sm:$0xff] }
 0x183   :  { %787 = vrot.lane.b32.xlu1 %v6097_v57, %s5686_s16 }
 0x184   :  { %785 = vrot.lane.b32.xlu0 %v6070_v51, %s5686_s16  ;;  %v6601_v52 = vpop.permute.xlu2 %723  ;;  %v54_v51 = vld [vmem:[%s12507_s0 + $0x80] sm:$0xff]  ;;  %s5687_s16 = smov 16  }
 0x185   :  { %12658 = vst [vmem:[#allocation107_spill] sm:$0xff] %v6601_v52  ;;  %v6603_v45 = vpop.permute.xlu1 %703  ;;  %v150_v52 = vld [vmem:[%s12507_s0 + $0x380] sm:$0xff] }
 0x186   :  { %12659 = vst [vmem:[#allocation108_spill] sm:$0xff] %v6603_v45  ;;  %v6605_v53 = vpop.permute.xlu0 %701 }
 0x187   :  { %12660 = vst [vmem:[#allocation109_spill] sm:$0xff] %v6605_v53  ;;  %v7029_v53 = vld [vmem:[%s12507_s0 + $0x6e0] sm:$0xff] }
 0x18a   :  { %893 = vrot.lane.b32.xlu2 %v6610_v43, %s5687_s16 }
 0x18b   :  { %891 = vrot.lane.b32.xlu1 %v6615_v37, %s5687_s16 }
 0x18c   :  { %889 = vrot.lane.b32.xlu0 %v54_v51, %s5687_s16  ;;  %v6625_v57 = vpop.permute.xlu2 %729  ;;  %v6644_v51 = vld [vmem:[%s12507_s0 + $0xb0] sm:$0xff] }
 0x18d   :  { %12661 = vst [vmem:[#allocation110_spill] sm:$0xff] %v6625_v57  ;;  %v6627_v35 = vpop.permute.xlu1 %709  ;;  %v6763_v57 = vld [vmem:[%s12507_s0 + $0x2e0] sm:$0xff] }
 0x18e   :  { %12662 = vst [vmem:[#allocation111_spill] sm:$0xff] %v6627_v35  ;;  %v6629_v39 = vpop.permute.xlu0 %707  ;;  %v6943_v35 = vld [vmem:[%s12507_s0 + $0x5e0] sm:$0xff] }
 0x18f   :  { %12663 = vst [vmem:[#allocation112_spill] sm:$0xff] %v6629_v39 }
 0x192   :  { %899 = vrot.lane.b32.xlu2 %v6634_v32, %s5687_s16 }
 0x193   :  { %897 = vrot.lane.b32.xlu1 %v6639_v19, %s5687_s16 }
 0x194   :  { %895 = vrot.lane.b32.xlu0 %v6644_v51, %s5687_s16  ;;  %v6652_v26 = vpop.permute.xlu2 %735 }
 0x195   :  { %12664 = vst [vmem:[#allocation113_spill] sm:$0xff] %v6652_v26  ;;  %v6654_v27 = vpop.permute.xlu1 %715 }
 0x196   :  { %12665 = vst [vmem:[#allocation114_spill] sm:$0xff] %v6654_v27  ;;  %v6656_v25 = vpop.permute.xlu0 %713  ;;  %v214_v27 = vld [vmem:[%s12507_s0 + $0x580] sm:$0xff] }
 0x197   :  { %12666 = vst [vmem:[#allocation115_spill] sm:$0xff] %v6656_v25  ;;  %v6900_v25 = vld [vmem:[%s12507_s0 + $0x4d0] sm:$0xff] }
 0x19a   :  { %905 = vrot.lane.b32.xlu2 %v6661_v30, %s5687_s16 }
 0x19b   :  { %903 = vrot.lane.b32.xlu1 %v86_v13, %s5687_s16  ;;  %v6695_v13 = vld [vmem:[%s12507_s0 + $0x1a0] sm:$0xff] }
 0x19c   :  { %901 = vrot.lane.b32.xlu0 %v6669_v29, %s5687_s16  ;;  %v6676_v24 = vpop.permute.xlu2 %741 }
 0x19d   :  { %12667 = vst [vmem:[#allocation116_spill] sm:$0xff] %v6676_v24  ;;  %v6678_v18 = vpop.permute.xlu1 %721 }
 0x19e   :  { %12668 = vst [vmem:[#allocation117_spill] sm:$0xff] %v6678_v18  ;;  %v6680_v16 = vpop.permute.xlu0 %719  ;;  %v6819_v18 = vld [vmem:[%s12507_s0 + $0x3c0] sm:$0xff] }
 0x19f   :  { %12669 = vst [vmem:[#allocation118_spill] sm:$0xff] %v6680_v16  ;;  %v182_v16 = vld [vmem:[%s12507_s0 + $0x480] sm:$0xff] }
 0x1a2   :  { %911 = vrot.lane.b32.xlu2 %v6685_v10, %s5687_s16 }
 0x1a3   :  { %909 = vrot.lane.b32.xlu1 %v6690_v21, %s5687_s16 }
 0x1a4   :  { %907 = vrot.lane.b32.xlu0 %v6695_v13, %s5687_s16  ;;  %v6703_v15 = vpop.permute.xlu2 %747 }
 0x1a5   :  { %12670 = vst [vmem:[#allocation119_spill] sm:$0xff] %v6703_v15  ;;  %v6705_v20 = vpop.permute.xlu1 %727 }
 0x1a6   :  { %12671 = vst [vmem:[#allocation120_spill] sm:$0xff] %v6705_v20  ;;  %v6707_v24 = vpop.permute.xlu0 %725  ;;  %v6773_v20 = vld [vmem:[%s12507_s0 + $0x2c0] sm:$0xff] }
 0x1a7   :  { %12672 = vst [vmem:[#allocation121_spill] sm:$0xff] %v6707_v24  ;;  %v6795_v24 = vld [vmem:[%s12507_s0 + $0x390] sm:$0xff] }
 0x1aa   :  { %917 = vrot.lane.b32.xlu2 %v118_v17, %s5687_s16  ;;  %v6741_v17 = vld [vmem:[%s12507_s0 + $0x2a0] sm:$0xff] }
 0x1ab   :  { %915 = vrot.lane.b32.xlu1 %v6715_v48, %s5687_s16 }
 0x1ac   :  { %913 = vrot.lane.b32.xlu0 %v6720_v0, %s5687_s16  ;;  %v6727_v15 = vpop.permute.xlu2 %753 }
 0x1ad   :  { %12673 = vst [vmem:[#allocation122_spill] sm:$0xff] %v6727_v15  ;;  %v6729_v26 = vpop.permute.xlu1 %733 }
 0x1ae   :  { %12674 = vst [vmem:[#allocation123_spill] sm:$0xff] %v6729_v26  ;;  %v6731_v9 = vpop.permute.xlu0 %731 }
 0x1af   :  { %12675 = vst [vmem:[#allocation124_spill] sm:$0xff] %v6731_v9 }
 0x1b2   :  { %923 = vrot.lane.b32.xlu2 %v6736_v14, %s5687_s16 }
 0x1b3   :  { %921 = vrot.lane.b32.xlu1 %v6741_v17, %s5687_s16 }
 0x1b4   :  { %919 = vrot.lane.b32.xlu0 %v6746_v5, %s5687_s16  ;;  %v6754_v15 = vpop.permute.xlu2 %759 }
 0x1b5   :  { %12676 = vst [vmem:[#allocation125_spill] sm:$0xff] %v6754_v15  ;;  %v6756_v26 = vpop.permute.xlu1 %739 }
 0x1b6   :  { %12677 = vst [vmem:[#allocation126_spill] sm:$0xff] %v6756_v26  ;;  %v6758_v9 = vpop.permute.xlu0 %737 }
 0x1b7   :  { %12678 = vst [vmem:[#allocation127_spill] sm:$0xff] %v6758_v9 }
 0x1ba   :  { %929 = vrot.lane.b32.xlu2 %v6763_v57, %s5687_s16 }
 0x1bb   :  { %927 = vrot.lane.b32.xlu1 %v6768_v11, %s5687_s16 }
 0x1bc   :  { %925 = vrot.lane.b32.xlu0 %v6773_v20, %s5687_s16  ;;  %v6781_v15 = vpop.permute.xlu2 %765 }
 0x1bd   :  { %12679 = vst [vmem:[#allocation128_spill] sm:$0xff] %v6781_v15  ;;  %v6783_v26 = vpop.permute.xlu1 %745 }
 0x1be   :  { %12680 = vst [vmem:[#allocation129_spill] sm:$0xff] %v6783_v26  ;;  %v6785_v9 = vpop.permute.xlu0 %743 }
 0x1bf   :  { %12681 = vst [vmem:[#allocation130_spill] sm:$0xff] %v6785_v9 }
 0x1c2   :  { %935 = vrot.lane.b32.xlu2 %v6790_v6, %s5687_s16 }
 0x1c3   :  { %933 = vrot.lane.b32.xlu1 %v6795_v24, %s5687_s16 }
 0x1c4   :  { %931 = vrot.lane.b32.xlu0 %v150_v52, %s5687_s16  ;;  %v6805_v15 = vpop.permute.xlu2 %771  ;;  %v6824_v52 = vld [vmem:[%s12507_s0 + $0x3b0] sm:$0xff] }
 0x1c5   :  { %12682 = vst [vmem:[#allocation131_spill] sm:$0xff] %v6805_v15  ;;  %v6807_v26 = vpop.permute.xlu1 %751 }
 0x1c6   :  { %12683 = vst [vmem:[#allocation132_spill] sm:$0xff] %v6807_v26  ;;  %v6809_v9 = vpop.permute.xlu0 %749 }
 0x1c7   :  { %12684 = vst [vmem:[#allocation133_spill] sm:$0xff] %v6809_v9 }
 0x1ca   :  { %941 = vrot.lane.b32.xlu2 %v6814_v8, %s5687_s16 }
 0x1cb   :  { %939 = vrot.lane.b32.xlu1 %v6819_v18, %s5687_s16 }
 0x1cc   :  { %937 = vrot.lane.b32.xlu0 %v6824_v52, %s5687_s16  ;;  %v6832_v15 = vpop.permute.xlu2 %777 }
 0x1cd   :  { %12685 = vst [vmem:[#allocation134_spill] sm:$0xff] %v6832_v15  ;;  %v6834_v26 = vpop.permute.xlu1 %757 }
 0x1ce   :  { %12686 = vst [vmem:[#allocation135_spill] sm:$0xff] %v6834_v26  ;;  %v6836_v9 = vpop.permute.xlu0 %755 }
 0x1cf   :  { %12687 = vst [vmem:[#allocation136_spill] sm:$0xff] %v6836_v9 }
 0x1d2   :  { %947 = vrot.lane.b32.xlu2 %v6841_v3, %s5687_s16 }
 0x1d3   :  { %945 = vrot.lane.b32.xlu1 %v182_v16, %s5687_s16  ;;  %v6875_v16 = vld [vmem:[%s12507_s0 + $0x4a0] sm:$0xff] }
 0x1d4   :  { %943 = vrot.lane.b32.xlu0 %v6849_v47, %s5687_s16  ;;  %v6856_v26 = vpop.permute.xlu2 %783 }
 0x1d5   :  { %12688 = vst [vmem:[#allocation137_spill] sm:$0xff] %v6856_v26  ;;  %v6858_v9 = vpop.permute.xlu1 %763 }
 0x1d6   :  { %12689 = vst [vmem:[#allocation138_spill] sm:$0xff] %v6858_v9  ;;  %v6860_v15 = vpop.permute.xlu0 %761 }
 0x1d7   :  { %12690 = vst [vmem:[#allocation139_spill] sm:$0xff] %v6860_v15 }
 0x1da   :  { %953 = vrot.lane.b32.xlu2 %v6865_v46, %s5687_s16 }
 0x1db   :  { %951 = vrot.lane.b32.xlu1 %v6870_v1, %s5687_s16 }
 0x1dc   :  { %949 = vrot.lane.b32.xlu0 %v6875_v16, %s5687_s16  ;;  %v6883_v26 = vpop.permute.xlu2 %789 }
 0x1dd   :  { %12691 = vst [vmem:[#allocation140_spill] sm:$0xff] %v6883_v26  ;;  %v6885_v9 = vpop.permute.xlu1 %769 }
 0x1de   :  { %12692 = vst [vmem:[#allocation141_spill] sm:$0xff] %v6885_v9  ;;  %v6887_v15 = vpop.permute.xlu0 %767 }
 0x1df   :  { %12693 = vst [vmem:[#allocation142_spill] sm:$0xff] %v6887_v15 }
 0x1e2   :  { %959 = vrot.lane.b32.xlu2 %v214_v27, %s5687_s16  ;;  %v6921_v27 = vld [vmem:[%s12507_s0 + $0x5a0] sm:$0xff] }
 0x1e3   :  { %957 = vrot.lane.b32.xlu1 %v6895_v4, %s5687_s16 }
 0x1e4   :  { %955 = vrot.lane.b32.xlu0 %v6900_v25, %s5687_s16  ;;  %v6907_v26 = vpop.permute.xlu2 %893 }
 0x1e5   :  { %12694 = vst [vmem:[#allocation143_spill] sm:$0xff] %v6907_v26  ;;  %v6909_v9 = vpop.permute.xlu1 %775  ;;  %v7096_v26 = vld [vmem:[%s12507_s0 + $0x1b8] sm:$0xff] }
 0x1e6   :  { %12695 = vst [vmem:[#allocation144_spill] sm:$0xff] %v6909_v9  ;;  %v6911_v15 = vpop.permute.xlu0 %773 }
 0x1e7   :  { %12696 = vst [vmem:[#allocation145_spill] sm:$0xff] %v6911_v15 }
 0x1ea   :  { %965 = vrot.lane.b32.xlu2 %v6916_v42, %s5687_s16 }
 0x1eb   :  { %963 = vrot.lane.b32.xlu1 %v6921_v27, %s5687_s16 }
 0x1ec   :  { %961 = vrot.lane.b32.xlu0 %v6926_v59, %s5687_s16  ;;  %v6934_v9 = vpop.permute.xlu2 %899 }
 0x1ed   :  { %12697 = vst [vmem:[#allocation146_spill] sm:$0xff] %v6934_v9  ;;  %v6936_v15 = vpop.permute.xlu1 %781 }
 0x1ee   :  { %12698 = vst [vmem:[#allocation147_spill] sm:$0xff] %v6936_v15  ;;  %v6938_v28 = vpop.permute.xlu0 %779 }
 0x1ef   :  { %12699 = vst [vmem:[#allocation148_spill] sm:$0xff] %v6938_v28 }
 0x1f2   :  { %971 = vrot.lane.b32.xlu2 %v6943_v35, %s5687_s16 }
 0x1f3   :  { %969 = vrot.lane.b32.xlu1 %v6948_v23, %s5687_s16 }
 0x1f4   :  { %967 = vrot.lane.b32.xlu0 %v6953_v44, %s5687_s16  ;;  %v6961_v15 = vpop.permute.xlu2 %905 }
 0x1f5   :  { %12700 = vst [vmem:[#allocation149_spill] sm:$0xff] %v6961_v15  ;;  %v6963_v28 = vpop.permute.xlu1 %787 }
 0x1f6   :  { %12701 = vst [vmem:[#allocation150_spill] sm:$0xff] %v6963_v28  ;;  %v6965_v39 = vpop.permute.xlu0 %785 }
 0x1f7   :  { %12702 = vst [vmem:[#allocation151_spill] sm:$0xff] %v6965_v39 }
 0x1fa   :  { %977 = vrot.lane.b32.xlu2 %v6970_v12, %s5687_s16 }
 0x1fb   :  { %975 = vrot.lane.b32.xlu1 %v6975_v61, %s5687_s16 }
 0x1fc   :  { %973 = vrot.lane.b32.xlu0 %v246_v38, %s5687_s16  ;;  %v6985_v28 = vpop.permute.xlu2 %911  ;;  %v7004_v38 = vld [vmem:[%s12507_s0 + $0x6b0] sm:$0xff] }
 0x1fd   :  { %12703 = vst [vmem:[#allocation152_spill] sm:$0xff] %v6985_v28  ;;  %v6987_v39 = vpop.permute.xlu1 %891 }
 0x1fe   :  { %12704 = vst [vmem:[#allocation153_spill] sm:$0xff] %v6987_v39  ;;  %v6989_v15 = vpop.permute.xlu0 %889  ;;  %v7133_v39 = vld [vmem:[%s12507_s0 + $0x1c8] sm:$0xff] }
 0x1ff   :  { %12705 = vst [vmem:[#allocation154_spill] sm:$0xff] %v6989_v15  ;;  %v7174_v15 = vld [vmem:[%s12507_s0 + $0x2d8] sm:$0xff] }
 0x200   :  { %12728 = vst [vmem:[#allocation177_spill] sm:$0xff] %v7174_v15 }
 0x202   :  { %983 = vrot.lane.b32.xlu2 %v6994_v7, %s5687_s16 }
 0x203   :  { %981 = vrot.lane.b32.xlu1 %v6999_v62, %s5687_s16 }
 0x204   :  { %979 = vrot.lane.b32.xlu0 %v7004_v38, %s5687_s16  ;;  %v7012_v28 = vpop.permute.xlu2 %917 }
 0x205   :  { %12706 = vst [vmem:[#allocation155_spill] sm:$0xff] %v7012_v28  ;;  %v7014_v9 = vpop.permute.xlu1 %897 }
 0x206   :  { %12707 = vst [vmem:[#allocation156_spill] sm:$0xff] %v7014_v9  ;;  %v7016_v45 = vpop.permute.xlu0 %895 }
 0x207   :  { %12708 = vst [vmem:[#allocation157_spill] sm:$0xff] %v7016_v45  ;;  %v7050_v45 = vld [vmem:[%s12507_s0 + $0xb8] sm:$0xff] }
 0x20a   :  { %1087 = vrot.lane.b32.xlu2 %v7021_v2, %s5688_s24 }
 0x20b   :  { %1085 = vrot.lane.b32.xlu1 %v55_v40, %s5688_s24  ;;  %v7055_v40 = vld [vmem:[%s12507_s0 + $0xa8] sm:$0xff] }
 0x20c   :  { %985 = vrot.lane.b32.xlu0 %v7029_v53, %s5687_s16  ;;  %v7036_v28 = vpop.permute.xlu2 %923  ;;  %s5692_s16 = smov 36  }
 0x20d   :  { %12709 = vst [vmem:[#allocation158_spill] sm:$0xff] %v7036_v28  ;;  %v7038_v9 = vpop.permute.xlu1 %903 }
 0x20e   :  { %12710 = vst [vmem:[#allocation159_spill] sm:$0xff] %v7038_v9  ;;  %v7040_v33 = vpop.permute.xlu0 %901 }
 0x20f   :  { %12711 = vst [vmem:[#allocation160_spill] sm:$0xff] %v7040_v33 }
 0x212   :  { %1093 = vrot.lane.b32.xlu2 %v7045_v36, %s5688_s24 }
 0x213   :  { %1091 = vrot.lane.b32.xlu1 %v7050_v45, %s5688_s24 }
 0x214   :  { %1089 = vrot.lane.b32.xlu0 %v7055_v40, %s5688_s24  ;;  %v7063_v28 = vpop.permute.xlu2 %929 }
 0x215   :  { %12712 = vst [vmem:[#allocation161_spill] sm:$0xff] %v7063_v28  ;;  %v7065_v9 = vpop.permute.xlu1 %909 }
 0x216   :  { %12713 = vst [vmem:[#allocation162_spill] sm:$0xff] %v7065_v9  ;;  %v7067_v33 = vpop.permute.xlu0 %907 }
 0x217   :  { %12714 = vst [vmem:[#allocation163_spill] sm:$0xff] %v7067_v33 }
 0x21a   :  { %1099 = vrot.lane.b32.xlu2 %v87_v34, %s5688_s24  ;;  %v7101_v34 = vld [vmem:[%s12507_s0 + $0x1a8] sm:$0xff] }
 0x21b   :  { %1097 = vrot.lane.b32.xlu1 %v7075_v63, %s5688_s24 }
 0x21c   :  { %1095 = vrot.lane.b32.xlu0 %v7080_v55, %s5688_s24  ;;  %v7087_v28 = vpop.permute.xlu2 %935 }
 0x21d   :  { %12715 = vst [vmem:[#allocation164_spill] sm:$0xff] %v7087_v28  ;;  %v7089_v9 = vpop.permute.xlu1 %915 }
 0x21e   :  { %12716 = vst [vmem:[#allocation165_spill] sm:$0xff] %v7089_v9  ;;  %v7091_v33 = vpop.permute.xlu0 %913 }
 0x21f   :  { %12717 = vst [vmem:[#allocation166_spill] sm:$0xff] %v7091_v33 }
 0x222   :  { %1105 = vrot.lane.b32.xlu2 %v7096_v26, %s5688_s24 }
 0x223   :  { %1103 = vrot.lane.b32.xlu1 %v7101_v34, %s5688_s24 }
 0x224   :  { %1101 = vrot.lane.b32.xlu0 %v7106_v22, %s5688_s24  ;;  %v7114_v28 = vpop.permute.xlu2 %941 }
 0x225   :  { %12718 = vst [vmem:[#allocation167_spill] sm:$0xff] %v7114_v28  ;;  %v7116_v9 = vpop.permute.xlu1 %921 }
 0x226   :  { %12719 = vst [vmem:[#allocation168_spill] sm:$0xff] %v7116_v9  ;;  %v7118_v33 = vpop.permute.xlu0 %919 }
 0x227   :  { %12720 = vst [vmem:[#allocation169_spill] sm:$0xff] %v7118_v33 }
 0x22a   :  { %1111 = vrot.lane.b32.xlu2 %v7123_v60, %s5688_s24 }
 0x22b   :  { %1109 = vrot.lane.b32.xlu1 %v7128_v49, %s5688_s24 }
 0x22c   :  { %1107 = vrot.lane.b32.xlu0 %v7133_v39, %s5688_s24  ;;  %v7141_v28 = vpop.permute.xlu2 %947 }
 0x22d   :  { %12721 = vst [vmem:[#allocation170_spill] sm:$0xff] %v7141_v28  ;;  %v7143_v9 = vpop.permute.xlu1 %927 }
 0x22e   :  { %12722 = vst [vmem:[#allocation171_spill] sm:$0xff] %v7143_v9  ;;  %v7145_v33 = vpop.permute.xlu0 %925 }
 0x22f   :  { %12723 = vst [vmem:[#allocation172_spill] sm:$0xff] %v7145_v33 }
 0x232   :  { %1117 = vrot.lane.b32.xlu2 %v7150_v41, %s5688_s24  ;;  %v7225_v41 = vld [vmem:[%s12507_s0 + $0x3c8] sm:$0xff] }
 0x233   :  { %1115 = vrot.lane.b32.xlu1 %v7155_v58, %s5688_s24  ;;  %12737 = vst [vmem:[#allocation186_spill] sm:$0xff] %v7225_v41 }
 0x234   :  { %1113 = vrot.lane.b32.xlu0 %v119_v56, %s5688_s24  ;;  %v7165_v28 = vpop.permute.xlu2 %953  ;;  %v7184_v56 = vld [vmem:[%s12507_s0 + $0x2b8] sm:$0xff] }
 0x235   :  { %12725 = vst [vmem:[#allocation174_spill] sm:$0xff] %v7165_v28  ;;  %v7167_v9 = vpop.permute.xlu1 %933 }
 0x236   :  { %12726 = vst [vmem:[#allocation175_spill] sm:$0xff] %v7167_v9  ;;  %v7169_v33 = vpop.permute.xlu0 %931 }
 0x237   :  { %12727 = vst [vmem:[#allocation176_spill] sm:$0xff] %v7169_v33 }
 0x23a   :  { %1123 = vrot.lane.b32.xlu2 %v7174_v15, %s5688_s24  ;;  %v7209_v15 = vld [vmem:[%s12507_s0 + $0x2e8] sm:$0xff] }
 0x23b   :  { %1121 = vrot.lane.b32.xlu1 %v7179_v31, %s5688_s24  ;;  %12733 = vst [vmem:[#allocation182_spill] sm:$0xff] %v7209_v15 }
 0x23c   :  { %1119 = vrot.lane.b32.xlu0 %v7184_v56, %s5688_s24  ;;  %v7192_v28 = vpop.permute.xlu2 %959 }
 0x23d   :  { %12729 = vst [vmem:[#allocation178_spill] sm:$0xff] %v7192_v28  ;;  %v7194_v9 = vpop.permute.xlu1 %939 }
 0x23e   :  { %12730 = vst [vmem:[#allocation179_spill] sm:$0xff] %v7194_v9  ;;  %v7196_v33 = vpop.permute.xlu0 %937 }
 0x23f   :  { %12731 = vst [vmem:[#allocation180_spill] sm:$0xff] %v7196_v33 }
 0x242   :  { %1129 = vrot.lane.b32.xlu2 %v7201_v54, %s5688_s24  ;;  %v7230_v54 = vld [vmem:[%s12507_s0 + $0x3b8] sm:$0xff] }
 0x243   :  { %1127 = vrot.lane.b32.xlu1 %v151_v50, %s5688_s24  ;;  %12738 = vst [vmem:[#allocation187_spill] sm:$0xff] %v7230_v54  ;;  %v7235_v50 = vld [vmem:[%s12507_s0 + $0x3a8] sm:$0xff] }
 0x244   :  { %1125 = vrot.lane.b32.xlu0 %v7209_v15, %s5688_s24  ;;  %v7216_v28 = vpop.permute.xlu2 %965  ;;  %12739 = vst [vmem:[#allocation188_spill] sm:$0xff] %v7235_v50  ;;  %v183_v15 = vld [vmem:[%s12507_s0 + $0x488] sm:$0xff] }
 0x245   :  { %12734 = vst [vmem:[#allocation183_spill] sm:$0xff] %v7216_v28  ;;  %v7218_v9 = vpop.permute.xlu1 %945 }
 0x246   :  { %12735 = vst [vmem:[#allocation184_spill] sm:$0xff] %v7218_v9  ;;  %v7220_v33 = vpop.permute.xlu0 %943 }
 0x247   :  { %12736 = vst [vmem:[#allocation185_spill] sm:$0xff] %v7220_v33 }
 0x24a   :  { %1135 = vrot.lane.b32.xlu2 %v7225_v41, %s5688_s24  ;;  %v7255_v41 = vld [vmem:[%s12507_s0 + $0x3e8] sm:$0xff] }
 0x24b   :  { %1133 = vrot.lane.b32.xlu1 %v7230_v54, %s5688_s24  ;;  %12743 = vst [vmem:[#allocation192_spill] sm:$0xff] %v7255_v41  ;;  %v7260_v54 = vld [vmem:[%s12507_s0 + $0x3d8] sm:$0xff] }
 0x24c   :  { %1131 = vrot.lane.b32.xlu0 %v7235_v50, %s5688_s24  ;;  %v7243_v28 = vpop.permute.xlu2 %971  ;;  %12744 = vst [vmem:[#allocation193_spill] sm:$0xff] %v7260_v54  ;;  %v7276_v50 = vld [vmem:[%s12507_s0 + $0x4b8] sm:$0xff] }
 0x24d   :  { %12740 = vst [vmem:[#allocation189_spill] sm:$0xff] %v7243_v28  ;;  %v7245_v9 = vpop.permute.xlu1 %951 }
 0x24e   :  { %12741 = vst [vmem:[#allocation190_spill] sm:$0xff] %v7245_v9  ;;  %v7247_v33 = vpop.permute.xlu0 %949 }
 0x24f   :  { %12742 = vst [vmem:[#allocation191_spill] sm:$0xff] %v7247_v33 }
 0x250   :  { %12748 = vst [vmem:[#allocation197_spill] sm:$0xff] %v7276_v50 }
 0x252   :  { %1141 = vrot.lane.b32.xlu2 %v183_v15, %s5688_s24  ;;  %v7281_v15 = vld [vmem:[%s12507_s0 + $0x4a8] sm:$0xff] }
 0x253   :  { %1139 = vrot.lane.b32.xlu1 %v7255_v41, %s5688_s24  ;;  %12749 = vst [vmem:[#allocation198_spill] sm:$0xff] %v7281_v15  ;;  %v7303_v41 = vld [vmem:[%s12507_s0 + $0x4e8] sm:$0xff] }
 0x254   :  { %1137 = vrot.lane.b32.xlu0 %v7260_v54, %s5688_s24  ;;  %v7267_v28 = vpop.permute.xlu2 %977  ;;  %v7286_v54 = vld [vmem:[%s12507_s0 + $0x498] sm:$0xff]  ;;  %12754 = vst [vmem:[#allocation203_spill] sm:$0xff] %v7303_v41 }
 0x255   :  { %12745 = vst [vmem:[#allocation194_spill] sm:$0xff] %v7267_v28  ;;  %v7269_v9 = vpop.permute.xlu1 %957 }
 0x256   :  { %12746 = vst [vmem:[#allocation195_spill] sm:$0xff] %v7269_v9  ;;  %v7271_v33 = vpop.permute.xlu0 %955 }
 0x257   :  { %12747 = vst [vmem:[#allocation196_spill] sm:$0xff] %v7271_v33 }
 0x258   :  { %12750 = vst [vmem:[#allocation199_spill] sm:$0xff] %v7286_v54 }
 0x25a   :  { %1147 = vrot.lane.b32.xlu2 %v7276_v50, %s5688_s24  ;;  %v7308_v50 = vld [vmem:[%s12507_s0 + $0x4d8] sm:$0xff] }
 0x25b   :  { %1145 = vrot.lane.b32.xlu1 %v7281_v15, %s5688_s24  ;;  %12755 = vst [vmem:[#allocation204_spill] sm:$0xff] %v7308_v50  ;;  %v7330_v15 = vld [vmem:[%s12507_s0 + $0x5a8] sm:$0xff] }
 0x25c   :  { %1143 = vrot.lane.b32.xlu0 %v7286_v54, %s5688_s24  ;;  %v7294_v28 = vpop.permute.xlu2 %983  ;;  %v7313_v54 = vld [vmem:[%s12507_s0 + $0x4c8] sm:$0xff]  ;;  %12760 = vst [vmem:[#allocation209_spill] sm:$0xff] %v7330_v15 }
 0x25d   :  { %12751 = vst [vmem:[#allocation200_spill] sm:$0xff] %v7294_v28  ;;  %v7296_v9 = vpop.permute.xlu1 %963 }
 0x25e   :  { %12752 = vst [vmem:[#allocation201_spill] sm:$0xff] %v7296_v9  ;;  %v7298_v33 = vpop.permute.xlu0 %961 }
 0x25f   :  { %12753 = vst [vmem:[#allocation202_spill] sm:$0xff] %v7298_v33 }
 0x260   :  { %12756 = vst [vmem:[#allocation205_spill] sm:$0xff] %v7313_v54 }
 0x262   :  { %1153 = vrot.lane.b32.xlu2 %v7303_v41, %s5688_s24  ;;  %v7335_v41 = vld [vmem:[%s12507_s0 + $0x598] sm:$0xff] }
 0x263   :  { %1151 = vrot.lane.b32.xlu1 %v7308_v50, %s5688_s24  ;;  %12761 = vst [vmem:[#allocation210_spill] sm:$0xff] %v7335_v41  ;;  %v7354_v50 = vld [vmem:[%s12507_s0 + $0x5d8] sm:$0xff] }
 0x264   :  { %1149 = vrot.lane.b32.xlu0 %v7313_v54, %s5688_s24  ;;  %v7321_v28 = vpop.permute.xlu2 %1087  ;;  %v215_v54 = vld [vmem:[%s12507_s0 + $0x588] sm:$0xff]  ;;  %12765 = vst [vmem:[#allocation214_spill] sm:$0xff] %v7354_v50 }
 0x265   :  { %12757 = vst [vmem:[#allocation206_spill] sm:$0xff] %v7321_v28  ;;  %v7323_v9 = vpop.permute.xlu1 %969 }
 0x266   :  { %12758 = vst [vmem:[#allocation207_spill] sm:$0xff] %v7323_v9  ;;  %v7325_v33 = vpop.permute.xlu0 %967 }
 0x267   :  { %12759 = vst [vmem:[#allocation208_spill] sm:$0xff] %v7325_v33 }
 0x26a   :  { %1159 = vrot.lane.b32.xlu2 %v7330_v15, %s5688_s24  ;;  %v7359_v15 = vld [vmem:[%s12507_s0 + $0x5c8] sm:$0xff] }
 0x26b   :  { %1157 = vrot.lane.b32.xlu1 %v7335_v41, %s5688_s24  ;;  %12766 = vst [vmem:[#allocation215_spill] sm:$0xff] %v7359_v15  ;;  %v7381_v41 = vld [vmem:[%s12507_s0 + $0x698] sm:$0xff] }
 0x26c   :  { %1155 = vrot.lane.b32.xlu0 %v215_v54, %s5688_s24  ;;  %v7345_v9 = vpop.permute.xlu2 %1093  ;;  %v7364_v54 = vld [vmem:[%s12507_s0 + $0x5b8] sm:$0xff]  ;;  %12771 = vst [vmem:[#allocation220_spill] sm:$0xff] %v7381_v41 }
 0x26d   :  { %12762 = vst [vmem:[#allocation211_spill] sm:$0xff] %v7345_v9  ;;  %v7347_v33 = vpop.permute.xlu1 %975 }
 0x26e   :  { %12763 = vst [vmem:[#allocation212_spill] sm:$0xff] %v7347_v33  ;;  %v7349_v28 = vpop.permute.xlu0 %973 }
 0x26f   :  { %12764 = vst [vmem:[#allocation213_spill] sm:$0xff] %v7349_v28 }
 0x270   :  { %12767 = vst [vmem:[#allocation216_spill] sm:$0xff] %v7364_v54 }
 0x272   :  { %1165 = vrot.lane.b32.xlu2 %v7354_v50, %s5688_s24  ;;  %v247_v50 = vld [vmem:[%s12507_s0 + $0x688] sm:$0xff] }
 0x273   :  { %1163 = vrot.lane.b32.xlu1 %v7359_v15, %s5688_s24  ;;  %v7389_v15 = vld [vmem:[%s12507_s0 + $0x5e8] sm:$0xff] }
 0x274   :  { %1161 = vrot.lane.b32.xlu0 %v7364_v54, %s5688_s24  ;;  %v7372_v33 = vpop.permute.xlu2 %1099  ;;  %12772 = vst [vmem:[#allocation221_spill] sm:$0xff] %v7389_v15  ;;  %v7405_v54 = vld [vmem:[%s12507_s0 + $0x6c8] sm:$0xff] }
 0x275   :  { %12768 = vst [vmem:[#allocation217_spill] sm:$0xff] %v7372_v33  ;;  %v7374_v28 = vpop.permute.xlu1 %981 }
 0x276   :  { %12769 = vst [vmem:[#allocation218_spill] sm:$0xff] %v7374_v28  ;;  %v7376_v9 = vpop.permute.xlu0 %979 }
 0x277   :  { %12770 = vst [vmem:[#allocation219_spill] sm:$0xff] %v7376_v9 }
 0x278   :  { %12776 = vst [vmem:[#allocation225_spill] sm:$0xff] %v7405_v54 }
 0x27a   :  { %1171 = vrot.lane.b32.xlu2 %v7381_v41, %s5688_s24  ;;  %v7410_v41 = vld [vmem:[%s12507_s0 + $0x6b8] sm:$0xff] }
 0x27b   :  { %1169 = vrot.lane.b32.xlu1 %v247_v50, %s5688_s24  ;;  %v7415_v50 = vld [vmem:[%s12507_s0 + $0x6a8] sm:$0xff] }
 0x27c   :  { %1167 = vrot.lane.b32.xlu0 %v7389_v15, %s5688_s24  ;;  %v7396_v28 = vpop.permute.xlu2 %1105  ;;  %v7432_v15 = vld [vmem:[%s12507_s0 + $0x6e8] sm:$0xff] }
 0x27d   :  { %12773 = vst [vmem:[#allocation222_spill] sm:$0xff] %v7396_v28  ;;  %v7398_v9 = vpop.permute.xlu1 %1085 }
 0x27e   :  { %12774 = vst [vmem:[#allocation223_spill] sm:$0xff] %v7398_v9  ;;  %v7400_v33 = vpop.permute.xlu0 %985 }
 0x27f   :  { %12775 = vst [vmem:[#allocation224_spill] sm:$0xff] %v7400_v33 }
 0x280   :  { %12780 = vst [vmem:[#allocation229_spill] sm:$0xff] %v7432_v15 }
 0x282   :  { %1177 = vrot.lane.b32.xlu2 %v7405_v54, %s5688_s24  ;;  %v7437_v54 = vld [vmem:[%s12507_s0 + $0x6d8] sm:$0xff] }
 0x283   :  { %1175 = vrot.lane.b32.xlu1 %v7410_v41, %s5688_s24  ;;  %12781 = vst [vmem:[#allocation230_spill] sm:$0xff] %v7437_v54 }
 0x284   :  { %1173 = vrot.lane.b32.xlu0 %v7415_v50, %s5688_s24  ;;  %v7423_v33 = vpop.permute.xlu2 %1111 }
 0x285   :  { %12777 = vst [vmem:[#allocation226_spill] sm:$0xff] %v7423_v33  ;;  %v7425_v28 = vpop.permute.xlu1 %1091 }
 0x286   :  { %12778 = vst [vmem:[#allocation227_spill] sm:$0xff] %v7425_v28  ;;  %v7427_v9 = vpop.permute.xlu0 %1089 }
 0x287   :  { %12779 = vst [vmem:[#allocation228_spill] sm:$0xff] %v7427_v9 }
 0x28a   :  { %1239 = vrot.lane.b32.xlu2 %v6615_v37, %s5689_s29 }
 0x28b   :  { %1181 = vrot.lane.b32.xlu1 %v7432_v15, %s5688_s24 }
 0x28c   :  { %1179 = vrot.lane.b32.xlu0 %v7437_v54, %s5688_s24  ;;  %v7445_v33 = vpop.permute.xlu2 %1117 }
 0x28d   :  { %12782 = vst [vmem:[#allocation231_spill] sm:$0xff] %v7445_v33  ;;  %v7447_v28 = vpop.permute.xlu1 %1097  ;;  %v68_v33 = vld [vmem:[%s12507_s0 + $0xf0] sm:$0xff] }
 0x28e   :  { %v7449_v9 = vpop.permute.xlu0 %1095 }
 0x292   :  { %1245 = vrot.lane.b32.xlu2 %v6639_v19, %s5689_s29 }
 0x293   :  { %1243 = vrot.lane.b32.xlu1 %v6644_v51, %s5689_s29 }
 0x294   :  { %1241 = vrot.lane.b32.xlu0 %v6610_v43, %s5689_s29  ;;  %v7457_v37 = vpop.permute.xlu2 %1123 }
 0x295   :  { %12783 = vst [vmem:[#allocation232_spill] sm:$0xff] %v7457_v37  ;;  %v7459_v15 = vpop.permute.xlu1 %1103 }
 0x296   :  { %12784 = vst [vmem:[#allocation233_spill] sm:$0xff] %v7459_v15  ;;  %v7461_v54 = vpop.permute.xlu0 %1101  ;;  %v5480_v15 = vld [vmem:[%s12507_s0 + $0x408] sm:$0xff] }
 0x297   :  { %12785 = vst [vmem:[#allocation234_spill] sm:$0xff] %v7461_v54  ;;  %v5505_v54 = vld [vmem:[%s12507_s0 + $0x1b0] sm:$0xff] }
 0x29a   :  { %1251 = vrot.lane.b32.xlu2 %v68_v33, %s5689_s29 }
 0x29b   :  { %1249 = vrot.lane.b32.xlu1 %v6669_v29, %s5689_s29 }
 0x29c   :  { %1247 = vrot.lane.b32.xlu0 %v6634_v32, %s5689_s29  ;;  %v7471_v19 = vpop.permute.xlu2 %1129 }
 0x29d   :  { %12786 = vst [vmem:[#allocation235_spill] sm:$0xff] %v7471_v19  ;;  %v7473_v43 = vpop.permute.xlu1 %1109 }
 0x29e   :  { %12787 = vst [vmem:[#allocation236_spill] sm:$0xff] %v7473_v43  ;;  %v7475_v51 = vpop.permute.xlu0 %1107 }
 0x29f   :  { %12788 = vst [vmem:[#allocation237_spill] sm:$0xff] %v7475_v51 }
 0x2a2   :  { %1257 = vrot.lane.b32.xlu2 %v6690_v21, %s5689_s29 }
 0x2a3   :  { %1255 = vrot.lane.b32.xlu1 %v6695_v13, %s5689_s29 }
 0x2a4   :  { %1253 = vrot.lane.b32.xlu0 %v6661_v30, %s5689_s29  ;;  %v7483_v33 = vpop.permute.xlu2 %1135 }
 0x2a5   :  { %12789 = vst [vmem:[#allocation238_spill] sm:$0xff] %v7483_v33  ;;  %v7485_v29 = vpop.permute.xlu1 %1115  ;;  %v7504_v33 = vld [vmem:[%s12507_s0 + $0x1f0] sm:$0xff] }
 0x2a6   :  { %12790 = vst [vmem:[#allocation239_spill] sm:$0xff] %v7485_v29  ;;  %v7487_v32 = vpop.permute.xlu0 %1113  ;;  %v274_v29 = vld [vmem:[%s12507_s0 + $0x760] sm:$0xff] }
 0x2a7   :  { %12791 = vst [vmem:[#allocation240_spill] sm:$0xff] %v7487_v32  ;;  %v8215_v32 = vld [vmem:[%s12507_s0 + $0x138] sm:$0xff] }
 0x2aa   :  { %1263 = vrot.lane.b32.xlu2 %v6715_v48, %s5689_s29 }
 0x2ab   :  { %1261 = vrot.lane.b32.xlu1 %v6720_v0, %s5689_s29 }
 0x2ac   :  { %1259 = vrot.lane.b32.xlu0 %v6685_v10, %s5689_s29  ;;  %v7495_v21 = vpop.permute.xlu2 %1141 }
 0x2ad   :  { %12792 = vst [vmem:[#allocation241_spill] sm:$0xff] %v7495_v21  ;;  %v7497_v13 = vpop.permute.xlu1 %1121 }
 0x2ae   :  { %12793 = vst [vmem:[#allocation242_spill] sm:$0xff] %v7497_v13  ;;  %v7499_v30 = vpop.permute.xlu0 %1119  ;;  %v5437_v13 = vld [vmem:[%s12507_s0 + $0x320] sm:$0xff] }
 0x2af   :  { %12794 = vst [vmem:[#allocation243_spill] sm:$0xff] %v7499_v30  ;;  %v5444_v30 = vld [vmem:[%s12507_s0 + $0x440] sm:$0xff] }
 0x2b2   :  { %1269 = vrot.lane.b32.xlu2 %v6741_v17, %s5689_s29 }
 0x2b3   :  { %1267 = vrot.lane.b32.xlu1 %v6746_v5, %s5689_s29 }
 0x2b4   :  { %1265 = vrot.lane.b32.xlu0 %v7504_v33, %s5689_s29  ;;  %v7512_v0 = vpop.permute.xlu2 %1147 }
 0x2b5   :  { %12795 = vst [vmem:[#allocation244_spill] sm:$0xff] %v7512_v0  ;;  %v7514_v10 = vpop.permute.xlu1 %1127  ;;  %v132_v0 = vld [vmem:[%s12507_s0 + $0x2f0] sm:$0xff] }
 0x2b6   :  { %12796 = vst [vmem:[#allocation245_spill] sm:$0xff] %v7514_v10  ;;  %v7516_v48 = vpop.permute.xlu0 %1125 }
 0x2b7   :  { %12797 = vst [vmem:[#allocation246_spill] sm:$0xff] %v7516_v48 }
 0x2ba   :  { %1275 = vrot.lane.b32.xlu2 %v6768_v11, %s5689_s29 }
 0x2bb   :  { %1273 = vrot.lane.b32.xlu1 %v6773_v20, %s5689_s29 }
 0x2bc   :  { %1271 = vrot.lane.b32.xlu0 %v6736_v14, %s5689_s29  ;;  %v7524_v17 = vpop.permute.xlu2 %1153 }
 0x2bd   :  { %12798 = vst [vmem:[#allocation247_spill] sm:$0xff] %v7524_v17  ;;  %v7526_v5 = vpop.permute.xlu1 %1133  ;;  %v261_v17 = vld [vmem:[%s12507_s0 + $0x6f8] sm:$0xff] }
 0x2be   :  { %12799 = vst [vmem:[#allocation248_spill] sm:$0xff] %v7526_v5  ;;  %v7528_v21 = vpop.permute.xlu0 %1131 }
 0x2bf   :  { %12800 = vst [vmem:[#allocation249_spill] sm:$0xff] %v7528_v21  ;;  %v7942_v21 = vld [vmem:[%s12507_s0 + $0x230] sm:$0xff] }
 0x2c2   :  { %1281 = vrot.lane.b32.xlu2 %v6795_v24, %s5689_s29 }
 0x2c3   :  { %1279 = vrot.lane.b32.xlu1 %v132_v0, %s5689_s29 }
 0x2c4   :  { %1277 = vrot.lane.b32.xlu0 %v6763_v57, %s5689_s29  ;;  %v7538_v11 = vpop.permute.xlu2 %1159 }
 0x2c5   :  { %12801 = vst [vmem:[#allocation250_spill] sm:$0xff] %v7538_v11  ;;  %v7540_v14 = vpop.permute.xlu1 %1139  ;;  %v164_v11 = vld [vmem:[%s12507_s0 + $0x3f0] sm:$0xff] }
 0x2c6   :  { %12802 = vst [vmem:[#allocation251_spill] sm:$0xff] %v7540_v14  ;;  %v7542_v20 = vpop.permute.xlu0 %1137 }
 0x2c7   :  { %12803 = vst [vmem:[#allocation252_spill] sm:$0xff] %v7542_v20  ;;  %v102_v20 = vld [vmem:[%s12507_s0 + $0x200] sm:$0xff] }
 0x2ca   :  { %1287 = vrot.lane.b32.xlu2 %v6819_v18, %s5689_s29 }
 0x2cb   :  { %1285 = vrot.lane.b32.xlu1 %v6824_v52, %s5689_s29 }
 0x2cc   :  { %1283 = vrot.lane.b32.xlu0 %v6790_v6, %s5689_s29  ;;  %v7550_v24 = vpop.permute.xlu2 %1165 }
 0x2cd   :  { %12804 = vst [vmem:[#allocation253_spill] sm:$0xff] %v7550_v24  ;;  %v7552_v0 = vpop.permute.xlu1 %1145  ;;  %v228_v24 = vld [vmem:[%s12507_s0 + $0x5f0] sm:$0xff] }
 0x2ce   :  { %12805 = vst [vmem:[#allocation254_spill] sm:$0xff] %v7552_v0  ;;  %v7554_v57 = vpop.permute.xlu0 %1143  ;;  %v12853_v0 = vld [vmem:[#allocation192_spill] sm:$0xff] }
 0x2cf   :  { %12806 = vst [vmem:[#allocation255_spill] sm:$0xff] %v7554_v57  ;;  %v12876_v57 = vld [vmem:[#allocation209_spill] sm:$0xff] }
 0x2d2   :  { %1293 = vrot.lane.b32.xlu2 %v164_v11, %s5689_s29 }
 0x2d3   :  { %1291 = vrot.lane.b32.xlu1 %v6849_v47, %s5689_s29 }
 0x2d4   :  { %1289 = vrot.lane.b32.xlu0 %v6814_v8, %s5689_s29  ;;  %v7564_v18 = vpop.permute.xlu2 %1171 }
 0x2d5   :  { %12807 = vst [vmem:[#allocation256_spill] sm:$0xff] %v7564_v18  ;;  %v7566_v6 = vpop.permute.xlu1 %1151  ;;  %v12847_v18 = vld [vmem:[#allocation187_spill] sm:$0xff] }
 0x2d6   :  { %12808 = vst [vmem:[#allocation257_spill] sm:$0xff] %v7566_v6  ;;  %v7568_v52 = vpop.permute.xlu0 %1149  ;;  %v7891_v6 = vld [vmem:[%s12507_s0 + $0x140] sm:$0xff] }
 0x2d7   :  { %12809 = vst [vmem:[#allocation258_spill] sm:$0xff] %v7568_v52 }
 0x2da   :  { %1299 = vrot.lane.b32.xlu2 %v6870_v1, %s5689_s29 }
 0x2db   :  { %1297 = vrot.lane.b32.xlu1 %v6875_v16, %s5689_s29 }
 0x2dc   :  { %1295 = vrot.lane.b32.xlu0 %v6841_v3, %s5689_s29  ;;  %v7576_v11 = vpop.permute.xlu2 %1177 }
 0x2dd   :  { %12810 = vst [vmem:[#allocation259_spill] sm:$0xff] %v7576_v11  ;;  %v7578_v47 = vpop.permute.xlu1 %1157  ;;  %v196_v11 = vld [vmem:[%s12507_s0 + $0x4f0] sm:$0xff] }
 0x2de   :  { %12811 = vst [vmem:[#allocation260_spill] sm:$0xff] %v7578_v47  ;;  %v7580_v8 = vpop.permute.xlu0 %1155 }
 0x2df   :  { %12812 = vst [vmem:[#allocation261_spill] sm:$0xff] %v7580_v8  ;;  %v12859_v8 = vld [vmem:[#allocation198_spill] sm:$0xff] }
 0x2e2   :  { %1305 = vrot.lane.b32.xlu2 %v6895_v4, %s5689_s29 }
 0x2e3   :  { %1303 = vrot.lane.b32.xlu1 %v6900_v25, %s5689_s29 }
 0x2e4   :  { %1301 = vrot.lane.b32.xlu0 %v6865_v46, %s5689_s29  ;;  %v7588_v1 = vpop.permute.xlu2 %1239 }
 0x2e5   :  { %v7590_v16 = vpop.permute.xlu1 %1163 }
 0x2e6   :  { %12813 = vst [vmem:[#allocation262_spill] sm:$0xff] %v7590_v16  ;;  %v7592_v3 = vpop.permute.xlu0 %1161 }
 0x2e7   :  { %12814 = vst [vmem:[#allocation263_spill] sm:$0xff] %v7592_v3 }
 0x2ea   :  { %1311 = vrot.lane.b32.xlu2 %v6921_v27, %s5689_s29 }
 0x2eb   :  { %1309 = vrot.lane.b32.xlu1 %v6926_v59, %s5689_s29 }
 0x2ec   :  { %1307 = vrot.lane.b32.xlu0 %v196_v11, %s5689_s29  ;;  %v7602_v4 = vpop.permute.xlu2 %1245 }
 0x2ed   :  { %v7604_v25 = vpop.permute.xlu1 %1169 }
 0x2ee   :  { %12815 = vst [vmem:[#allocation264_spill] sm:$0xff] %v7604_v25  ;;  %v7606_v46 = vpop.permute.xlu0 %1167  ;;  %v12848_v25 = vld [vmem:[#allocation188_spill] sm:$0xff] }
 0x2ef   :  { %12816 = vst [vmem:[#allocation265_spill] sm:$0xff] %v7606_v46  ;;  %v7713_v46 = vld [vmem:[%s12507_s0 + $0x1f8] sm:$0xff] }
 0x2f2   :  { %1317 = vrot.lane.b32.xlu2 %v6948_v23, %s5689_s29 }
 0x2f3   :  { %1315 = vrot.lane.b32.xlu1 %v6953_v44, %s5689_s29 }
 0x2f4   :  { %1313 = vrot.lane.b32.xlu0 %v6916_v42, %s5689_s29  ;;  %v7614_v27 = vpop.permute.xlu2 %1251 }
 0x2f5   :  { %v7616_v59 = vpop.permute.xlu1 %1175 }
 0x2f6   :  { %12817 = vst [vmem:[#allocation266_spill] sm:$0xff] %v7616_v59  ;;  %v7618_v11 = vpop.permute.xlu0 %1173 }
 0x2f7   :  { %12818 = vst [vmem:[#allocation267_spill] sm:$0xff] %v7618_v11  ;;  %v133_v11 = vld [vmem:[%s12507_s0 + $0x2f8] sm:$0xff] }
 0x2fa   :  { %1323 = vrot.lane.b32.xlu2 %v6975_v61, %s5689_s29 }
 0x2fb   :  { %1321 = vrot.lane.b32.xlu1 %v228_v24, %s5689_s29 }
 0x2fc   :  { %1319 = vrot.lane.b32.xlu0 %v6943_v35, %s5689_s29  ;;  %v7628_v44 = vpop.permute.xlu2 %1257 }
 0x2fd   :  { %12819 = vst [vmem:[#allocation268_spill] sm:$0xff] %v7628_v44  ;;  %v7630_v23 = vpop.permute.xlu1 %1181  ;;  %v8344_v44 = vld [vmem:[%s12507_s0 + $0x348] sm:$0xff] }
 0x2fe   :  { %12820 = vst [vmem:[#allocation269_spill] sm:$0xff] %v7630_v23  ;;  %v7632_v42 = vpop.permute.xlu0 %1179  ;;  %v260_v23 = vld [vmem:[%s12507_s0 + $0x6f0] sm:$0xff] }
 0x2ff   :  { %12821 = vst [vmem:[#allocation270_spill] sm:$0xff] %v7632_v42  ;;  %v69_v42 = vld [vmem:[%s12507_s0 + $0xf8] sm:$0xff] }
 0x300   :  { %12946 = vst [vmem:[#allocation345_spill] sm:$0xff] %v8344_v44 }
 0x302   :  { %1329 = vrot.lane.b32.xlu2 %v6999_v62, %s5689_s29 }
 0x303   :  { %1327 = vrot.lane.b32.xlu1 %v7004_v38, %s5689_s29 }
 0x304   :  { %1325 = vrot.lane.b32.xlu0 %v6970_v12, %s5689_s29  ;;  %v7640_v61 = vpop.permute.xlu2 %1263 }
 0x305   :  { %12822 = vst [vmem:[#allocation271_spill] sm:$0xff] %v7640_v61  ;;  %v7642_v24 = vpop.permute.xlu1 %1243 }
 0x306   :  { %v7644_v35 = vpop.permute.xlu0 %1241 }
 0x30a   :  { %1335 = vrot.lane.b32.xlu2 %v260_v23, %s5689_s29 }
 0x30b   :  { %1333 = vrot.lane.b32.xlu1 %v7029_v53, %s5689_s29 }
 0x30c   :  { %1331 = vrot.lane.b32.xlu0 %v6994_v7, %s5689_s29  ;;  %v7654_v62 = vpop.permute.xlu2 %1269  ;;  %s5696_s29 = smov 52  }
 0x30d   :  { %12823 = vst [vmem:[#allocation272_spill] sm:$0xff] %v7654_v62  ;;  %v7656_v12 = vpop.permute.xlu1 %1249 }
 0x30e   :  { %v7658_v38 = vpop.permute.xlu0 %1247 }
 0x312   :  { %1397 = vrot.lane.b32.xlu2 %v7050_v45, %s5690_s25 }
 0x313   :  { %1395 = vrot.lane.b32.xlu1 %v7055_v40, %s5690_s25 }
 0x314   :  { %1393 = vrot.lane.b32.xlu0 %v7021_v2, %s5690_s25  ;;  %v7666_v53 = vpop.permute.xlu2 %1275 }
 0x315   :  { %12824 = vst [vmem:[#allocation273_spill] sm:$0xff] %v7666_v53  ;;  %v7668_v23 = vpop.permute.xlu1 %1255  ;;  %v134_v53 = vld [vmem:[%s12507_s0 + $0x300] sm:$0xff] }
 0x316   :  { %12825 = vst [vmem:[#allocation274_spill] sm:$0xff] %v7668_v23  ;;  %v7670_v7 = vpop.permute.xlu0 %1253 }
 0x31a   :  { %1403 = vrot.lane.b32.xlu2 %v7075_v63, %s5690_s25 }
 0x31b   :  { %1401 = vrot.lane.b32.xlu1 %v7080_v55, %s5690_s25 }
 0x31c   :  { %1399 = vrot.lane.b32.xlu0 %v7045_v36, %s5690_s25  ;;  %v7678_v45 = vpop.permute.xlu2 %1281 }
 0x31d   :  { %12826 = vst [vmem:[#allocation275_spill] sm:$0xff] %v7678_v45  ;;  %v7680_v40 = vpop.permute.xlu1 %1261 }
 0x31e   :  { %12827 = vst [vmem:[#allocation276_spill] sm:$0xff] %v7680_v40  ;;  %v7682_v2 = vpop.permute.xlu0 %1259  ;;  %v8276_v40 = vld [vmem:[%s12507_s0 + $0x218] sm:$0xff] }
 0x31f   :  { %12828 = vst [vmem:[#allocation277_spill] sm:$0xff] %v7682_v2  ;;  %v8320_v2 = vld [vmem:[%s12507_s0 + $0x318] sm:$0xff] }
 0x322   :  { %1409 = vrot.lane.b32.xlu2 %v7101_v34, %s5690_s25 }
 0x323   :  { %1407 = vrot.lane.b32.xlu1 %v7106_v22, %s5690_s25 }
 0x324   :  { %1405 = vrot.lane.b32.xlu0 %v69_v42, %s5690_s25  ;;  %v7692_v55 = vpop.permute.xlu2 %1287 }
 0x325   :  { %12829 = vst [vmem:[#allocation278_spill] sm:$0xff] %v7692_v55  ;;  %v7694_v36 = vpop.permute.xlu1 %1267  ;;  %v7929_v55 = vld [vmem:[%s12507_s0 + $0x150] sm:$0xff] }
 0x326   :  { %12830 = vst [vmem:[#allocation279_spill] sm:$0xff] %v7694_v36  ;;  %v7696_v63 = vpop.permute.xlu0 %1265 }
 0x327   :  { %12831 = vst [vmem:[#allocation280_spill] sm:$0xff] %v7696_v63  ;;  %v8249_v63 = vld [vmem:[%s12507_s0 + $0x158] sm:$0xff] }
 0x32a   :  { %1415 = vrot.lane.b32.xlu2 %v7128_v49, %s5690_s25 }
 0x32b   :  { %1413 = vrot.lane.b32.xlu1 %v7133_v39, %s5690_s25 }
 0x32c   :  { %1411 = vrot.lane.b32.xlu0 %v7096_v26, %s5690_s25  ;;  %v7704_v34 = vpop.permute.xlu2 %1293 }
 0x32d   :  { %12832 = vst [vmem:[#allocation281_spill] sm:$0xff] %v7704_v34  ;;  %v7706_v22 = vpop.permute.xlu1 %1273 }
 0x32e   :  { %12833 = vst [vmem:[#allocation282_spill] sm:$0xff] %v7706_v22  ;;  %v7708_v42 = vpop.permute.xlu0 %1271  ;;  %v5440_v22 = vld [vmem:[%s12507_s0 + $0x340] sm:$0xff] }
 0x32f   :  { %12834 = vst [vmem:[#allocation283_spill] sm:$0xff] %v7708_v42 }
 0x332   :  { %1421 = vrot.lane.b32.xlu2 %v7155_v58, %s5690_s25  ;;  %v12838_v58 = vld [vmem:[#allocation173_spill] sm:$0xff] }
 0x333   :  { %1419 = vrot.lane.b32.xlu1 %v7713_v46, %s5690_s25 }
 0x334   :  { %1417 = vrot.lane.b32.xlu0 %v7123_v60, %s5690_s25  ;;  %v7721_v49 = vpop.permute.xlu2 %1299 }
 0x335   :  { %12835 = vst [vmem:[#allocation284_spill] sm:$0xff] %v7721_v49  ;;  %v7723_v26 = vpop.permute.xlu1 %1279 }
 0x336   :  { %12836 = vst [vmem:[#allocation285_spill] sm:$0xff] %v7723_v26  ;;  %v7725_v39 = vpop.permute.xlu0 %1277  ;;  %v7976_v26 = vld [vmem:[%s12507_s0 + $0x250] sm:$0xff] }
 0x337   :  { %12837 = vst [vmem:[#allocation286_spill] sm:$0xff] %v7725_v39 }
 0x33a   :  { %1427 = vrot.lane.b32.xlu2 %v7179_v31, %s5690_s25  ;;  %v12842_v31 = vld [vmem:[#allocation182_spill] sm:$0xff] }
 0x33b   :  { %1425 = vrot.lane.b32.xlu1 %v7184_v56, %s5690_s25  ;;  %v12843_v56 = vld [vmem:[#allocation177_spill] sm:$0xff] }
 0x33c   :  { %1423 = vrot.lane.b32.xlu0 %v12838_v58, %s5690_s25  ;;  %v7733_v59 = vpop.permute.xlu2 %1305 }
 0x33d   :  { %12839 = vst [vmem:[#allocation173_spill] sm:$0xff] %v7733_v59  ;;  %v7735_v16 = vpop.permute.xlu1 %1285 }
 0x33e   :  { %12840 = vst [vmem:[#allocation287_spill] sm:$0xff] %v7735_v16  ;;  %v7737_v60 = vpop.permute.xlu0 %1283 }
 0x33f   :  { %12841 = vst [vmem:[#allocation288_spill] sm:$0xff] %v7737_v60  ;;  %v7949_v60 = vld [vmem:[%s12507_s0 + $0x220] sm:$0xff] }
 0x342   :  { %1433 = vrot.lane.b32.xlu2 %v133_v11, %s5690_s25  ;;  %v12849_v11 = vld [vmem:[#allocation181_spill] sm:$0xff] }
 0x343   :  { %1431 = vrot.lane.b32.xlu1 %v12842_v31, %s5690_s25 }
 0x344   :  { %1429 = vrot.lane.b32.xlu0 %v12843_v56, %s5690_s25  ;;  %v7747_v52 = vpop.permute.xlu2 %1311 }
 0x345   :  { %12844 = vst [vmem:[#allocation182_spill] sm:$0xff] %v7747_v52  ;;  %v7749_v58 = vpop.permute.xlu1 %1291  ;;  %v12854_v52 = vld [vmem:[#allocation193_spill] sm:$0xff] }
 0x346   :  { %12845 = vst [vmem:[#allocation177_spill] sm:$0xff] %v7749_v58  ;;  %v7751_v3 = vpop.permute.xlu0 %1289 }
 0x347   :  { %12846 = vst [vmem:[#allocation289_spill] sm:$0xff] %v7751_v3  ;;  %v7922_v3 = vld [vmem:[%s12507_s0 + $0x160] sm:$0xff] }
 0x34a   :  { %1439 = vrot.lane.b32.xlu2 %v12847_v18, %s5690_s25  ;;  %v12855_v18 = vld [vmem:[#allocation186_spill] sm:$0xff] }
 0x34b   :  { %1437 = vrot.lane.b32.xlu1 %v12848_v25, %s5690_s25 }
 0x34c   :  { %1435 = vrot.lane.b32.xlu0 %v12849_v11, %s5690_s25  ;;  %v7759_v49 = vpop.permute.xlu2 %1317 }
 0x34d   :  { %12850 = vst [vmem:[#allocation187_spill] sm:$0xff] %v7759_v49  ;;  %v7761_v31 = vpop.permute.xlu1 %1297  ;;  %v165_v49 = vld [vmem:[%s12507_s0 + $0x3f8] sm:$0xff] }
 0x34e   :  { %12851 = vst [vmem:[#allocation188_spill] sm:$0xff] %v7761_v31  ;;  %v7763_v56 = vpop.permute.xlu0 %1295  ;;  %v12866_v31 = vld [vmem:[#allocation197_spill] sm:$0xff] }
 0x34f   :  { %12852 = vst [vmem:[#allocation181_spill] sm:$0xff] %v7763_v56 }
 0x352   :  { %1445 = vrot.lane.b32.xlu2 %v12853_v0, %s5690_s25  ;;  %v12860_v0 = vld [vmem:[#allocation199_spill] sm:$0xff] }
 0x353   :  { %1443 = vrot.lane.b32.xlu1 %v12854_v52, %s5690_s25 }
 0x354   :  { %1441 = vrot.lane.b32.xlu0 %v12855_v18, %s5690_s25  ;;  %v7771_v47 = vpop.permute.xlu2 %1323 }
 0x355   :  { %12856 = vst [vmem:[#allocation192_spill] sm:$0xff] %v7771_v47  ;;  %v7773_v25 = vpop.permute.xlu1 %1303 }
 0x356   :  { %12857 = vst [vmem:[#allocation193_spill] sm:$0xff] %v7773_v25  ;;  %v7775_v11 = vpop.permute.xlu0 %1301  ;;  %v12864_v25 = vld [vmem:[#allocation204_spill] sm:$0xff] }
 0x357   :  { %12858 = vst [vmem:[#allocation186_spill] sm:$0xff] %v7775_v11  ;;  %v12865_v11 = vld [vmem:[#allocation205_spill] sm:$0xff] }
 0x35a   :  { %1451 = vrot.lane.b32.xlu2 %v12859_v8, %s5690_s25 }
 0x35b   :  { %1449 = vrot.lane.b32.xlu1 %v12860_v0, %s5690_s25 }
 0x35c   :  { %1447 = vrot.lane.b32.xlu0 %v165_v49, %s5690_s25  ;;  %v7785_v52 = vpop.permute.xlu2 %1329 }
 0x35d   :  { %12861 = vst [vmem:[#allocation198_spill] sm:$0xff] %v7785_v52  ;;  %v7787_v18 = vpop.permute.xlu1 %1309  ;;  %v197_v52 = vld [vmem:[%s12507_s0 + $0x4f8] sm:$0xff] }
 0x35e   :  { %12862 = vst [vmem:[#allocation199_spill] sm:$0xff] %v7787_v18  ;;  %v7789_v47 = vpop.permute.xlu0 %1307  ;;  %v12870_v18 = vld [vmem:[#allocation210_spill] sm:$0xff] }
 0x35f   :  { %12863 = vst [vmem:[#allocation290_spill] sm:$0xff] %v7789_v47 }
 0x362   :  { %1457 = vrot.lane.b32.xlu2 %v12864_v25, %s5690_s25  ;;  %v12871_v25 = vld [vmem:[#allocation203_spill] sm:$0xff] }
 0x363   :  { %1455 = vrot.lane.b32.xlu1 %v12865_v11, %s5690_s25 }
 0x364   :  { %1453 = vrot.lane.b32.xlu0 %v12866_v31, %s5690_s25  ;;  %v7797_v8 = vpop.permute.xlu2 %1335 }
 0x365   :  { %12867 = vst [vmem:[#allocation204_spill] sm:$0xff] %v7797_v8  ;;  %v7799_v0 = vpop.permute.xlu1 %1315 }
 0x366   :  { %12868 = vst [vmem:[#allocation205_spill] sm:$0xff] %v7799_v0  ;;  %v7801_v49 = vpop.permute.xlu0 %1313  ;;  %v12874_v0 = vld [vmem:[#allocation215_spill] sm:$0xff] }
 0x367   :  { %12869 = vst [vmem:[#allocation197_spill] sm:$0xff] %v7801_v49  ;;  %v12875_v49 = vld [vmem:[#allocation216_spill] sm:$0xff] }
 0x36a   :  { %1463 = vrot.lane.b32.xlu2 %v12870_v18, %s5690_s25 }
 0x36b   :  { %1461 = vrot.lane.b32.xlu1 %v197_v52, %s5690_s25 }
 0x36c   :  { %1459 = vrot.lane.b32.xlu0 %v12871_v25, %s5690_s25  ;;  %v7811_v11 = vpop.permute.xlu2 %1397 }
 0x36d   :  { %v7813_v31 = vpop.permute.xlu1 %1321 }
 0x36e   :  { %12872 = vst [vmem:[#allocation210_spill] sm:$0xff] %v7813_v31  ;;  %v7815_v8 = vpop.permute.xlu0 %1319  ;;  %v229_v31 = vld [vmem:[%s12507_s0 + $0x5f8] sm:$0xff] }
 0x36f   :  { %12873 = vst [vmem:[#allocation203_spill] sm:$0xff] %v7815_v8 }
 0x372   :  { %1469 = vrot.lane.b32.xlu2 %v12874_v0, %s5690_s25  ;;  %v12879_v0 = vld [vmem:[#allocation221_spill] sm:$0xff] }
 0x373   :  { %1467 = vrot.lane.b32.xlu1 %v12875_v49, %s5690_s25  ;;  %v12880_v49 = vld [vmem:[#allocation214_spill] sm:$0xff] }
 0x374   :  { %1465 = vrot.lane.b32.xlu0 %v12876_v57, %s5690_s25  ;;  %v7823_v18 = vpop.permute.xlu2 %1403 }
 0x375   :  { %v7825_v52 = vpop.permute.xlu1 %1327 }
 0x376   :  { %12877 = vst [vmem:[#allocation215_spill] sm:$0xff] %v7825_v52  ;;  %v7827_v25 = vpop.permute.xlu0 %1325 }
 0x377   :  { %12878 = vst [vmem:[#allocation216_spill] sm:$0xff] %v7827_v25  ;;  %v12886_v25 = vld [vmem:[#allocation229_spill] sm:$0xff] }
 0x37a   :  { %1475 = vrot.lane.b32.xlu2 %v229_v31, %s5690_s25  ;;  %v12884_v31 = vld [vmem:[#allocation220_spill] sm:$0xff] }
 0x37b   :  { %1473 = vrot.lane.b32.xlu1 %v12879_v0, %s5690_s25 }
 0x37c   :  { %1471 = vrot.lane.b32.xlu0 %v12880_v49, %s5690_s25  ;;  %v7837_v8 = vpop.permute.xlu2 %1409 }
 0x37d   :  { %12881 = vst [vmem:[#allocation209_spill] sm:$0xff] %v7837_v8  ;;  %v7839_v57 = vpop.permute.xlu1 %1333 }
 0x37e   :  { %12882 = vst [vmem:[#allocation221_spill] sm:$0xff] %v7839_v57  ;;  %v7841_v47 = vpop.permute.xlu0 %1331  ;;  %v12887_v57 = vld [vmem:[#allocation230_spill] sm:$0xff] }
 0x37f   :  { %12883 = vst [vmem:[#allocation214_spill] sm:$0xff] %v7841_v47 }
 0x382   :  { %1481 = vrot.lane.b32.xlu2 %v7410_v41, %s5690_s25  ;;  %v12888_v41 = vld [vmem:[#allocation225_spill] sm:$0xff] }
 0x383   :  { %1479 = vrot.lane.b32.xlu1 %v7415_v50, %s5690_s25 }
 0x384   :  { %1477 = vrot.lane.b32.xlu0 %v12884_v31, %s5690_s25  ;;  %v7849_v52 = vpop.permute.xlu2 %1415 }
 0x385   :  { %12885 = vst [vmem:[#allocation220_spill] sm:$0xff] %v7849_v52  ;;  %v7851_v0 = vpop.permute.xlu1 %1395  ;;  %v8269_v52 = vld [vmem:[%s12507_s0 + $0x228] sm:$0xff] }
 0x386   :  { %v7853_v49 = vpop.permute.xlu0 %1393 }
 0x38a   :  { %1487 = vrot.lane.b32.xlu2 %v12886_v25, %s5690_s25  ;;  %v70_v25 = vld [vmem:[%s12507_s0 + $0x100] sm:$0xff] }
 0x38b   :  { %1485 = vrot.lane.b32.xlu1 %v12887_v57, %s5690_s25  ;;  %v7876_v57 = vld [vmem:[%s12507_s0 + $0x110] sm:$0xff] }
 0x38c   :  { %1483 = vrot.lane.b32.xlu0 %v12888_v41, %s5690_s25  ;;  %v7861_v47 = vpop.permute.xlu2 %1421 }
 0x38d   :  { %12889 = vst [vmem:[#allocation229_spill] sm:$0xff] %v7861_v47  ;;  %v7863_v50 = vpop.permute.xlu1 %1401  ;;  %v272_v47 = vld [vmem:[%s12507_s0 + $0x750] sm:$0xff] }
 0x38e   :  { %v7865_v31 = vpop.permute.xlu0 %1399 }
 0x392   :  { %1555 = vrot.lane.b32.xlu2 %v7876_v57, %s5691_s26 }
 0x393   :  { %1553 = vrot.lane.b32.xlu1 %v70_v25, %s5691_s26  ;;  %v7898_v25 = vld [vmem:[%s12507_s0 + $0x130] sm:$0xff] }
 0x394   :  { %1489 = vrot.lane.b32.xlu0 %v261_v17, %s5690_s25  ;;  %v7882_v41 = vpop.permute.xlu2 %1427  ;;  %v7905_v17 = vld [vmem:[%s12507_s0 + $0x120] sm:$0xff] }
 0x395   :  { %12890 = vst [vmem:[#allocation230_spill] sm:$0xff] %v7882_v41  ;;  %v7884_v56 = vpop.permute.xlu1 %1407  ;;  %v8003_v41 = vld [vmem:[%s12507_s0 + $0x310] sm:$0xff] }
 0x396   :  { %v7886_v59 = vpop.permute.xlu0 %1405 }
 0x39a   :  { %1561 = vrot.lane.b32.xlu2 %v7891_v6, %s5691_s26 }
 0x39b   :  { %1559 = vrot.lane.b32.xlu1 %v7898_v25, %s5691_s26 }
 0x39c   :  { %1557 = vrot.lane.b32.xlu0 %v7905_v17, %s5691_s26  ;;  %v7909_v34 = vpop.permute.xlu2 %1433 }
 0x39d   :  { %12891 = vst [vmem:[#allocation225_spill] sm:$0xff] %v7909_v34  ;;  %v7911_v14 = vpop.permute.xlu1 %1413  ;;  %v7969_v34 = vld [vmem:[%s12507_s0 + $0x260] sm:$0xff] }
 0x39e   :  { %12892 = vst [vmem:[#allocation291_spill] sm:$0xff] %v7911_v14  ;;  %v7913_v58 = vpop.permute.xlu0 %1411  ;;  %v8300_v14 = vld [vmem:[%s12507_s0 + $0x248] sm:$0xff] }
 0x39f   :  { %12893 = vst [vmem:[#allocation292_spill] sm:$0xff] %v7913_v58 }
 0x3a2   :  { %1567 = vrot.lane.b32.xlu2 %v102_v20, %s5691_s26 }
 0x3a3   :  { %1565 = vrot.lane.b32.xlu1 %v7922_v3, %s5691_s26 }
 0x3a4   :  { %1563 = vrot.lane.b32.xlu0 %v7929_v55, %s5691_s26  ;;  %v7933_v5 = vpop.permute.xlu2 %1439 }
 0x3a5   :  { %12894 = vst [vmem:[#allocation293_spill] sm:$0xff] %v7933_v5  ;;  %v7935_v16 = vpop.permute.xlu1 %1419  ;;  %v7956_v5 = vld [vmem:[%s12507_s0 + $0x210] sm:$0xff] }
 0x3a6   :  { %12895 = vst [vmem:[#allocation294_spill] sm:$0xff] %v7935_v16  ;;  %v7937_v20 = vpop.permute.xlu0 %1417  ;;  %v8242_v16 = vld [vmem:[%s12507_s0 + $0x168] sm:$0xff] }
 0x3a7   :  { %12896 = vst [vmem:[#allocation295_spill] sm:$0xff] %v7937_v20 }
 0x3aa   :  { %1573 = vrot.lane.b32.xlu2 %v7942_v21, %s5691_s26 }
 0x3ab   :  { %1571 = vrot.lane.b32.xlu1 %v7949_v60, %s5691_s26 }
 0x3ac   :  { %1569 = vrot.lane.b32.xlu0 %v7956_v5, %s5691_s26  ;;  %v7960_v19 = vpop.permute.xlu2 %1445 }
 0x3ad   :  { %12897 = vst [vmem:[#allocation296_spill] sm:$0xff] %v7960_v19  ;;  %v7962_v45 = vpop.permute.xlu1 %1425  ;;  %v7983_v19 = vld [vmem:[%s12507_s0 + $0x240] sm:$0xff] }
 0x3ae   :  { %12898 = vst [vmem:[#allocation297_spill] sm:$0xff] %v7962_v45  ;;  %v7964_v10 = vpop.permute.xlu0 %1423  ;;  %v5457_v45 = vld [vmem:[%s12507_s0 + $0x650] sm:$0xff] }
 0x3af   :  { %12899 = vst [vmem:[#allocation298_spill] sm:$0xff] %v7964_v10  ;;  %v270_v10 = vld [vmem:[%s12507_s0 + $0x740] sm:$0xff] }
 0x3b2   :  { %1579 = vrot.lane.b32.xlu2 %v7969_v34, %s5691_s26 }
 0x3b3   :  { %1577 = vrot.lane.b32.xlu1 %v7976_v26, %s5691_s26 }
 0x3b4   :  { %1575 = vrot.lane.b32.xlu0 %v7983_v19, %s5691_s26  ;;  %v7987_v48 = vpop.permute.xlu2 %1451 }
 0x3b5   :  { %12900 = vst [vmem:[#allocation299_spill] sm:$0xff] %v7987_v48  ;;  %v7989_v39 = vpop.permute.xlu1 %1431 }
 0x3b6   :  { %12901 = vst [vmem:[#allocation300_spill] sm:$0xff] %v7989_v39  ;;  %v7991_v37 = vpop.permute.xlu0 %1429 }
 0x3b7   :  { %12902 = vst [vmem:[#allocation301_spill] sm:$0xff] %v7991_v37 }
 0x3ba   :  { %1585 = vrot.lane.b32.xlu2 %v5437_v13, %s5691_s26  ;;  %v5439_v13 = vld [vmem:[%s12507_s0 + $0x350] sm:$0xff] }
 0x3bb   :  { %1583 = vrot.lane.b32.xlu1 %v8003_v41, %s5691_s26 }
 0x3bc   :  { %1581 = vrot.lane.b32.xlu0 %v134_v53, %s5691_s26  ;;  %v8008_v48 = vpop.permute.xlu2 %1457  ;;  %v5441_v53 = vld [vmem:[%s12507_s0 + $0x330] sm:$0xff] }
 0x3bd   :  { %12903 = vst [vmem:[#allocation302_spill] sm:$0xff] %v8008_v48  ;;  %v8010_v39 = vpop.permute.xlu1 %1437 }
 0x3be   :  { %12904 = vst [vmem:[#allocation303_spill] sm:$0xff] %v8010_v39  ;;  %v8012_v37 = vpop.permute.xlu0 %1435 }
 0x3bf   :  { %12905 = vst [vmem:[#allocation304_spill] sm:$0xff] %v8012_v37 }
 0x3c2   :  { %1591 = vrot.lane.b32.xlu2 %v5439_v13, %s5691_s26  ;;  %v166_v13 = vld [vmem:[%s12507_s0 + $0x400] sm:$0xff] }
 0x3c3   :  { %1589 = vrot.lane.b32.xlu1 %v5440_v22, %s5691_s26  ;;  %v5442_v22 = vld [vmem:[%s12507_s0 + $0x410] sm:$0xff] }
 0x3c4   :  { %1587 = vrot.lane.b32.xlu0 %v5441_v53, %s5691_s26  ;;  %v8026_v48 = vpop.permute.xlu2 %1463  ;;  %v5443_v53 = vld [vmem:[%s12507_s0 + $0x360] sm:$0xff] }
 0x3c5   :  { %12906 = vst [vmem:[#allocation305_spill] sm:$0xff] %v8026_v48  ;;  %v8028_v39 = vpop.permute.xlu1 %1443 }
 0x3c6   :  { %12907 = vst [vmem:[#allocation306_spill] sm:$0xff] %v8028_v39  ;;  %v8030_v37 = vpop.permute.xlu0 %1441 }
 0x3c7   :  { %12908 = vst [vmem:[#allocation307_spill] sm:$0xff] %v8030_v37 }
 0x3ca   :  { %1597 = vrot.lane.b32.xlu2 %v5442_v22, %s5691_s26  ;;  %v5446_v22 = vld [vmem:[%s12507_s0 + $0x420] sm:$0xff] }
 0x3cb   :  { %1595 = vrot.lane.b32.xlu1 %v166_v13, %s5691_s26  ;;  %v5445_v13 = vld [vmem:[%s12507_s0 + $0x430] sm:$0xff] }
 0x3cc   :  { %1593 = vrot.lane.b32.xlu0 %v5443_v53, %s5691_s26  ;;  %v8044_v48 = vpop.permute.xlu2 %1469 }
 0x3cd   :  { %12909 = vst [vmem:[#allocation308_spill] sm:$0xff] %v8044_v48  ;;  %v8046_v39 = vpop.permute.xlu1 %1449 }
 0x3ce   :  { %12910 = vst [vmem:[#allocation309_spill] sm:$0xff] %v8046_v39  ;;  %v8048_v37 = vpop.permute.xlu0 %1447 }
 0x3cf   :  { %12911 = vst [vmem:[#allocation310_spill] sm:$0xff] %v8048_v37 }
 0x3d2   :  { %1603 = vrot.lane.b32.xlu2 %v5444_v30, %s5691_s26  ;;  %v198_v30 = vld [vmem:[%s12507_s0 + $0x500] sm:$0xff] }
 0x3d3   :  { %1601 = vrot.lane.b32.xlu1 %v5445_v13, %s5691_s26  ;;  %v5447_v13 = vld [vmem:[%s12507_s0 + $0x460] sm:$0xff] }
 0x3d4   :  { %1599 = vrot.lane.b32.xlu0 %v5446_v22, %s5691_s26  ;;  %v8062_v53 = vpop.permute.xlu2 %1475  ;;  %v5448_v22 = vld [vmem:[%s12507_s0 + $0x450] sm:$0xff] }
 0x3d5   :  { %12912 = vst [vmem:[#allocation311_spill] sm:$0xff] %v8062_v53  ;;  %v8064_v48 = vpop.permute.xlu1 %1455 }
 0x3d6   :  { %12913 = vst [vmem:[#allocation312_spill] sm:$0xff] %v8064_v48  ;;  %v8066_v39 = vpop.permute.xlu0 %1453 }
 0x3d7   :  { %12914 = vst [vmem:[#allocation313_spill] sm:$0xff] %v8066_v39 }
 0x3da   :  { %1609 = vrot.lane.b32.xlu2 %v198_v30, %s5691_s26  ;;  %v5449_v30 = vld [vmem:[%s12507_s0 + $0x530] sm:$0xff] }
 0x3db   :  { %1607 = vrot.lane.b32.xlu1 %v5447_v13, %s5691_s26  ;;  %v5450_v13 = vld [vmem:[%s12507_s0 + $0x520] sm:$0xff] }
 0x3dc   :  { %1605 = vrot.lane.b32.xlu0 %v5448_v22, %s5691_s26  ;;  %v8080_v53 = vpop.permute.xlu2 %1481  ;;  %v5451_v22 = vld [vmem:[%s12507_s0 + $0x510] sm:$0xff] }
 0x3dd   :  { %12915 = vst [vmem:[#allocation314_spill] sm:$0xff] %v8080_v53  ;;  %v8082_v48 = vpop.permute.xlu1 %1461 }
 0x3de   :  { %12916 = vst [vmem:[#allocation315_spill] sm:$0xff] %v8082_v48  ;;  %v8084_v39 = vpop.permute.xlu0 %1459 }
 0x3df   :  { %12917 = vst [vmem:[#allocation316_spill] sm:$0xff] %v8084_v39 }
 0x3e2   :  { %1615 = vrot.lane.b32.xlu2 %v5449_v30, %s5691_s26  ;;  %v5452_v30 = vld [vmem:[%s12507_s0 + $0x560] sm:$0xff] }
 0x3e3   :  { %1613 = vrot.lane.b32.xlu1 %v5450_v13, %s5691_s26  ;;  %v5453_v13 = vld [vmem:[%s12507_s0 + $0x550] sm:$0xff] }
 0x3e4   :  { %1611 = vrot.lane.b32.xlu0 %v5451_v22, %s5691_s26  ;;  %v8098_v53 = vpop.permute.xlu2 %1487  ;;  %v5454_v22 = vld [vmem:[%s12507_s0 + $0x540] sm:$0xff] }
 0x3e5   :  { %12918 = vst [vmem:[#allocation317_spill] sm:$0xff] %v8098_v53  ;;  %v8100_v48 = vpop.permute.xlu1 %1467 }
 0x3e6   :  { %12919 = vst [vmem:[#allocation318_spill] sm:$0xff] %v8100_v48  ;;  %v8102_v39 = vpop.permute.xlu0 %1465 }
 0x3e7   :  { %12920 = vst [vmem:[#allocation319_spill] sm:$0xff] %v8102_v39 }
 0x3ea   :  { %1621 = vrot.lane.b32.xlu2 %v5452_v30, %s5691_s26  ;;  %v230_v30 = vld [vmem:[%s12507_s0 + $0x600] sm:$0xff] }
 0x3eb   :  { %1619 = vrot.lane.b32.xlu1 %v5453_v13, %s5691_s26  ;;  %v5455_v13 = vld [vmem:[%s12507_s0 + $0x620] sm:$0xff] }
 0x3ec   :  { %1617 = vrot.lane.b32.xlu0 %v5454_v22, %s5691_s26  ;;  %v8116_v53 = vpop.permute.xlu2 %1555  ;;  %v5456_v22 = vld [vmem:[%s12507_s0 + $0x610] sm:$0xff] }
 0x3ed   :  { %v8118_v48 = vpop.permute.xlu1 %1473 }
 0x3ee   :  { %12921 = vst [vmem:[#allocation320_spill] sm:$0xff] %v8118_v48  ;;  %v8120_v39 = vpop.permute.xlu0 %1471 }
 0x3ef   :  { %12922 = vst [vmem:[#allocation321_spill] sm:$0xff] %v8120_v39 }
 0x3f2   :  { %1627 = vrot.lane.b32.xlu2 %v5455_v13, %s5691_s26  ;;  %v5458_v13 = vld [vmem:[%s12507_s0 + $0x640] sm:$0xff] }
 0x3f3   :  { %1625 = vrot.lane.b32.xlu1 %v5456_v22, %s5691_s26 }
 0x3f4   :  { %1623 = vrot.lane.b32.xlu0 %v230_v30, %s5691_s26  ;;  %v8134_v48 = vpop.permute.xlu2 %1561  ;;  %v5459_v30 = vld [vmem:[%s12507_s0 + $0x630] sm:$0xff] }
 0x3f5   :  { %v8136_v39 = vpop.permute.xlu1 %1479 }
 0x3f6   :  { %12923 = vst [vmem:[#allocation322_spill] sm:$0xff] %v8136_v39  ;;  %v8138_v37 = vpop.permute.xlu0 %1477 }
 0x3f7   :  { %12924 = vst [vmem:[#allocation323_spill] sm:$0xff] %v8138_v37 }
 0x3fa   :  { %1633 = vrot.lane.b32.xlu2 %v5457_v45, %s5691_s26  ;;  %v264_v45 = vld [vmem:[%s12507_s0 + $0x710] sm:$0xff] }
 0x3fb   :  { %1631 = vrot.lane.b32.xlu1 %v5458_v13, %s5691_s26  ;;  %v262_v13 = vld [vmem:[%s12507_s0 + $0x700] sm:$0xff] }
 0x3fc   :  { %1629 = vrot.lane.b32.xlu0 %v5459_v30, %s5691_s26  ;;  %v8152_v22 = vpop.permute.xlu2 %1567  ;;  %v5460_v30 = vld [vmem:[%s12507_s0 + $0x660] sm:$0xff] }
 0x3fd   :  { %v8154_v39 = vpop.permute.xlu1 %1485 }
 0x3fe   :  { %12925 = vst [vmem:[#allocation324_spill] sm:$0xff] %v8154_v39  ;;  %v8156_v37 = vpop.permute.xlu0 %1483 }
 0x3ff   :  { %12926 = vst [vmem:[#allocation325_spill] sm:$0xff] %v8156_v37 }
 0x402   :  { %1639 = vrot.lane.b32.xlu2 %v264_v45, %s5691_s26  ;;  %v268_v45 = vld [vmem:[%s12507_s0 + $0x730] sm:$0xff] }
 0x403   :  { %1637 = vrot.lane.b32.xlu1 %v262_v13, %s5691_s26  ;;  %v266_v13 = vld [vmem:[%s12507_s0 + $0x720] sm:$0xff] }
 0x404   :  { %1635 = vrot.lane.b32.xlu0 %v5460_v30, %s5691_s26  ;;  %v8170_v39 = vpop.permute.xlu2 %1573 }
 0x405   :  { %12927 = vst [vmem:[#allocation326_spill] sm:$0xff] %v8170_v39  ;;  %v8172_v37 = vpop.permute.xlu1 %1553  ;;  %v8293_v39 = vld [vmem:[%s12507_s0 + $0x258] sm:$0xff] }
 0x406   :  { %v8174_v42 = vpop.permute.xlu0 %1489 }
 0x407   :  { %12928 = vst [vmem:[#allocation327_spill] sm:$0xff] %v8174_v42 }
 0x40a   :  { %1645 = vrot.lane.b32.xlu2 %v270_v10, %s5691_s26  ;;  %v5461_v10 = vld [vmem:[%s12507_s0 + $0x108] sm:$0xff] }
 0x40b   :  { %1643 = vrot.lane.b32.xlu1 %v268_v45, %s5691_s26 }
 0x40c   :  { %1641 = vrot.lane.b32.xlu0 %v266_v13, %s5691_s26  ;;  %v8188_v30 = vpop.permute.xlu2 %1579 }
 0x40d   :  { %12929 = vst [vmem:[#allocation328_spill] sm:$0xff] %v8188_v30  ;;  %v8190_v42 = vpop.permute.xlu1 %1559 }
 0x40e   :  { %v8192_v62 = vpop.permute.xlu0 %1557 }
 0x412   :  { %1707 = vrot.lane.b32.xlu2 %v5461_v10, %s5692_s16 }
 0x413   :  { %1649 = vrot.lane.b32.xlu1 %v274_v29, %s5691_s26  ;;  %v8222_v29 = vld [vmem:[%s12507_s0 + $0x128] sm:$0xff] }
 0x414   :  { %1647 = vrot.lane.b32.xlu0 %v272_v47, %s5691_s26  ;;  %v8206_v45 = vpop.permute.xlu2 %1585  ;;  %v8229_v47 = vld [vmem:[%s12507_s0 + $0x118] sm:$0xff] }
 0x415   :  { %12930 = vst [vmem:[#allocation329_spill] sm:$0xff] %v8206_v45  ;;  %v8208_v13 = vpop.permute.xlu1 %1565 }
 0x416   :  { %v8210_v36 = vpop.permute.xlu0 %1563 }
 0x41a   :  { %1713 = vrot.lane.b32.xlu2 %v8215_v32, %s5692_s16 }
 0x41b   :  { %1711 = vrot.lane.b32.xlu1 %v8222_v29, %s5692_s16 }
 0x41c   :  { %1709 = vrot.lane.b32.xlu0 %v8229_v47, %s5692_s16  ;;  %v8233_v10 = vpop.permute.xlu2 %1591 }
 0x41d   :  { %12931 = vst [vmem:[#allocation330_spill] sm:$0xff] %v8233_v10  ;;  %v8235_v45 = vpop.permute.xlu1 %1571  ;;  %v8256_v10 = vld [vmem:[%s12507_s0 + $0x148] sm:$0xff] }
 0x41e   :  { %12932 = vst [vmem:[#allocation331_spill] sm:$0xff] %v8235_v45  ;;  %v8237_v30 = vpop.permute.xlu0 %1569  ;;  %v5475_v45 = vld [vmem:[%s12507_s0 + $0x308] sm:$0xff] }
 0x41f   :  { %12933 = vst [vmem:[#allocation332_spill] sm:$0xff] %v8237_v30  ;;  %v5483_v30 = vld [vmem:[%s12507_s0 + $0x438] sm:$0xff] }
 0x422   :  { %1719 = vrot.lane.b32.xlu2 %v8242_v16, %s5692_s16 }
 0x423   :  { %1717 = vrot.lane.b32.xlu1 %v8249_v63, %s5692_s16 }
 0x424   :  { %1715 = vrot.lane.b32.xlu0 %v8256_v10, %s5692_s16  ;;  %v8260_v20 = vpop.permute.xlu2 %1597 }
 0x425   :  { %12934 = vst [vmem:[#allocation333_spill] sm:$0xff] %v8260_v20  ;;  %v8262_v61 = vpop.permute.xlu1 %1577  ;;  %v5470_v20 = vld [vmem:[%s12507_s0 + $0x208] sm:$0xff] }
 0x426   :  { %12935 = vst [vmem:[#allocation334_spill] sm:$0xff] %v8262_v61  ;;  %v8264_v43 = vpop.permute.xlu0 %1575 }
 0x427   :  { %12936 = vst [vmem:[#allocation335_spill] sm:$0xff] %v8264_v43 }
 0x42a   :  { %1725 = vrot.lane.b32.xlu2 %v8269_v52, %s5692_s16 }
 0x42b   :  { %1723 = vrot.lane.b32.xlu1 %v8276_v40, %s5692_s16 }
 0x42c   :  { %1721 = vrot.lane.b32.xlu0 %v5470_v20, %s5692_s16  ;;  %v8284_v61 = vpop.permute.xlu2 %1603  ;;  %v8307_v20 = vld [vmem:[%s12507_s0 + $0x238] sm:$0xff] }
 0x42d   :  { %12937 = vst [vmem:[#allocation336_spill] sm:$0xff] %v8284_v61  ;;  %v8286_v43 = vpop.permute.xlu1 %1583 }
 0x42e   :  { %12938 = vst [vmem:[#allocation337_spill] sm:$0xff] %v8286_v43  ;;  %v8288_v51 = vpop.permute.xlu0 %1581 }
 0x42f   :  { %12939 = vst [vmem:[#allocation338_spill] sm:$0xff] %v8288_v51 }
 0x432   :  { %1731 = vrot.lane.b32.xlu2 %v8293_v39, %s5692_s16 }
 0x433   :  { %1729 = vrot.lane.b32.xlu1 %v8300_v14, %s5692_s16 }
 0x434   :  { %1727 = vrot.lane.b32.xlu0 %v8307_v20, %s5692_s16  ;;  %v8311_v61 = vpop.permute.xlu2 %1609 }
 0x435   :  { %12940 = vst [vmem:[#allocation339_spill] sm:$0xff] %v8311_v61  ;;  %v8313_v43 = vpop.permute.xlu1 %1589  ;;  %v8331_v61 = vld [vmem:[%s12507_s0 + $0x268] sm:$0xff] }
 0x436   :  { %12941 = vst [vmem:[#allocation340_spill] sm:$0xff] %v8313_v43  ;;  %v8315_v51 = vpop.permute.xlu0 %1587 }
 0x437   :  { %12942 = vst [vmem:[#allocation341_spill] sm:$0xff] %v8315_v51 }
 0x43a   :  { %1737 = vrot.lane.b32.xlu2 %v8320_v2, %s5692_s16 }
 0x43b   :  { %1735 = vrot.lane.b32.xlu1 %v5475_v45, %s5692_s16  ;;  %v8351_v45 = vld [vmem:[%s12507_s0 + $0x338] sm:$0xff] }
 0x43c   :  { %1733 = vrot.lane.b32.xlu0 %v8331_v61, %s5692_s16  ;;  %v8335_v43 = vpop.permute.xlu2 %1615  ;;  %12947 = vst [vmem:[#allocation346_spill] sm:$0xff] %v8351_v45 }
 0x43d   :  { %12943 = vst [vmem:[#allocation342_spill] sm:$0xff] %v8335_v43  ;;  %v8337_v51 = vpop.permute.xlu1 %1595  ;;  %v8358_v43 = vld [vmem:[%s12507_s0 + $0x328] sm:$0xff] }
 0x43e   :  { %12944 = vst [vmem:[#allocation343_spill] sm:$0xff] %v8337_v51  ;;  %v8339_v58 = vpop.permute.xlu0 %1593 }
 0x43f   :  { %12945 = vst [vmem:[#allocation344_spill] sm:$0xff] %v8339_v58 }
 0x440   :  { %12948 = vst [vmem:[#allocation347_spill] sm:$0xff] %v8358_v43 }
 0x442   :  { %1743 = vrot.lane.b32.xlu2 %v8344_v44, %s5692_s16 }
 0x443   :  { %1741 = vrot.lane.b32.xlu1 %v8351_v45, %s5692_s16  ;;  %v8375_v45 = vld [vmem:[%s12507_s0 + $0x368] sm:$0xff] }
 0x444   :  { %1739 = vrot.lane.b32.xlu0 %v8358_v43, %s5692_s16  ;;  %v8362_v51 = vpop.permute.xlu2 %1621  ;;  %12952 = vst [vmem:[#allocation351_spill] sm:$0xff] %v8375_v45 }
 0x445   :  { %12949 = vst [vmem:[#allocation348_spill] sm:$0xff] %v8362_v51  ;;  %v8364_v58 = vpop.permute.xlu1 %1601  ;;  %v8382_v51 = vld [vmem:[%s12507_s0 + $0x358] sm:$0xff] }
 0x446   :  { %12950 = vst [vmem:[#allocation349_spill] sm:$0xff] %v8364_v58  ;;  %v8366_v44 = vpop.permute.xlu0 %1599 }
 0x447   :  { %12951 = vst [vmem:[#allocation350_spill] sm:$0xff] %v8366_v44 }
 0x448   :  { %12953 = vst [vmem:[#allocation352_spill] sm:$0xff] %v8382_v51 }
 0x44a   :  { %1749 = vrot.lane.b32.xlu2 %v5480_v15, %s5692_s16 }
 0x44b   :  { %1747 = vrot.lane.b32.xlu1 %v8375_v45, %s5692_s16  ;;  %v5484_v45 = vld [vmem:[%s12507_s0 + $0x428] sm:$0xff] }
 0x44c   :  { %1745 = vrot.lane.b32.xlu0 %v8382_v51, %s5692_s16  ;;  %v8386_v58 = vpop.permute.xlu2 %1627 }
 0x44d   :  { %12954 = vst [vmem:[#allocation353_spill] sm:$0xff] %v8386_v58  ;;  %v8388_v44 = vpop.permute.xlu1 %1607  ;;  %v5485_v58 = vld [vmem:[%s12507_s0 + $0x418] sm:$0xff] }
 0x44e   :  { %12955 = vst [vmem:[#allocation354_spill] sm:$0xff] %v8388_v44  ;;  %v8390_v15 = vpop.permute.xlu0 %1605 }
 0x44f   :  { %12956 = vst [vmem:[#allocation355_spill] sm:$0xff] %v8390_v15 }
 0x452   :  { %1755 = vrot.lane.b32.xlu2 %v5483_v30, %s5692_s16  ;;  %v5486_v30 = vld [vmem:[%s12507_s0 + $0x468] sm:$0xff] }
 0x453   :  { %1753 = vrot.lane.b32.xlu1 %v5484_v45, %s5692_s16  ;;  %v5487_v45 = vld [vmem:[%s12507_s0 + $0x458] sm:$0xff] }
 0x454   :  { %1751 = vrot.lane.b32.xlu0 %v5485_v58, %s5692_s16  ;;  %v8404_v44 = vpop.permute.xlu2 %1633  ;;  %v5488_v58 = vld [vmem:[%s12507_s0 + $0x448] sm:$0xff] }
 0x455   :  { %12957 = vst [vmem:[#allocation356_spill] sm:$0xff] %v8404_v44  ;;  %v8406_v15 = vpop.permute.xlu1 %1613 }
 0x456   :  { %12958 = vst [vmem:[#allocation357_spill] sm:$0xff] %v8406_v15  ;;  %v8408_v51 = vpop.permute.xlu0 %1611 }
 0x457   :  { %12959 = vst [vmem:[#allocation358_spill] sm:$0xff] %v8408_v51 }
 0x45a   :  { %1761 = vrot.lane.b32.xlu2 %v5486_v30, %s5692_s16  ;;  %v5489_v30 = vld [vmem:[%s12507_s0 + $0x528] sm:$0xff] }
 0x45b   :  { %1759 = vrot.lane.b32.xlu1 %v5487_v45, %s5692_s16  ;;  %v5490_v45 = vld [vmem:[%s12507_s0 + $0x518] sm:$0xff] }
 0x45c   :  { %1757 = vrot.lane.b32.xlu0 %v5488_v58, %s5692_s16  ;;  %v8422_v44 = vpop.permute.xlu2 %1639  ;;  %v5491_v58 = vld [vmem:[%s12507_s0 + $0x508] sm:$0xff] }
 0x45d   :  { %12960 = vst [vmem:[#allocation359_spill] sm:$0xff] %v8422_v44  ;;  %v8424_v15 = vpop.permute.xlu1 %1619 }
 0x45e   :  { %12961 = vst [vmem:[#allocation360_spill] sm:$0xff] %v8424_v15  ;;  %v8426_v51 = vpop.permute.xlu0 %1617 }
 0x45f   :  { %12962 = vst [vmem:[#allocation361_spill] sm:$0xff] %v8426_v51 }
 0x462   :  { %1767 = vrot.lane.b32.xlu2 %v5489_v30, %s5692_s16  ;;  %v5492_v30 = vld [vmem:[%s12507_s0 + $0x558] sm:$0xff] }
 0x463   :  { %1765 = vrot.lane.b32.xlu1 %v5490_v45, %s5692_s16  ;;  %v5493_v45 = vld [vmem:[%s12507_s0 + $0x548] sm:$0xff] }
 0x464   :  { %1763 = vrot.lane.b32.xlu0 %v5491_v58, %s5692_s16  ;;  %v8440_v44 = vpop.permute.xlu2 %1645  ;;  %v5494_v58 = vld [vmem:[%s12507_s0 + $0x538] sm:$0xff] }
 0x465   :  { %12963 = vst [vmem:[#allocation362_spill] sm:$0xff] %v8440_v44  ;;  %v8442_v51 = vpop.permute.xlu1 %1625 }
 0x466   :  { %12964 = vst [vmem:[#allocation363_spill] sm:$0xff] %v8442_v51  ;;  %v8444_v15 = vpop.permute.xlu0 %1623 }
 0x467   :  { %12965 = vst [vmem:[#allocation364_spill] sm:$0xff] %v8444_v15 }
 0x46a   :  { %1773 = vrot.lane.b32.xlu2 %v5492_v30, %s5692_s16  ;;  %v5495_v30 = vld [vmem:[%s12507_s0 + $0x618] sm:$0xff] }
 0x46b   :  { %1771 = vrot.lane.b32.xlu1 %v5493_v45, %s5692_s16  ;;  %v5496_v45 = vld [vmem:[%s12507_s0 + $0x608] sm:$0xff] }
 0x46c   :  { %1769 = vrot.lane.b32.xlu0 %v5494_v58, %s5692_s16  ;;  %v8458_v44 = vpop.permute.xlu2 %1707  ;;  %v5497_v58 = vld [vmem:[%s12507_s0 + $0x568] sm:$0xff] }
 0x46d   :  { %v8460_v51 = vpop.permute.xlu1 %1631 }
 0x46e   :  { %12966 = vst [vmem:[#allocation365_spill] sm:$0xff] %v8460_v51  ;;  %v8462_v15 = vpop.permute.xlu0 %1629 }
 0x46f   :  { %12967 = vst [vmem:[#allocation366_spill] sm:$0xff] %v8462_v15 }
 0x472   :  { %1779 = vrot.lane.b32.xlu2 %v5495_v30, %s5692_s16  ;;  %v5498_v30 = vld [vmem:[%s12507_s0 + $0x628] sm:$0xff] }
 0x473   :  { %1777 = vrot.lane.b32.xlu1 %v5496_v45, %s5692_s16 }
 0x474   :  { %1775 = vrot.lane.b32.xlu0 %v5497_v58, %s5692_s16  ;;  %v8476_v51 = vpop.permute.xlu2 %1713 }
 0x475   :  { %v8478_v15 = vpop.permute.xlu1 %1637 }
 0x476   :  { %12968 = vst [vmem:[#allocation367_spill] sm:$0xff] %v8478_v15  ;;  %v8480_v8 = vpop.permute.xlu0 %1635 }
 0x477   :  { %12969 = vst [vmem:[#allocation368_spill] sm:$0xff] %v8480_v8 }
 0x47a   :  { %2003 = vrot.lane.b32.xlu2 %v8229_v47, %s5693_s17  ;;  %v5499_v47 = vld [vmem:[%s12507_s0 + $0x190] sm:$0xff] }
 0x47b   :  { %1855 = vrot.lane.b32.xlu1 %v7876_v57, %s5694_s23  ;;  %v5500_v57 = vld [vmem:[%s12507_s0 + $0x188] sm:$0xff] }
 0x47c   :  { %1781 = vrot.lane.b32.xlu0 %v5498_v30, %s5692_s16  ;;  %v8490_v45 = vpop.permute.xlu2 %1719  ;;  %v5501_v30 = vld [vmem:[%s12507_s0 + $0x180] sm:$0xff] }
 0x47d   :  { %v8492_v58 = vpop.permute.xlu1 %1643 }
 0x47e   :  { %12970 = vst [vmem:[#allocation369_spill] sm:$0xff] %v8492_v58  ;;  %v8494_v15 = vpop.permute.xlu0 %1641 }
 0x47f   :  { %12971 = vst [vmem:[#allocation370_spill] sm:$0xff] %v8494_v15 }
 0x482   :  { %2459 = vrot.lane.b32.xlu2 %v5499_v47, %s5695_s22 }
 0x483   :  { %2311 = vrot.lane.b32.xlu1 %v5500_v57, %s5696_s29  ;;  %v5502_v57 = vld [vmem:[%s12507_s0 + $0x198] sm:$0xff] }
 0x484   :  { %2157 = vrot.lane.b32.xlu0 %v5501_v30, %s5697_s12  ;;  %v8508_v8 = vpop.permute.xlu2 %1725 }
 0x485   :  { %12972 = vst [vmem:[#allocation371_spill] sm:$0xff] %v8508_v8  ;;  %v8510_v58 = vpop.permute.xlu1 %1649 }
 0x486   :  { %12973 = vst [vmem:[#allocation372_spill] sm:$0xff] %v8510_v58  ;;  %v8512_v15 = vpop.permute.xlu0 %1647 }
 0x487   :  { %12974 = vst [vmem:[#allocation373_spill] sm:$0xff] %v8512_v15 }
 0x48a   :  { %2005 = vrot.lane.b32.xlu2 %v8222_v29, %s5693_s17  ;;  %v5503_v29 = vld [vmem:[%s12507_s0 + $0x1a0] sm:$0xff] }
 0x48b   :  { %1857 = vrot.lane.b32.xlu1 %v7905_v17, %s5694_s23 }
 0x48c   :  { %2607 = vrot.lane.b32.xlu0 %v5502_v57, %s5698_s15  ;;  %v8522_v30 = vpop.permute.xlu2 %1731 }
 0x48d   :  { %12975 = vst [vmem:[#allocation374_spill] sm:$0xff] %v8522_v30  ;;  %v8524_v8 = vpop.permute.xlu1 %1711  ;;  %v5504_v30 = vld [vmem:[%s12507_s0 + $0x1a8] sm:$0xff] }
 0x48e   :  { %v8526_v58 = vpop.permute.xlu0 %1709 }
 0x492   :  { %2461 = vrot.lane.b32.xlu2 %v5503_v29, %s5695_s22 }
 0x493   :  { %2313 = vrot.lane.b32.xlu1 %v5502_v57, %s5696_s29 }
 0x494   :  { %2159 = vrot.lane.b32.xlu0 %v5499_v47, %s5697_s12  ;;  %v8534_v17 = vpop.permute.xlu2 %1737 }
 0x495   :  { %12976 = vst [vmem:[#allocation375_spill] sm:$0xff] %v8534_v17  ;;  %v8536_v15 = vpop.permute.xlu1 %1717 }
 0x496   :  { %v8538_v23 = vpop.permute.xlu0 %1715 }
 0x49a   :  { %2007 = vrot.lane.b32.xlu2 %v8215_v32, %s5693_s17 }
 0x49b   :  { %1859 = vrot.lane.b32.xlu1 %v7898_v25, %s5694_s23 }
 0x49c   :  { %2609 = vrot.lane.b32.xlu0 %v5504_v30, %s5698_s15  ;;  %v8548_v57 = vpop.permute.xlu2 %1743 }
 0x49d   :  { %12977 = vst [vmem:[#allocation376_spill] sm:$0xff] %v8548_v57  ;;  %v8550_v47 = vpop.permute.xlu1 %1723  ;;  %v5506_v57 = vld [vmem:[%s12507_s0 + $0x1b8] sm:$0xff] }
 0x49e   :  { %v8552_v17 = vpop.permute.xlu0 %1721 }
 0x4a2   :  { %2463 = vrot.lane.b32.xlu2 %v5505_v54, %s5695_s22 }
 0x4a3   :  { %2315 = vrot.lane.b32.xlu1 %v5504_v30, %s5696_s29 }
 0x4a4   :  { %2161 = vrot.lane.b32.xlu0 %v5503_v29, %s5697_s12  ;;  %v8560_v32 = vpop.permute.xlu2 %1749 }
 0x4a5   :  { %12978 = vst [vmem:[#allocation377_spill] sm:$0xff] %v8560_v32  ;;  %v8562_v25 = vpop.permute.xlu1 %1729 }
 0x4a6   :  { %12979 = vst [vmem:[#allocation378_spill] sm:$0xff] %v8562_v25  ;;  %v8564_v43 = vpop.permute.xlu0 %1727  ;;  %v5507_v25 = vld [vmem:[%s12507_s0 + $0x1c0] sm:$0xff] }
 0x4a7   :  { %12980 = vst [vmem:[#allocation379_spill] sm:$0xff] %v8564_v43 }
 0x4aa   :  { %2009 = vrot.lane.b32.xlu2 %v8256_v10, %s5693_s17 }
 0x4ab   :  { %1861 = vrot.lane.b32.xlu1 %v7891_v6, %s5694_s23 }
 0x4ac   :  { %2611 = vrot.lane.b32.xlu0 %v5506_v57, %s5698_s15  ;;  %v8574_v30 = vpop.permute.xlu2 %1755 }
 0x4ad   :  { %12981 = vst [vmem:[#allocation380_spill] sm:$0xff] %v8574_v30  ;;  %v8576_v29 = vpop.permute.xlu1 %1735  ;;  %v5508_v30 = vld [vmem:[%s12507_s0 + $0x1c8] sm:$0xff] }
 0x4ae   :  { %v8578_v32 = vpop.permute.xlu0 %1733 }
 0x4b2   :  { %2465 = vrot.lane.b32.xlu2 %v5507_v25, %s5695_s22 }
 0x4b3   :  { %2317 = vrot.lane.b32.xlu1 %v5506_v57, %s5696_s29 }
 0x4b4   :  { %2163 = vrot.lane.b32.xlu0 %v5505_v54, %s5697_s12  ;;  %v8586_v6 = vpop.permute.xlu2 %1761 }
 0x4b5   :  { %12982 = vst [vmem:[#allocation381_spill] sm:$0xff] %v8586_v6  ;;  %v8588_v10 = vpop.permute.xlu1 %1741 }
 0x4b6   :  { %12983 = vst [vmem:[#allocation382_spill] sm:$0xff] %v8588_v10  ;;  %v8590_v43 = vpop.permute.xlu0 %1739  ;;  %v5509_v10 = vld [vmem:[%s12507_s0 + $0x1d0] sm:$0xff] }
 0x4b7   :  { %12984 = vst [vmem:[#allocation383_spill] sm:$0xff] %v8590_v43 }
 0x4ba   :  { %2011 = vrot.lane.b32.xlu2 %v8249_v63, %s5693_s17 }
 0x4bb   :  { %1863 = vrot.lane.b32.xlu1 %v7929_v55, %s5694_s23 }
 0x4bc   :  { %2613 = vrot.lane.b32.xlu0 %v5508_v30, %s5698_s15  ;;  %v8600_v57 = vpop.permute.xlu2 %1767 }
 0x4bd   :  { %12985 = vst [vmem:[#allocation384_spill] sm:$0xff] %v8600_v57  ;;  %v8602_v54 = vpop.permute.xlu1 %1747  ;;  %v5510_v57 = vld [vmem:[%s12507_s0 + $0x1d8] sm:$0xff] }
 0x4be   :  { %12986 = vst [vmem:[#allocation385_spill] sm:$0xff] %v8602_v54  ;;  %v8604_v6 = vpop.permute.xlu0 %1745 }
 0x4bf   :  { %12987 = vst [vmem:[#allocation386_spill] sm:$0xff] %v8604_v6 }
 0x4c2   :  { %2467 = vrot.lane.b32.xlu2 %v5509_v10, %s5695_s22 }
 0x4c3   :  { %2319 = vrot.lane.b32.xlu1 %v5508_v30, %s5696_s29 }
 0x4c4   :  { %2165 = vrot.lane.b32.xlu0 %v5507_v25, %s5697_s12  ;;  %v8612_v55 = vpop.permute.xlu2 %1773 }
 0x4c5   :  { %12988 = vst [vmem:[#allocation387_spill] sm:$0xff] %v8612_v55  ;;  %v8614_v63 = vpop.permute.xlu1 %1753 }
 0x4c6   :  { %12989 = vst [vmem:[#allocation388_spill] sm:$0xff] %v8614_v63  ;;  %v8616_v43 = vpop.permute.xlu0 %1751  ;;  %v3511_v63 = vld [vmem:[%s12508_s1 + $0x38] sm:$0xff] }
 0x4c7   :  { %12990 = vst [vmem:[#allocation389_spill] sm:$0xff] %v8616_v43  ;;  %3672 = vmatpush.msra.mxu0 %v3511_v63  ;;  %5268 = vmatpush.msra.mxu2 %v3511_v63  ;;  %v3508_v43 = vld [vmem:[%s12508_s1 + $0x20] sm:$0xff] }
 0x4c8   :  { %5269 = vmatpush.msra.mxu3 %v3511_v63 }
 0x4ca   :  { %2013 = vrot.lane.b32.xlu2 %v8242_v16, %s5693_s17  ;;  %v3510_v16 = vld [vmem:[%s12508_s1 + $0x30] sm:$0xff] }
 0x4cb   :  { %1865 = vrot.lane.b32.xlu1 %v7922_v3, %s5694_s23  ;;  %3673 = vmatpush.msra.mxu0 %v3510_v16  ;;  %v5511_v3 = vld [vmem:[%s12507_s0 + $0x1e0] sm:$0xff] }
 0x4cc   :  { %2615 = vrot.lane.b32.xlu0 %v5510_v57, %s5698_s15  ;;  %v8626_v30 = vpop.permute.xlu2 %1779  ;;  %5270 = vmatpush.msra.mxu2 %v3510_v16 }
 0x4cd   :  { %12991 = vst [vmem:[#allocation390_spill] sm:$0xff] %v8626_v30  ;;  %v8628_v25 = vpop.permute.xlu1 %1759  ;;  %v3509_v30 = vld [vmem:[%s12508_s1 + $0x28] sm:$0xff]  ;;  %5271 = vmatpush.msra.mxu3 %v3510_v16  ;;  %v5512_v16 = vld [vmem:[%s12507_s0 + $0x178] sm:$0xff] }
 0x4ce   :  { %12992 = vst [vmem:[#allocation391_spill] sm:$0xff] %v8628_v25  ;;  %v8630_v55 = vpop.permute.xlu0 %1757  ;;  %3674 = vmatpush.msra.mxu0 %v3509_v30  ;;  %5272 = vmatpush.msra.mxu2 %v3509_v30 }
 0x4cf   :  { %12993 = vst [vmem:[#allocation392_spill] sm:$0xff] %v8630_v55  ;;  %5273 = vmatpush.msra.mxu3 %v3509_v30  ;;  %v5513_v30 = vld [vmem:[%s12507_s0 + $0x170] sm:$0xff] }
 0x4d0   :  { %3675 = vmatpush.msra.mxu0 %v3508_v43  ;;  %5274 = vmatpush.msra.mxu2 %v3508_v43 }
 0x4d1   :  { %5275 = vmatpush.msra.mxu3 %v3508_v43  ;;  %v5514_v43 = vld [vmem:[%s12507_s0 + $0x1e8] sm:$0xff] }
 0x4d2   :  { %2469 = vrot.lane.b32.xlu2 %v5511_v3, %s5695_s22 }
 0x4d3   :  { %2321 = vrot.lane.b32.xlu1 %v5510_v57, %s5696_s29  ;;  %v3506_v57 = vld [vmem:[%s12508_s1 + $0x10] sm:$0xff] }
 0x4d4   :  { %2167 = vrot.lane.b32.xlu0 %v5509_v10, %s5697_s12  ;;  %v8647_v25 = vpop.permute.xlu2 %2003  ;;  %v3507_v10 = vld [vmem:[%s12508_s1 + $0x18] sm:$0xff] }
 0x4d5   :  { %v8649_v63 = vpop.permute.xlu1 %1765  ;;  %3676 = vmatpush.msra.mxu0 %v3507_v10  ;;  %5276 = vmatpush.msra.mxu2 %v3507_v10 }
 0x4d6   :  { %12994 = vst [vmem:[#allocation393_spill] sm:$0xff] %v8649_v63  ;;  %v8651_v55 = vpop.permute.xlu0 %1763  ;;  %5277 = vmatpush.msra.mxu3 %v3507_v10  ;;  %v3505_v10 = vld [vmem:[%s12508_s1 + $0x8] sm:$0xff] }
 0x4d7   :  { %12995 = vst [vmem:[#allocation394_spill] sm:$0xff] %v8651_v55  ;;  %3677 = vmatpush.msra.mxu0 %v3506_v57  ;;  %5278 = vmatpush.msra.mxu2 %v3506_v57 }
 0x4d8   :  { %5279 = vmatpush.msra.mxu3 %v3506_v57 }
 0x4d9   :  { %3678 = vmatpush.msra.mxu0 %v3505_v10  ;;  %5280 = vmatpush.msra.mxu2 %v3505_v10 }
 0x4da   :  { %2015 = vrot.lane.b32.xlu2 %v5512_v16, %s5693_s17  ;;  %5281 = vmatpush.msra.mxu3 %v3505_v10  ;;  %v38_v10 = vld [vmem:[%s12507_s0] sm:$0xff] }
 0x4db   :  { %1867 = vrot.lane.b32.xlu1 %v5513_v30, %s5694_s23  ;;  %v3504_v30 = vld [vmem:[%s12508_s1] sm:$0xff] }
 0x4dc   :  { %2617 = vrot.lane.b32.xlu0 %v5514_v43, %s5698_s15  ;;  %v8677_v63 = vpop.permute.xlu2 %2459  ;;  %3679 = vmatpush.msra.mxu0 %v3504_v30 }
 0x4dd   :  { %v8679_v16 = vpop.permute.xlu1 %1771  ;;  %5282 = vmatpush.msra.mxu2 %v3504_v30  ;;  %5283 = vmatpush.msra.mxu3 %v3504_v30  ;;  %v13000_v30 = vld [vmem:[#allocation7_spill] sm:$0xff] }
 0x4de   :  { %12996 = vst [vmem:[#allocation395_spill] sm:$0xff] %v8679_v16  ;;  %v8681_v55 = vpop.permute.xlu0 %1769  ;;  %v2755_v54 = vsel %vm2754_vm0, %v38_v10, %v13000_v30  ;;  %v13003_v30 = vld [vmem:[#allocation154_spill] sm:$0xff] }
 0x4df   :  { %12997 = vst [vmem:[#allocation396_spill] sm:$0xff] %v8681_v55 }
 0x4e2   :  { %2471 = vrot.lane.b32.xlu2 %v7504_v33, %s5695_s22  ;;  %v13001_v33 = vld [vmem:[#allocation54_spill] sm:$0xff] }
 0x4e3   :  { %2323 = vrot.lane.b32.xlu1 %v5514_v43, %s5696_s29  ;;  %v13002_v43 = vld [vmem:[#allocation92_spill] sm:$0xff] }
 0x4e4   :  { %2169 = vrot.lane.b32.xlu0 %v5511_v3, %s5697_s12  ;;  %v8690_v57 = vpop.permute.xlu2 %2005  ;;  %v2805_v3 = vsel %vm2804_vm2, %v2755_v54, %v13001_v33 }
 0x4e5   :  { %v8692_v16 = vpop.permute.xlu1 %1777 }
 0x4e6   :  { %12998 = vst [vmem:[#allocation397_spill] sm:$0xff] %v8692_v16  ;;  %v8694_v55 = vpop.permute.xlu0 %1775  ;;  %v2855_v16 = vsel %vm2854_vm1, %v2805_v3, %v13002_v43  ;;  %v5515_v43 = vld [vmem:[%s12507_s0 + $0x290] sm:$0xff] }
 0x4e7   :  { %12999 = vst [vmem:[#allocation398_spill] sm:$0xff] %v8694_v55 }
 0x4ea   :  { %2017 = vrot.lane.b32.xlu2 %v8276_v40, %s5693_s17  ;;  %v2905_v40 = vsel %vm2904_vm3, %v2855_v16, %v13003_v30 }
 0x4eb   :  { %1869 = vrot.lane.b32.xlu1 %v7956_v5, %s5694_s23  ;;  %v13004_v5 = vld [vmem:[#allocation223_spill] sm:$0xff] }
 0x4ec   :  { %2619 = vrot.lane.b32.xlu0 %v7713_v46, %s5698_s15  ;;  %v8711_v55 = vpop.permute.xlu2 %2461  ;;  %v2955_v54 = vsel %vm2954_vm5, %v2905_v40, %v13004_v5 }
 0x4ed   :  { %v1856_v10 = vpop.permute.xlu1 %1855  ;;  %v3005_v46 = vsel %vm3004_vm4, %v2955_v54, %v7588_v1  ;;  %v5516_v1 = vld [vmem:[%s12507_s0 + $0x288] sm:$0xff] }
 0x4ee   :  { %v8715_v6 = vpop.permute.xlu0 %1781  ;;  %v3055_v33 = vsel %vm3054_vm6, %v3005_v46, %v7853_v49  ;;  %v13005_v46 = vld [vmem:[#allocation10_spill] sm:$0xff] }
 0x4ef   :  { %v3105_v3 = vsel %vm3104_vm8, %v3055_v33, %v8172_v37  ;;  %v5517_v37 = vld [vmem:[%s12507_s0 + $0x280] sm:$0xff] }
 0x4f0   :  { %v3155_v16 = vsel %vm3154_vm7, %v3105_v3, %v8458_v44 }
 0x4f1   :  { %v3205_v49 = vsel %vm3204_vm9, %v3155_v16, %v1856_v10  ;;  %v5518_v10 = vld [vmem:[%s12507_s0 + $0x10] sm:$0xff] }
 0x4f2   :  { %2473 = vrot.lane.b32.xlu2 %v5515_v43, %s5695_s22  ;;  %v3255_v5 = vsel %vm3254_vm10, %v3205_v49, %v8647_v25  ;;  %v2756_v33 = vsel %vm2754_vm0, %v5518_v10, %v13005_v46  ;;  %v13006_v25 = vld [vmem:[#allocation45_spill] sm:$0xff]  ;;  %v13007_v49 = vld [vmem:[#allocation106_spill] sm:$0xff] }
 0x4f3   :  { %2325 = vrot.lane.b32.xlu1 %v5516_v1, %s5696_s29  ;;  %v2806_v16 = vsel %vm2804_vm2, %v2756_v33, %v13006_v25  ;;  %v5519_v1 = vld [vmem:[%s12507_s0 + $0x298] sm:$0xff]  ;;  %v13009_v10 = vld [vmem:[#allocation206_spill] sm:$0xff] }
 0x4f4   :  { %2171 = vrot.lane.b32.xlu0 %v5517_v37, %s5697_s12  ;;  %v8740_v44 = vpop.permute.xlu2 %2007  ;;  %v2856_v37 = vsel %vm2854_vm1, %v2806_v16, %v13007_v49 }
 0x4f5   :  { %v2312_v30 = vpop.permute.xlu1 %2311 }
 0x4f6   :  { %v2158_v40 = vpop.permute.xlu0 %2157 }
 0x4f7   :  { %v3305_v54 = vsel %vm3304_vm11, %v3255_v5, %v2158_v40  ;;  %v13008_v40 = vld [vmem:[#allocation153_spill] sm:$0xff] }
 0x4f8   :  { %v3355_v3 = vsel %vm3354_vm12, %v3305_v54, %v2312_v30 }
 0x4f9   :  { %v3405_v54 = vsel %vm3404_vm13, %v3355_v3, %v8677_v63  ;;  %v5520_v63 = vld [vmem:[%s12507_s0 + $0x2a0] sm:$0xff] }
 0x4fa   :  { %2019 = vrot.lane.b32.xlu2 %v8269_v52, %s5693_s17 }
 0x4fb   :  { %1871 = vrot.lane.b32.xlu1 %v7949_v60, %s5694_s23  ;;  %v2906_v60 = vsel %vm2904_vm3, %v2856_v37, %v13008_v40 }
 0x4fc   :  { %2621 = vrot.lane.b32.xlu0 %v5519_v1, %s5698_s15  ;;  %v8763_v30 = vpop.permute.xlu2 %2463  ;;  %v2956_v46 = vsel %vm2954_vm5, %v2906_v60, %v13009_v10  ;;  %v5521_v60 = vld [vmem:[%s12507_s0 + $0x20] sm:$0xff]  ;;  %v13012_v10 = vld [vmem:[#allocation105_spill] sm:$0xff] }
 0x4fd   :  { %v1858_v52 = vpop.permute.xlu1 %1857  ;;  %v3006_v25 = vsel %vm3004_vm4, %v2956_v46, %v7644_v35 }
 0x4fe   :  { %v2608_v5 = vpop.permute.xlu0 %2607  ;;  %v3056_v16 = vsel %vm3054_vm6, %v3006_v25, %v7851_v0 }
 0x4ff   :  { %v3455_v33 = vsel %vm3454_vm14, %v3405_v54, %v2608_v5  ;;  %v3106_v49 = vsel %vm3104_vm8, %v3056_v16, %v8116_v53  ;;  %v13010_v5 = vld [vmem:[#allocation6_spill] sm:$0xff]  ;;  %v5522_v54 = vld [vmem:[%s12507_s0 + $0x2a8] sm:$0xff] }
 0x500   :  { %5098 = vmatmul.msk.f32.vlgmr.msra.gmra.mxu0 %vm3516_vm15, %v3455_v33  ;;  %v3156_v37 = vsel %vm3154_vm7, %v3106_v49, %v8526_v58  ;;  %v13013_v16 = vld [vmem:[#allocation143_spill] sm:$0xff] }
 0x501   :  { %v3206_v35 = vsel %vm3204_vm9, %v3156_v37, %v1858_v52  ;;  %v13014_v37 = vld [vmem:[#allocation228_spill] sm:$0xff] }
 0x502   :  { %2475 = vrot.lane.b32.xlu2 %v5520_v63, %s5695_s22  ;;  %v3256_v53 = vsel %vm3254_vm10, %v3206_v35, %v8690_v57 }
 0x503   :  { %2327 = vrot.lane.b32.xlu1 %v5519_v1, %s5696_s29  ;;  %v2757_v1 = vsel %vm2754_vm0, %v5521_v60, %v13010_v5 }
 0x504   :  { %2173 = vrot.lane.b32.xlu0 %v5515_v43, %s5697_s12  ;;  %v8788_v3 = vpop.permute.xlu2 %2009  ;;  %v13011_v43 = vld [vmem:[#allocation58_spill] sm:$0xff] }
 0x505   :  { %v2314_v0 = vpop.permute.xlu1 %2313  ;;  %v2807_v57 = vsel %vm2804_vm2, %v2757_v1, %v13011_v43  ;;  %v13015_v43 = vld [vmem:[#allocation9_spill] sm:$0xff] }
 0x506   :  { %v2160_v40 = vpop.permute.xlu0 %2159  ;;  %v2857_v46 = vsel %vm2854_vm1, %v2807_v57, %v13012_v10  ;;  %v5525_v10 = vld [vmem:[%s12507_s0 + $0x2b8] sm:$0xff] }
 0x507   :  { %v3306_v58 = vsel %vm3304_vm11, %v3256_v53, %v2160_v40 }
 0x508   :  { %v3356_v52 = vsel %vm3354_vm12, %v3306_v58, %v2314_v0 }
 0x50a   :  { %2021 = vrot.lane.b32.xlu2 %v8307_v20, %s5693_s17  ;;  %v2907_v20 = vsel %vm2904_vm3, %v2857_v46, %v13013_v16  ;;  %v13017_v46 = vld [vmem:[#allocation95_spill] sm:$0xff] }
 0x50b   :  { %1873 = vrot.lane.b32.xlu1 %v7942_v21, %s5694_s23  ;;  %v3406_v21 = vsel %vm3404_vm13, %v3356_v52, %v8711_v55  ;;  %v2957_v35 = vsel %vm2954_vm5, %v2907_v20, %v13014_v37  ;;  %v5523_v55 = vld [vmem:[%s12507_s0 + $0x2b0] sm:$0xff]  ;;  %v13019_v37 = vld [vmem:[#allocation227_spill] sm:$0xff] }
 0x50c   :  { %2623 = vrot.lane.b32.xlu0 %v5522_v54, %s5698_s15  ;;  %v8811_v33 = vpop.permute.xlu2 %2465  ;;  %v3007_v40 = vsel %vm3004_vm4, %v2957_v35, %v7642_v24  ;;  %v5524_v52 = vld [vmem:[%s12507_s0 + $0x30] sm:$0xff] }
 0x50d   :  { %v1860_v25 = vpop.permute.xlu1 %1859  ;;  %v3057_v53 = vsel %vm3054_vm6, %v3007_v40, %v7811_v11  ;;  %v2758_v57 = vsel %vm2754_vm0, %v5524_v52, %v13015_v43  ;;  %v5528_v43 = vld [vmem:[%s12507_s0 + $0x2c8] sm:$0xff] }
 0x50e   :  { %v2610_v49 = vpop.permute.xlu0 %2609  ;;  %v3107_v58 = vsel %vm3104_vm8, %v3057_v53, %v8192_v62 }
 0x50f   :  { %v3456_v0 = vsel %vm3454_vm14, %v3406_v21, %v2610_v49  ;;  %v3157_v60 = vsel %vm3154_vm7, %v3107_v58, %v8524_v8  ;;  %v13018_v49 = vld [vmem:[#allocation157_spill] sm:$0xff] }
 0x510   :  { %5099 = vmatmul.msk.f32.gmra.mxu0 %vm3516_vm15, %v3456_v0  ;;  %v3207_v24 = vsel %vm3204_vm9, %v3157_v60, %v1860_v25 }
 0x511   :  { %v3257_v62 = vsel %vm3254_vm10, %v3207_v24, %v8740_v44 }
 0x512   :  { %2477 = vrot.lane.b32.xlu2 %v5523_v55, %s5695_s22 }
 0x513   :  { %2329 = vrot.lane.b32.xlu1 %v5522_v54, %s5696_s29 }
 0x514   :  { %2175 = vrot.lane.b32.xlu0 %v5520_v63, %s5697_s12  ;;  %v8836_v5 = vpop.permute.xlu2 %2011  ;;  %v13016_v63 = vld [vmem:[#allocation57_spill] sm:$0xff] }
 0x515   :  { %v2316_v11 = vpop.permute.xlu1 %2315  ;;  %v2808_v44 = vsel %vm2804_vm2, %v2758_v57, %v13016_v63  ;;  %v13022_v57 = vld [vmem:[#allocation109_spill] sm:$0xff] }
 0x516   :  { %v2162_v1 = vpop.permute.xlu0 %2161  ;;  %v2858_v25 = vsel %vm2854_vm1, %v2808_v44, %v13017_v46 }
 0x517   :  { %v3307_v8 = vsel %vm3304_vm11, %v3257_v62, %v2162_v1  ;;  %v5527_v1 = vld [vmem:[%s12507_s0 + $0x40] sm:$0xff] }
 0x518   :  { %v3357_v54 = vsel %vm3354_vm12, %v3307_v8, %v2316_v11  ;;  %v13020_v62 = vld [vmem:[#allocation2_spill] sm:$0xff] }
 0x519   :  { %v2759_v8 = vsel %vm2754_vm0, %v5527_v1, %v13020_v62  ;;  %v13028_v1 = vld [vmem:[#allocation146_spill] sm:$0xff] }
 0x51a   :  { %2023 = vrot.lane.b32.xlu2 %v8300_v14, %s5693_s17  ;;  %v2908_v14 = vsel %vm2904_vm3, %v2858_v25, %v13018_v49  ;;  %v13024_v25 = vld [vmem:[#allocation211_spill] sm:$0xff] }
 0x51b   :  { %1875 = vrot.lane.b32.xlu1 %v7983_v19, %s5694_s23  ;;  %v3407_v19 = vsel %vm3404_vm13, %v3357_v54, %v8763_v30  ;;  %v2958_v35 = vsel %vm2954_vm5, %v2908_v14, %v13019_v37  ;;  %v5526_v30 = vld [vmem:[%s12507_s0 + $0x2c0] sm:$0xff] }
 0x51c   :  { %2625 = vrot.lane.b32.xlu0 %v5525_v10, %s5698_s15  ;;  %v8859_v16 = vpop.permute.xlu2 %2467  ;;  %v3008_v40 = vsel %vm3004_vm4, %v2958_v35, %v7602_v4 }
 0x51d   :  { %v1862_v20 = vpop.permute.xlu1 %1861  ;;  %v3058_v53 = vsel %vm3054_vm6, %v3008_v40, %v7865_v31  ;;  %v5530_v40 = vld [vmem:[%s12507_s0 + $0x50] sm:$0xff] }
 0x51e   :  { %v2612_v21 = vpop.permute.xlu0 %2611  ;;  %v3108_v58 = vsel %vm3104_vm8, %v3058_v53, %v8190_v42  ;;  %v13025_v53 = vld [vmem:[#allocation3_spill] sm:$0xff] }
 0x51f   :  { %v3457_v0 = vsel %vm3454_vm14, %v3407_v19, %v2612_v21  ;;  %v3158_v60 = vsel %vm3154_vm7, %v3108_v58, %v8476_v51  ;;  %v2760_v58 = vsel %vm2754_vm0, %v5530_v40, %v13025_v53 }
 0x520   :  { %5100 = vmatmul.msk.f32.gmra.mxu0 %vm3516_vm15, %v3457_v0  ;;  %v3208_v4 = vsel %vm3204_vm9, %v3158_v60, %v1862_v20 }
 0x521   :  { %v3258_v42 = vsel %vm3254_vm10, %v3208_v4, %v8788_v3  ;;  %v5531_v4 = vld [vmem:[%s12507_s0 + $0x2d8] sm:$0xff] }
 0x522   :  { %2479 = vrot.lane.b32.xlu2 %v5526_v30, %s5695_s22 }
 0x523   :  { %2331 = vrot.lane.b32.xlu1 %v5525_v10, %s5696_s29  ;;  %v13023_v10 = vld [vmem:[#allocation156_spill] sm:$0xff] }
 0x524   :  { %2177 = vrot.lane.b32.xlu0 %v5523_v55, %s5697_s12  ;;  %v8884_v24 = vpop.permute.xlu2 %2013  ;;  %v13021_v55 = vld [vmem:[#allocation48_spill] sm:$0xff] }
 0x525   :  { %v2318_v31 = vpop.permute.xlu1 %2317  ;;  %v2809_v3 = vsel %vm2804_vm2, %v2759_v8, %v13021_v55 }
 0x526   :  { %v2164_v11 = vpop.permute.xlu0 %2163  ;;  %v2859_v54 = vsel %vm2854_vm1, %v2809_v3, %v13022_v57 }
 0x527   :  { %v3308_v51 = vsel %vm3304_vm11, %v3258_v42, %v2164_v11 }
 0x528   :  { %v3358_v52 = vsel %vm3354_vm12, %v3308_v51, %v2318_v31  ;;  %v13027_v31 = vld [vmem:[#allocation108_spill] sm:$0xff] }
 0x52a   :  { %2025 = vrot.lane.b32.xlu2 %v8293_v39, %s5693_s17  ;;  %v2909_v39 = vsel %vm2904_vm3, %v2859_v54, %v13023_v10  ;;  %v13029_v10 = vld [vmem:[#allocation13_spill] sm:$0xff] }
 0x52b   :  { %1877 = vrot.lane.b32.xlu1 %v7976_v26, %s5694_s23  ;;  %v3408_v26 = vsel %vm3404_vm13, %v3358_v52, %v8811_v33  ;;  %v2959_v20 = vsel %vm2954_vm5, %v2909_v39, %v13024_v25  ;;  %v5529_v33 = vld [vmem:[%s12507_s0 + $0x2d0] sm:$0xff] }
 0x52c   :  { %2627 = vrot.lane.b32.xlu0 %v5528_v43, %s5698_s15  ;;  %v8907_v63 = vpop.permute.xlu2 %2469  ;;  %v3009_v14 = vsel %vm3004_vm4, %v2959_v20, %v7658_v38  ;;  %v13030_v25 = vld [vmem:[#allocation60_spill] sm:$0xff] }
 0x52d   :  { %v1864_v44 = vpop.permute.xlu1 %1863  ;;  %v3059_v21 = vsel %vm3054_vm6, %v3009_v14, %v7863_v50  ;;  %v13031_v14 = vld [vmem:[#allocation98_spill] sm:$0xff] }
 0x52e   :  { %v2614_v46 = vpop.permute.xlu0 %2613  ;;  %v3109_v19 = vsel %vm3104_vm8, %v3059_v21, %v8134_v48 }
 0x52f   :  { %v3458_v49 = vsel %vm3454_vm14, %v3408_v26, %v2614_v46  ;;  %v3159_v37 = vsel %vm3154_vm7, %v3109_v19, %v8538_v23  ;;  %v5534_v26 = vld [vmem:[%s12507_s0 + $0x278] sm:$0xff] }
 0x530   :  { %5101 = vmatmul.msk.f32.gmra.mxu0 %vm3516_vm15, %v3458_v49  ;;  %v3209_v38 = vsel %vm3204_vm9, %v3159_v37, %v1864_v44  ;;  %v5533_v44 = vld [vmem:[%s12507_s0 + $0x60] sm:$0xff]  ;;  %v5536_v49 = vld [vmem:[%s12507_s0 + $0x2e8] sm:$0xff] }
 0x531   :  { %v3259_v48 = vsel %vm3254_vm10, %v3209_v38, %v8836_v5  ;;  %v2761_v39 = vsel %vm2754_vm0, %v5533_v44, %v13029_v10 }
 0x532   :  { %2481 = vrot.lane.b32.xlu2 %v5529_v33, %s5695_s22  ;;  %v2811_v20 = vsel %vm2804_vm2, %v2761_v39, %v13030_v25  ;;  %v5543_v39 = vld [vmem:[%s12507_s0 + $0x110] sm:$0xff]  ;;  %v13039_v25 = vld [vmem:[#allocation347_spill] sm:$0xff] }
 0x533   :  { %2333 = vrot.lane.b32.xlu1 %v5528_v43, %s5696_s29  ;;  %v2861_v21 = vsel %vm2854_vm1, %v2811_v20, %v13031_v14  ;;  %v9102_v20 = vld [vmem:[%s12507_s0 + $0x320] sm:$0xff]  ;;  %v5545_v14 = vld [vmem:[%s12507_s0 + $0x398] sm:$0xff] }
 0x534   :  { %2179 = vrot.lane.b32.xlu0 %v5526_v30, %s5697_s12  ;;  %v8932_v35 = vpop.permute.xlu2 %2015  ;;  %v13026_v30 = vld [vmem:[#allocation61_spill] sm:$0xff] }
 0x535   :  { %v2320_v50 = vpop.permute.xlu1 %2319  ;;  %v2810_v5 = vsel %vm2804_vm2, %v2760_v58, %v13026_v30 }
 0x536   :  { %v2166_v0 = vpop.permute.xlu0 %2165  ;;  %v2860_v11 = vsel %vm2854_vm1, %v2810_v5, %v13027_v31  ;;  %v5538_v5 = vld [vmem:[%s12507_s0 + $0x100] sm:$0xff] }
 0x537   :  { %v3309_v23 = vsel %vm3304_vm11, %v3259_v48, %v2166_v0 }
 0x538   :  { %v3359_v60 = vsel %vm3354_vm12, %v3309_v23, %v2320_v50 }
 0x53a   :  { %2027 = vrot.lane.b32.xlu2 %v8331_v61, %s5693_s17  ;;  %v2910_v61 = vsel %vm2904_vm3, %v2860_v11, %v13028_v1  ;;  %v5539_v1 = vld [vmem:[%s12507_s0 + $0x2f8] sm:$0xff] }
 0x53b   :  { %1879 = vrot.lane.b32.xlu1 %v7969_v34, %s5694_s23  ;;  %v3409_v34 = vsel %vm3404_vm13, %v3359_v60, %v8859_v16  ;;  %v2960_v8 = vsel %vm2954_vm5, %v2910_v61, %v7449_v9  ;;  %v5532_v9 = vld [vmem:[%s12507_s0 + $0x2e0] sm:$0xff]  ;;  %v13035_v61 = vld [vmem:[#allocation112_spill] sm:$0xff] }
 0x53c   :  { %2629 = vrot.lane.b32.xlu0 %v5531_v4, %s5698_s15  ;;  %v8955_v42 = vpop.permute.xlu2 %2471  ;;  %v3010_v55 = vsel %vm3004_vm4, %v2960_v8, %v7656_v12 }
 0x53d   :  { %v1866_v51 = vpop.permute.xlu1 %1865  ;;  %v3060_v3 = vsel %vm3054_vm6, %v3010_v55, %v7823_v18 }
 0x53e   :  { %v2616_v62 = vpop.permute.xlu0 %2615  ;;  %v3110_v43 = vsel %vm3104_vm8, %v3060_v3, %v8210_v36  ;;  %v13037_v3 = vld [vmem:[#allocation217_spill] sm:$0xff] }
 0x53f   :  { %v3459_v52 = vsel %vm3454_vm14, %v3409_v34, %v2616_v62  ;;  %v3160_v57 = vsel %vm3154_vm7, %v3110_v43, %v8536_v15 }
 0x540   :  { %5102 = vmatmul.msk.f32.gmra.mxu0 %vm3516_vm15, %v3459_v52  ;;  %v3210_v12 = vsel %vm3204_vm9, %v3160_v57, %v1866_v51  ;;  %v13034_v51 = vld [vmem:[#allocation51_spill] sm:$0xff] }
 0x541   :  { %v3260_v36 = vsel %vm3254_vm10, %v3210_v12, %v8884_v24  ;;  %v5535_v24 = vld [vmem:[%s12507_s0 + $0x270] sm:$0xff]  ;;  %v13036_v52 = vld [vmem:[#allocation159_spill] sm:$0xff] }
 0x542   :  { %2483 = vrot.lane.b32.xlu2 %v5532_v9, %s5695_s22 }
 0x543   :  { %2335 = vrot.lane.b32.xlu1 %v5531_v4, %s5696_s29  ;;  %v13033_v4 = vld [vmem:[#allocation12_spill] sm:$0xff] }
 0x544   :  { %2181 = vrot.lane.b32.xlu0 %v5529_v33, %s5697_s12  ;;  %v8980_v16 = vpop.permute.xlu2 %2017  ;;  %v13032_v33 = vld [vmem:[#allocation160_spill] sm:$0xff]  ;;  %v2762_v31 = vsel %vm2754_vm0, %v5538_v5, %v13033_v4 }
 0x545   :  { %v2322_v18 = vpop.permute.xlu1 %2321  ;;  %v2911_v38 = vsel %vm2904_vm3, %v2861_v21, %v13032_v33  ;;  %v13041_v21 = vld [vmem:[#allocation111_spill] sm:$0xff] }
 0x546   :  { %v2168_v54 = vpop.permute.xlu0 %2167  ;;  %v2961_v48 = vsel %vm2954_vm5, %v2911_v38, %v7447_v28  ;;  %v5537_v28 = vld [vmem:[%s12507_s0 + $0x2f0] sm:$0xff] }
 0x547   :  { %v3310_v15 = vsel %vm3304_vm11, %v3260_v36, %v2168_v54  ;;  %v3011_v40 = vsel %vm3004_vm4, %v2961_v48, %v7614_v27 }
 0x548   :  { %v3360_v46 = vsel %vm3354_vm12, %v3310_v15, %v2322_v18  ;;  %v3061_v53 = vsel %vm3054_vm6, %v3011_v40, %v7886_v59  ;;  %v13043_v40 = vld [vmem:[#allocation234_spill] sm:$0xff] }
 0x549   :  { %v3410_v0 = vsel %vm3404_vm13, %v3360_v46, %v8907_v63  ;;  %v3111_v58 = vsel %vm3104_vm8, %v3061_v53, %v8208_v13  ;;  %v13038_v46 = vld [vmem:[#allocation4_spill] sm:$0xff] }
 0x54a   :  { %2029 = vrot.lane.b32.xlu2 %v5534_v26, %s5693_s17  ;;  %v3161_v60 = vsel %vm3154_vm7, %v3111_v58, %v8490_v45  ;;  %v2763_v26 = vsel %vm2754_vm0, %v5543_v39, %v13038_v46  ;;  %v13056_v46 = vld [vmem:[#allocation371_spill] sm:$0xff] }
 0x54b   :  { %1881 = vrot.lane.b32.xlu1 %v5535_v24, %s5694_s23 }
 0x54c   :  { %2631 = vrot.lane.b32.xlu0 %v5536_v49, %s5698_s15  ;;  %v9007_v19 = vpop.permute.xlu2 %2473 }
 0x54d   :  { %v1868_v37 = vpop.permute.xlu1 %1867 }
 0x54e   :  { %v2618_v50 = vpop.permute.xlu0 %2617  ;;  %v3211_v27 = vsel %vm3204_vm9, %v3161_v60, %v1868_v37  ;;  %v13044_v60 = vld [vmem:[#allocation274_spill] sm:$0xff] }
 0x54f   :  { %v3460_v23 = vsel %vm3454_vm14, %v3410_v0, %v2618_v50  ;;  %v3261_v13 = vsel %vm3254_vm10, %v3211_v27, %v8932_v35  ;;  %v2812_v35 = vsel %vm2804_vm2, %v2762_v31, %v13034_v51  ;;  %v13042_v50 = vld [vmem:[#allocation149_spill] sm:$0xff] }
 0x550   :  { %5103 = vmatmul.msk.f32.gmra.mxu0 %vm3516_vm15, %v3460_v23  ;;  %v2862_v62 = vsel %vm2854_vm1, %v2812_v35, %v13035_v61  ;;  %v13045_v27 = vld [vmem:[#allocation209_spill] sm:$0xff]  ;;  %v5547_v35 = vld [vmem:[%s12507_s0 + $0x120] sm:$0xff] }
 0x552   :  { %2485 = vrot.lane.b32.xlu2 %v5537_v28, %s5695_s22 }
 0x553   :  { %2337 = vrot.lane.b32.xlu1 %v5536_v49, %s5696_s29 }
 0x554   :  { %2183 = vrot.lane.b32.xlu0 %v5532_v9, %s5697_s12  ;;  %v9032_v63 = vpop.permute.xlu2 %2019 }
 0x555   :  { %v2324_v59 = vpop.permute.xlu1 %2323 }
 0x556   :  { %v2170_v30 = vpop.permute.xlu0 %2169 }
 0x557   :  { %v3311_v45 = vsel %vm3304_vm11, %v3261_v13, %v2170_v30  ;;  %v13046_v30 = vld [vmem:[#allocation332_spill] sm:$0xff] }
 0x558   :  { %v3361_v11 = vsel %vm3354_vm12, %v3311_v45, %v2324_v59 }
 0x55a   :  { %2031 = vrot.lane.b32.xlu2 %v8320_v2, %s5693_s17  ;;  %v2912_v2 = vsel %vm2904_vm3, %v2862_v62, %v13036_v52  ;;  %v9155_v52 = vld [vmem:[%s12507_s0 + $0x330] sm:$0xff] }
 0x55b   :  { %1883 = vrot.lane.b32.xlu1 %v8003_v41, %s5694_s23  ;;  %v3411_v41 = vsel %vm3404_vm13, %v3361_v11, %v8955_v42  ;;  %v2962_v43 = vsel %vm2954_vm5, %v2912_v2, %v13037_v3  ;;  %v5540_v42 = vld [vmem:[%s12507_s0 + $0x390] sm:$0xff] }
 0x55c   :  { %2633 = vrot.lane.b32.xlu0 %v5539_v1, %s5698_s15  ;;  %v9055_v34 = vpop.permute.xlu2 %2475  ;;  %v3012_v9 = vsel %vm3004_vm4, %v2962_v43, %v7670_v7  ;;  %v5541_v7 = vld [vmem:[%s12507_s0 + $0x388] sm:$0xff]  ;;  %v13047_v1 = vld [vmem:[#allocation16_spill] sm:$0xff] }
 0x55d   :  { %v1870_v8 = vpop.permute.xlu1 %1869  ;;  %v3062_v12 = vsel %vm3054_vm6, %v3012_v9, %v7884_v56  ;;  %v2764_v61 = vsel %vm2754_vm0, %v5547_v35, %v13047_v1  ;;  %v13065_v1 = vld [vmem:[#allocation326_spill] sm:$0xff] }
 0x55e   :  { %v2620_v55 = vpop.permute.xlu0 %2619  ;;  %v3112_v18 = vsel %vm3104_vm8, %v3062_v12, %v8152_v22  ;;  %v5542_v22 = vld [vmem:[%s12507_s0 + $0x380] sm:$0xff] }
 0x55f   :  { %v3461_v57 = vsel %vm3454_vm14, %v3411_v41, %v2620_v55  ;;  %v3162_v54 = vsel %vm3154_vm7, %v3112_v18, %v8552_v17  ;;  %v5549_v55 = vld [vmem:[%s12507_s0 + $0x3a8] sm:$0xff]  ;;  %v13050_v41 = vld [vmem:[#allocation101_spill] sm:$0xff] }
 0x560   :  { %5104 = vmatmul.msk.f32.gmra.mxu0 %vm3516_vm15, %v3461_v57  ;;  %v3212_v56 = vsel %vm3204_vm9, %v3162_v54, %v1870_v8  ;;  %v13048_v8 = vld [vmem:[#allocation346_spill] sm:$0xff]  ;;  %v13051_v57 = vld [vmem:[#allocation163_spill] sm:$0xff] }
 0x561   :  { %v3262_v44 = vsel %vm3254_vm10, %v3212_v56, %v8980_v16  ;;  %v13040_v16 = vld [vmem:[#allocation64_spill] sm:$0xff] }
 0x562   :  { %2487 = vrot.lane.b32.xlu2 %v5540_v42, %s5695_s22  ;;  %v2813_v49 = vsel %vm2804_vm2, %v2763_v26, %v13040_v16 }
 0x563   :  { %2339 = vrot.lane.b32.xlu1 %v5541_v7, %s5696_s29  ;;  %v2863_v37 = vsel %vm2854_vm1, %v2813_v49, %v13041_v21 }
 0x564   :  { %2185 = vrot.lane.b32.xlu0 %v5542_v22, %s5697_s12  ;;  %v9086_v17 = vpop.permute.xlu2 %2021  ;;  %v2913_v0 = vsel %vm2904_vm3, %v2863_v37, %v13042_v50  ;;  %v13053_v22 = vld [vmem:[#allocation268_spill] sm:$0xff] }
 0x565   :  { %v2326_v36 = vpop.permute.xlu1 %2325  ;;  %v2963_v53 = vsel %vm2954_vm5, %v2913_v0, %v13043_v40  ;;  %v5551_v37 = vld [vmem:[%s12507_s0 + $0x130] sm:$0xff] }
 0x566   :  { %v2172_v15 = vpop.permute.xlu0 %2171  ;;  %v3013_v28 = vsel %vm3004_vm4, %v2963_v53, %v13044_v60  ;;  %v5553_v53 = vld [vmem:[%s12507_s0 + $0x3b8] sm:$0xff] }
 0x567   :  { %v3312_v10 = vsel %vm3304_vm11, %v3262_v44, %v2172_v15  ;;  %v3063_v59 = vsel %vm3054_vm6, %v3013_v28, %v13045_v27  ;;  %v13054_v15 = vld [vmem:[#allocation292_spill] sm:$0xff]  ;;  %v13061_v27 = vld [vmem:[#allocation162_spill] sm:$0xff] }
 0x568   :  { %v3362_v24 = vsel %vm3354_vm12, %v3312_v10, %v2326_v36  ;;  %v3113_v13 = vsel %vm3104_vm8, %v3063_v59, %v13046_v30  ;;  %v13055_v10 = vld [vmem:[#allocation331_spill] sm:$0xff] }
 0x569   :  { %v3412_v23 = vsel %vm3404_vm13, %v3362_v24, %v9007_v19  ;;  %v3163_v45 = vsel %vm3154_vm7, %v3113_v13, %v8550_v47  ;;  %v5546_v19 = vld [vmem:[%s12507_s0 + $0x3a0] sm:$0xff] }
 0x56a   :  { %2033 = vrot.lane.b32.xlu2 %v13039_v25, %s5693_s17 }
 0x56b   :  { %1885 = vrot.lane.b32.xlu1 %v9102_v20, %s5694_s23 }
 0x56c   :  { %2635 = vrot.lane.b32.xlu0 %v5545_v14, %s5698_s15  ;;  %v9114_v33 = vpop.permute.xlu2 %2477 }
 0x56d   :  { %v1872_v38 = vpop.permute.xlu1 %1871 }
 0x56e   :  { %v2622_v48 = vpop.permute.xlu0 %2621  ;;  %v3213_v5 = vsel %vm3204_vm9, %v3163_v45, %v1872_v38  ;;  %v13057_v38 = vld [vmem:[#allocation15_spill] sm:$0xff] }
 0x56f   :  { %v3462_v58 = vsel %vm3454_vm14, %v3412_v23, %v2622_v48  ;;  %v3263_v51 = vsel %vm3254_vm10, %v3213_v5, %v9032_v63  ;;  %v13049_v63 = vld [vmem:[#allocation63_spill] sm:$0xff]  ;;  %v2765_v50 = vsel %vm2754_vm0, %v5551_v37, %v13057_v38  ;;  %v13058_v48 = vld [vmem:[#allocation345_spill] sm:$0xff]  ;;  %v9208_v23 = vld [vmem:[%s12507_s0 + $0x340] sm:$0xff] }
 0x570   :  { %5105 = vmatmul.msk.f32.gmra.mxu0 %vm3516_vm15, %v3462_v58  ;;  %v2814_v2 = vsel %vm2804_vm2, %v2764_v61, %v13049_v63  ;;  %v13060_v58 = vld [vmem:[#allocation115_spill] sm:$0xff]  ;;  %v13074_v37 = vld [vmem:[#allocation220_spill] sm:$0xff] }
 0x571   :  { %v2864_v3 = vsel %vm2854_vm1, %v2814_v2, %v13050_v41 }
 0x572   :  { %2489 = vrot.lane.b32.xlu2 %v5546_v19, %s5695_s22  ;;  %v2914_v9 = vsel %vm2904_vm3, %v2864_v3, %v13051_v57 }
 0x573   :  { %2341 = vrot.lane.b32.xlu1 %v5545_v14, %s5696_s29 }
 0x574   :  { %2187 = vrot.lane.b32.xlu0 %v5540_v42, %s5697_s12  ;;  %v9139_v4 = vpop.permute.xlu2 %2023  ;;  %v13052_v42 = vld [vmem:[#allocation233_spill] sm:$0xff] }
 0x575   :  { %v2328_v31 = vpop.permute.xlu1 %2327  ;;  %v2964_v7 = vsel %vm2954_vm5, %v2914_v9, %v13052_v42  ;;  %v5555_v9 = vld [vmem:[%s12507_s0 + $0x140] sm:$0xff]  ;;  %v13068_v42 = vld [vmem:[#allocation352_spill] sm:$0xff] }
 0x576   :  { %v2174_v11 = vpop.permute.xlu0 %2173  ;;  %v3014_v36 = vsel %vm3004_vm4, %v2964_v7, %v13053_v22  ;;  %v9261_v7 = vld [vmem:[%s12507_s0 + $0x350] sm:$0xff]  ;;  %v5557_v22 = vld [vmem:[%s12507_s0 + $0x3c8] sm:$0xff] }
 0x577   :  { %v3313_v47 = vsel %vm3304_vm11, %v3263_v51, %v2174_v11  ;;  %v3064_v44 = vsel %vm3054_vm6, %v3014_v36, %v13054_v15  ;;  %v13063_v11 = vld [vmem:[#allocation277_spill] sm:$0xff]  ;;  %v13070_v36 = vld [vmem:[#allocation114_spill] sm:$0xff] }
 0x578   :  { %v3363_v62 = vsel %vm3354_vm12, %v3313_v47, %v2328_v31  ;;  %v3114_v39 = vsel %vm3104_vm8, %v3064_v44, %v13055_v10  ;;  %v13064_v47 = vld [vmem:[#allocation291_spill] sm:$0xff]  ;;  %v13071_v10 = vld [vmem:[#allocation152_spill] sm:$0xff] }
 0x579   :  { %v3413_v54 = vsel %vm3404_vm13, %v3363_v62, %v9055_v34  ;;  %v3164_v26 = vsel %vm3154_vm7, %v3114_v39, %v13056_v46  ;;  %v5550_v34 = vld [vmem:[%s12507_s0 + $0x3b0] sm:$0xff]  ;;  %v13066_v62 = vld [vmem:[#allocation379_spill] sm:$0xff] }
 0x57a   :  { %2035 = vrot.lane.b32.xlu2 %v13048_v8, %s5693_s17 }
 0x57b   :  { %1887 = vrot.lane.b32.xlu1 %v9155_v52, %s5694_s23 }
 0x57c   :  { %2637 = vrot.lane.b32.xlu0 %v5549_v55, %s5698_s15  ;;  %v9167_v43 = vpop.permute.xlu2 %2479 }
 0x57d   :  { %v1874_v12 = vpop.permute.xlu1 %1873 }
 0x57e   :  { %v2624_v18 = vpop.permute.xlu0 %2623  ;;  %v3214_v24 = vsel %vm3204_vm9, %v3164_v26, %v1874_v12  ;;  %v13067_v12 = vld [vmem:[#allocation5_spill] sm:$0xff] }
 0x57f   :  { %v3463_v56 = vsel %vm3454_vm14, %v3413_v54, %v2624_v18  ;;  %v3264_v14 = vsel %vm3254_vm10, %v3214_v24, %v9086_v17  ;;  %v13059_v17 = vld [vmem:[#allocation53_spill] sm:$0xff]  ;;  %v2766_v18 = vsel %vm2754_vm0, %v5555_v9, %v13067_v12  ;;  %v13084_v12 = vld [vmem:[#allocation295_spill] sm:$0xff] }
 0x580   :  { %5106 = vmatmul.msk.f32.gmra.mxu0 %vm3516_vm15, %v3463_v56  ;;  %v2815_v40 = vsel %vm2804_vm2, %v2765_v50, %v13059_v17  ;;  %v13072_v24 = vld [vmem:[#allocation237_spill] sm:$0xff]  ;;  %v13075_v50 = vld [vmem:[#allocation335_spill] sm:$0xff] }
 0x581   :  { %v2865_v60 = vsel %vm2854_vm1, %v2815_v40, %v13060_v58 }
 0x582   :  { %2491 = vrot.lane.b32.xlu2 %v5550_v34, %s5695_s22  ;;  %v2915_v59 = vsel %vm2904_vm3, %v2865_v60, %v13061_v27 }
 0x583   :  { %2343 = vrot.lane.b32.xlu1 %v5549_v55, %s5696_s29 }
 0x584   :  { %2189 = vrot.lane.b32.xlu0 %v5546_v19, %s5697_s12  ;;  %v9192_v25 = vpop.permute.xlu2 %2025  ;;  %v13062_v19 = vld [vmem:[#allocation222_spill] sm:$0xff] }
 0x585   :  { %v2330_v16 = vpop.permute.xlu1 %2329  ;;  %v2965_v5 = vsel %vm2954_vm5, %v2915_v59, %v13062_v19 }
 0x586   :  { %v2176_v49 = vpop.permute.xlu0 %2175  ;;  %v3015_v51 = vsel %vm3004_vm4, %v2965_v5, %v13063_v11  ;;  %v13078_v5 = vld [vmem:[#allocation351_spill] sm:$0xff] }
 0x587   :  { %v3314_v21 = vsel %vm3304_vm11, %v3264_v14, %v2176_v49  ;;  %v3065_v35 = vsel %vm3054_vm6, %v3015_v51, %v13064_v47  ;;  %v13073_v14 = vld [vmem:[#allocation276_spill] sm:$0xff]  ;;  %v5561_v51 = vld [vmem:[%s12507_s0 + $0x3d8] sm:$0xff] }
 0x588   :  { %v3364_v0 = vsel %vm3354_vm12, %v3314_v21, %v2330_v16  ;;  %v3115_v61 = vsel %vm3104_vm8, %v3065_v35, %v13065_v1  ;;  %v13080_v47 = vld [vmem:[#allocation104_spill] sm:$0xff] }
 0x589   :  { %v3414_v45 = vsel %vm3404_vm13, %v3364_v0, %v9114_v33  ;;  %v3165_v8 = vsel %vm3154_vm7, %v3115_v61, %v13066_v62  ;;  %v5554_v33 = vld [vmem:[%s12507_s0 + $0x3c0] sm:$0xff] }
 0x58a   :  { %2037 = vrot.lane.b32.xlu2 %v13058_v48, %s5693_s17  ;;  %v13076_v48 = vld [vmem:[#allocation378_spill] sm:$0xff] }
 0x58b   :  { %1889 = vrot.lane.b32.xlu1 %v9208_v23, %s5694_s23  ;;  %v13081_v61 = vld [vmem:[#allocation166_spill] sm:$0xff] }
 0x58c   :  { %2639 = vrot.lane.b32.xlu0 %v5553_v53, %s5698_s15  ;;  %v9220_v28 = vpop.permute.xlu2 %2481 }
 0x58d   :  { %v1876_v30 = vpop.permute.xlu1 %1875 }
 0x58e   :  { %v2626_v13 = vpop.permute.xlu0 %2625  ;;  %v3215_v63 = vsel %vm3204_vm9, %v3165_v8, %v1876_v30  ;;  %v5559_v30 = vld [vmem:[%s12507_s0 + $0x150] sm:$0xff] }
 0x58f   :  { %v3464_v31 = vsel %vm3454_vm14, %v3414_v45, %v2626_v13  ;;  %v3265_v3 = vsel %vm3254_vm10, %v3215_v63, %v9139_v4  ;;  %v13069_v4 = vld [vmem:[#allocation67_spill] sm:$0xff] }
 0x590   :  { %5107 = vmatmul.msk.f32.gmra.mxu0 %vm3516_vm15, %v3464_v31  ;;  %v2816_v56 = vsel %vm2804_vm2, %v2766_v18, %v13069_v4  ;;  %v13077_v13 = vld [vmem:[#allocation19_spill] sm:$0xff]  ;;  %v9314_v31 = vld [vmem:[%s12507_s0 + $0x360] sm:$0xff] }
 0x591   :  { %v2866_v15 = vsel %vm2854_vm1, %v2816_v56, %v13070_v36  ;;  %v2767_v45 = vsel %vm2754_vm0, %v5559_v30, %v13077_v13  ;;  %v13086_v4 = vld [vmem:[#allocation374_spill] sm:$0xff]  ;;  %v13092_v30 = vld [vmem:[#allocation280_spill] sm:$0xff] }
 0x592   :  { %2493 = vrot.lane.b32.xlu2 %v5554_v33, %s5695_s22  ;;  %v2916_v39 = vsel %vm2904_vm3, %v2866_v15, %v13071_v10 }
 0x593   :  { %2345 = vrot.lane.b32.xlu1 %v5553_v53, %s5696_s29  ;;  %v2966_v16 = vsel %vm2954_vm5, %v2916_v39, %v13072_v24 }
 0x594   :  { %2191 = vrot.lane.b32.xlu0 %v5550_v34, %s5697_s12  ;;  %v9245_v2 = vpop.permute.xlu2 %2027  ;;  %v3016_v21 = vsel %vm3004_vm4, %v2966_v16, %v13073_v14  ;;  %v13088_v14 = vld [vmem:[#allocation56_spill] sm:$0xff] }
 0x595   :  { %v2332_v55 = vpop.permute.xlu1 %2331  ;;  %v3066_v38 = vsel %vm3054_vm6, %v3016_v21, %v13074_v37  ;;  %v5566_v37 = vld [vmem:[%s12507_s0 + $0x3e8] sm:$0xff] }
 0x596   :  { %v2178_v41 = vpop.permute.xlu0 %2177  ;;  %v3116_v0 = vsel %vm3104_vm8, %v3066_v38, %v13075_v50  ;;  %v13089_v38 = vld [vmem:[#allocation118_spill] sm:$0xff] }
 0x597   :  { %v3315_v57 = vsel %vm3304_vm11, %v3265_v3, %v2178_v41  ;;  %v3166_v17 = vsel %vm3154_vm7, %v3116_v0, %v13076_v48  ;;  %v13090_v48 = vld [vmem:[#allocation165_spill] sm:$0xff] }
 0x598   :  { %v3365_v54 = vsel %vm3354_vm12, %v3315_v57, %v2332_v55  ;;  %v13082_v55 = vld [vmem:[#allocation236_spill] sm:$0xff]  ;;  %v13083_v57 = vld [vmem:[#allocation271_spill] sm:$0xff] }
 0x599   :  { %v3415_v34 = vsel %vm3404_vm13, %v3365_v54, %v9167_v43  ;;  %v5558_v43 = vld [vmem:[%s12507_s0 + $0x3d0] sm:$0xff]  ;;  %v13085_v54 = vld [vmem:[#allocation334_spill] sm:$0xff] }
 0x59a   :  { %2039 = vrot.lane.b32.xlu2 %v13068_v42, %s5693_s17 }
 0x59b   :  { %1891 = vrot.lane.b32.xlu1 %v9261_v7, %s5694_s23 }
 0x59c   :  { %2641 = vrot.lane.b32.xlu0 %v5557_v22, %s5698_s15  ;;  %v9273_v44 = vpop.permute.xlu2 %2483 }
 0x59d   :  { %v1878_v46 = vpop.permute.xlu1 %1877 }
 0x59e   :  { %v2628_v26 = vpop.permute.xlu0 %2627  ;;  %v3216_v40 = vsel %vm3204_vm9, %v3166_v17, %v1878_v46 }
 0x59f   :  { %v3465_v49 = vsel %vm3454_vm14, %v3415_v34, %v2628_v26  ;;  %v3266_v27 = vsel %vm3254_vm10, %v3216_v40, %v9192_v25  ;;  %v13079_v25 = vld [vmem:[#allocation66_spill] sm:$0xff] }
 0x5a0   :  { %5108 = vmatmul.msk.f32.gmra.mxu0 %vm3516_vm15, %v3465_v49  ;;  %v2817_v11 = vsel %vm2804_vm2, %v2767_v45, %v13079_v25  ;;  %v5563_v26 = vld [vmem:[%s12507_s0 + $0x160] sm:$0xff]  ;;  %v5564_v49 = vld [vmem:[%s12507_s0 + $0x378] sm:$0xff] }
 0x5a1   :  { %v2867_v35 = vsel %vm2854_vm1, %v2817_v11, %v13080_v47  ;;  %v13087_v34 = vld [vmem:[#allocation18_spill] sm:$0xff] }
 0x5a2   :  { %2495 = vrot.lane.b32.xlu2 %v5558_v43, %s5695_s22  ;;  %v2917_v62 = vsel %vm2904_vm3, %v2867_v35, %v13081_v61  ;;  %v2768_v24 = vsel %vm2754_vm0, %v5563_v26, %v13087_v34  ;;  %v13093_v45 = vld [vmem:[#allocation294_spill] sm:$0xff]  ;;  %v13101_v34 = vld [vmem:[#allocation229_spill] sm:$0xff] }
 0x5a3   :  { %2347 = vrot.lane.b32.xlu1 %v5557_v22, %s5696_s29  ;;  %v2967_v41 = vsel %vm2954_vm5, %v2917_v62, %v13082_v55  ;;  %v2818_v21 = vsel %vm2804_vm2, %v2768_v24, %v13088_v14  ;;  %v5573_v14 = vld [vmem:[%s12507_s0 + $0x488] sm:$0xff] }
 0x5a4   :  { %2193 = vrot.lane.b32.xlu0 %v5554_v33, %s5697_s12  ;;  %v9298_v53 = vpop.permute.xlu2 %2029  ;;  %v3017_v9 = vsel %vm3004_vm4, %v2967_v41, %v13083_v57  ;;  %v2868_v50 = vsel %vm2854_vm1, %v2818_v21, %v13089_v38  ;;  %v5569_v41 = vld [vmem:[%s12507_s0 + $0x418] sm:$0xff] }
 0x5a5   :  { %v2334_v58 = vpop.permute.xlu1 %2333  ;;  %v3067_v18 = vsel %vm3054_vm6, %v3017_v9, %v13084_v12  ;;  %v2918_v17 = vsel %vm2904_vm3, %v2868_v50, %v13090_v48  ;;  %v5571_v9 = vld [vmem:[%s12507_s0 + $0x3f8] sm:$0xff] }
 0x5a6   :  { %v2180_v60 = vpop.permute.xlu0 %2179  ;;  %v3117_v42 = vsel %vm3104_vm8, %v3067_v18, %v13085_v54  ;;  %v13097_v12 = vld [vmem:[#allocation117_spill] sm:$0xff] }
 0x5a7   :  { %v3316_v59 = vsel %vm3304_vm11, %v3266_v27, %v2180_v60  ;;  %v3167_v56 = vsel %vm3154_vm7, %v3117_v42, %v13086_v4  ;;  %v13091_v60 = vld [vmem:[#allocation226_spill] sm:$0xff]  ;;  %v13098_v42 = vld [vmem:[#allocation155_spill] sm:$0xff] }
 0x5a8   :  { %v3366_v19 = vsel %vm3354_vm12, %v3316_v59, %v2334_v58  ;;  %v2968_v27 = vsel %vm2954_vm5, %v2918_v17, %v13091_v60 }
 0x5a9   :  { %v3416_v63 = vsel %vm3404_vm13, %v3366_v19, %v9220_v28  ;;  %v5562_v28 = vld [vmem:[%s12507_s0 + $0x3e0] sm:$0xff]  ;;  %v3018_v13 = vsel %vm3004_vm4, %v2968_v27, %v13092_v30  ;;  %v5576_v27 = vld [vmem:[%s12507_s0 + $0x428] sm:$0xff] }
 0x5aa   :  { %2041 = vrot.lane.b32.xlu2 %v13078_v5, %s5693_s17  ;;  %v3068_v19 = vsel %vm3054_vm6, %v3018_v13, %v13093_v45  ;;  %v13094_v5 = vld [vmem:[#allocation328_spill] sm:$0xff]  ;;  %v5578_v13 = vld [vmem:[%s12507_s0 + $0x498] sm:$0xff]  ;;  %v13105_v45 = vld [vmem:[#allocation107_spill] sm:$0xff] }
 0x5ab   :  { %1893 = vrot.lane.b32.xlu1 %v9314_v31, %s5694_s23  ;;  %v3118_v25 = vsel %vm3104_vm8, %v3068_v19, %v13094_v5 }
 0x5ac   :  { %2643 = vrot.lane.b32.xlu0 %v5561_v51, %s5698_s15  ;;  %v9326_v1 = vpop.permute.xlu2 %2485  ;;  %v3168_v11 = vsel %vm3154_vm7, %v3118_v25, %v8578_v32  ;;  %v13106_v25 = vld [vmem:[#allocation169_spill] sm:$0xff] }
 0x5ad   :  { %v1880_v8 = vpop.permute.xlu1 %1879 }
 0x5ae   :  { %v2630_v33 = vpop.permute.xlu0 %2629  ;;  %v3217_v22 = vsel %vm3204_vm9, %v3167_v56, %v1880_v8  ;;  %v5568_v8 = vld [vmem:[%s12507_s0 + $0x200] sm:$0xff] }
 0x5af   :  { %v3466_v3 = vsel %vm3454_vm14, %v3416_v63, %v2630_v33  ;;  %v3267_v39 = vsel %vm3254_vm10, %v3217_v22, %v9245_v2  ;;  %v5565_v2 = vld [vmem:[%s12507_s0 + $0x370] sm:$0xff] }
 0x5b0   :  { %5109 = vmatmul.msk.f32.gmra.mxu0 %vm3516_vm15, %v3466_v3  ;;  %v13095_v33 = vld [vmem:[#allocation8_spill] sm:$0xff]  ;;  %v13096_v3 = vld [vmem:[#allocation70_spill] sm:$0xff] }
 0x5b1   :  { %v2769_v63 = vsel %vm2754_vm0, %v5568_v8, %v13095_v33  ;;  %v13108_v8 = vld [vmem:[#allocation272_spill] sm:$0xff] }
 0x5b2   :  { %2497 = vrot.lane.b32.xlu2 %v5562_v28, %s5695_s22  ;;  %v2819_v57 = vsel %vm2804_vm2, %v2769_v63, %v13096_v3  ;;  %v13109_v63 = vld [vmem:[#allocation298_spill] sm:$0xff]  ;;  %v13111_v3 = vld [vmem:[#allocation375_spill] sm:$0xff] }
 0x5b3   :  { %2349 = vrot.lane.b32.xlu1 %v5561_v51, %s5696_s29  ;;  %v2869_v18 = vsel %vm2854_vm1, %v2819_v57, %v13097_v12 }
 0x5b4   :  { %2195 = vrot.lane.b32.xlu0 %v5558_v43, %s5697_s12  ;;  %v9351_v36 = vpop.permute.xlu2 %2031  ;;  %v2919_v4 = vsel %vm2904_vm3, %v2869_v18, %v13098_v42 }
 0x5b5   :  { %v2336_v15 = vpop.permute.xlu1 %2335 }
 0x5b6   :  { %v2182_v10 = vpop.permute.xlu0 %2181 }
 0x5b7   :  { %v3317_v46 = vsel %vm3304_vm11, %v3267_v39, %v2182_v10 }
 0x5b8   :  { %v3367_v16 = vsel %vm3354_vm12, %v3317_v46, %v2336_v15  ;;  %v13099_v15 = vld [vmem:[#allocation240_spill] sm:$0xff]  ;;  %v13100_v46 = vld [vmem:[#allocation279_spill] sm:$0xff] }
 0x5b9   :  { %v3417_v58 = vsel %vm3404_vm13, %v3367_v16, %v9273_v44  ;;  %v5567_v44 = vld [vmem:[%s12507_s0 + $0x3f0] sm:$0xff]  ;;  %v2969_v10 = vsel %vm2954_vm5, %v2919_v4, %v13099_v15  ;;  %v13102_v16 = vld [vmem:[#allocation338_spill] sm:$0xff] }
 0x5ba   :  { %2043 = vrot.lane.b32.xlu2 %v5564_v49, %s5693_s17  ;;  %v3019_v26 = vsel %vm3004_vm4, %v2969_v10, %v13100_v46  ;;  %v13113_v46 = vld [vmem:[#allocation59_spill] sm:$0xff] }
 0x5bb   :  { %1895 = vrot.lane.b32.xlu1 %v5565_v2, %s5694_s23  ;;  %v3069_v24 = vsel %vm3054_vm6, %v3019_v26, %v13101_v34  ;;  %v5583_v34 = vld [vmem:[%s12507_s0 + $0x4a8] sm:$0xff] }
 0x5bc   :  { %2645 = vrot.lane.b32.xlu0 %v5566_v37, %s5698_s15  ;;  %v9378_v0 = vpop.permute.xlu2 %2487  ;;  %v3119_v49 = vsel %vm3104_vm8, %v3069_v24, %v13102_v16  ;;  %v13114_v24 = vld [vmem:[#allocation121_spill] sm:$0xff] }
 0x5bd   :  { %v1882_v43 = vpop.permute.xlu1 %1881  ;;  %v3169_v2 = vsel %vm3154_vm7, %v3119_v49, %v8576_v29 }
 0x5be   :  { %v2632_v40 = vpop.permute.xlu0 %2631  ;;  %v3218_v51 = vsel %vm3204_vm9, %v3168_v11, %v1882_v43  ;;  %v5575_v43 = vld [vmem:[%s12507_s0 + $0x210] sm:$0xff] }
 0x5bf   :  { %v3467_v59 = vsel %vm3454_vm14, %v3417_v58, %v2632_v40  ;;  %v3268_v62 = vsel %vm3254_vm10, %v3218_v51, %v9298_v53  ;;  %v5570_v53 = vld [vmem:[%s12507_s0 + $0x410] sm:$0xff]  ;;  %v13103_v40 = vld [vmem:[#allocation22_spill] sm:$0xff] }
 0x5c0   :  { %5110 = vmatmul.msk.f32.gmra.mxu0 %vm3516_vm15, %v3467_v59  ;;  %v2770_v58 = vsel %vm2754_vm0, %v5575_v43, %v13103_v40  ;;  %v13104_v59 = vld [vmem:[#allocation69_spill] sm:$0xff] }
 0x5c1   :  { %v2820_v30 = vsel %vm2804_vm2, %v2770_v58, %v13104_v59  ;;  %v13118_v40 = vld [vmem:[#allocation297_spill] sm:$0xff] }
 0x5c2   :  { %2499 = vrot.lane.b32.xlu2 %v5567_v44, %s5695_s22  ;;  %v2870_v19 = vsel %vm2854_vm1, %v2820_v30, %v13105_v45 }
 0x5c3   :  { %2351 = vrot.lane.b32.xlu1 %v5566_v37, %s5696_s29  ;;  %v5574_v37 = vld [vmem:[%s12507_s0 + $0x480] sm:$0xff]  ;;  %v2920_v11 = vsel %vm2904_vm3, %v2870_v19, %v13106_v25 }
 0x5c4   :  { %2197 = vrot.lane.b32.xlu0 %v5562_v28, %s5697_s12  ;;  %v9403_v47 = vpop.permute.xlu2 %2033 }
 0x5c5   :  { %v2338_v35 = vpop.permute.xlu1 %2337 }
 0x5c6   :  { %v2184_v61 = vpop.permute.xlu0 %2183 }
 0x5c7   :  { %v3318_v32 = vsel %vm3304_vm11, %v3268_v62, %v2184_v61  ;;  %v13107_v61 = vld [vmem:[#allocation239_spill] sm:$0xff] }
 0x5c8   :  { %v3368_v55 = vsel %vm3354_vm12, %v3318_v32, %v2338_v35  ;;  %v2970_v62 = vsel %vm2954_vm5, %v2920_v11, %v13107_v61 }
 0x5c9   :  { %v3418_v22 = vsel %vm3404_vm13, %v3368_v55, %v9326_v1  ;;  %v5572_v1 = vld [vmem:[%s12507_s0 + $0x490] sm:$0xff]  ;;  %v3020_v33 = vsel %vm3004_vm4, %v2970_v62, %v13108_v8  ;;  %v5586_v62 = vld [vmem:[%s12507_s0 + $0x448] sm:$0xff] }
 0x5ca   :  { %2045 = vrot.lane.b32.xlu2 %v5569_v41, %s5693_s17  ;;  %v3070_v55 = vsel %vm3054_vm6, %v3020_v33, %v13109_v63  ;;  %v13110_v41 = vld [vmem:[#allocation337_spill] sm:$0xff]  ;;  %v13123_v63 = vld [vmem:[#allocation120_spill] sm:$0xff] }
 0x5cb   :  { %1897 = vrot.lane.b32.xlu1 %v5570_v53, %s5694_s23  ;;  %v3120_v53 = vsel %vm3104_vm8, %v3070_v55, %v13110_v41  ;;  %v5588_v33 = vld [vmem:[%s12507_s0 + $0x4b8] sm:$0xff] }
 0x5cc   :  { %2647 = vrot.lane.b32.xlu0 %v5571_v9, %s5698_s15  ;;  %v9430_v54 = vpop.permute.xlu2 %2489  ;;  %v3170_v57 = vsel %vm3154_vm7, %v3120_v53, %v13111_v3  ;;  %v13124_v53 = vld [vmem:[#allocation158_spill] sm:$0xff] }
 0x5cd   :  { %v1884_v56 = vpop.permute.xlu1 %1883 }
 0x5ce   :  { %v2634_v28 = vpop.permute.xlu0 %2633  ;;  %v3219_v21 = vsel %vm3204_vm9, %v3169_v2, %v1884_v56  ;;  %v13115_v2 = vld [vmem:[#allocation168_spill] sm:$0xff] }
 0x5cf   :  { %v3468_v39 = vsel %vm3454_vm14, %v3418_v22, %v2634_v28  ;;  %v3269_v48 = vsel %vm3254_vm10, %v3219_v21, %v9351_v36  ;;  %v5577_v36 = vld [vmem:[%s12507_s0 + $0x420] sm:$0xff]  ;;  %v13112_v22 = vld [vmem:[#allocation21_spill] sm:$0xff] }
 0x5d0   :  { %5111 = vmatmul.msk.f32.gmra.mxu0 %vm3516_vm15, %v3468_v39  ;;  %v5580_v28 = vld [vmem:[%s12507_s0 + $0x220] sm:$0xff]  ;;  %v5581_v39 = vld [vmem:[%s12507_s0 + $0x438] sm:$0xff] }
 0x5d1   :  { %v2771_v15 = vsel %vm2754_vm0, %v5580_v28, %v13112_v22  ;;  %v13127_v22 = vld [vmem:[#allocation230_spill] sm:$0xff] }
 0x5d2   :  { %2501 = vrot.lane.b32.xlu2 %v5572_v1, %s5695_s22  ;;  %v2821_v26 = vsel %vm2804_vm2, %v2771_v15, %v13113_v46 }
 0x5d3   :  { %2353 = vrot.lane.b32.xlu1 %v5573_v14, %s5696_s29  ;;  %v2871_v16 = vsel %vm2854_vm1, %v2821_v26, %v13114_v24 }
 0x5d4   :  { %2199 = vrot.lane.b32.xlu0 %v5574_v37, %s5697_s12  ;;  %v9461_v29 = vpop.permute.xlu2 %2035 }
 0x5d5   :  { %v2340_v38 = vpop.permute.xlu1 %2339 }
 0x5d6   :  { %v2186_v50 = vpop.permute.xlu0 %2185 }
 0x5d7   :  { %v3319_v17 = vsel %vm3304_vm11, %v3269_v48, %v2186_v50 }
 0x5d8   :  { %v3369_v60 = vsel %vm3354_vm12, %v3319_v17, %v2340_v38  ;;  %v13116_v38 = vld [vmem:[#allocation231_spill] sm:$0xff] }
 0x5d9   :  { %v3419_v35 = vsel %vm3404_vm13, %v3369_v60, %v9378_v0  ;;  %v5579_v0 = vld [vmem:[%s12507_s0 + $0x4a0] sm:$0xff]  ;;  %v13117_v17 = vld [vmem:[#allocation283_spill] sm:$0xff]  ;;  %v13119_v60 = vld [vmem:[#allocation329_spill] sm:$0xff] }
 0x5da   :  { %2047 = vrot.lane.b32.xlu2 %v5576_v27, %s5693_s17 }
 0x5db   :  { %1899 = vrot.lane.b32.xlu1 %v5577_v36, %s5694_s23  ;;  %v13120_v36 = vld [vmem:[#allocation383_spill] sm:$0xff] }
 0x5dc   :  { %2649 = vrot.lane.b32.xlu0 %v5578_v13, %s5698_s15  ;;  %v9488_v5 = vpop.permute.xlu2 %2491 }
 0x5dd   :  { %v1886_v44 = vpop.permute.xlu1 %1885 }
 0x5de   :  { %v2636_v51 = vpop.permute.xlu0 %2635  ;;  %v3220_v9 = vsel %vm3204_vm9, %v3170_v57, %v1886_v44  ;;  %v5585_v44 = vld [vmem:[%s12507_s0 + $0x230] sm:$0xff] }
 0x5df   :  { %v3469_v32 = vsel %vm3454_vm14, %v3419_v35, %v2636_v51  ;;  %v3270_v4 = vsel %vm3254_vm10, %v3220_v9, %v9403_v47  ;;  %v5582_v47 = vld [vmem:[%s12507_s0 + $0x430] sm:$0xff]  ;;  %v13121_v51 = vld [vmem:[#allocation11_spill] sm:$0xff] }
 0x5e0   :  { %5112 = vmatmul.msk.f32.gmra.mxu0 %vm3516_vm15, %v3469_v32  ;;  %v2772_v35 = vsel %vm2754_vm0, %v5585_v44, %v13121_v51  ;;  %v13122_v32 = vld [vmem:[#allocation73_spill] sm:$0xff] }
 0x5e1   :  { %v2822_v8 = vsel %vm2804_vm2, %v2772_v35, %v13122_v32  ;;  %v13136_v51 = vld [vmem:[#allocation273_spill] sm:$0xff] }
 0x5e2   :  { %2503 = vrot.lane.b32.xlu2 %v5579_v0, %s5695_s22  ;;  %v2872_v55 = vsel %vm2854_vm1, %v2822_v8, %v13123_v63  ;;  %v13139_v8 = vld [vmem:[#allocation376_spill] sm:$0xff] }
 0x5e3   :  { %2355 = vrot.lane.b32.xlu1 %v5578_v13, %s5696_s29  ;;  %v2922_v3 = vsel %vm2904_vm3, %v2872_v55, %v13124_v53 }
 0x5e4   :  { %2201 = vrot.lane.b32.xlu0 %v5572_v1, %s5697_s12  ;;  %v9513_v12 = vpop.permute.xlu2 %2037  ;;  %v2921_v1 = vsel %vm2904_vm3, %v2871_v16, %v13115_v2 }
 0x5e5   :  { %v2342_v18 = vpop.permute.xlu1 %2341  ;;  %v2971_v50 = vsel %vm2954_vm5, %v2921_v1, %v13116_v38 }
 0x5e6   :  { %v2188_v42 = vpop.permute.xlu0 %2187  ;;  %v3021_v43 = vsel %vm3004_vm4, %v2971_v50, %v13117_v17  ;;  %v13132_v17 = vld [vmem:[#allocation72_spill] sm:$0xff] }
 0x5e7   :  { %v3320_v56 = vsel %vm3304_vm11, %v3270_v4, %v2188_v42  ;;  %v3071_v58 = vsel %vm3054_vm6, %v3021_v43, %v13118_v40  ;;  %v5593_v40 = vld [vmem:[%s12507_s0 + $0x4c8] sm:$0xff] }
 0x5e8   :  { %v3370_v10 = vsel %vm3354_vm12, %v3320_v56, %v2342_v18  ;;  %v3121_v27 = vsel %vm3104_vm8, %v3071_v58, %v13119_v60  ;;  %v13125_v18 = vld [vmem:[#allocation243_spill] sm:$0xff]  ;;  %v13126_v56 = vld [vmem:[#allocation282_spill] sm:$0xff] }
 0x5e9   :  { %v3420_v37 = vsel %vm3404_vm13, %v3370_v10, %v9430_v54  ;;  %v3171_v59 = vsel %vm3154_vm7, %v3121_v27, %v13120_v36  ;;  %v5584_v54 = vld [vmem:[%s12507_s0 + $0x4b0] sm:$0xff]  ;;  %v2972_v42 = vsel %vm2954_vm5, %v2922_v3, %v13125_v18  ;;  %v13128_v10 = vld [vmem:[#allocation341_spill] sm:$0xff]  ;;  %v13133_v58 = vld [vmem:[#allocation110_spill] sm:$0xff] }
 0x5ea   :  { %2049 = vrot.lane.b32.xlu2 %v5581_v39, %s5693_s17  ;;  %v3022_v28 = vsel %vm3004_vm4, %v2972_v42, %v13126_v56  ;;  %v5595_v18 = vld [vmem:[%s12507_s0 + $0x250] sm:$0xff] }
 0x5eb   :  { %1901 = vrot.lane.b32.xlu1 %v5582_v47, %s5694_s23  ;;  %v3072_v15 = vsel %vm3054_vm6, %v3022_v28, %v13127_v22  ;;  %v13129_v47 = vld [vmem:[#allocation382_spill] sm:$0xff]  ;;  %v13140_v42 = vld [vmem:[#allocation24_spill] sm:$0xff]  ;;  %v5596_v28 = vld [vmem:[%s12507_s0 + $0x468] sm:$0xff] }
 0x5ec   :  { %2651 = vrot.lane.b32.xlu0 %v5583_v34, %s5698_s15  ;;  %v9540_v49 = vpop.permute.xlu2 %2493  ;;  %v3122_v39 = vsel %vm3104_vm8, %v3072_v15, %v13128_v10  ;;  %v13141_v22 = vld [vmem:[#allocation62_spill] sm:$0xff]  ;;  %v5598_v10 = vld [vmem:[%s12507_s0 + $0x4d8] sm:$0xff] }
 0x5ed   :  { %v1888_v14 = vpop.permute.xlu1 %1887  ;;  %v3172_v46 = vsel %vm3154_vm7, %v3122_v39, %v13129_v47  ;;  %v13142_v39 = vld [vmem:[#allocation124_spill] sm:$0xff] }
 0x5ee   :  { %v2638_v21 = vpop.permute.xlu0 %2637  ;;  %v3221_v30 = vsel %vm3204_vm9, %v3171_v59, %v1888_v14  ;;  %v13134_v59 = vld [vmem:[#allocation172_spill] sm:$0xff] }
 0x5ef   :  { %v3470_v48 = vsel %vm3454_vm14, %v3420_v37, %v2638_v21  ;;  %v3271_v25 = vsel %vm3254_vm10, %v3221_v30, %v9461_v29  ;;  %v5587_v29 = vld [vmem:[%s12507_s0 + $0x440] sm:$0xff]  ;;  %v13131_v37 = vld [vmem:[#allocation25_spill] sm:$0xff] }
 0x5f0   :  { %5113 = vmatmul.msk.f32.gmra.mxu0 %vm3516_vm15, %v3470_v48  ;;  %v5590_v21 = vld [vmem:[%s12507_s0 + $0x240] sm:$0xff]  ;;  %v5591_v48 = vld [vmem:[%s12507_s0 + $0x458] sm:$0xff] }
 0x5f1   :  { %v2773_v38 = vsel %vm2754_vm0, %v5590_v21, %v13131_v37  ;;  %v13144_v21 = vld [vmem:[#allocation232_spill] sm:$0xff] }
 0x5f2   :  { %2505 = vrot.lane.b32.xlu2 %v5584_v54, %s5695_s22  ;;  %v2823_v43 = vsel %vm2804_vm2, %v2773_v38, %v13132_v17  ;;  %v13146_v17 = vld [vmem:[#allocation300_spill] sm:$0xff] }
 0x5f3   :  { %2357 = vrot.lane.b32.xlu1 %v5583_v34, %s5696_s29  ;;  %v9617_v34 = vpop.f32.mrf.mxu0  ;;  %v2873_v60 = vsel %vm2854_vm1, %v2823_v43, %v13133_v58 }
 0x5f4   :  { %2203 = vrot.lane.b32.xlu0 %v5579_v0, %s5697_s12  ;;  %v9565_v13 = vpop.permute.xlu2 %2039  ;;  %13130 = vst [vmem:[#allocation7_spill] sm:$0xff] %v9617_v34 }
 0x5f5   :  { %v2344_v45 = vpop.permute.xlu1 %2343 }
 0x5f6   :  { %v2190_v19 = vpop.permute.xlu0 %2189 }
 0x5f7   :  { %v3321_v11 = vsel %vm3304_vm11, %v3271_v25, %v2190_v19  ;;  %v13135_v25 = vld [vmem:[#allocation242_spill] sm:$0xff] }
 0x5f8   :  { %v3371_v61 = vsel %vm3354_vm12, %v3321_v11, %v2344_v45 }
 0x5f9   :  { %v3421_v9 = vsel %vm3404_vm13, %v3371_v61, %v9488_v5  ;;  %v5589_v5 = vld [vmem:[%s12507_s0 + $0x4c0] sm:$0xff]  ;;  %v13137_v61 = vld [vmem:[#allocation301_spill] sm:$0xff] }
 0x5fa   :  { %2051 = vrot.lane.b32.xlu2 %v5586_v62, %s5693_s17 }
 0x5fb   :  { %1903 = vrot.lane.b32.xlu1 %v5587_v29, %s5694_s23  ;;  %v9649_v27 = vpop.f32.mrf.mxu0  ;;  %v13138_v29 = vld [vmem:[#allocation340_spill] sm:$0xff] }
 0x5fc   :  { %2653 = vrot.lane.b32.xlu0 %v5588_v33, %s5698_s15  ;;  %v9592_v41 = vpop.permute.xlu2 %2495 }
 0x5fd   :  { %v1890_v57 = vpop.permute.xlu1 %1889 }
 0x5fe   :  { %v2640_v0 = vpop.permute.xlu0 %2639  ;;  %v3222_v26 = vsel %vm3204_vm9, %v3172_v46, %v1890_v57 }
 0x5ff   :  { %v3471_v4 = vsel %vm3454_vm14, %v3421_v9, %v2640_v0  ;;  %v3272_v1 = vsel %vm3254_vm10, %v3222_v26, %v9513_v12  ;;  %v9637_v12 = vld [vmem:[%s12507_s0 + $0x450] sm:$0xff]  ;;  %v13143_v26 = vld [vmem:[#allocation171_spill] sm:$0xff] }
 0x600   :  { %5114 = vmatmul.msk.f32.gmra.mxu0 %vm3516_vm15, %v3471_v4  ;;  %v2774_v4 = vsel %vm2754_vm0, %v5595_v18, %v13140_v42 }
 0x601   :  { %v2824_v15 = vsel %vm2804_vm2, %v2774_v4, %v13141_v22 }
 0x602   :  { %2507 = vrot.lane.b32.xlu2 %v5589_v5, %s5695_s22  ;;  %v2874_v47 = vsel %vm2854_vm1, %v2824_v15, %v13142_v39  ;;  %v13154_v15 = vld [vmem:[#allocation285_spill] sm:$0xff] }
 0x603   :  { %2359 = vrot.lane.b32.xlu1 %v5588_v33, %s5696_s29  ;;  %v9676_v55 = vpop.f32.mrf.mxu0  ;;  %v13155_v39 = vld [vmem:[#allocation225_spill] sm:$0xff] }
 0x604   :  { %2205 = vrot.lane.b32.xlu0 %v5584_v54, %s5697_s12  ;;  %v9619_v24 = vpop.permute.xlu2 %2041  ;;  %v2923_v54 = vsel %vm2904_vm3, %v2873_v60, %v13134_v59  ;;  %v13148_v60 = vld [vmem:[#allocation386_spill] sm:$0xff] }
 0x605   :  { %v2346_v16 = vpop.permute.xlu1 %2345  ;;  %v2973_v11 = vsel %vm2954_vm5, %v2923_v54, %v13135_v25 }
 0x606   :  { %v2192_v2 = vpop.permute.xlu0 %2191  ;;  %v3023_v35 = vsel %vm3004_vm4, %v2973_v11, %v13136_v51  ;;  %v5600_v51 = vld [vmem:[%s12507_s0 + $0x260] sm:$0xff] }
 0x607   :  { %v3322_v14 = vsel %vm3304_vm11, %v3272_v1, %v2192_v2  ;;  %v3073_v62 = vsel %vm3054_vm6, %v3023_v35, %v13137_v61  ;;  %v13149_v35 = vld [vmem:[#allocation14_spill] sm:$0xff] }
 0x608   :  { %v3372_v50 = vsel %vm3354_vm12, %v3322_v14, %v2346_v16  ;;  %v3123_v32 = vsel %vm3104_vm8, %v3073_v62, %v13138_v29  ;;  %v2924_v16 = vsel %vm2904_vm3, %v2874_v47, %v13143_v26  ;;  %v2775_v61 = vsel %vm2754_vm0, %v5600_v51, %v13149_v35  ;;  %v5601_v29 = vld [vmem:[%s12507_s0 + $0x560] sm:$0xff]  ;;  %v13156_v26 = vld [vmem:[#allocation344_spill] sm:$0xff] }
 0x609   :  { %v3422_v19 = vsel %vm3404_vm13, %v3372_v50, %v9540_v49  ;;  %v3173_v33 = vsel %vm3154_vm7, %v3123_v32, %v13139_v8  ;;  %v5594_v49 = vld [vmem:[%s12507_s0 + $0x4d0] sm:$0xff]  ;;  %v2974_v37 = vsel %vm2954_vm5, %v2924_v16, %v13144_v21  ;;  %v13145_v50 = vld [vmem:[#allocation286_spill] sm:$0xff]  ;;  %v5605_v21 = vld [vmem:[%s12507_s0 + $0x478] sm:$0xff] }
 0x60a   :  { %2053 = vrot.lane.b32.xlu2 %v5591_v48, %s5693_s17  ;;  %v3024_v48 = vsel %vm3004_vm4, %v2974_v37, %v13145_v50  ;;  %v13150_v32 = vld [vmem:[#allocation76_spill] sm:$0xff] }
 0x60b   :  { %1905 = vrot.lane.b32.xlu1 %v9637_v12, %s5694_s23  ;;  %v9708_v46 = vpop.f32.mrf.mxu0  ;;  %v3074_v43 = vsel %vm3054_vm6, %v3024_v48, %v13146_v17  ;;  %v2825_v8 = vsel %vm2804_vm2, %v2775_v61, %v13150_v32  ;;  %v13161_v35 = vld [vmem:[#allocation176_spill] sm:$0xff]  ;;  %v13162_v32 = vld [vmem:[#allocation245_spill] sm:$0xff] }
 0x60c   :  { %2655 = vrot.lane.b32.xlu0 %v5593_v40, %s5698_s15  ;;  %v9651_v36 = vpop.permute.xlu2 %2497 }
 0x60d   :  { %v1892_v30 = vpop.permute.xlu1 %1891 }
 0x60e   :  { %v2642_v45 = vpop.permute.xlu0 %2641  ;;  %v3223_v63 = vsel %vm3204_vm9, %v3173_v33, %v1892_v30  ;;  %v5603_v33 = vld [vmem:[%s12507_s0 + $0x4e8] sm:$0xff] }
 0x60f   :  { %v3472_v44 = vsel %vm3454_vm14, %v3422_v19, %v2642_v45  ;;  %v3273_v0 = vsel %vm3254_vm10, %v3223_v63, %v9565_v13  ;;  %v9696_v13 = vld [vmem:[%s12507_s0 + $0x460] sm:$0xff] }
 0x610   :  { %5115 = vmatmul.msk.f32.gmra.mxu0 %vm3516_vm15, %v3472_v44 }
 0x612   :  { %2509 = vrot.lane.b32.xlu2 %v5594_v49, %s5695_s22 }
 0x613   :  { %2361 = vrot.lane.b32.xlu1 %v5593_v40, %s5696_s29  ;;  %v13147_v40 = vld [vmem:[#allocation330_spill] sm:$0xff]  ;;  %v9735_v30 = vpop.f32.mrf.mxu0 }
 0x614   :  { %2207 = vrot.lane.b32.xlu0 %v5589_v5, %s5697_s12  ;;  %v9678_v53 = vpop.permute.xlu2 %2043  ;;  %v3124_v58 = vsel %vm3104_vm8, %v3074_v43, %v13147_v40  ;;  %v5606_v40 = vld [vmem:[%s12507_s0 + $0x300] sm:$0xff] }
 0x615   :  { %v2348_v3 = vpop.permute.xlu1 %2347  ;;  %v3174_v59 = vsel %vm3154_vm7, %v3124_v58, %v13148_v60  ;;  %v13158_v58 = vld [vmem:[#allocation28_spill] sm:$0xff] }
 0x616   :  { %v2194_v57 = vpop.permute.xlu0 %2193  ;;  %v2776_v60 = vsel %vm2754_vm0, %v5606_v40, %v13158_v58  ;;  %v13170_v40 = vld [vmem:[#allocation127_spill] sm:$0xff] }
 0x617   :  { %v3323_v9 = vsel %vm3304_vm11, %v3273_v0, %v2194_v57  ;;  %v13152_v0 = vld [vmem:[#allocation161_spill] sm:$0xff] }
 0x618   :  { %v3373_v56 = vsel %vm3354_vm12, %v3323_v9, %v2348_v3 }
 0x619   :  { %v3423_v14 = vsel %vm3404_vm13, %v3373_v56, %v9592_v41  ;;  %v5599_v41 = vld [vmem:[%s12507_s0 + $0x4e0] sm:$0xff] }
 0x61a   :  { %2055 = vrot.lane.b32.xlu2 %v5596_v28, %s5693_s17  ;;  %v13153_v56 = vld [vmem:[#allocation246_spill] sm:$0xff] }
 0x61b   :  { %1907 = vrot.lane.b32.xlu1 %v9696_v13, %s5694_s23  ;;  %v9764_v3 = vpop.f32.mrf.mxu0 }
 0x61c   :  { %2657 = vrot.lane.b32.xlu0 %v5598_v10, %s5698_s15  ;;  %v9710_v5 = vpop.permute.xlu2 %2499 }
 0x61d   :  { %v1894_v2 = vpop.permute.xlu1 %1893 }
 0x61e   :  { %v2644_v1 = vpop.permute.xlu0 %2643  ;;  %v3224_v54 = vsel %vm3204_vm9, %v3174_v59, %v1894_v2  ;;  %v13157_v2 = vld [vmem:[#allocation385_spill] sm:$0xff] }
 0x61f   :  { %v3473_v38 = vsel %vm3454_vm14, %v3423_v14, %v2644_v1  ;;  %v3274_v11 = vsel %vm3254_vm10, %v3224_v54, %v9619_v24  ;;  %v5602_v24 = vld [vmem:[%s12507_s0 + $0x470] sm:$0xff] }
 0x620   :  { %5116 = vmatmul.msk.f32.gmra.mxu0 %vm3516_vm15, %v3473_v38 }
 0x622   :  { %2511 = vrot.lane.b32.xlu2 %v5599_v41, %s5695_s22 }
 0x623   :  { %2363 = vrot.lane.b32.xlu1 %v5598_v10, %s5696_s29  ;;  %v9794_v37 = vpop.f32.mrf.mxu0 }
 0x624   :  { %2209 = vrot.lane.b32.xlu0 %v5594_v49, %s5697_s12  ;;  %v9737_v45 = vpop.permute.xlu2 %2045  ;;  %v13151_v49 = vld [vmem:[#allocation123_spill] sm:$0xff] }
 0x625   :  { %v2350_v19 = vpop.permute.xlu1 %2349  ;;  %v2875_v63 = vsel %vm2854_vm1, %v2825_v8, %v13151_v49  ;;  %v13163_v49 = vld [vmem:[#allocation275_spill] sm:$0xff] }
 0x626   :  { %v2196_v25 = vpop.permute.xlu0 %2195  ;;  %v2925_v9 = vsel %vm2904_vm3, %v2875_v63, %v13152_v0  ;;  %v13164_v0 = vld [vmem:[#allocation304_spill] sm:$0xff] }
 0x627   :  { %v3324_v44 = vsel %vm3304_vm11, %v3274_v11, %v2196_v25  ;;  %v2975_v28 = vsel %vm2954_vm5, %v2925_v9, %v13153_v56  ;;  %v13160_v25 = vld [vmem:[#allocation113_spill] sm:$0xff] }
 0x628   :  { %v3374_v62 = vsel %vm3354_vm12, %v3324_v44, %v2350_v19  ;;  %v3025_v10 = vsel %vm3004_vm4, %v2975_v28, %v13154_v15  ;;  %v9820_v19 = vld [vmem:[%s12507_s0 + $0x5d0] sm:$0xff]  ;;  %v5610_v28 = vld [vmem:[%s12507_s0 + $0x5e0] sm:$0xff] }
 0x629   :  { %v3424_v4 = vsel %vm3404_vm13, %v3374_v62, %v9651_v36  ;;  %v3075_v47 = vsel %vm3054_vm6, %v3025_v10, %v13155_v39  ;;  %v5604_v36 = vld [vmem:[%s12507_s0 + $0x568] sm:$0xff]  ;;  %v5611_v15 = vld [vmem:[%s12507_s0 + $0x4f0] sm:$0xff] }
 0x62a   :  { %1921 = vrot.lane.b32.xlu2 %v5601_v29, %s5694_s23  ;;  %v3125_v16 = vsel %vm3104_vm8, %v3075_v47, %v13156_v26 }
 0x62b   :  { %1909 = vrot.lane.b32.xlu1 %v5602_v24, %s5694_s23  ;;  %v3175_v1 = vsel %vm3154_vm7, %v3125_v16, %v13157_v2  ;;  %v9826_v44 = vpop.f32.mrf.mxu0 }
 0x62c   :  { %2659 = vrot.lane.b32.xlu0 %v5603_v33, %s5698_s15  ;;  %v9766_v57 = vpop.permute.xlu2 %2501 }
 0x62d   :  { %v1896_v18 = vpop.permute.xlu1 %1895 }
 0x62e   :  { %v2646_v42 = vpop.permute.xlu0 %2645  ;;  %v3225_v14 = vsel %vm3204_vm9, %v3175_v1, %v1896_v18  ;;  %v13165_v18 = vld [vmem:[#allocation343_spill] sm:$0xff]  ;;  %v5612_v1 = vld [vmem:[%s12507_s0 + $0x310] sm:$0xff] }
 0x62f   :  { %v3474_v22 = vsel %vm3454_vm14, %v3424_v4, %v2646_v42  ;;  %v3275_v17 = vsel %vm3254_vm10, %v3225_v14, %v9678_v53  ;;  %v13159_v53 = vld [vmem:[#allocation75_spill] sm:$0xff]  ;;  %v13166_v4 = vld [vmem:[#allocation377_spill] sm:$0xff] }
 0x630   :  { %5117 = vmatmul.msk.f32.gmra.mxu0 %vm3516_vm15, %v3474_v22  ;;  %v2826_v54 = vsel %vm2804_vm2, %v2776_v60, %v13159_v53  ;;  %v13171_v53 = vld [vmem:[#allocation175_spill] sm:$0xff] }
 0x631   :  { %v2876_v11 = vsel %vm2854_vm1, %v2826_v54, %v13160_v25 }
 0x632   :  { %2211 = vrot.lane.b32.xlu2 %v5599_v41, %s5697_s12  ;;  %v9810_v41 = vld [vmem:[%s12507_s0 + $0x5d8] sm:$0xff]  ;;  %v2926_v61 = vsel %vm2904_vm3, %v2876_v11, %v13161_v35 }
 0x633   :  { %2069 = vrot.lane.b32.xlu1 %v5604_v36, %s5693_s17  ;;  %v2976_v8 = vsel %vm2954_vm5, %v2926_v61, %v13162_v32  ;;  %v9859_v10 = vpop.f32.mrf.mxu0  ;;  %v13168_v36 = vld [vmem:[#allocation27_spill] sm:$0xff] }
 0x634   :  { %2057 = vrot.lane.b32.xlu0 %v5605_v21, %s5693_s17  ;;  %v9796_v38 = vpop.permute.xlu2 %2047  ;;  %v3026_v63 = vsel %vm3004_vm4, %v2976_v8, %v13163_v49  ;;  %13167 = vst [vmem:[#allocation54_spill] sm:$0xff] %v9859_v10  ;;  %v2777_v14 = vsel %vm2754_vm0, %v5612_v1, %v13168_v36  ;;  %v13172_v61 = vld [vmem:[#allocation235_spill] sm:$0xff]  ;;  %v13175_v49 = vld [vmem:[#allocation333_spill] sm:$0xff]  ;;  %v13303_v10 = vld [vmem:[#allocation42_spill] sm:$0xff] }
 0x635   :  { %v2352_v50 = vpop.permute.xlu1 %2351  ;;  %v3076_v9 = vsel %vm3054_vm6, %v3026_v63, %v13164_v0  ;;  %v13174_v8 = vld [vmem:[#allocation303_spill] sm:$0xff]  ;;  %v13176_v0 = vld [vmem:[#allocation389_spill] sm:$0xff] }
 0x636   :  { %v2198_v48 = vpop.permute.xlu0 %2197  ;;  %v3126_v42 = vsel %vm3104_vm8, %v3076_v9, %v13165_v18  ;;  %v5617_v18 = vld [vmem:[%s12507_s0 + $0x578] sm:$0xff]  ;;  %v5619_v36 = vld [vmem:[%s12507_s0 + $0x588] sm:$0xff] }
 0x637   :  { %v3325_v43 = vsel %vm3304_vm11, %v3275_v17, %v2198_v48  ;;  %v3176_v56 = vsel %vm3154_vm7, %v3126_v42, %v13166_v4  ;;  %v13169_v48 = vld [vmem:[#allocation65_spill] sm:$0xff] }
 0x638   :  { %v3375_v59 = vsel %vm3354_vm12, %v3325_v43, %v2352_v50  ;;  %v5613_v50 = vld [vmem:[%s12507_s0 + $0x570] sm:$0xff]  ;;  %v2827_v17 = vsel %vm2804_vm2, %v2777_v14, %v13169_v48  ;;  %v5615_v43 = vld [vmem:[%s12507_s0 + $0x5e8] sm:$0xff]  ;;  %v5618_v4 = vld [vmem:[%s12507_s0 + $0x518] sm:$0xff] }
 0x639   :  { %v3425_v24 = vsel %vm3404_vm13, %v3375_v59, %v9710_v5  ;;  %v5609_v5 = vld [vmem:[%s12507_s0 + $0x4f8] sm:$0xff]  ;;  %v2877_v58 = vsel %vm2854_vm1, %v2827_v17, %v13170_v40  ;;  %v13179_v14 = vld [vmem:[#allocation79_spill] sm:$0xff]  ;;  %v13181_v17 = vld [vmem:[#allocation164_spill] sm:$0xff] }
 0x63a   :  { %2377 = vrot.lane.b32.xlu2 %v9810_v41, %s5696_s29  ;;  %v2927_v54 = vsel %vm2904_vm3, %v2877_v58, %v13171_v53 }
 0x63b   :  { %2365 = vrot.lane.b32.xlu1 %v5603_v33, %s5696_s29  ;;  %v9891_v60 = vpop.f32.mrf.mxu0 }
 0x63c   :  { %2223 = vrot.lane.b32.xlu0 %v9820_v19, %s5697_s12  ;;  %v9828_v51 = vpop.permute.xlu2 %2503 }
 0x63d   :  { %v1898_v62 = vpop.permute.xlu1 %1897 }
 0x63e   :  { %v2648_v29 = vpop.permute.xlu0 %2647  ;;  %v3226_v22 = vsel %vm3204_vm9, %v3176_v56, %v1898_v62  ;;  %v2977_v62 = vsel %vm2954_vm5, %v2927_v54, %v13172_v61  ;;  %v13182_v54 = vld [vmem:[#allocation249_spill] sm:$0xff] }
 0x63f   :  { %v3475_v33 = vsel %vm3454_vm14, %v3425_v24, %v2648_v29  ;;  %v3276_v16 = vsel %vm3254_vm10, %v3226_v22, %v9737_v45  ;;  %v9879_v45 = vld [vmem:[%s12507_s0 + $0x510] sm:$0xff]  ;;  %v13184_v61 = vld [vmem:[#allocation293_spill] sm:$0xff] }
 0x640   :  { %5118 = vmatmul.msk.f32.gmra.mxu0 %vm3516_vm15, %v3475_v33  ;;  %v13173_v24 = vld [vmem:[#allocation288_spill] sm:$0xff] }
 0x641   :  { %v3027_v32 = vsel %vm3004_vm4, %v2977_v62, %v13173_v24 }
 0x642   :  { %2661 = vrot.lane.b32.xlu2 %v5609_v5, %s5698_s15  ;;  %v3077_v33 = vsel %vm3054_vm6, %v3027_v32, %v13174_v8  ;;  %v13186_v32 = vld [vmem:[#allocation388_spill] sm:$0xff] }
 0x643   :  { %2525 = vrot.lane.b32.xlu1 %v5610_v28, %s5695_s22  ;;  %v3127_v63 = vsel %vm3104_vm8, %v3077_v33, %v13175_v49  ;;  %v9924_v56 = vpop.f32.mrf.mxu0  ;;  %v5621_v33 = vld [vmem:[%s12507_s0 + $0x5f0] sm:$0xff] }
 0x644   :  { %2513 = vrot.lane.b32.xlu0 %v5611_v15, %s5695_s22  ;;  %v9861_v39 = vpop.permute.xlu2 %2049  ;;  %v3177_v9 = vsel %vm3154_vm7, %v3127_v63, %v13176_v0  ;;  %13177 = vst [vmem:[#allocation92_spill] sm:$0xff] %v9924_v56  ;;  %v5622_v63 = vld [vmem:[%s12507_s0 + $0x590] sm:$0xff] }
 0x645   :  { %v2354_v47 = vpop.permute.xlu1 %2353 }
 0x646   :  { %v2200_v26 = vpop.permute.xlu0 %2199 }
 0x647   :  { %v3326_v2 = vsel %vm3304_vm11, %v3276_v16, %v2200_v26  ;;  %v13178_v16 = vld [vmem:[#allocation17_spill] sm:$0xff] }
 0x648   :  { %v3376_v21 = vsel %vm3354_vm12, %v3326_v2, %v2354_v47  ;;  %v2778_v2 = vsel %vm2754_vm0, %v9102_v20, %v13178_v16  ;;  %v13189_v16 = vld [vmem:[#allocation78_spill] sm:$0xff] }
 0x649   :  { %v3426_v35 = vsel %vm3404_vm13, %v3376_v21, %v9766_v57  ;;  %v5616_v57 = vld [vmem:[%s12507_s0 + $0x580] sm:$0xff]  ;;  %v2828_v21 = vsel %vm2804_vm2, %v2778_v2, %v13179_v14  ;;  %v5625_v2 = vld [vmem:[%s12507_s0 + $0x5f8] sm:$0xff] }
 0x64a   :  { %1923 = vrot.lane.b32.xlu2 %v5613_v50, %s5694_s23 }
 0x64b   :  { %1911 = vrot.lane.b32.xlu1 %v9879_v45, %s5694_s23  ;;  %v9945_v48 = vpop.f32.mrf.mxu0 }
 0x64c   :  { %2673 = vrot.lane.b32.xlu0 %v5615_v43, %s5698_s15  ;;  %v9893_v59 = vpop.permute.xlu2 %2505 }
 0x64d   :  { %v1900_v25 = vpop.permute.xlu1 %1899 }
 0x64e   :  { %v2650_v11 = vpop.permute.xlu0 %2649  ;;  %v3227_v42 = vsel %vm3204_vm9, %v3177_v9, %v1900_v25 }
 0x64f   :  { %v3476_v29 = vsel %vm3454_vm14, %v3426_v35, %v2650_v11  ;;  %v3277_v47 = vsel %vm3254_vm10, %v3227_v42, %v9796_v38  ;;  %v13180_v38 = vld [vmem:[#allocation126_spill] sm:$0xff]  ;;  %v13183_v11 = vld [vmem:[#allocation287_spill] sm:$0xff] }
 0x650   :  { %5119 = vmatmul.msk.f32.gmra.mxu0 %vm3516_vm15, %v3476_v29  ;;  %v2878_v50 = vsel %vm2854_vm1, %v2828_v21, %v13180_v38  ;;  %v13185_v29 = vld [vmem:[#allocation350_spill] sm:$0xff]  ;;  %v13191_v38 = vld [vmem:[#allocation180_spill] sm:$0xff] }
 0x652   :  { %2213 = vrot.lane.b32.xlu2 %v5616_v57, %s5697_s12 }
 0x653   :  { %2071 = vrot.lane.b32.xlu1 %v5617_v18, %s5693_s17  ;;  %v9978_v0 = vpop.f32.mrf.mxu0 }
 0x654   :  { %2059 = vrot.lane.b32.xlu0 %v5618_v4, %s5693_s17  ;;  %v9926_v5 = vpop.permute.xlu2 %2051  ;;  %13187 = vst [vmem:[#allocation154_spill] sm:$0xff] %v9978_v0 }
 0x655   :  { %v2356_v22 = vpop.permute.xlu1 %2355 }
 0x656   :  { %v2202_v15 = vpop.permute.xlu0 %2201 }
 0x657   :  { %v3327_v26 = vsel %vm3304_vm11, %v3277_v47, %v2202_v15 }
 0x658   :  { %v3377_v1 = vsel %vm3354_vm12, %v3327_v26, %v2356_v22  ;;  %v13188_v22 = vld [vmem:[#allocation31_spill] sm:$0xff]  ;;  %v9992_v26 = vld [vmem:[%s12507_s0 + $0x610] sm:$0xff] }
 0x659   :  { %v3427_v53 = vsel %vm3404_vm13, %v3377_v1, %v9828_v51  ;;  %v5620_v51 = vld [vmem:[%s12507_s0 + $0x598] sm:$0xff]  ;;  %v2779_v15 = vsel %vm2754_vm0, %v9155_v52, %v13188_v22  ;;  %v13190_v1 = vld [vmem:[#allocation116_spill] sm:$0xff] }
 0x65a   :  { %2379 = vrot.lane.b32.xlu2 %v5615_v43, %s5696_s29  ;;  %v2928_v43 = vsel %vm2904_vm3, %v2878_v50, %v13181_v17  ;;  %v2829_v52 = vsel %vm2804_vm2, %v2779_v15, %v13189_v16  ;;  %v13198_v16 = vld [vmem:[#allocation68_spill] sm:$0xff] }
 0x65b   :  { %2367 = vrot.lane.b32.xlu1 %v5619_v36, %s5696_s29  ;;  %v2978_v25 = vsel %vm2954_vm5, %v2928_v43, %v13182_v54  ;;  %v2879_v36 = vsel %vm2854_vm1, %v2829_v52, %v13190_v1  ;;  %v10011_v14 = vpop.f32.mrf.mxu0 }
 0x65c   :  { %2225 = vrot.lane.b32.xlu0 %v5610_v28, %s5697_s12  ;;  %v9947_v20 = vpop.permute.xlu2 %2507  ;;  %v3028_v35 = vsel %vm3004_vm4, %v2978_v25, %v13183_v11  ;;  %v2929_v50 = vsel %vm2904_vm3, %v2879_v36, %v13191_v38  ;;  %v13193_v25 = vld [vmem:[#allocation278_spill] sm:$0xff]  ;;  %v13194_v11 = vld [vmem:[#allocation307_spill] sm:$0xff] }
 0x65d   :  { %v1902_v40 = vpop.permute.xlu1 %1901  ;;  %v3078_v62 = vsel %vm3054_vm6, %v3028_v35, %v13184_v61  ;;  %v13195_v61 = vld [vmem:[#allocation349_spill] sm:$0xff]  ;;  %v13200_v38 = vld [vmem:[#allocation179_spill] sm:$0xff] }
 0x65e   :  { %v2652_v58 = vpop.permute.xlu0 %2651  ;;  %v3128_v24 = vsel %vm3104_vm8, %v3078_v62, %v13185_v29  ;;  %v13196_v29 = vld [vmem:[#allocation380_spill] sm:$0xff] }
 0x65f   :  { %v3477_v28 = vsel %vm3454_vm14, %v3427_v53, %v2652_v58  ;;  %v3178_v8 = vsel %vm3154_vm7, %v3128_v24, %v13186_v32  ;;  %v13192_v58 = vld [vmem:[#allocation248_spill] sm:$0xff] }
 0x660   :  { %5120 = vmatmul.msk.f32.gmra.mxu0 %vm3516_vm15, %v3477_v28  ;;  %v3228_v49 = vsel %vm3204_vm9, %v3178_v8, %v1902_v40  ;;  %v2979_v53 = vsel %vm2954_vm5, %v2929_v50, %v13192_v58  ;;  %v5627_v8 = vld [vmem:[%s12507_s0 + $0x528] sm:$0xff] }
 0x661   :  { %v3278_v42 = vsel %vm3254_vm10, %v3228_v49, %v9861_v39  ;;  %v9999_v39 = vld [vmem:[%s12507_s0 + $0x520] sm:$0xff]  ;;  %v3029_v28 = vsel %vm3004_vm4, %v2979_v53, %v13193_v25 }
 0x662   :  { %2663 = vrot.lane.b32.xlu2 %v5620_v51, %s5698_s15  ;;  %v3079_v35 = vsel %vm3054_vm6, %v3029_v28, %v13194_v11  ;;  %v13203_v28 = vld [vmem:[#allocation306_spill] sm:$0xff] }
 0x663   :  { %2527 = vrot.lane.b32.xlu1 %v5621_v33, %s5695_s22  ;;  %v3129_v62 = vsel %vm3104_vm8, %v3079_v35, %v13195_v61  ;;  %v10041_v33 = vpop.f32.mrf.mxu0  ;;  %v13204_v35 = vld [vmem:[#allocation336_spill] sm:$0xff] }
 0x664   :  { %2515 = vrot.lane.b32.xlu0 %v5622_v63, %s5695_s22  ;;  %v9980_v9 = vpop.permute.xlu2 %2053  ;;  %v3179_v24 = vsel %vm3154_vm7, %v3129_v62, %v13196_v29  ;;  %v13205_v62 = vld [vmem:[#allocation392_spill] sm:$0xff]  ;;  %v10088_v29 = vld [vmem:[%s12507_s0 + $0x5a8] sm:$0xff] }
 0x665   :  { %v2358_v57 = vpop.permute.xlu1 %2357 }
 0x666   :  { %v2204_v18 = vpop.permute.xlu0 %2203 }
 0x667   :  { %v3328_v4 = vsel %vm3304_vm11, %v3278_v42, %v2204_v18 }
 0x668   :  { %v3378_v47 = vsel %vm3354_vm12, %v3328_v4, %v2358_v57  ;;  %v13197_v4 = vld [vmem:[#allocation30_spill] sm:$0xff] }
 0x669   :  { %v3428_v40 = vsel %vm3404_vm13, %v3378_v47, %v9893_v59  ;;  %v5626_v59 = vld [vmem:[%s12507_s0 + $0x618] sm:$0xff]  ;;  %v2780_v22 = vsel %vm2754_vm0, %v9208_v23, %v13197_v4  ;;  %v5628_v47 = vld [vmem:[%s12507_s0 + $0x688] sm:$0xff]  ;;  %v13199_v23 = vld [vmem:[#allocation130_spill] sm:$0xff] }
 0x66a   :  { %1925 = vrot.lane.b32.xlu2 %v9992_v26, %s5694_s23  ;;  %v2830_v52 = vsel %vm2804_vm2, %v2780_v22, %v13198_v16  ;;  %v10111_v22 = vld [vmem:[%s12509_s2] ss:$0 sm:$0xff] }
 0x66b   :  { %1913 = vrot.lane.b32.xlu1 %v9999_v39, %s5694_s23 }
 0x66c   :  { %2675 = vrot.lane.b32.xlu0 %v5625_v2, %s5698_s15  ;;  %v10013_v21 = vpop.permute.xlu2 %2509  ;;  %v2880_v2 = vsel %vm2854_vm1, %v2830_v52, %v13199_v23  ;;  %v10120_v52 = vld [vmem:[%s12507_s0 + $0x620] sm:$0xff]  ;;  %v10135_v23 = vadd.f32 %v10111_v22, %v9891_v60 }
 0x66d   :  { %v1904_v17 = vpop.permute.xlu1 %1903  ;;  %v10065_v1 = vpop.f32.mrf.mxu0  ;;  %v2930_v50 = vsel %vm2904_vm3, %v2880_v2, %v13200_v38  ;;  %v5635_v2 = vld [vmem:[%s12507_s0 + $0x698] sm:$0xff] }
 0x66e   :  { %v2654_v43 = vpop.permute.xlu0 %2653  ;;  %v3229_v32 = vsel %vm3204_vm9, %v3179_v24, %v1904_v17  ;;  %v5631_v24 = vld [vmem:[%s12507_s0 + $0x690] sm:$0xff]  ;;  %v13208_v38 = vld [vmem:[#allocation129_spill] sm:$0xff] }
 0x66f   :  { %v3478_v54 = vsel %vm3454_vm14, %v3428_v40, %v2654_v43  ;;  %v3279_v18 = vsel %vm3254_vm10, %v3229_v32, %v9926_v5  ;;  %v5629_v5 = vld [vmem:[%s12507_s0 + $0x680] sm:$0xff] }
 0x670   :  { %5121 = vmatmul.msk.f32.gmra.mxu0 %vm3516_vm15, %v3478_v54  ;;  %v13201_v40 = vld [vmem:[#allocation238_spill] sm:$0xff]  ;;  %v13202_v54 = vld [vmem:[#allocation289_spill] sm:$0xff] }
 0x671   :  { %v2980_v58 = vsel %vm2954_vm5, %v2930_v50, %v13201_v40  ;;  %v5632_v32 = vld [vmem:[%s12507_s0 + $0x5a0] sm:$0xff] }
 0x672   :  { %2215 = vrot.lane.b32.xlu2 %v5622_v63, %s5697_s12  ;;  %v3030_v25 = vsel %vm3004_vm4, %v2980_v58, %v13202_v54 }
 0x673   :  { %2073 = vrot.lane.b32.xlu1 %v5626_v59, %s5693_s17  ;;  %v3080_v11 = vsel %vm3054_vm6, %v3030_v25, %v13203_v28  ;;  %v13210_v25 = vld [vmem:[#allocation252_spill] sm:$0xff] }
 0x674   :  { %2061 = vrot.lane.b32.xlu0 %v5627_v8, %s5693_s17  ;;  %v10043_v49 = vpop.permute.xlu2 %2055  ;;  %v3130_v61 = vsel %vm3104_vm8, %v3080_v11, %v13204_v35  ;;  %v13211_v35 = vld [vmem:[#allocation177_spill] sm:$0xff] }
 0x675   :  { %v2360_v57 = vpop.permute.xlu1 %2359 }
 0x676   :  { %v2206_v63 = vpop.permute.xlu0 %2205 }
 0x677   :  { %v3329_v42 = vsel %vm3304_vm11, %v3279_v18, %v2206_v63 }
 0x678   :  { %v3379_v15 = vsel %vm3354_vm12, %v3329_v42, %v2360_v57 }
 0x679   :  { %v3429_v17 = vsel %vm3404_vm13, %v3379_v15, %v9947_v20  ;;  %v3180_v20 = vsel %vm3154_vm7, %v3130_v61, %v13205_v62  ;;  %v13206_v15 = vld [vmem:[#allocation20_spill] sm:$0xff]  ;;  %v12552_v62 = vmax.f32 %v10135_v23, 0.0 }
 0x67a   :  { %2381 = vrot.lane.b32.xlu2 %v5628_v47, %s5696_s29  ;;  %v2781_v47 = vsel %vm2754_vm0, %v9261_v7, %v13206_v15  ;;  %v13214_v15 = vld [vmem:[#allocation391_spill] sm:$0xff] }
 0x67b   :  { %2369 = vrot.lane.b32.xlu1 %v5620_v51, %s5696_s29 }
 0x67c   :  { %2227 = vrot.lane.b32.xlu0 %v5629_v5, %s5697_s12  ;;  %v10067_v36 = vpop.permute.xlu2 %2511  ;;  %v13207_v5 = vld [vmem:[#allocation82_spill] sm:$0xff] }
 0x67d   :  { %v1906_v51 = vpop.permute.xlu1 %1905  ;;  %v10101_v8 = vpop.f32.mrf.mxu0  ;;  %v2831_v7 = vsel %vm2804_vm2, %v2781_v47, %v13207_v5 }
 0x67e   :  { %v2656_v43 = vpop.permute.xlu0 %2655  ;;  %v3230_v59 = vsel %vm3204_vm9, %v3180_v20, %v1906_v51  ;;  %v2881_v50 = vsel %vm2854_vm1, %v2831_v7, %v13208_v38  ;;  %v5637_v7 = vld [vmem:[%s12507_s0 + $0x538] sm:$0xff] }
 0x67f   :  { %v3479_v53 = vsel %vm3454_vm14, %v3429_v17, %v2656_v43  ;;  %v3280_v42 = vsel %vm3254_vm10, %v3230_v59, %v9980_v9  ;;  %v10127_v9 = vld [vmem:[%s12507_s0 + $0x530] sm:$0xff]  ;;  %v13209_v43 = vld [vmem:[#allocation167_spill] sm:$0xff] }
 0x680   :  { %5122 = vmatmul.msk.f32.gmra.mxu0 %vm3516_vm15, %v3479_v53  ;;  %v2931_v40 = vsel %vm2904_vm3, %v2881_v50, %v13209_v43  ;;  %v263_v59 = vld [vmem:[%s12507_s0 + $0x708] sm:$0xff] }
 0x681   :  { %v2981_v28 = vsel %vm2954_vm5, %v2931_v40, %v13210_v25 }
 0x682   :  { %2665 = vrot.lane.b32.xlu2 %v10088_v29, %s5698_s15  ;;  %v3031_v61 = vsel %vm3004_vm4, %v2981_v28, %v13211_v35 }
 0x683   :  { %2529 = vrot.lane.b32.xlu1 %v5631_v24, %s5695_s22 }
 0x684   :  { %2517 = vrot.lane.b32.xlu0 %v5632_v32, %s5695_s22  ;;  %v10103_v57 = vpop.permute.xlu2 %1921 }
 0x685   :  { %v2362_v63 = vpop.permute.xlu1 %2361 }
 0x686   :  { %v2208_v18 = vpop.permute.xlu0 %2207 }
 0x687   :  { %v3330_v4 = vsel %vm3304_vm11, %v3280_v42, %v2208_v18  ;;  %v13213_v18 = vld [vmem:[#allocation355_spill] sm:$0xff] }
 0x688   :  { %v3380_v16 = vsel %vm3354_vm12, %v3330_v4, %v2362_v63 }
 0x689   :  { %v3430_v53 = vsel %vm3404_vm13, %v3380_v16, %v10013_v21  ;;  %v13212_v21 = vld [vmem:[#allocation296_spill] sm:$0xff]  ;;  %v5636_v16 = vld [vmem:[%s12507_s0 + $0x628] sm:$0xff] }
 0x68a   :  { %1927 = vrot.lane.b32.xlu2 %v10120_v52, %s5694_s23  ;;  %v3081_v63 = vsel %vm3054_vm6, %v3031_v61, %v13212_v21 }
 0x68b   :  { %1915 = vrot.lane.b32.xlu1 %v10127_v9, %s5694_s23  ;;  %v3131_v42 = vsel %vm3104_vm8, %v3081_v63, %v13213_v18  ;;  %v13216_v63 = vld [vmem:[#allocation81_spill] sm:$0xff] }
 0x68c   :  { %2677 = vrot.lane.b32.xlu0 %v5635_v2, %s5698_s15  ;;  %v10143_v17 = vpop.permute.xlu2 %2211  ;;  %v3181_v47 = vsel %vm3154_vm7, %v3131_v42, %v13214_v15  ;;  %v13217_v42 = vld [vmem:[#allocation119_spill] sm:$0xff]  ;;  %v13218_v15 = vld [vmem:[#allocation185_spill] sm:$0xff] }
 0x68d   :  { %v3732_v51 = vpop.f32.mrf.mxu0  ;;  %v1908_v60 = vpop.permute.xlu1 %1907 }
 0x68e   :  { %v10148_v58 = vadd.f32 %v10111_v22, %v3732_v51  ;;  %v2658_v54 = vpop.permute.xlu0 %2657  ;;  %v3231_v5 = vsel %vm3204_vm9, %v3181_v47, %v1908_v60  ;;  %v5638_v60 = vld [vmem:[%s12507_s0 + $0x710] sm:$0xff] }
 0x68f   :  { %v3480_v11 = vsel %vm3454_vm14, %v3430_v53, %v2658_v54  ;;  %v3281_v43 = vsel %vm3254_vm10, %v3231_v5, %v10043_v49 }
 0x690   :  { %v12549_v20 = vmax.f32 %v10148_v58, 0.0  ;;  %5123 = vmatmul.msk.f32.gmra.mxu0 %vm3516_vm15, %v3480_v11 }
 0x692   :  { %v10171_v4 = vpack.i.bf16 %v12552_v62, %v12549_v20  ;;  %2075 = vrot.lane.b32.xlu2 %v5636_v16, %s5693_s17  ;;  %v10232_v16 = vld [vmem:[%s12507_s0 + $0x6a0] sm:$0xff] }
 0x693   :  { %1791 = vrot.lane.b32.xlu1 %v263_v59, %s5692_s16  ;;  %v13215_v59 = vld [vmem:[#allocation34_spill] sm:$0xff] }
 0x694   :  { %2063 = vrot.lane.b32.xlu0 %v5637_v7, %s5693_s17  ;;  %v10185_v38 = vpop.permute.xlu2 %2377  ;;  %v2782_v21 = vsel %vm2754_vm0, %v9314_v31, %v13215_v59  ;;  %v13219_v31 = vld [vmem:[#allocation251_spill] sm:$0xff]  ;;  %v10241_v7 = vadd.f32 %v10111_v22, %v9945_v48  ;;  %v13222_v59 = vld [vmem:[#allocation40_spill] sm:$0xff] }
 0x695   :  { %v2364_v50 = vpop.permute.xlu1 %2363  ;;  %v2832_v18 = vsel %vm2804_vm2, %v2782_v21, %v13216_v63  ;;  %v2788_v21 = vsel %vm2754_vm0, %v9637_v12, %v13222_v59  ;;  %v13228_v59 = vld [vmem:[#allocation257_spill] sm:$0xff] }
 0x696   :  { %v2210_v51 = vpop.permute.xlu0 %2209 }
 0x697   :  { %v3331_v40 = vsel %vm3304_vm11, %v3281_v43, %v2210_v51  ;;  %v13220_v51 = vld [vmem:[#allocation281_spill] sm:$0xff] }
 0x698   :  { %v3381_v53 = vsel %vm3354_vm12, %v3331_v40, %v2364_v50  ;;  %v10246_v50 = vld [vmem:[%s12507_s0 + $0x5b0] sm:$0xff] }
 0x699   :  { %v3431_v49 = vsel %vm3404_vm13, %v3381_v53, %v10067_v36 }
 0x69a   :  { %2229 = vrot.lane.b32.xlu2 %v5631_v24, %s5697_s12  ;;  %v10206_v24 = vld [vmem:[%s12507_s0 + $0x718] sm:$0xff] }
 0x69b   :  { %1939 = vrot.lane.b32.xlu1 %v5638_v60, %s5694_s23  ;;  %v13221_v60 = vld [vmem:[#allocation310_spill] sm:$0xff] }
 0x69c   :  { %2217 = vrot.lane.b32.xlu0 %v5632_v32, %s5697_s12  ;;  %v10197_v54 = vpop.permute.xlu2 %2661 }
 0x69d   :  { %v1910_v25 = vpop.permute.xlu1 %1909  ;;  %v10213_v32 = vpop.f32.mrf.mxu0 }
 0x69e   :  { %v2660_v28 = vpop.permute.xlu0 %2659 }
 0x69f   :  { %v3481_v11 = vsel %vm3454_vm14, %v3431_v49, %v2660_v28 }
 0x6a0   :  { %5124 = vmatmul.msk.f32.gmra.mxu0 %vm3516_vm15, %v3481_v11 }
 0x6a2   :  { %2383 = vrot.lane.b32.xlu2 %v5635_v2, %s5696_s29  ;;  %v278_v2 = vld [vmem:[%s12507_s0 + $0x780] sm:$0xff] }
 0x6a3   :  { %2087 = vrot.lane.b32.xlu1 %v10206_v24, %s5693_s17 }
 0x6a4   :  { %2371 = vrot.lane.b32.xlu0 %v10088_v29, %s5696_s29  ;;  %v10215_v36 = vpop.permute.xlu2 %1923  ;;  %v2882_v29 = vsel %vm2854_vm1, %v2832_v18, %v13217_v42  ;;  %v13224_v18 = vld [vmem:[#allocation87_spill] sm:$0xff] }
 0x6a5   :  { %v2070_v35 = vpop.permute.xlu1 %2069  ;;  %v2932_v47 = vsel %vm2904_vm3, %v2882_v29, %v13218_v15  ;;  %v2838_v42 = vsel %vm2804_vm2, %v2788_v21, %v13224_v18  ;;  %v13225_v29 = vld [vmem:[#allocation381_spill] sm:$0xff]  ;;  %v13230_v18 = vld [vmem:[#allocation316_spill] sm:$0xff] }
 0x6a6   :  { %v2058_v61 = vpop.permute.xlu0 %2057  ;;  %v2982_v5 = vsel %vm2954_vm5, %v2932_v47, %v13219_v31  ;;  %v12551_v47 = vmax.f32 %v10241_v7, 0.0  ;;  %v279_v31 = vld [vmem:[%s12507_s0 + $0x788] sm:$0xff] }
 0x6a7   :  { %v3032_v43 = vsel %vm3004_vm4, %v2982_v5, %v13220_v51  ;;  %v13226_v5 = vld [vmem:[#allocation125_spill] sm:$0xff] }
 0x6a8   :  { %v3082_v49 = vsel %vm3054_vm6, %v3032_v43, %v13221_v60  ;;  %v2888_v12 = vsel %vm2854_vm1, %v2838_v42, %v13226_v5  ;;  %v13227_v43 = vld [vmem:[#allocation196_spill] sm:$0xff] }
 0x6aa   :  { %2531 = vrot.lane.b32.xlu2 %v10232_v16, %s5695_s22 }
 0x6ab   :  { %2241 = vrot.lane.b32.xlu1 %v278_v2, %s5697_s12  ;;  %v13223_v2 = vld [vmem:[#allocation354_spill] sm:$0xff] }
 0x6ac   :  { %2519 = vrot.lane.b32.xlu0 %v10246_v50, %s5695_s22  ;;  %v10252_v53 = vpop.permute.xlu2 %2213  ;;  %v3132_v63 = vsel %vm3104_vm8, %v3082_v49, %v13223_v2  ;;  %v10290_v2 = vld [vmem:[%s12507_s0 + $0x6a8] sm:$0xff] }
 0x6ad   :  { %v3738_v40 = vpop.f32.mrf.mxu0  ;;  %v2366_v28 = vpop.permute.xlu1 %2365  ;;  %v3182_v15 = vsel %vm3154_vm7, %v3132_v63, %v13225_v29  ;;  %v10300_v63 = vld [vmem:[%s12507_s0 + $0x5b8] sm:$0xff] }
 0x6ae   :  { %v10257_v48 = vadd.f32 %v10111_v22, %v3738_v40  ;;  %v2224_v11 = vpop.permute.xlu0 %2223  ;;  %v3232_v51 = vsel %vm3204_vm9, %v3182_v15, %v1910_v25  ;;  %v2938_v40 = vsel %vm2904_vm3, %v2888_v12, %v13227_v43  ;;  %v13229_v25 = vld [vmem:[#allocation173_spill] sm:$0xff] }
 0x6af   :  { %v3282_v60 = vsel %vm3254_vm10, %v3232_v51, %v2058_v61  ;;  %v2988_v21 = vsel %vm2954_vm5, %v2938_v40, %v13228_v59  ;;  %v13232_v40 = vld [vmem:[#allocation387_spill] sm:$0xff] }
 0x6b0   :  { %v12550_v22 = vmax.f32 %v10257_v48, 0.0  ;;  %v3038_v61 = vsel %vm3004_vm4, %v2988_v21, %v13229_v25  ;;  %v3332_v29 = vsel %vm3304_vm11, %v3282_v60, %v10143_v17  ;;  %v10323_v60 = vld [vmem:[%s12507_s0 + $0x798] sm:$0xff] }
 0x6b1   :  { %v3088_v42 = vsel %vm3054_vm6, %v3038_v61, %v13230_v18  ;;  %v3382_v12 = vsel %vm3354_vm12, %v3332_v29, %v2366_v28  ;;  %v10330_v61 = vld [vmem:[%s12507_s0 + $0x790] sm:$0xff] }
 0x6b2   :  { %v10283_v49 = vpack.i.bf16 %v12551_v47, %v12550_v22  ;;  %2679 = vrot.lane.b32.xlu2 %v10290_v2, %s5698_s15  ;;  %v13243_v22 = vld [vmem:[#allocation394_spill] sm:$0xff] }
 0x6b3   :  { %2395 = vrot.lane.b32.xlu1 %v279_v31, %s5696_s29  ;;  %v13231_v31 = vld [vmem:[#allocation360_spill] sm:$0xff] }
 0x6b4   :  { %2667 = vrot.lane.b32.xlu0 %v10300_v63, %s5698_s15  ;;  %v10308_v15 = vpop.permute.xlu2 %2379  ;;  %v3138_v5 = vsel %vm3104_vm8, %v3088_v42, %v13231_v31 }
 0x6b5   :  { %v2526_v51 = vpop.permute.xlu1 %2525  ;;  %v3188_v59 = vsel %vm3154_vm7, %v3138_v5, %v13232_v40  ;;  %v5644_v5 = vld [vmem:[%s12507_s0 + $0x548] sm:$0xff]  ;;  %v13233_v40 = vld [vmem:[#allocation33_spill] sm:$0xff] }
 0x6b6   :  { %v2514_v43 = vpop.permute.xlu0 %2513  ;;  %v3238_v25 = vsel %vm3204_vm9, %v3188_v59, %v10103_v57  ;;  %v10338_v57 = vld [vmem:[%s12507_s0 + $0x540] sm:$0xff] }
 0x6b7   :  { %v3432_v21 = vsel %vm3404_vm13, %v3382_v12, %v2514_v43  ;;  %v3288_v28 = vsel %vm3254_vm10, %v3238_v25, %v2070_v35 }
 0x6b8   :  { %v3482_v17 = vsel %vm3454_vm14, %v3432_v21, %v10197_v54  ;;  %v3338_v18 = vsel %vm3304_vm11, %v3288_v28, %v2224_v11  ;;  %v13234_v21 = vld [vmem:[#allocation71_spill] sm:$0xff] }
 0x6b9   :  { %5125 = vmatmul.msk.f32.gmra.mxu0 %vm3516_vm15, %v3482_v17  ;;  %v3388_v54 = vsel %vm3354_vm12, %v3338_v18, %v10185_v38  ;;  %v10358_v38 = vld [vmem:[%s12507_s0 + $0x630] sm:$0xff]  ;;  %v13235_v17 = vld [vmem:[#allocation133_spill] sm:$0xff] }
 0x6ba   :  { %2691 = vrot.lane.b32.xlu2 %v10323_v60, %s5698_s15  ;;  %v3438_v11 = vsel %vm3404_vm13, %v3388_v54, %v2526_v51  ;;  %v13236_v18 = vld [vmem:[#allocation184_spill] sm:$0xff] }
 0x6bb   :  { %1917 = vrot.lane.b32.xlu1 %v10338_v57, %s5694_s23 }
 0x6bc   :  { %2543 = vrot.lane.b32.xlu0 %v10330_v61, %s5695_s22  ;;  %v2664_v35 = vpop.permute.xlu2 %2663 }
 0x6bd   :  { %v1912_v42 = vpop.permute.xlu1 %1911 }
 0x6be   :  { %v2674_v29 = vpop.permute.xlu0 %2673 }
 0x6bf   :  { %v3488_v31 = vsel %vm3454_vm14, %v3438_v11, %v2674_v29  ;;  %v5647_v11 = vld [vmem:[%s12507_s0 + $0x720] sm:$0xff]  ;;  %v13237_v29 = vld [vmem:[#allocation241_spill] sm:$0xff] }
 0x6c0   :  { %5131 = vmatmul.msk.f32.vlgmr.msra.gmra.mxu2 %vm3516_vm15, %v3488_v31 }
 0x6c2   :  { %1793 = vrot.lane.b32.xlu2 %v10206_v24, %s5692_s16  ;;  %v5646_v24 = vld [vmem:[%s12507_s0 + $0x400] sm:$0xff] }
 0x6c3   :  { %2065 = vrot.lane.b32.xlu1 %v5644_v5, %s5693_s17  ;;  %v2783_v59 = vsel %vm2754_vm0, %v5646_v24, %v13233_v40  ;;  %v5648_v5 = vld [vmem:[%s12507_s0 + $0x638] sm:$0xff] }
 0x6c4   :  { %1929 = vrot.lane.b32.xlu0 %v10358_v38, %s5694_s23  ;;  %v10362_v12 = vpop.permute.xlu2 %1925  ;;  %v2833_v25 = vsel %vm2804_vm2, %v2783_v59, %v13234_v21  ;;  %v13238_v24 = vld [vmem:[#allocation181_spill] sm:$0xff] }
 0x6c5   :  { %v2072_v51 = vpop.permute.xlu1 %2071  ;;  %v2883_v28 = vsel %vm2854_vm1, %v2833_v25, %v13235_v17  ;;  %v13239_v21 = vld [vmem:[#allocation309_spill] sm:$0xff] }
 0x6c6   :  { %v2060_v43 = vpop.permute.xlu0 %2059  ;;  %v2933_v54 = vsel %vm2904_vm3, %v2883_v28, %v13236_v18 }
 0x6c7   :  { %v2983_v31 = vsel %vm2954_vm5, %v2933_v54, %v13237_v29  ;;  %v13241_v54 = vld [vmem:[#allocation339_spill] sm:$0xff]  ;;  %v13242_v29 = vld [vmem:[#allocation77_spill] sm:$0xff] }
 0x6c8   :  { %v3033_v40 = vsel %vm3004_vm4, %v2983_v31, %v13238_v24  ;;  %v10405_v24 = vld [vmem:[%s12507_s0 + $0x728] sm:$0xff] }
 0x6c9   :  { %v3083_v25 = vsel %vm3054_vm6, %v3033_v40, %v13239_v21  ;;  %v13244_v40 = vld [vmem:[#allocation139_spill] sm:$0xff] }
 0x6ca   :  { %1941 = vrot.lane.b32.xlu2 %v5647_v11, %s5694_s23  ;;  %v3133_v11 = vsel %vm3104_vm8, %v3083_v25, %v13241_v54  ;;  %v13246_v54 = vld [vmem:[#allocation247_spill] sm:$0xff] }
 0x6cb   :  { %2219 = vrot.lane.b32.xlu1 %v10246_v50, %s5697_s12  ;;  %v13240_v50 = vld [vmem:[#allocation39_spill] sm:$0xff]  ;;  %v3183_v31 = vsel %vm3154_vm7, %v3133_v11, %v13243_v22  ;;  %v13247_v22 = vld [vmem:[#allocation290_spill] sm:$0xff] }
 0x6cc   :  { %2077 = vrot.lane.b32.xlu0 %v5648_v5, %s5693_s17  ;;  %v10389_v59 = vpop.permute.xlu2 %2215  ;;  %v2789_v18 = vsel %vm2754_vm0, %v9696_v13, %v13240_v50  ;;  %v3233_v47 = vsel %vm3204_vm9, %v3183_v31, %v1912_v42  ;;  %v13245_v13 = vld [vmem:[#allocation195_spill] sm:$0xff] }
 0x6cd   :  { %v2368_v17 = vpop.permute.xlu1 %2367  ;;  %v2839_v20 = vsel %vm2804_vm2, %v2789_v18, %v13242_v29  ;;  %v3283_v25 = vsel %vm3254_vm10, %v3233_v47, %v2060_v43  ;;  %v13249_v29 = vld [vmem:[#allocation348_spill] sm:$0xff] }
 0x6ce   :  { %v2226_v28 = vpop.permute.xlu0 %2225  ;;  %v2889_v21 = vsel %vm2854_vm1, %v2839_v20, %v13244_v40  ;;  %v13248_v20 = vld [vmem:[#allocation315_spill] sm:$0xff]  ;;  %v3333_v47 = vsel %vm3304_vm11, %v3283_v25, %v10252_v53 }
 0x6cf   :  { %v2939_v50 = vsel %vm2904_vm3, %v2889_v21, %v13245_v13  ;;  %v3383_v40 = vsel %vm3354_vm12, %v3333_v47, %v2368_v17  ;;  %v13250_v13 = vld [vmem:[#allocation398_spill] sm:$0xff]  ;;  %v13251_v47 = vld [vmem:[#allocation23_spill] sm:$0xff] }
 0x6d0   :  { %v2989_v18 = vsel %vm2954_vm5, %v2939_v50, %v13246_v54  ;;  %v10446_v17 = vld [vmem:[%s12507_s0 + $0x5c0] sm:$0xff] }
 0x6d1   :  { %v3039_v11 = vsel %vm3004_vm4, %v2989_v18, %v13247_v22 }
 0x6d2   :  { %2089 = vrot.lane.b32.xlu2 %v10405_v24, %s5693_s17  ;;  %v3089_v42 = vsel %vm3054_vm6, %v3039_v11, %v13248_v20  ;;  %v10462_v11 = vld [vmem:[%s12507_s0 + $0x5c8] sm:$0xff] }
 0x6d3   :  { %2373 = vrot.lane.b32.xlu1 %v10300_v63, %s5696_s29  ;;  %v3139_v31 = vsel %vm3104_vm8, %v3089_v42, %v13249_v29  ;;  %v5652_v42 = vld [vmem:[%s12507_s0 + $0x410] sm:$0xff] }
 0x6d4   :  { %2231 = vrot.lane.b32.xlu0 %v10232_v16, %s5697_s12  ;;  %v10427_v43 = vpop.permute.xlu2 %2381  ;;  %v3189_v50 = vsel %vm3154_vm7, %v3139_v31, %v13250_v13  ;;  %v2784_v29 = vsel %vm2754_vm0, %v5652_v42, %v13251_v47  ;;  %v10483_v31 = vld [vmem:[%s12507_s0 + $0x7a0] sm:$0xff] }
 0x6d5   :  { %v2528_v63 = vpop.permute.xlu1 %2527  ;;  %v3239_v54 = vsel %vm3204_vm9, %v3189_v50, %v10215_v36  ;;  %v13254_v50 = vld [vmem:[#allocation170_spill] sm:$0xff] }
 0x6d6   :  { %v2516_v21 = vpop.permute.xlu0 %2515  ;;  %v3289_v53 = vsel %vm3254_vm10, %v3239_v54, %v2072_v51  ;;  %v13255_v54 = vld [vmem:[#allocation255_spill] sm:$0xff]  ;;  %v5654_v47 = vld [vmem:[%s12507_s0 + $0x500] sm:$0xff] }
 0x6d7   :  { %v3433_v16 = vsel %vm3404_vm13, %v3383_v40, %v2516_v21  ;;  %v3339_v25 = vsel %vm3304_vm11, %v3289_v53, %v2226_v28  ;;  %v13252_v40 = vld [vmem:[#allocation85_spill] sm:$0xff]  ;;  %v13253_v21 = vld [vmem:[#allocation132_spill] sm:$0xff] }
 0x6d8   :  { %v3483_v18 = vsel %vm3454_vm14, %v3433_v16, %v2664_v35  ;;  %v3389_v36 = vsel %vm3354_vm12, %v3339_v25, %v10308_v15  ;;  %v10499_v53 = vld [vmem:[%s12507_s0 + $0x6b8] sm:$0xff]  ;;  %v13256_v25 = vld [vmem:[#allocation188_spill] sm:$0xff] }
 0x6d9   :  { %5126 = vmatmul.msk.f32.gmra.mxu0 %vm3516_vm15, %v3483_v18  ;;  %v3439_v51 = vsel %vm3404_vm13, %v3389_v36, %v2528_v63  ;;  %v2834_v63 = vsel %vm2804_vm2, %v2784_v29, %v13252_v40  ;;  %v13258_v29 = vld [vmem:[#allocation29_spill] sm:$0xff] }
 0x6da   :  { %2243 = vrot.lane.b32.xlu2 %v10330_v61, %s5697_s12  ;;  %v2884_v13 = vsel %vm2854_vm1, %v2834_v63, %v13253_v21  ;;  %v2790_v40 = vsel %vm2754_vm0, %v5654_v47, %v13258_v29  ;;  %v13259_v63 = vld [vmem:[#allocation358_spill] sm:$0xff] }
 0x6db   :  { %2521 = vrot.lane.b32.xlu1 %v10446_v17, %s5695_s22  ;;  %v2934_v16 = vsel %vm2904_vm3, %v2884_v13, %v13254_v50  ;;  %v13260_v13 = vld [vmem:[#allocation91_spill] sm:$0xff]  ;;  %v13263_v47 = vld [vmem:[#allocation178_spill] sm:$0xff] }
 0x6dc   :  { %2385 = vrot.lane.b32.xlu0 %v10290_v2, %s5696_s29  ;;  %v2666_v35 = vpop.permute.xlu2 %2665  ;;  %v10469_v2 = vld [vmem:[%s12507_s0 + $0x6b0] sm:$0xff]  ;;  %v2984_v18 = vsel %vm2954_vm5, %v2934_v16, %v13255_v54  ;;  %v2840_v50 = vsel %vm2804_vm2, %v2790_v40, %v13260_v13  ;;  %v13261_v16 = vld [vmem:[#allocation393_spill] sm:$0xff] }
 0x6dd   :  { %v1914_v28 = vpop.permute.xlu1 %1913  ;;  %v3034_v36 = vsel %vm3004_vm4, %v2984_v18, %v13256_v25  ;;  %v10523_v18 = vld [vmem:[%s12507_s0 + $0x7a8] sm:$0xff]  ;;  %v13262_v25 = vld [vmem:[#allocation138_spill] sm:$0xff] }
 0x6de   :  { %v2676_v22 = vpop.permute.xlu0 %2675 }
 0x6df   :  { %v3489_v61 = vsel %vm3454_vm14, %v3439_v51, %v2676_v22 }
 0x6e0   :  { %5132 = vmatmul.msk.f32.gmra.mxu2 %vm3516_vm15, %v3489_v61 }
 0x6e2   :  { %2397 = vrot.lane.b32.xlu2 %v10323_v60, %s5696_s29 }
 0x6e3   :  { %2669 = vrot.lane.b32.xlu1 %v10462_v11, %s5698_s15 }
 0x6e4   :  { %2533 = vrot.lane.b32.xlu0 %v10469_v2, %s5695_s22  ;;  %v10473_v15 = vpop.permute.xlu2 %1927 }
 0x6e5   :  { %v2074_v20 = vpop.permute.xlu1 %2073 }
 0x6e6   :  { %v2062_v60 = vpop.permute.xlu0 %2061 }
 0x6ea   :  { %1783 = vrot.lane.b32.xlu2 %v5648_v5, %s5692_s16  ;;  %v13257_v5 = vld [vmem:[#allocation299_spill] sm:$0xff] }
 0x6eb   :  { %2545 = vrot.lane.b32.xlu1 %v10483_v31, %s5695_s22  ;;  %v3084_v22 = vsel %vm3054_vm6, %v3034_v36, %v13257_v5  ;;  %v2890_v36 = vsel %vm2854_vm1, %v2840_v50, %v13262_v25  ;;  %v13266_v50 = vld [vmem:[#allocation305_spill] sm:$0xff] }
 0x6ec   :  { %2681 = vrot.lane.b32.xlu0 %v10499_v53, %s5698_s15  ;;  %v10505_v51 = vpop.permute.xlu2 %2075  ;;  %v3134_v21 = vsel %vm3104_vm8, %v3084_v22, %v13259_v63  ;;  %v2940_v29 = vsel %vm2904_vm3, %v2890_v36, %v13263_v47  ;;  %v13264_v63 = vld [vmem:[#allocation261_spill] sm:$0xff]  ;;  %v13267_v36 = vld [vmem:[#allocation364_spill] sm:$0xff] }
 0x6ed   :  { %v2370_v61 = vpop.permute.xlu1 %2369  ;;  %v3184_v54 = vsel %vm3154_vm7, %v3134_v21, %v13261_v16  ;;  %v2990_v40 = vsel %vm2954_vm5, %v2940_v29, %v13264_v63  ;;  %v10536_v21 = vld [vmem:[%s12507_s0 + $0x640] sm:$0xff] }
 0x6ee   :  { %v2228_v42 = vpop.permute.xlu0 %2227  ;;  %v3234_v5 = vsel %vm3204_vm9, %v3184_v54, %v1914_v28  ;;  %v13265_v28 = vld [vmem:[#allocation199_spill] sm:$0xff] }
 0x6ef   :  { %v3284_v22 = vsel %vm3254_vm10, %v3234_v5, %v2062_v60  ;;  %v3040_v13 = vsel %vm3004_vm4, %v2990_v40, %v13265_v28  ;;  %v10547_v60 = vld [vmem:[%s12507_s0 + $0x550] sm:$0xff]  ;;  %v13268_v40 = vld [vmem:[#allocation397_spill] sm:$0xff] }
 0x6f0   :  { %v3090_v16 = vsel %vm3054_vm6, %v3040_v13, %v13266_v50  ;;  %v3334_v54 = vsel %vm3304_vm11, %v3284_v22, %v10389_v59 }
 0x6f1   :  { %v3140_v5 = vsel %vm3104_vm8, %v3090_v16, %v13267_v36  ;;  %v3384_v47 = vsel %vm3354_vm12, %v3334_v54, %v2370_v61  ;;  %v10570_v61 = vld [vmem:[%s12507_s0 + $0x648] sm:$0xff]  ;;  %v13270_v54 = vld [vmem:[#allocation90_spill] sm:$0xff] }
 0x6f2   :  { %1931 = vrot.lane.b32.xlu2 %v10536_v21, %s5694_s23  ;;  %v3190_v28 = vsel %vm3154_vm7, %v3140_v5, %v13268_v40  ;;  %v13269_v16 = vld [vmem:[#allocation43_spill] sm:$0xff]  ;;  %v13271_v5 = vld [vmem:[#allocation128_spill] sm:$0xff] }
 0x6f3   :  { %2693 = vrot.lane.b32.xlu1 %v10523_v18, %s5698_s15  ;;  %v3240_v0 = vsel %vm3204_vm9, %v3190_v28, %v10362_v12  ;;  %v13274_v28 = vld [vmem:[#allocation182_spill] sm:$0xff] }
 0x6f4   :  { %1919 = vrot.lane.b32.xlu0 %v10547_v60, %s5694_s23  ;;  %v2230_v25 = vpop.permute.xlu2 %2229  ;;  %v3290_v59 = vsel %vm3254_vm10, %v3240_v0, %v2074_v20 }
 0x6f5   :  { %v2530_v29 = vpop.permute.xlu1 %2529  ;;  %v3340_v22 = vsel %vm3304_vm11, %v3290_v59, %v2228_v42 }
 0x6f6   :  { %v2518_v63 = vpop.permute.xlu0 %2517  ;;  %v3390_v0 = vsel %vm3354_vm12, %v3340_v22, %v10427_v43  ;;  %v13275_v22 = vld [vmem:[#allocation319_spill] sm:$0xff] }
 0x6f7   :  { %v3434_v62 = vsel %vm3404_vm13, %v3384_v47, %v2518_v63  ;;  %v13272_v47 = vld [vmem:[#allocation202_spill] sm:$0xff]  ;;  %v5659_v63 = vld [vmem:[%s12507_s0 + $0x730] sm:$0xff] }
 0x6f8   :  { %v3484_v13 = vsel %vm3454_vm14, %v3434_v62, %v2666_v35  ;;  %v5658_v62 = vld [vmem:[%s12507_s0 + $0x558] sm:$0xff]  ;;  %v3440_v35 = vsel %vm3404_vm13, %v3390_v0, %v2530_v29 }
 0x6f9   :  { %5127 = vmatmul.msk.f32.gmra.mxu0 %vm3516_vm15, %v3484_v13 }
 0x6fa   :  { %2079 = vrot.lane.b32.xlu2 %v10570_v61, %s5693_s17 }
 0x6fb   :  { %1795 = vrot.lane.b32.xlu1 %v10405_v24, %s5692_s16  ;;  %v2791_v24 = vsel %vm2754_vm0, %v9879_v45, %v13269_v16  ;;  %v13273_v45 = vld [vmem:[#allocation260_spill] sm:$0xff] }
 0x6fc   :  { %2067 = vrot.lane.b32.xlu0 %v5658_v62, %s5693_s17  ;;  %v2384_v12 = vpop.permute.xlu2 %2383  ;;  %v2841_v36 = vsel %vm2804_vm2, %v2791_v24, %v13270_v54 }
 0x6fd   :  { %v10583_v20 = vpop.permute.xlu1 %1915  ;;  %v2891_v43 = vsel %vm2854_vm1, %v2841_v36, %v13271_v5 }
 0x6fe   :  { %v2678_v42 = vpop.permute.xlu0 %2677  ;;  %v2941_v29 = vsel %vm2904_vm3, %v2891_v43, %v13272_v47 }
 0x6ff   :  { %v3490_v50 = vsel %vm3454_vm14, %v3440_v35, %v2678_v42  ;;  %v2991_v40 = vsel %vm2954_vm5, %v2941_v29, %v13273_v45  ;;  %v13276_v35 = vld [vmem:[#allocation363_spill] sm:$0xff]  ;;  %v13278_v45 = vld [vmem:[#allocation37_spill] sm:$0xff] }
 0x700   :  { %5133 = vmatmul.msk.f32.gmra.mxu2 %vm3516_vm15, %v3490_v50  ;;  %v3041_v13 = vsel %vm3004_vm4, %v2991_v40, %v13274_v28  ;;  %v13277_v50 = vld [vmem:[#allocation390_spill] sm:$0xff]  ;;  %v13279_v28 = vld [vmem:[#allocation84_spill] sm:$0xff] }
 0x701   :  { %v3091_v62 = vsel %vm3054_vm6, %v3041_v13, %v13275_v22 }
 0x702   :  { %2233 = vrot.lane.b32.xlu2 %v10469_v2, %s5697_s12  ;;  %v3141_v42 = vsel %vm3104_vm8, %v3091_v62, %v13276_v35  ;;  %v13282_v35 = vld [vmem:[#allocation254_spill] sm:$0xff] }
 0x703   :  { %1943 = vrot.lane.b32.xlu1 %v5659_v63, %s5694_s23  ;;  %v3191_v16 = vsel %vm3154_vm7, %v3141_v42, %v13277_v50  ;;  %v5661_v63 = vld [vmem:[%s12507_s0 + $0x420] sm:$0xff] }
 0x704   :  { %2221 = vrot.lane.b32.xlu0 %v10446_v17, %s5697_s12  ;;  %v2532_v59 = vpop.permute.xlu2 %2531  ;;  %v10619_v17 = vld [vmem:[%s12507_s0 + $0x738] sm:$0xff]  ;;  %v3241_v24 = vsel %vm3204_vm9, %v3191_v16, %v10473_v15  ;;  %v2785_v40 = vsel %vm2754_vm0, %v5661_v63, %v13278_v45  ;;  %v13283_v16 = vld [vmem:[#allocation284_spill] sm:$0xff] }
 0x705   :  { %v10610_v2 = vpop.permute.xlu1 %1791  ;;  %v3291_v54 = vsel %vm3254_vm10, %v3241_v24, %v10505_v51  ;;  %v2835_v13 = vsel %vm2804_vm2, %v2785_v40, %v13279_v28  ;;  %v284_v45 = vld [vmem:[%s12507_s0 + $0x7b0] sm:$0xff]  ;;  %v5663_v40 = vld [vmem:[%s12507_s0 + $0x600] sm:$0xff]  ;;  %v13287_v28 = vld [vmem:[#allocation49_spill] sm:$0xff] }
 0x706   :  { %v2064_v0 = vpop.permute.xlu0 %2063  ;;  %v3341_v36 = vsel %vm3304_vm11, %v3291_v54, %v2230_v25 }
 0x707   :  { %v3391_v5 = vsel %vm3354_vm12, %v3341_v36, %v2384_v12 }
 0x708   :  { %v3441_v43 = vsel %vm3404_vm13, %v3391_v5, %v2532_v59  ;;  %v13280_v59 = vld [vmem:[#allocation122_spill] sm:$0xff]  ;;  %v13284_v5 = vld [vmem:[#allocation313_spill] sm:$0xff] }
 0x709   :  { %v2885_v22 = vsel %vm2854_vm1, %v2835_v13, %v13280_v59  ;;  %v2797_v13 = vsel %vm2754_vm0, %v5663_v40, %v13287_v28  ;;  %v13293_v28 = vld [vmem:[#allocation323_spill] sm:$0xff] }
 0x70a   :  { %2387 = vrot.lane.b32.xlu2 %v10499_v53, %s5696_s29  ;;  %v10639_v53 = vld [vmem:[%s12507_s0 + $0x6c0] sm:$0xff] }
 0x70b   :  { %2091 = vrot.lane.b32.xlu1 %v10619_v17, %s5693_s17 }
 0x70c   :  { %2375 = vrot.lane.b32.xlu0 %v10462_v11, %s5696_s29  ;;  %v2680_v47 = vpop.permute.xlu2 %2679 }
 0x70d   :  { %v1940_v15 = vpop.permute.xlu1 %1939  ;;  %v3491_v51 = vsel %vm3454_vm14, %v3441_v43, %v2680_v47 }
 0x70e   :  { %v2218_v29 = vpop.permute.xlu0 %2217  ;;  %5134 = vmatmul.msk.f32.gmra.mxu2 %vm3516_vm15, %v3491_v51  ;;  %v13286_v51 = vld [vmem:[#allocation384_spill] sm:$0xff] }
 0x712   :  { %2535 = vrot.lane.b32.xlu2 %v10639_v53, %s5695_s22 }
 0x713   :  { %2245 = vrot.lane.b32.xlu1 %v10483_v31, %s5697_s12  ;;  %v13281_v31 = vld [vmem:[#allocation191_spill] sm:$0xff] }
 0x714   :  { %2523 = vrot.lane.b32.xlu0 %v9820_v19, %s5695_s22  ;;  %v2692_v11 = vpop.permute.xlu2 %2691  ;;  %v10659_v19 = vld [vmem:[%s12507_s0 + $0x6c8] sm:$0xff]  ;;  %v2935_v62 = vsel %vm2904_vm3, %v2885_v22, %v13281_v31  ;;  %v13288_v22 = vld [vmem:[#allocation96_spill] sm:$0xff] }
 0x715   :  { %v2088_v25 = vpop.permute.xlu1 %2087  ;;  %v2985_v42 = vsel %vm2954_vm5, %v2935_v62, %v13282_v35  ;;  %v2847_v31 = vsel %vm2804_vm2, %v2797_v13, %v13288_v22  ;;  %v13289_v35 = vld [vmem:[#allocation134_spill] sm:$0xff] }
 0x716   :  { %v2372_v12 = vpop.permute.xlu0 %2371  ;;  %v3035_v24 = vsel %vm3004_vm4, %v2985_v42, %v13283_v16  ;;  %v2897_v42 = vsel %vm2854_vm1, %v2847_v31, %v13289_v35  ;;  %v5664_v31 = vld [vmem:[%s12507_s0 + $0x658] sm:$0xff]  ;;  %v10733_v35 = vld [vmem:[%s12507_s0 + $0x650] sm:$0xff] }
 0x717   :  { %v3085_v43 = vsel %vm3054_vm6, %v3035_v24, %v13284_v5  ;;  %v13290_v24 = vld [vmem:[#allocation213_spill] sm:$0xff] }
 0x71a   :  { %2683 = vrot.lane.b32.xlu2 %v10659_v19, %s5698_s15 }
 0x71b   :  { %2399 = vrot.lane.b32.xlu1 %v10523_v18, %s5696_s29  ;;  %v13285_v18 = vld [vmem:[#allocation357_spill] sm:$0xff] }
 0x71c   :  { %2671 = vrot.lane.b32.xlu0 %v9810_v41, %s5698_s15  ;;  %v10671_v50 = vpop.permute.xlu2 %1793  ;;  %v3135_v47 = vsel %vm3104_vm8, %v3085_v43, %v13285_v18  ;;  %v285_v41 = vld [vmem:[%s12507_s0 + $0x7b8] sm:$0xff] }
 0x71d   :  { %v2242_v54 = vpop.permute.xlu1 %2241  ;;  %v3185_v63 = vsel %vm3154_vm7, %v3135_v47, %v13286_v51 }
 0x71e   :  { %v2520_v36 = vpop.permute.xlu0 %2519  ;;  %v3235_v59 = vsel %vm3204_vm9, %v3185_v63, %v10583_v20  ;;  %v2947_v20 = vsel %vm2904_vm3, %v2897_v42, %v13290_v24  ;;  %v13292_v63 = vld [vmem:[#allocation192_spill] sm:$0xff] }
 0x71f   :  { %v3285_v62 = vsel %vm3254_vm10, %v3235_v59, %v2064_v0  ;;  %v13291_v0 = vld [vmem:[#allocation264_spill] sm:$0xff] }
 0x720   :  { %v3335_v16 = vsel %vm3304_vm11, %v3285_v62, %v2218_v29  ;;  %v2997_v18 = vsel %vm2954_vm5, %v2947_v20, %v13291_v0  ;;  %v271_v20 = vld [vmem:[%s12507_s0 + $0x748] sm:$0xff] }
 0x721   :  { %v3385_v5 = vsel %vm3354_vm12, %v3335_v16, %v2372_v12  ;;  %v3047_v40 = vsel %vm3004_vm4, %v2997_v18, %v13292_v63  ;;  %v13294_v12 = vld [vmem:[#allocation367_spill] sm:$0xff]  ;;  %v10759_v18 = vld [vmem:[%s12507_s0 + $0x6d0] sm:$0xff]  ;;  %v5668_v63 = vld [vmem:[%s12507_s0 + $0x6d8] sm:$0xff] }
 0x722   :  { %2695 = vrot.lane.b32.xlu2 %v285_v41, %s5698_s15  ;;  %v3435_v47 = vsel %vm3404_vm13, %v3385_v5, %v2520_v36  ;;  %v3097_v13 = vsel %vm3054_vm6, %v3047_v40, %v13293_v28  ;;  %v5669_v28 = vld [vmem:[%s12507_s0 + $0x430] sm:$0xff] }
 0x723   :  { %1785 = vrot.lane.b32.xlu1 %v10570_v61, %s5692_s16  ;;  %v3147_v59 = vsel %vm3104_vm8, %v3097_v13, %v13294_v12  ;;  %v13295_v13 = vld [vmem:[#allocation36_spill] sm:$0xff] }
 0x724   :  { %2547 = vrot.lane.b32.xlu0 %v284_v45, %s5695_s22  ;;  %v10707_v43 = vpop.permute.xlu2 %1941  ;;  %v3197_v22 = vsel %vm3154_vm7, %v3147_v59, %v10610_v2  ;;  %v2786_v12 = vsel %vm2754_vm0, %v5669_v28, %v13295_v13  ;;  %v13296_v59 = vld [vmem:[#allocation74_spill] sm:$0xff] }
 0x725   :  { %v2396_v61 = vpop.permute.xlu1 %2395  ;;  %v3247_v36 = vsel %vm3204_vm9, %v3197_v22, %v1940_v15  ;;  %v2836_v22 = vsel %vm2804_vm2, %v2786_v12, %v13296_v59  ;;  %v13301_v59 = vld [vmem:[#allocation312_spill] sm:$0xff] }
 0x726   :  { %v2668_v51 = vpop.permute.xlu0 %2667  ;;  %v3297_v62 = vsel %vm3254_vm10, %v3247_v36, %v2088_v25 }
 0x727   :  { %v3485_v29 = vsel %vm3454_vm14, %v3435_v47, %v2668_v51  ;;  %v3347_v2 = vsel %vm3304_vm11, %v3297_v62, %v2242_v54  ;;  %v5666_v54 = vld [vmem:[%s12507_s0 + $0x740] sm:$0xff] }
 0x728   :  { %5128 = vmatmul.msk.f32.gmra.mxu0 %vm3516_vm15, %v3485_v29  ;;  %v3397_v42 = vsel %vm3354_vm12, %v3347_v2, %v2396_v61  ;;  %v10771_v51 = vld [vmem:[%s12507_s0 + $0x7c0] sm:$0xff]  ;;  %v10785_v29 = vld [vmem:[%s12507_s0 + $0x7c8] sm:$0xff] }
 0x729   :  { %v10799_v62 = vld [vmem:[%s12507_s0 + $0x660] sm:$0xff] }
 0x72a   :  { %2081 = vrot.lane.b32.xlu2 %v5664_v31, %s5693_s17  ;;  %v13298_v2 = vld [vmem:[#allocation190_spill] sm:$0xff] }
 0x72b   :  { %1797 = vrot.lane.b32.xlu1 %v10619_v17, %s5692_s16 }
 0x72c   :  { %1933 = vrot.lane.b32.xlu0 %v10733_v35, %s5694_s23  ;;  %v10738_v15 = vpop.permute.xlu2 %2089 }
 0x72d   :  { %v1918_v16 = vpop.permute.xlu1 %1917 }
 0x72e   :  { %v2544_v24 = vpop.permute.xlu0 %2543 }
 0x72f   :  { %v3447_v17 = vsel %vm3404_vm13, %v3397_v42, %v2544_v24  ;;  %v13299_v24 = vld [vmem:[#allocation244_spill] sm:$0xff] }
 0x730   :  { %v3497_v25 = vsel %vm3454_vm14, %v3447_v17, %v2692_v11 }
 0x731   :  { %5140 = vmatmul.msk.f32.vlgmr.msra.gmra.mxu3 %vm3516_vm15, %v3497_v25 }
 0x732   :  { %2093 = vrot.lane.b32.xlu2 %v271_v20, %s5693_s17 }
 0x733   :  { %2235 = vrot.lane.b32.xlu1 %v10639_v53, %s5697_s12 }
 0x734   :  { %1945 = vrot.lane.b32.xlu0 %v5666_v54, %s5694_s23  ;;  %v10754_v5 = vpop.permute.xlu2 %2243  ;;  %v13300_v54 = vld [vmem:[#allocation186_spill] sm:$0xff] }
 0x735   :  { %v2066_v11 = vpop.permute.xlu1 %2065 }
 0x736   :  { %v1930_v0 = vpop.permute.xlu0 %1929 }
 0x73a   :  { %2537 = vrot.lane.b32.xlu2 %v10759_v18, %s5695_s22 }
 0x73b   :  { %2247 = vrot.lane.b32.xlu1 %v284_v45, %s5697_s12 }
 0x73c   :  { %2389 = vrot.lane.b32.xlu0 %v10659_v19, %s5696_s29  ;;  %v10766_v53 = vpop.permute.xlu2 %2397 }
 0x73d   :  { %v2220_v47 = vpop.permute.xlu1 %2219 }
 0x73e   :  { %v2078_v61 = vpop.permute.xlu0 %2077 }
 0x742   :  { %2549 = vrot.lane.b32.xlu2 %v10771_v51, %s5695_s22 }
 0x743   :  { %2685 = vrot.lane.b32.xlu1 %v5668_v63, %s5698_s15 }
 0x744   :  { %2401 = vrot.lane.b32.xlu0 %v285_v41, %s5696_s29  ;;  %v10780_v19 = vpop.permute.xlu2 %1783  ;;  %v13297_v41 = vld [vmem:[#allocation136_spill] sm:$0xff] }
 0x745   :  { %v2374_v45 = vpop.permute.xlu1 %2373  ;;  %v2886_v36 = vsel %vm2854_vm1, %v2836_v22, %v13297_v41  ;;  %v13302_v41 = vld [vmem:[#allocation342_spill] sm:$0xff] }
 0x746   :  { %v2232_v40 = vpop.permute.xlu0 %2231  ;;  %v2936_v42 = vsel %vm2904_vm3, %v2886_v36, %v13298_v2  ;;  %v13304_v36 = vld [vmem:[#allocation396_spill] sm:$0xff] }
 0x747   :  { %v2986_v17 = vsel %vm2954_vm5, %v2936_v42, %v13299_v24  ;;  %v13305_v42 = vld [vmem:[#allocation80_spill] sm:$0xff] }
 0x748   :  { %v3036_v28 = vsel %vm3004_vm4, %v2986_v17, %v13300_v54  ;;  %v13306_v54 = vld [vmem:[#allocation142_spill] sm:$0xff] }
 0x749   :  { %v3086_v22 = vsel %vm3054_vm6, %v3036_v28, %v13301_v59  ;;  %v5671_v59 = vld [vmem:[%s12507_s0 + $0x750] sm:$0xff] }
 0x74a   :  { %1935 = vrot.lane.b32.xlu2 %v10799_v62, %s5694_s23  ;;  %v3136_v56 = vsel %vm3104_vm8, %v3086_v22, %v13302_v41 }
 0x74b   :  { %2697 = vrot.lane.b32.xlu1 %v10785_v29, %s5698_s15  ;;  %v3186_v2 = vsel %vm3154_vm7, %v3136_v56, %v13304_v36  ;;  %v13307_v56 = vld [vmem:[#allocation201_spill] sm:$0xff] }
 0x74c   :  { %1787 = vrot.lane.b32.xlu0 %v5664_v31, %s5692_s16  ;;  %v10810_v25 = vpop.permute.xlu2 %1931  ;;  %v2792_v31 = vsel %vm2754_vm0, %v9999_v39, %v13303_v10  ;;  %v3236_v17 = vsel %vm3204_vm9, %v3186_v2, %v1918_v16  ;;  %v5672_v10 = vld [vmem:[%s12507_s0 + $0x668] sm:$0xff]  ;;  %v13309_v36 = vld [vmem:[#allocation197_spill] sm:$0xff] }
 0x74d   :  { %v2522_v13 = vpop.permute.xlu1 %2521  ;;  %v2842_v24 = vsel %vm2804_vm2, %v2792_v31, %v13305_v42  ;;  %v3286_v28 = vsel %vm3254_vm10, %v3236_v17, %v2066_v11  ;;  %v13308_v11 = vld [vmem:[#allocation250_spill] sm:$0xff] }
 0x74e   :  { %v2386_v12 = vpop.permute.xlu0 %2385  ;;  %v2892_v34 = vsel %vm2854_vm1, %v2842_v24, %v13306_v54  ;;  %v3336_v16 = vsel %vm3304_vm11, %v3286_v28, %v2220_v47  ;;  %v13310_v54 = vld [vmem:[#allocation318_spill] sm:$0xff] }
 0x74f   :  { %v2942_v39 = vsel %vm2904_vm3, %v2892_v34, %v13307_v56  ;;  %v3386_v41 = vsel %vm3354_vm12, %v3336_v16, %v2374_v45  ;;  %v273_v45 = vld [vmem:[%s12507_s0 + $0x758] sm:$0xff] }
 0x750   :  { %v2992_v22 = vsel %vm2954_vm5, %v2942_v39, %v13308_v11  ;;  %v3436_v42 = vsel %vm3404_vm13, %v3386_v41, %v2522_v13  ;;  %v13313_v39 = vld [vmem:[#allocation86_spill] sm:$0xff] }
 0x751   :  { %v3042_v2 = vsel %vm3004_vm4, %v2992_v22, %v13309_v36  ;;  %v13314_v22 = vld [vmem:[#allocation148_spill] sm:$0xff] }
 0x752   :  { %1947 = vrot.lane.b32.xlu2 %v5671_v59, %s5694_s23  ;;  %v3092_v34 = vsel %vm3054_vm6, %v3042_v2, %v13310_v54  ;;  %v13312_v59 = vld [vmem:[#allocation47_spill] sm:$0xff]  ;;  %v13315_v2 = vld [vmem:[#allocation212_spill] sm:$0xff] }
 0x753   :  { %2083 = vrot.lane.b32.xlu1 %v5672_v10, %s5693_s17  ;;  %v2798_v13 = vsel %vm2754_vm0, %v9992_v26, %v13312_v59 }
 0x754   :  { %1799 = vrot.lane.b32.xlu0 %v271_v20, %s5692_s16  ;;  %v10844_v31 = vpop.permute.xlu2 %2079  ;;  %v13311_v20 = vld [vmem:[#allocation353_spill] sm:$0xff]  ;;  %v2848_v16 = vsel %vm2804_vm2, %v2798_v13, %v13313_v39  ;;  %v13319_v13 = vld [vmem:[#allocation359_spill] sm:$0xff]  ;;  %v5673_v39 = vld [vmem:[%s12507_s0 + $0x6e0] sm:$0xff] }
 0x755   :  { %v2670_v24 = vpop.permute.xlu1 %2669  ;;  %v3142_v28 = vsel %vm3104_vm8, %v3092_v34, %v13311_v20  ;;  %v2898_v41 = vsel %vm2854_vm1, %v2848_v16, %v13314_v22  ;;  %v13317_v34 = vld [vmem:[#allocation216_spill] sm:$0xff] }
 0x756   :  { %v2534_v17 = vpop.permute.xlu0 %2533  ;;  %v3486_v47 = vsel %vm3454_vm14, %v3436_v42, %v2670_v24  ;;  %v3192_v56 = vsel %vm3154_vm7, %v3142_v28, %v8715_v6  ;;  %v2948_v26 = vsel %vm2904_vm3, %v2898_v41, %v13315_v2  ;;  %v13316_v6 = vld [vmem:[#allocation256_spill] sm:$0xff]  ;;  %v13318_v28 = vld [vmem:[#allocation322_spill] sm:$0xff] }
 0x757   :  { %5129 = vmatmul.msk.f32.gmra.mxu0 %vm3516_vm15, %v3486_v47  ;;  %v3242_v11 = vsel %vm3204_vm9, %v3192_v56, %v1930_v0  ;;  %v2998_v0 = vsel %vm2954_vm5, %v2948_v26, %v13316_v6  ;;  %v13321_v2 = vld [vmem:[#allocation94_spill] sm:$0xff]  ;;  %v13322_v26 = vld [vmem:[#allocation141_spill] sm:$0xff]  ;;  %v13323_v6 = vld [vmem:[#allocation183_spill] sm:$0xff] }
 0x758   :  { %v3292_v36 = vsel %vm3254_vm10, %v3242_v11, %v2078_v61  ;;  %v3048_v61 = vsel %vm3004_vm4, %v2998_v0, %v13317_v34  ;;  %v5674_v34 = vld [vmem:[%s12507_s0 + $0x6e8] sm:$0xff] }
 0x759   :  { %v3342_v42 = vsel %vm3304_vm11, %v3292_v36, %v2232_v40  ;;  %v3098_v59 = vsel %vm3054_vm6, %v3048_v61, %v13318_v28  ;;  %v13320_v36 = vld [vmem:[#allocation32_spill] sm:$0xff]  ;;  %v13325_v61 = vld [vmem:[#allocation205_spill] sm:$0xff] }
 0x75a   :  { %2391 = vrot.lane.b32.xlu2 %v5668_v63, %s5696_s29  ;;  %v3392_v24 = vsel %vm3354_vm12, %v3342_v42, %v2386_v12  ;;  %v13326_v28 = vld [vmem:[#allocation308_spill] sm:$0xff] }
 0x75b   :  { %2095 = vrot.lane.b32.xlu1 %v273_v45, %s5693_s17  ;;  %v3442_v63 = vsel %vm3404_vm13, %v3392_v24, %v2534_v17 }
 0x75c   :  { %2237 = vrot.lane.b32.xlu0 %v10759_v18, %s5697_s12  ;;  %v2234_v54 = vpop.permute.xlu2 %2233  ;;  %v3148_v18 = vsel %vm3104_vm8, %v3098_v59, %v13319_v13  ;;  %v13327_v13 = vld [vmem:[#allocation366_spill] sm:$0xff] }
 0x75d   :  { %v2546_v47 = vpop.permute.xlu1 %2545  ;;  %v3198_v12 = vsel %vm3154_vm7, %v3148_v18, %v10671_v50  ;;  %v10904_v50 = vpop.f32.mrf.mxu0 }
 0x75e   :  { %v2682_v20 = vpop.permute.xlu0 %2681  ;;  %v3248_v56 = vsel %vm3204_vm9, %v3198_v12, %v10707_v43 }
 0x75f   :  { %v3492_v40 = vsel %vm3454_vm14, %v3442_v63, %v2682_v20  ;;  %v3298_v17 = vsel %vm3254_vm10, %v3248_v56, %v10738_v15 }
 0x760   :  { %5135 = vmatmul.msk.f32.gmra.mxu2 %vm3516_vm15, %v3492_v40  ;;  %v3348_v16 = vsel %vm3304_vm11, %v3298_v17, %v10754_v5  ;;  %v2793_v5 = vsel %vm2754_vm0, %v10127_v9, %v13320_v36  ;;  %v13324_v9 = vld [vmem:[#allocation263_spill] sm:$0xff]  ;;  %v289_v17 = vld [vmem:[%s12507_s0 + $0x7d8] sm:$0xff] }
 0x761   :  { %v3398_v43 = vsel %vm3354_vm12, %v3348_v16, %v10766_v53  ;;  %v2843_v53 = vsel %vm2804_vm2, %v2793_v5, %v13321_v2 }
 0x762   :  { %2403 = vrot.lane.b32.xlu2 %v10785_v29, %s5696_s29  ;;  %v3448_v29 = vsel %vm3404_vm13, %v3398_v43, %v2546_v47  ;;  %v2893_v42 = vsel %vm2854_vm1, %v2843_v53, %v13322_v26 }
 0x763   :  { %2539 = vrot.lane.b32.xlu1 %v5673_v39, %s5695_s22  ;;  %v2943_v0 = vsel %vm2904_vm3, %v2893_v42, %v13323_v6  ;;  %v13328_v42 = vld [vmem:[#allocation26_spill] sm:$0xff] }
 0x764   :  { %2249 = vrot.lane.b32.xlu0 %v10771_v51, %s5697_s12  ;;  %v2388_v15 = vpop.permute.xlu2 %2387  ;;  %v288_v51 = vld [vmem:[%s12507_s0 + $0x7d0] sm:$0xff]  ;;  %v2993_v24 = vsel %vm2954_vm5, %v2943_v0, %v13324_v9  ;;  %v275_v0 = vld [vmem:[%s12507_s0 + $0x768] sm:$0xff] }
 0x765   :  { %v2694_v11 = vpop.permute.xlu1 %2693  ;;  %v3043_v63 = vsel %vm3004_vm4, %v2993_v24, %v13325_v61  ;;  %v10935_v47 = vpop.f32.mrf.mxu0  ;;  %v13329_v9 = vld [vmem:[#allocation88_spill] sm:$0xff]  ;;  %v13330_v61 = vld [vmem:[#allocation135_spill] sm:$0xff] }
 0x766   :  { %v10909_v22 = vpop.permute.xlu0 %1919  ;;  %v3498_v41 = vsel %vm3454_vm14, %v3448_v29, %v2694_v11  ;;  %v5675_v29 = vld [vmem:[%s12507_s0 + $0x670] sm:$0xff] }
 0x767   :  { %5141 = vmatmul.msk.f32.gmra.mxu3 %vm3516_vm15, %v3498_v41 }
 0x76a   :  { %1789 = vrot.lane.b32.xlu2 %v5672_v10, %s5692_s16  ;;  %v3093_v10 = vsel %vm3054_vm6, %v3043_v63, %v13326_v28 }
 0x76b   :  { %2551 = vrot.lane.b32.xlu1 %v288_v51, %s5695_s22  ;;  %v3143_v18 = vsel %vm3104_vm8, %v3093_v10, %v13327_v13  ;;  %v13332_v10 = vld [vmem:[#allocation258_spill] sm:$0xff] }
 0x76c   :  { %2687 = vrot.lane.b32.xlu0 %v5674_v34, %s5698_s15  ;;  %v2536_v20 = vpop.permute.xlu2 %2535  ;;  %v3193_v12 = vsel %vm3154_vm7, %v3143_v18, %v10780_v19 }
 0x76d   :  { %v10939_v59 = vpop.permute.xlu1 %1795  ;;  %v3243_v56 = vsel %vm3204_vm9, %v3193_v12, %v10810_v25  ;;  %v10960_v25 = vpop.f32.mrf.mxu0 }
 0x76e   :  { %v2068_v40 = vpop.permute.xlu0 %2067  ;;  %v3293_v16 = vsel %vm3254_vm10, %v3243_v56, %v10844_v31  ;;  %v13333_v56 = vld [vmem:[#allocation193_spill] sm:$0xff] }
 0x76f   :  { %v3343_v43 = vsel %vm3304_vm11, %v3293_v16, %v2234_v54 }
 0x770   :  { %v3393_v19 = vsel %vm3354_vm12, %v3343_v43, %v2388_v15  ;;  %v5677_v15 = vld [vmem:[%s12507_s0 + $0x678] sm:$0xff] }
 0x771   :  { %v3443_v11 = vsel %vm3404_vm13, %v3393_v19, %v2536_v20  ;;  %v13331_v20 = vld [vmem:[#allocation174_spill] sm:$0xff]  ;;  %v13335_v19 = vld [vmem:[#allocation361_spill] sm:$0xff] }
 0x772   :  { %1801 = vrot.lane.b32.xlu2 %v273_v45, %s5692_s16  ;;  %v5676_v45 = vld [vmem:[%s12507_s0 + $0x760] sm:$0xff] }
 0x773   :  { %1937 = vrot.lane.b32.xlu1 %v5675_v29, %s5694_s23 }
 0x774   :  { %2699 = vrot.lane.b32.xlu0 %v289_v17, %s5698_s15  ;;  %v2684_v41 = vpop.permute.xlu2 %2683 }
 0x775   :  { %v1944_v31 = vpop.permute.xlu1 %1943  ;;  %v3493_v54 = vsel %vm3454_vm14, %v3443_v11, %v2684_v41  ;;  %v10974_v5 = vpop.f32.mrf.mxu0  ;;  %v13336_v41 = vld [vmem:[#allocation395_spill] sm:$0xff] }
 0x776   :  { %v2222_v36 = vpop.permute.xlu0 %2221  ;;  %5136 = vmatmul.msk.f32.gmra.mxu2 %vm3516_vm15, %v3493_v54 }
 0x77a   :  { %2239 = vrot.lane.b32.xlu2 %v5673_v39, %s5697_s12  ;;  %v5678_v39 = vld [vmem:[%s12507_s0 + $0x440] sm:$0xff] }
 0x77b   :  { %1949 = vrot.lane.b32.xlu1 %v5676_v45, %s5694_s23  ;;  %v2787_v6 = vsel %vm2754_vm0, %v5678_v39, %v13328_v42  ;;  %v13337_v45 = vld [vmem:[#allocation38_spill] sm:$0xff]  ;;  %v13338_v42 = vld [vmem:[#allocation100_spill] sm:$0xff] }
 0x77c   :  { %2085 = vrot.lane.b32.xlu0 %v5677_v15, %s5693_s17  ;;  %v2696_v2 = vpop.permute.xlu2 %2695  ;;  %v2837_v24 = vsel %vm2804_vm2, %v2787_v6, %v13329_v9  ;;  %v2799_v15 = vsel %vm2754_vm0, %v10120_v52, %v13337_v45  ;;  %v13344_v45 = vld [vmem:[#allocation370_spill] sm:$0xff] }
 0x77d   :  { %v2092_v53 = vpop.permute.xlu1 %2091  ;;  %v2887_v63 = vsel %vm2854_vm1, %v2837_v24, %v13330_v61  ;;  %v10995_v18 = vpop.f32.mrf.mxu0  ;;  %v2849_v6 = vsel %vm2804_vm2, %v2799_v15, %v13338_v42  ;;  %v5679_v24 = vld [vmem:[%s12507_s0 + $0x6f8] sm:$0xff]  ;;  %v13339_v61 = vld [vmem:[#allocation147_spill] sm:$0xff] }
 0x77e   :  { %v2376_v26 = vpop.permute.xlu0 %2375  ;;  %v2937_v28 = vsel %vm2904_vm3, %v2887_v63, %v13331_v20  ;;  %v2899_v63 = vsel %vm2854_vm1, %v2849_v6, %v13339_v61 }
 0x77f   :  { %v2987_v13 = vsel %vm2954_vm5, %v2937_v28, %v13332_v10 }
 0x780   :  { %v3037_v16 = vsel %vm3004_vm4, %v2987_v13, %v13333_v56 }
 0x782   :  { %2251 = vrot.lane.b32.xlu2 %v288_v51, %s5697_s12  ;;  %v13334_v51 = vld [vmem:[#allocation302_spill] sm:$0xff] }
 0x783   :  { %2393 = vrot.lane.b32.xlu1 %v5674_v34, %s5696_s29  ;;  %v3087_v34 = vsel %vm3054_vm6, %v3037_v16, %v13334_v51 }
 0x784   :  { %2097 = vrot.lane.b32.xlu0 %v275_v0, %s5693_s17  ;;  %v10997_v12 = vpop.permute.xlu2 %2081  ;;  %v3137_v11 = vsel %vm3104_vm8, %v3087_v34, %v13335_v19  ;;  %v13342_v34 = vld [vmem:[#allocation215_spill] sm:$0xff] }
 0x785   :  { %v2246_v43 = vpop.permute.xlu1 %2245  ;;  %v3187_v54 = vsel %vm3154_vm7, %v3137_v11, %v13336_v41  ;;  %v11029_v28 = vpop.f32.mrf.mxu0  ;;  %v13343_v41 = vld [vmem:[#allocation314_spill] sm:$0xff] }
 0x786   :  { %v2524_v29 = vpop.permute.xlu0 %2523  ;;  %v3237_v39 = vsel %vm3204_vm9, %v3187_v54, %v10909_v22  ;;  %v5680_v22 = vld [vmem:[%s12507_s0 + $0x6f0] sm:$0xff] }
 0x787   :  { %v3287_v9 = vsel %vm3254_vm10, %v3237_v39, %v2068_v40  ;;  %v13340_v40 = vld [vmem:[#allocation194_spill] sm:$0xff] }
 0x788   :  { %v3337_v52 = vsel %vm3304_vm11, %v3287_v9, %v2222_v36  ;;  %v2949_v20 = vsel %vm2904_vm3, %v2899_v63, %v13340_v40 }
 0x789   :  { %v3387_v10 = vsel %vm3354_vm12, %v3337_v52, %v2376_v26  ;;  %v291_v26 = vld [vmem:[%s12507_s0 + $0x7e8] sm:$0xff] }
 0x78a   :  { %2689 = vrot.lane.b32.xlu2 %v5679_v24, %s5698_s15  ;;  %v3437_v36 = vsel %vm3404_vm13, %v3387_v10, %v2524_v29  ;;  %v290_v29 = vld [vmem:[%s12507_s0 + $0x7e0] sm:$0xff]  ;;  %v293_v10 = vld [vmem:[%s12507_s0 + $0x7f8] sm:$0xff] }
 0x78b   :  { %2405 = vrot.lane.b32.xlu1 %v289_v17, %s5696_s29  ;;  %v13341_v17 = vld [vmem:[#allocation267_spill] sm:$0xff] }
 0x78c   :  { %2541 = vrot.lane.b32.xlu0 %v5680_v22, %s5695_s22  ;;  %v11032_v13 = vpop.permute.xlu2 %2093  ;;  %v2999_v56 = vsel %vm2954_vm5, %v2949_v20, %v13341_v17  ;;  %v292_v17 = vld [vmem:[%s12507_s0 + $0x7f0] sm:$0xff] }
 0x78d   :  { %v2400_v16 = vpop.permute.xlu1 %2399  ;;  %v3049_v19 = vsel %vm3004_vm4, %v2999_v56, %v13342_v34  ;;  %v11058_v9 = vpop.f32.mrf.mxu0  ;;  %v11091_v56 = vld [vmem:[%s12509_s2] ss:$0 sm:$0xff] }
 0x78e   :  { %v2672_v51 = vpop.permute.xlu0 %2671  ;;  %v3099_v54 = vsel %vm3054_vm6, %v3049_v19, %v13343_v41  ;;  %v3703_v34 = vadd.f32 %v11091_v56, %v9826_v44  ;;  %v3685_v19 = vadd.f32 %v11091_v56, %v9649_v27  ;;  %v13347_v27 = vld [vmem:[#allocation131_spill] sm:$0xff] }
 0x78f   :  { %v3487_v11 = vsel %vm3454_vm14, %v3437_v36, %v2672_v51  ;;  %v3149_v15 = vsel %vm3104_vm8, %v3099_v54, %v13344_v45  ;;  %v11095_v36 = vadd.f32 %v11091_v56, %v10041_v33  ;;  %v11103_v51 = vadd.f32 %v11091_v56, %v9676_v55  ;;  %v13345_v33 = vld [vmem:[#allocation46_spill] sm:$0xff]  ;;  %v13346_v54 = vld [vmem:[#allocation93_spill] sm:$0xff] }
 0x790   :  { %5130 = vmatmul.msk.f32.gmra.mxu0 %vm3516_vm15, %v3487_v11  ;;  %v3199_v39 = vsel %vm3154_vm7, %v3149_v15, %v10939_v59 }
 0x791   :  { %v3249_v42 = vsel %vm3204_vm9, %v3199_v39, %v1944_v31  ;;  %v3842_v11 = vmax.f32 %v11095_v36, 0.0  ;;  %v3830_v39 = vmax.f32 %v11103_v51, 0.0 }
 0x792   :  { %1803 = vrot.lane.b32.xlu2 %v275_v0, %s5692_s16  ;;  %v3299_v6 = vsel %vm3254_vm10, %v3249_v42, %v2092_v53  ;;  %v277_v53 = vld [vmem:[%s12507_s0 + $0x778] sm:$0xff]  ;;  %v3835_v42 = vmax.f32 %v3703_v34, 0.0 }
 0x793   :  { %2701 = vrot.lane.b32.xlu1 %v291_v26, %s5698_s15  ;;  %v3349_v24 = vsel %vm3304_vm11, %v3299_v6, %v2246_v43  ;;  %v276_v43 = vld [vmem:[%s12507_s0 + $0x770] sm:$0xff] }
 0x794   :  { %2553 = vrot.lane.b32.xlu0 %v290_v29, %s5695_s22  ;;  %v11061_v61 = vpop.permute.xlu2 %2537  ;;  %v3399_v63 = vsel %vm3354_vm12, %v3349_v24, %v2400_v16  ;;  %v11099_v16 = vadd.f32 %v11091_v56, %v10065_v1  ;;  %v2794_v1 = vsel %vm2754_vm0, %v10338_v57, %v13345_v33  ;;  %v13348_v57 = vld [vmem:[#allocation208_spill] sm:$0xff]  ;;  %v3829_v24 = vmax.f32 %v3685_v19, 0.0  ;;  %v13352_v19 = vld [vmem:[#allocation321_spill] sm:$0xff] }
 0x795   :  { %v1786_v52 = vpop.permute.xlu1 %1785  ;;  %v11076_v22 = vpop.f32.mrf.mxu0  ;;  %v2844_v45 = vsel %vm2804_vm2, %v2794_v1, %v13346_v54  ;;  %v11146_v1 = vadd.f32 %v11091_v56, %v9735_v30 }
 0x796   :  { %v2548_v59 = vpop.permute.xlu0 %2547  ;;  %v3843_v55 = vmax.f32 %v11099_v16, 0.0  ;;  %v13363_v16 = vmax.f32 %v10257_v48, 0.0  ;;  %v13367_v48 = vld [vmem:[#allocation145_spill] sm:$0xff] }
 0x797   :  { %v3449_v31 = vsel %vm3404_vm13, %v3399_v63, %v2548_v59  ;;  %v13349_v63 = vld [vmem:[#allocation262_spill] sm:$0xff] }
 0x798   :  { %v3499_v0 = vsel %vm3454_vm14, %v3449_v31, %v2696_v2  ;;  %v5306_v31 = vpack.i.bf16 %v3830_v39, %v3842_v11 }
 0x799   :  { %5142 = vmatmul.msk.f32.gmra.mxu3 %vm3516_vm15, %v3499_v0  ;;  %v5311_v0 = vpack.i.bf16 %v3835_v42, %v3843_v55 }
 0x79a   :  { %2253 = vrot.lane.b32.xlu2 %v290_v29, %s5697_s12 }
 0x79b   :  { %2099 = vrot.lane.b32.xlu1 %v277_v53, %s5693_s17  ;;  %v3730_v53 = vadd.f32 %v11091_v56, %v10101_v8  ;;  %s5699_s17 = smov 96   ;;  %v13353_v8 = vld [vmem:[#allocation365_spill] sm:$0xff] }
 0x79c   :  { %1951 = vrot.lane.b32.xlu0 %v276_v43, %s5694_s23  ;;  %v11078_v40 = vpop.permute.xlu2 %2549  ;;  %v13350_v43 = vld [vmem:[#allocation187_spill] sm:$0xff]  ;;  %s5700_s23 = smov 64  }
 0x79d   :  { %v11080_v2 = vpop.permute.xlu1 %1797  ;;  %v11117_v41 = vpop.f32.mrf.mxu0  ;;  %v11158_v30 = vmax.f32 %v3730_v53, 0.0 }
 0x79e   :  { %v1934_v20 = vpop.permute.xlu0 %1933 }
 0x7a2   :  { %2703 = vrot.lane.b32.xlu2 %v293_v10, %s5698_s15 }
 0x7a3   :  { %2555 = vrot.lane.b32.xlu1 %v292_v17, %s5695_s22  ;;  %v13351_v17 = vmax.f32 %v10135_v23, 0.0  ;;  %v3691_v23 = vadd.f32 %v11091_v56, %v9708_v46 }
 0x7a4   :  { %2407 = vrot.lane.b32.xlu0 %v291_v26, %s5696_s29  ;;  %v11119_v44 = vpop.permute.xlu2 %1935  ;;  %v2894_v26 = vsel %vm2854_vm1, %v2844_v45, %v13347_v27  ;;  %v13354_v45 = vld [vmem:[#allocation52_spill] sm:$0xff] }
 0x7a5   :  { %v2236_v15 = vpop.permute.xlu1 %2235  ;;  %v2944_v6 = vsel %vm2904_vm3, %v2894_v26, %v13348_v57  ;;  %v5301_v34 = vpack.i.bf16 %v3829_v24, %v13351_v17  ;;  %v2800_v27 = vsel %vm2754_vm0, %v10358_v38, %v13354_v45  ;;  %v3768_v26 = vpop.f32.mrf.mxu0  ;;  %v13357_v38 = vld [vmem:[#allocation219_spill] sm:$0xff]  ;;  %v13358_v17 = vld [vmem:[#allocation266_spill] sm:$0xff] }
 0x7a6   :  { %v1946_v29 = vpop.permute.xlu0 %1945  ;;  %v2994_v59 = vsel %vm2954_vm5, %v2944_v6, %v13349_v63  ;;  %v13355_v6 = vld [vmem:[#allocation99_spill] sm:$0xff] }
 0x7a7   :  { %v3044_v10 = vsel %vm3004_vm4, %v2994_v59, %v13350_v43  ;;  %v2850_v24 = vsel %vm2804_vm2, %v2800_v27, %v13355_v6  ;;  %v3832_v43 = vmax.f32 %v11146_v1, 0.0 }
 0x7a8   :  { %v3094_v33 = vsel %vm3054_vm6, %v3044_v10, %v13352_v19  ;;  %v3831_v10 = vmax.f32 %v3691_v23, 0.0  ;;  %v3721_v23 = vadd.f32 %v11091_v56, %v10011_v14  ;;  %v3697_v14 = vadd.f32 %v11091_v56, %v9764_v3 }
 0x7a9   :  { %v3144_v54 = vsel %vm3104_vm8, %v3094_v33, %v13353_v8  ;;  %v13359_v33 = vld [vmem:[#allocation198_spill] sm:$0xff] }
 0x7aa   :  { %5312 = vrot.lane.b32.xlu2 %v5311_v0, %s5699_s17  ;;  %v3194_v42 = vsel %vm3154_vm7, %v3144_v54, %v1786_v52  ;;  %v13360_v54 = vmax.f32 %v10241_v7, 0.0  ;;  %v13362_v7 = vld [vmem:[#allocation369_spill] sm:$0xff] }
 0x7ab   :  { %5307 = vrot.lane.b32.xlu1 %v5306_v31, %s5700_s23  ;;  %v3244_v63 = vsel %vm3204_vm9, %v3194_v42, %v1934_v20  ;;  %v13356_v31 = vld [vmem:[#allocation137_spill] sm:$0xff]  ;;  %v3736_v20 = vadd.f32 %v11091_v56, %v10213_v32  ;;  %v3700_v32 = vadd.f32 %v11091_v56, %v9794_v37 }
 0x7ac   :  { %5302 = vrot.lane.b32.xlu0 %v5301_v34, %s5691_s26  ;;  %v11161_v57 = vpop.permute.xlu2 %1947  ;;  %v2900_v0 = vsel %vm2854_vm1, %v2850_v24, %v13356_v31  ;;  %v5321_v34 = vpack.i.bf16 %v3832_v43, %v11158_v30  ;;  %v3294_v19 = vsel %vm3254_vm10, %v3244_v63, %v10997_v12  ;;  %v5316_v45 = vpack.i.bf16 %v3831_v10, %v13360_v54  ;;  %v13361_v42 = vld [vmem:[#allocation325_spill] sm:$0xff] }
 0x7ad   :  { %v2248_v59 = vpop.permute.xlu1 %2247  ;;  %v2950_v53 = vsel %vm2904_vm3, %v2900_v0, %v13357_v38  ;;  %v3344_v27 = vsel %vm3304_vm11, %v3294_v19, %v2236_v15  ;;  %v11200_v15 = vmax.f32 %v3736_v20, 0.0  ;;  %v3771_v63 = vpop.f32.mrf.mxu0  ;;  %v3841_v31 = vmax.f32 %v3721_v23, 0.0 }
 0x7ae   :  { %v2390_v46 = vpop.permute.xlu0 %2389  ;;  %v3000_v52 = vsel %vm2954_vm5, %v2950_v53, %v13358_v17  ;;  %v3834_v10 = vmax.f32 %v3700_v32, 0.0  ;;  %v3833_v17 = vmax.f32 %v3697_v14, 0.0 }
 0x7af   :  { %v3050_v8 = vsel %vm3004_vm4, %v3000_v52, %v13359_v33  ;;  %v3394_v24 = vsel %vm3354_vm12, %v3344_v27, %v2390_v46  ;;  %v3745_v33 = vadd.f32 %v11091_v56, %v10935_v47 }
 0x7b0   :  { %v3100_v6 = vsel %vm3054_vm6, %v3050_v8, %v13361_v42  ;;  %v3444_v53 = vsel %vm3404_vm13, %v3394_v24, %v11061_v61  ;;  %v5336_v52 = vpack.i.bf16 %v3834_v10, %v11200_v15  ;;  %v5331_v20 = vpack.i.bf16 %v3833_v17, %v3841_v31 }
 0x7b1   :  { %v3150_v12 = vsel %vm3104_vm8, %v3100_v6, %v13362_v7  ;;  %v11220_v61 = vadd.f32 %v11091_v56, %v10974_v5  ;;  %v11227_v8 = vadd.f32 %v11091_v56, %v11117_v41  ;;  %v3849_v23 = vmax.f32 %v3745_v33, 0.0  ;;  %v3780_v7 = vpop.f32.mrf.mxu2 }
 0x7b2   :  { %5327 = vrot.lane.b32.xlu2 %v10171_v4, %s5699_s17  ;;  %v3200_v37 = vsel %vm3154_vm7, %v3150_v12, %v11080_v2  ;;  %v11213_v2 = vadd.f32 %v11091_v56, %v3768_v26  ;;  %v3763_v42 = vadd.f32 %v11091_v56, %v11076_v22  ;;  %v11256_v24 = vadd.f32 %v11091_v56, %v11029_v28 }
 0x7b3   :  { %5322 = vrot.lane.b32.xlu1 %v5321_v34, %s5700_s23  ;;  %v3250_v4 = vsel %vm3204_vm9, %v3200_v37, %v1946_v29  ;;  %v3772_v34 = vadd.f32 %v11091_v56, %v3771_v63  ;;  %v3851_v47 = vmax.f32 %v11220_v61, 0.0  ;;  %v13364_v28 = vmax.f32 %v10148_v58, 0.0  ;;  %v13368_v58 = vld [vmem:[#allocation207_spill] sm:$0xff] }
 0x7b4   :  { %5317 = vrot.lane.b32.xlu0 %v5316_v45, %s5691_s26  ;;  %v11204_v46 = vpop.permute.xlu2 %2391  ;;  %v3300_v29 = vsel %vm3254_vm10, %v3250_v4, %v11032_v13  ;;  %v3857_v5 = vmax.f32 %v11213_v2, 0.0  ;;  %v3855_v22 = vmax.f32 %v3763_v42, 0.0  ;;  %v3853_v12 = vmax.f32 %v11256_v24, 0.0  ;;  %v4148_v2 = vld [vmem:[%s12510_s3 + $0xe0] sm:$0xff] }
 0x7b5   :  { %v2686_v0 = vpop.permute.xlu1 %2685  ;;  %v3350_v19 = vsel %vm3304_vm11, %v3300_v29, %v2248_v59  ;;  %v11235_v13 = vmax.f32 %v3772_v34, 0.0  ;;  %v13369_v29 = vld [vmem:[#allocation253_spill] sm:$0xff] }
 0x7b6   :  { %v2402_v38 = vpop.permute.xlu0 %2401  ;;  %v3494_v3 = vsel %vm3454_vm14, %v3444_v53, %v2686_v0  ;;  %v5356_v6 = vpack.i.bf16 %v3849_v23, %v3857_v5  ;;  %v5361_v31 = vpack.i.bf16 %v13364_v28, %v3853_v12  ;;  %v13365_v0 = vld [vmem:[#allocation44_spill] sm:$0xff]  ;;  %v13366_v53 = vld [vmem:[#allocation83_spill] sm:$0xff] }
 0x7b7   :  { %5137 = vmatmul.msk.f32.gmra.mxu2 %vm3516_vm15, %v3494_v3  ;;  %v3400_v26 = vsel %vm3354_vm12, %v3350_v19, %v2402_v38  ;;  %v2795_v38 = vsel %vm2754_vm0, %v10547_v60, %v13365_v0  ;;  %v13370_v19 = vld [vmem:[#allocation203_spill] sm:$0xff]  ;;  %v13371_v60 = vld [vmem:[#allocation320_spill] sm:$0xff]  ;;  %v13376_v0 = vld [vmem:[#allocation218_spill] sm:$0xff] }
 0x7b8   :  { %v3450_v45 = vsel %vm3404_vm13, %v3400_v26, %v11078_v40  ;;  %v5346_v40 = vpack.i.bf16 %v3843_v55, %v3851_v47  ;;  %v5371_v55 = vpack.i.bf16 %v13363_v16, %v3855_v22  ;;  %v2845_v10 = vsel %vm2804_vm2, %v2795_v38, %v13366_v53  ;;  %v13375_v28 = vld [vmem:[#allocation151_spill] sm:$0xff] }
 0x7b9   :  { %v11268_v4 = vpop.f32.mrf.mxu2  ;;  %v13377_v53 = vld [vmem:[#allocation259_spill] sm:$0xff] }
 0x7ba   :  { %5342 = vrot.lane.b32.xlu2 %v10283_v49, %s5699_s17  ;;  %v3856_v49 = vmax.f32 %v11227_v8, 0.0 }
 0x7bb   :  { %5337 = vrot.lane.b32.xlu1 %v5336_v52, %s5700_s23  ;;  %v2895_v52 = vsel %vm2854_vm1, %v2845_v10, %v13367_v48 }
 0x7bc   :  { %5332 = vrot.lane.b32.xlu0 %v5331_v20, %s5691_s26  ;;  %v11237_v59 = vpop.permute.xlu2 %2403  ;;  %v5351_v32 = vpack.i.bf16 %v11235_v13, %v3856_v49  ;;  %v2945_v34 = vsel %vm2904_vm3, %v2895_v52, %v13368_v58  ;;  %v13378_v52 = vld [vmem:[#allocation214_spill] sm:$0xff] }
 0x7bd   :  { %v2698_v54 = vpop.permute.xlu1 %2697  ;;  %v2995_v20 = vsel %vm2954_vm5, %v2945_v34, %v13369_v29  ;;  %v11313_v34 = vadd.f32 %v11091_v56, %v3780_v7 }
 0x7be   :  { %v1788_v41 = vpop.permute.xlu0 %1787  ;;  %v3500_v27 = vsel %vm3454_vm14, %v3450_v45, %v2698_v54  ;;  %v3045_v33 = vsel %vm3004_vm4, %v2995_v20, %v13370_v19  ;;  %v13372_v45 = vld [vmem:[#allocation356_spill] sm:$0xff] }
 0x7bf   :  { %5143 = vmatmul.msk.f32.gmra.mxu3 %vm3516_vm15, %v3500_v27  ;;  %v3095_v26 = vsel %vm3054_vm6, %v3045_v33, %v13371_v60  ;;  %v13373_v27 = vld [vmem:[#allocation50_spill] sm:$0xff]  ;;  %v13379_v19 = vld [vmem:[#allocation324_spill] sm:$0xff] }
 0x7c0   :  { %v3145_v23 = vsel %vm3104_vm8, %v3095_v26, %v13372_v45  ;;  %v2801_v42 = vsel %vm2754_vm0, %v10536_v21, %v13373_v27  ;;  %v13380_v26 = vld [vmem:[#allocation362_spill] sm:$0xff]  ;;  %v3861_v45 = vmax.f32 %v11313_v34, 0.0 }
 0x7c1   :  { %v3786_v54 = vpop.f32.mrf.mxu2 }
 0x7c2   :  { %5357 = vrot.lane.b32.xlu2 %v5356_v6, %s5699_s17  ;;  %v3195_v6 = vsel %vm3154_vm7, %v3145_v23, %v1788_v41 }
 0x7c3   :  { %5352 = vrot.lane.b32.xlu1 %v5351_v32, %s5700_s23  ;;  %v3245_v21 = vsel %vm3204_vm9, %v3195_v6, %v11119_v44 }
 0x7c4   :  { %5347 = vrot.lane.b32.xlu0 %v5346_v40, %s5691_s26  ;;  %v11262_v63 = vpop.permute.xlu2 %1789  ;;  %v13374_v40 = vld [vmem:[#allocation89_spill] sm:$0xff] }
 0x7c5   :  { %v2084_v14 = vpop.permute.xlu1 %2083  ;;  %v2851_v24 = vsel %vm2804_vm2, %v2801_v42, %v13374_v40  ;;  %v5381_v40 = vpack.i.bf16 %v3853_v12, %v3861_v45 }
 0x7c6   :  { %v1800_v37 = vpop.permute.xlu0 %1799  ;;  %v3295_v48 = vsel %vm3254_vm10, %v3245_v21, %v2084_v14 }
 0x7c9   :  { %v11320_v33 = vpop.f32.mrf.mxu2 }
 0x7ca   :  { %5372 = vrot.lane.b32.xlu2 %v5371_v55, %s5691_s26 }
 0x7cc   :  { %5362 = vrot.lane.b32.xlu0 %v5361_v31, %s5691_s26  ;;  %v11283_v61 = vpop.permute.xlu2 %1801  ;;  %v2901_v31 = vsel %vm2854_vm1, %v2851_v24, %v13375_v28 }
 0x7cd   :  { %v2096_v3 = vpop.permute.xlu1 %2095  ;;  %v2951_v38 = vsel %vm2904_vm3, %v2901_v31, %v13376_v0 }
 0x7ce   :  { %v2238_v17 = vpop.permute.xlu0 %2237  ;;  %v3001_v10 = vsel %vm2954_vm5, %v2951_v38, %v13377_v53  ;;  %v4134_v53 = vld [vmem:[%s12510_s3 + $0x70] sm:$0xff] }
 0x7cf   :  { %v3051_v58 = vsel %vm3004_vm4, %v3001_v10, %v13378_v52  ;;  %v3345_v29 = vsel %vm3304_vm11, %v3295_v48, %v2238_v17  ;;  %v4150_v10 = vld [vmem:[%s12510_s3 + $0xf0] sm:$0xff]  ;;  %v4133_v48 = vld [vmem:[%s12510_s3 + $0x68] sm:$0xff] }
 0x7d0   :  { %v3101_v44 = vsel %vm3054_vm6, %v3051_v58, %v13379_v19  ;;  %v3395_v17 = vsel %vm3354_vm12, %v3345_v29, %v11204_v46  ;;  %v4151_v46 = vld [vmem:[%s12510_s3 + $0xf8] sm:$0xff]  ;;  %v4149_v52 = vld [vmem:[%s12510_s3 + $0xe8] sm:$0xff]  ;;  %v4132_v58 = vld [vmem:[%s12510_s3 + $0x60] sm:$0xff]  ;;  %v3787_v29 = vadd.f32 %v11091_v56, %v3786_v54 }
 0x7d1   :  { %v3151_v14 = vsel %vm3104_vm8, %v3101_v44, %v13380_v26  ;;  %4223 = vmatpush.msrb.mxu2 %v4151_v46  ;;  %v4131_v19 = vld [vmem:[%s12510_s3 + $0x58] sm:$0xff] }
 0x7d2   :  { %v3201_v7 = vsel %vm3154_vm7, %v3151_v14, %v1800_v37  ;;  %v4135_v37 = vld [vmem:[%s12510_s3 + $0x78] sm:$0xff]  ;;  %v3863_v44 = vmax.f32 %v3787_v29, 0.0 }
 0x7d3   :  { %v3251_v6 = vsel %vm3204_vm9, %v3201_v7, %v11161_v57  ;;  %4179 = vmatpush.msra.mxu1 %v4135_v37  ;;  %v11346_v57 = vpop.f32.mrf.mxu3  ;;  %4224 = vmatpush.msrb.mxu2 %v4150_v10  ;;  %v4147_v54 = vld [vmem:[%s12510_s3 + $0xd8] sm:$0xff] }
 0x7d4   :  { %v3774_v32 = vpop.f32.mrf.mxu0  ;;  %v11322_v60 = vpop.permute.xlu2 %2239  ;;  %v13382_v37 = vld [vmem:[#allocation97_spill] sm:$0xff] }
 0x7d5   :  { %v11298_v22 = vadd.f32 %v11091_v56, %v3774_v32  ;;  %v2540_v16 = vpop.permute.xlu1 %2539  ;;  %v3301_v32 = vsel %vm3254_vm10, %v3251_v6, %v2096_v3  ;;  %4180 = vmatpush.msra.mxu1 %v4134_v53  ;;  %4225 = vmatpush.msrb.mxu2 %v4149_v52  ;;  %v13385_v10 = vld [vmem:[#allocation265_spill] sm:$0xff] }
 0x7d6   :  { %v2250_v55 = vpop.permute.xlu0 %2249  ;;  %v4143_v52 = vld [vmem:[%s12510_s3 + $0xb8] sm:$0xff] }
 0x7d7   :  { %v3859_v41 = vmax.f32 %v11298_v22, 0.0  ;;  %v3351_v24 = vsel %vm3304_vm11, %v3301_v32, %v2250_v55  ;;  %4181 = vmatpush.msra.mxu1 %v4133_v48  ;;  %4226 = vmatpush.msrb.mxu2 %v4148_v2  ;;  %v4127_v48 = vld [vmem:[%s12510_s3 + $0x38] sm:$0xff]  ;;  %v13387_v2 = vld [vmem:[#allocation311_spill] sm:$0xff] }
 0x7d8   :  { %v3401_v31 = vsel %vm3354_vm12, %v3351_v24, %v11237_v59  ;;  %v4145_v24 = vld [vmem:[%s12510_s3 + $0xc8] sm:$0xff] }
 0x7d9   :  { %v5366_v20 = vpack.i.bf16 %v3851_v47, %v3859_v41  ;;  %v3445_v47 = vsel %vm3404_vm13, %v3395_v17, %v2540_v16  ;;  %4182 = vmatpush.msra.mxu1 %v4132_v58  ;;  %4227 = vmatpush.msrb.mxu2 %v4147_v54  ;;  %v13386_v58 = vld [vmem:[#allocation210_spill] sm:$0xff]  ;;  %v13388_v54 = vld [vmem:[#allocation368_spill] sm:$0xff] }
 0x7db   :  { %5367 = vrot.lane.b32.xlu1 %v5366_v20, %s5699_s17  ;;  %4183 = vmatpush.msra.mxu1 %v4131_v19 }
 0x7dc   :  { %v11352_v28 = vpop.permute.xlu2 %2251 }
 0x7dd   :  { %v2552_v23 = vpop.permute.xlu1 %2551 }
 0x7de   :  { %v2688_v27 = vpop.permute.xlu0 %2687  ;;  %v3451_v0 = vsel %vm3404_vm13, %v3401_v31, %v2552_v23  ;;  %v4146_v23 = vld [vmem:[%s12510_s3 + $0xd0] sm:$0xff] }
 0x7df   :  { %v3495_v42 = vsel %vm3454_vm14, %v3445_v47, %v2688_v27  ;;  %v4130_v47 = vld [vmem:[%s12510_s3 + $0x50] sm:$0xff]  ;;  %v5682_v27 = vld [vmem:[%s12507_s0 + $0x560] sm:$0xff]  ;;  %4228 = vmatpush.msrb.mxu2 %v4146_v23  ;;  %v4125_v23 = vld [vmem:[%s12510_s3 + $0x28] sm:$0xff] }
 0x7e0   :  { %5138 = vmatmul.msk.f32.gmra.mxu2 %vm3516_vm15, %v3495_v42  ;;  %v13381_v42 = vld [vmem:[#allocation35_spill] sm:$0xff]  ;;  %4184 = vmatpush.msra.mxu1 %v4130_v47  ;;  %v4142_v47 = vld [vmem:[%s12510_s3 + $0xb0] sm:$0xff] }
 0x7e1   :  { %v2796_v6 = vsel %vm2754_vm0, %v5682_v27, %v13381_v42  ;;  %4229 = vmatpush.msrb.mxu2 %v4145_v24  ;;  %v13389_v27 = vld [vmem:[#allocation41_spill] sm:$0xff] }
 0x7e2   :  { %v2846_v46 = vsel %vm2804_vm2, %v2796_v6, %v13382_v37  ;;  %v2802_v42 = vsel %vm2754_vm0, %v10733_v35, %v13389_v27  ;;  %v13390_v37 = vld [vmem:[#allocation103_spill] sm:$0xff]  ;;  %v4122_v27 = vld [vmem:[%s12510_s3 + $0x10] sm:$0xff] }
 0x7e3   :  { %v3792_v16 = vpop.f32.mrf.mxu2  ;;  %5382 = vrot.lane.b32.xlu1 %v5381_v40, %s5699_s17  ;;  %v4129_v40 = vld [vmem:[%s12510_s3 + $0x48] sm:$0xff] }
 0x7e4   :  { %v11349_v3 = vadd.f32 %v11091_v56, %v3792_v16  ;;  %v11395_v17 = vpop.permute.xlu2 %2689  ;;  %v13383_v16 = vld [vmem:[#allocation144_spill] sm:$0xff]  ;;  %4185 = vmatpush.msra.mxu1 %v4129_v40 }
 0x7e5   :  { %v11358_v55 = vpop.permute.xlu1 %1937  ;;  %v2896_v31 = vsel %vm2854_vm1, %v2846_v46, %v13383_v16  ;;  %v2852_v46 = vsel %vm2804_vm2, %v2802_v42, %v13390_v37  ;;  %v13391_v16 = vld [vmem:[#allocation150_spill] sm:$0xff]  ;;  %v4138_v42 = vld [vmem:[%s12510_s3 + $0x90] sm:$0xff] }
 0x7e6   :  { %v3865_v12 = vmax.f32 %v11349_v3, 0.0  ;;  %v2700_v38 = vpop.permute.xlu0 %2699  ;;  %v2902_v35 = vsel %vm2854_vm1, %v2852_v46, %v13391_v16  ;;  %v4121_v46 = vld [vmem:[%s12510_s3 + $0x8] sm:$0xff] }
 0x7e7   :  { %v3501_v21 = vsel %vm3454_vm14, %v3451_v0, %v2700_v38  ;;  %v4128_v0 = vld [vmem:[%s12510_s3 + $0x40] sm:$0xff] }
 0x7e8   :  { %v5386_v59 = vpack.i.bf16 %v3857_v5, %v3865_v12  ;;  %5144 = vmatmul.msk.f32.gmra.mxu3 %vm3516_vm15, %v3501_v21  ;;  %v4144_v38 = vld [vmem:[%s12510_s3 + $0xc0] sm:$0xff]  ;;  %v13384_v21 = vld [vmem:[#allocation189_spill] sm:$0xff]  ;;  %4186 = vmatpush.msra.mxu1 %v4128_v0 }
 0x7e9   :  { %v2946_v53 = vsel %vm2904_vm3, %v2896_v31, %v13384_v21  ;;  %4230 = vmatpush.msrb.mxu2 %v4144_v38  ;;  %v4140_v0 = vld [vmem:[%s12510_s3 + $0xa0] sm:$0xff]  ;;  %v13392_v38 = vld [vmem:[#allocation200_spill] sm:$0xff] }
 0x7ea   :  { %5387 = vrot.lane.b32.xlu2 %v5386_v59, %s5691_s26  ;;  %v3810_v5 = vpop.f32.mrf.mxu3  ;;  %v2996_v59 = vsel %vm2954_vm5, %v2946_v53, %v13385_v10  ;;  %4187 = vmatpush.msra.mxu1 %v4127_v48  ;;  %v2952_v21 = vsel %vm2904_vm3, %v2902_v35, %v13392_v38  ;;  %v13393_v53 = vld [vmem:[#allocation270_spill] sm:$0xff]  ;;  %v13394_v10 = vld [vmem:[#allocation221_spill] sm:$0xff] }
 0x7eb   :  { %v3811_v20 = vadd.f32 %v11091_v56, %v3810_v5  ;;  %v3046_v29 = vsel %vm3004_vm4, %v2996_v59, %v13386_v58  ;;  %4231 = vmatpush.msrb.mxu2 %v4143_v52  ;;  %v4123_v52 = vld [vmem:[%s12510_s3 + $0x18] sm:$0xff]  ;;  %v4136_v35 = vld [vmem:[%s12510_s3 + $0x80] sm:$0xff] }
 0x7ec   :  { %v3096_v5 = vsel %vm3054_vm6, %v3046_v29, %v13387_v2  ;;  %v11462_v24 = vpop.permute.xlu2 %1803  ;;  %v4139_v58 = vld [vmem:[%s12510_s3 + $0x98] sm:$0xff]  ;;  %v4154_v29 = vld [vmem:[%s12510_s3 + $0x110] sm:$0xff] }
 0x7ed   :  { %v3871_v26 = vmax.f32 %v3811_v20, 0.0  ;;  %v11393_v14 = vpop.permute.xlu1 %1949  ;;  %4232 = vmatpush.msrb.mxu2 %v4142_v47  ;;  %v13395_v2 = vld [vmem:[#allocation317_spill] sm:$0xff] }
 0x7ee   :  { %v2086_v7 = vpop.permute.xlu0 %2085 }
 0x7ef   :  { %v5396_v32 = vpack.i.bf16 %v3863_v44, %v3871_v26  ;;  %v3146_v44 = vsel %vm3104_vm8, %v3096_v5, %v13388_v54  ;;  %v4126_v26 = vld [vmem:[%s12510_s3 + $0x30] sm:$0xff] }
 0x7f0   :  { %v3196_v6 = vsel %vm3154_vm7, %v3146_v44, %v11262_v63  ;;  %4188 = vmatpush.msra.mxu1 %v4126_v26  ;;  %v4124_v63 = vld [vmem:[%s12510_s3 + $0x20] sm:$0xff]  ;;  %v13396_v26 = vld [vmem:[#allocation373_spill] sm:$0xff] }
 0x7f1   :  { %5397 = vrot.lane.b32.xlu1 %v5396_v32, %s5699_s17  ;;  %v4141_v32 = vld [vmem:[%s12510_s3 + $0xa8] sm:$0xff]  ;;  %v3246_v40 = vsel %vm3204_vm9, %v3196_v6, %v11358_v55  ;;  %v4155_v55 = vld [vmem:[%s12510_s3 + $0x118] sm:$0xff] }
 0x7f2   :  { %v3296_v31 = vsel %vm3254_vm10, %v3246_v40, %v2086_v7  ;;  %4189 = vmatpush.msra.mxu1 %v4125_v23  ;;  %4233 = vmatpush.msrb.mxu2 %v4141_v32  ;;  %v3002_v7 = vsel %vm2954_vm5, %v2952_v21, %v13393_v53  ;;  %v4137_v40 = vld [vmem:[%s12510_s3 + $0x88] sm:$0xff]  ;;  %v13398_v53 = vld [vmem:[#allocation102_spill] sm:$0xff] }
 0x7f3   :  { %4279 = vmatpush.msrb.mxu3 %v4155_v55  ;;  %v3052_v59 = vsel %vm3004_vm4, %v3002_v7, %v13394_v10  ;;  %v3346_v48 = vsel %vm3304_vm11, %v3296_v31, %v11322_v60  ;;  %v13397_v55 = vld [vmem:[#allocation55_spill] sm:$0xff] }
 0x7f4   :  { %4190 = vmatpush.msra.mxu1 %v4124_v63  ;;  %4234 = vmatpush.msrb.mxu2 %v4140_v0  ;;  %v3102_v5 = vsel %vm3054_vm6, %v3052_v59, %v13395_v2  ;;  %v2254_v16 = vpop.permute.xlu2 %2253  ;;  %v2803_v38 = vsel %vm2754_vm0, %v10799_v62, %v13397_v55  ;;  %v13399_v59 = vld [vmem:[#allocation140_spill] sm:$0xff]  ;;  %v3808_v55 = vadd.f32 %v11091_v56, %v11346_v57  ;;  %vm4083_vm0 = vcmask 785408  }
 0x7f5   :  { %v2394_v20 = vpop.permute.xlu1 %2393  ;;  %4280 = vmatpush.msrb.mxu3 %v4154_v29  ;;  %v3152_v47 = vsel %vm3104_vm8, %v3102_v5, %v13396_v26  ;;  %v2853_v7 = vsel %vm2804_vm2, %v2803_v38, %v13398_v53  ;;  %v13402_v2 = vld [vmem:[#allocation204_spill] sm:$0xff]  ;;  %v11552_v5 = vadd.f32 %v11091_v56, %v10904_v50  ;;  %v13406_v38 = vld [vmem:[#allocation54_spill] sm:$0xff] }
 0x7f6   :  { %v2098_v19 = vpop.permute.xlu0 %2097  ;;  %v3396_v54 = vsel %vm3354_vm12, %v3346_v48, %v2394_v20  ;;  %4191 = vmatpush.msra.mxu1 %v4123_v52  ;;  %4235 = vmatpush.msrb.mxu2 %v4139_v58  ;;  %v4153_v20 = vld [vmem:[%s12510_s3 + $0x108] sm:$0xff]  ;;  %v3202_v6 = vsel %vm3154_vm7, %v3152_v47, %v11283_v61  ;;  %v4152_v61 = vld [vmem:[%s12510_s3 + $0x100] sm:$0xff]  ;;  %v2903_v48 = vsel %vm2854_vm1, %v2853_v7, %v13399_v59  ;;  %v13401_v58 = vld [vmem:[#allocation269_spill] sm:$0xff] }
 0x7f7   :  { %4281 = vmatpush.msrb.mxu3 %v4153_v20  ;;  %v3252_v37 = vsel %vm3204_vm9, %v3202_v6, %v11393_v14  ;;  %v4120_v14 = vld [vmem:[%s12510_s3] sm:$0xff]  ;;  %v13404_v47 = vld [vmem:[#allocation372_spill] sm:$0xff] }
 0x7f8   :  { %4192 = vmatpush.msra.mxu1 %v4122_v27  ;;  %4236 = vmatpush.msrb.mxu2 %v4138_v42 }
 0x7f9   :  { %4282 = vmatpush.msrb.mxu3 %v4152_v61 }
 0x7fa   :  { %4193 = vmatpush.msra.mxu1 %v4121_v46  ;;  %4237 = vmatpush.msrb.mxu2 %v4137_v40 }
 0x7fc   :  { %4194 = vmatpush.msra.mxu1 %v4120_v14  ;;  %4238 = vmatpush.msrb.mxu2 %v4136_v35 }
 0x7fd   :  { %v2406_v44 = vpop.permute.xlu1 %2405 }
 0x7fe   :  { %v2542_v60 = vpop.permute.xlu0 %2541 }
 0x7ff   :  { %v3446_v23 = vsel %vm3404_vm13, %v3396_v54, %v2542_v60  ;;  %v13403_v54 = vld [vmem:[#allocation327_spill] sm:$0xff]  ;;  %v2704_v60 = vpop.permute.xlu2 %2703 }
 0x800   :  { %v3496_v32 = vsel %vm3454_vm14, %v3446_v23, %v11395_v17  ;;  %v3302_v17 = vsel %vm3254_vm10, %v3252_v37, %v2098_v19 }
 0x801   :  { %5139 = vmatmul.msk.f32.gmra.mxu2 %vm3516_vm15, %v3496_v32  ;;  %v3352_v31 = vsel %vm3304_vm11, %v3302_v17, %v11352_v28  ;;  %v13400_v28 = vld [vmem:[#allocation224_spill] sm:$0xff]  ;;  %v3848_v32 = vmax.f32 %v11552_v5, 0.0 }
 0x802   :  { %v3402_v63 = vsel %vm3354_vm12, %v3352_v31, %v2406_v44  ;;  %v2953_v52 = vsel %vm2904_vm3, %v2903_v48, %v13400_v28 }
 0x803   :  { %v3003_v29 = vsel %vm2954_vm5, %v2953_v52, %v13401_v58 }
 0x804   :  { %v3053_v62 = vsel %vm3004_vm4, %v3003_v29, %v13402_v2 }
 0x805   :  { %v2702_v19 = vpop.permute.xlu1 %2701  ;;  %v3103_v44 = vsel %vm3054_vm6, %v3053_v62, %v13403_v54 }
 0x806   :  { %v2554_v0 = vpop.permute.xlu0 %2553  ;;  %v3153_v23 = vsel %vm3104_vm8, %v3103_v44, %v13404_v47 }
 0x807   :  { %v3452_v21 = vsel %vm3404_vm13, %v3402_v63, %v2554_v0  ;;  %v3203_v6 = vsel %vm3154_vm7, %v3153_v23, %v11462_v24  ;;  %v5313_v35 = vpop.permute.xlu2 %5312 }
 0x808   :  { %v3502_v10 = vsel %vm3454_vm14, %v3452_v21, %v2702_v19  ;;  %v13405_v19 = vld [vmem:[#allocation7_spill] sm:$0xff]  ;;  %v3706_v21 = vadd.f32 %v11091_v56, %v13406_v38  ;;  %v5315_v62 = vunpack.i.h.bf16 %v5313_v35  ;;  %v5314_v23 = vunpack.i.l.bf16 %v5313_v35 }
 0x809   :  { %5145 = vmatmul.msk.f32.gmra.mxu3 %vm3516_vm15, %v3502_v10  ;;  %v3682_v0 = vadd.f32 %v11091_v56, %v13405_v19  ;;  %v3870_v10 = vmax.f32 %v3808_v55, 0.0  ;;  %v13408_v55 = vld [vmem:[#allocation154_spill] sm:$0xff] }
 0x80a   :  { %v3836_v2 = vmax.f32 %v3706_v21, 0.0  ;;  %v3718_v38 = vadd.f32 %v11091_v56, %v13408_v55 }
 0x80b   :  { %v3828_v7 = vmax.f32 %v3682_v0, 0.0 }
 0x80c   :  { %v3840_v51 = vmax.f32 %v3718_v38, 0.0 }
 0x80d   :  { %v3777_v26 = vpop.f32.mrf.mxu0  ;;  %v2100_v42 = vpop.permute.xlu1 %2099 }
 0x80e   :  { %v3778_v27 = vadd.f32 %v11091_v56, %v3777_v26  ;;  %v1952_v20 = vpop.permute.xlu0 %1951  ;;  %v13407_v26 = vld [vmem:[#allocation92_spill] sm:$0xff] }
 0x80f   :  { %v3253_v50 = vsel %vm3204_vm9, %v3203_v6, %v1952_v20  ;;  %v5328_v54 = vpop.permute.xlu2 %5327  ;;  %v3712_v47 = vadd.f32 %v11091_v56, %v13407_v26 }
 0x810   :  { %v11562_v37 = vmax.f32 %v3778_v27, 0.0  ;;  %v3303_v40 = vsel %vm3254_vm10, %v3253_v50, %v2100_v42 }
 0x811   :  { %v3353_v17 = vsel %vm3304_vm11, %v3303_v40, %v2254_v16 }
 0x812   :  { %v5376_v46 = vpack.i.bf16 %v3848_v32, %v11562_v37 }
 0x814   :  { %5377 = vrot.lane.b32.xlu0 %v5376_v46, %s5700_s23  ;;  %v3838_v46 = vmax.f32 %v3712_v47, 0.0  ;;  %v3748_v47 = vadd.f32 %v11091_v56, %v10960_v25 }
 0x815   :  { %v2556_v61 = vpop.permute.xlu1 %2555 }
 0x816   :  { %v2408_v14 = vpop.permute.xlu0 %2407 }
 0x817   :  { %v3403_v24 = vsel %vm3354_vm12, %v3353_v17, %v2408_v14 }
 0x818   :  { %v3453_v31 = vsel %vm3404_vm13, %v3403_v24, %v2556_v61 }
 0x819   :  { %v3503_v63 = vsel %vm3454_vm14, %v3453_v31, %v2704_v60  ;;  %v5330_v31 = vunpack.i.h.bf16 %v5328_v54 }
 0x81a   :  { %5146 = vmatmul.msk.f32.gmra.mxu3 %vm3516_vm15, %v3503_v63  ;;  %v5329_v63 = vunpack.i.l.bf16 %v5328_v54 }
 0x81c   :  { %v3813_v16 = vpop.f32.mrf.mxu3 }
 0x81d   :  { %v11582_v53 = vadd.f32 %v11091_v56, %v3813_v16  ;;  %v5308_v59 = vpop.permute.xlu1 %5307 }
 0x81e   :  { %v5303_v48 = vpop.permute.xlu0 %5302  ;;  %v5310_v52 = vunpack.i.h.bf16 %v5308_v59  ;;  %v5309_v58 = vunpack.i.l.bf16 %v5308_v59 }
 0x81f   :  { %v3872_v28 = vmax.f32 %v11582_v53, 0.0  ;;  %v5305_v29 = vunpack.i.h.bf16 %v5303_v48  ;;  %v5304_v57 = vunpack.i.l.bf16 %v5303_v48 }
 0x821   :  { %v5391_v44 = vpack.i.bf16 %v3872_v28, %v3870_v10  ;;  %v4065_v60 = vsel %vm3104_vm8, %v3828_v7, %v5305_v29  ;;  %v4093_v42 = vsel %vm3104_vm8, %v3836_v2, %v5304_v57  ;;  %v5343_v7 = vpop.permute.xlu2 %5342 }
 0x822   :  { %5147 = vmatmul.msk.f32.vlgmr.msrb.gmra.mxu3 %vm3104_vm8, %v11158_v30  ;;  %v4074_v27 = vsel %vm3516_vm15, %v4065_v60, %v5310_v52  ;;  %v4102_v6 = vsel %vm3516_vm15, %v4093_v42, %v5309_v58  ;;  %v5345_v57 = vunpack.i.h.bf16 %v5343_v7 }
 0x823   :  { %5392 = vrot.lane.b32.xlu0 %v5391_v44, %s5700_s23  ;;  %v4084_v20 = vsel %vm4083_vm0, %v4074_v27, %v5315_v62  ;;  %v4111_v50 = vsel %vm4083_vm0, %v4102_v6, %v5314_v23  ;;  %v5344_v62 = vunpack.i.l.bf16 %v5343_v7  ;;  %v11625_v23 = vpop.f32.mrf.mxu2 }
 0x824   :  { %4195 = vmatmul.f32.vlgmr.msra.gmra.mxu1 %v4084_v20  ;;  %4239 = vmatmul.f32.vlgmr.msrb.gmra.mxu2 %v4111_v50 }
 0x825   :  { %v5323_v40 = vpop.permute.xlu1 %5322 }
 0x826   :  { %v5318_v61 = vpop.permute.xlu0 %5317  ;;  %v5325_v17 = vunpack.i.h.bf16 %v5323_v40  ;;  %v5324_v14 = vunpack.i.l.bf16 %v5323_v40 }
 0x827   :  { %v5320_v35 = vunpack.i.h.bf16 %v5318_v61  ;;  %v5319_v24 = vunpack.i.l.bf16 %v5318_v61 }
 0x829   :  { %v4066_v19 = vsel %vm3104_vm8, %v3830_v39, %v5320_v35  ;;  %v4094_v0 = vsel %vm3104_vm8, %v3838_v46, %v5319_v24 }
 0x82a   :  { %5148 = vmatmul.msk.f32.gmra.mxu3 %vm3104_vm8, %v11200_v15  ;;  %v4075_v21 = vsel %vm3516_vm15, %v4066_v19, %v5325_v17  ;;  %v4103_v16 = vsel %vm3516_vm15, %v4094_v0, %v5324_v14  ;;  %v3784_v0 = vadd.f32 %v11091_v56, %v11268_v4 }
 0x82b   :  { %v4085_v10 = vsel %vm4083_vm0, %v4075_v21, %v5330_v31  ;;  %v4112_v59 = vsel %vm4083_vm0, %v4103_v16, %v5329_v63  ;;  %v3754_v16 = vadd.f32 %v11091_v56, %v10995_v18 }
 0x82c   :  { %4198 = vmatmul.f32.gmra.mxu1 %v4085_v10  ;;  %4242 = vmatmul.f32.gmra.mxu2 %v4112_v59  ;;  %v3862_v7 = vmax.f32 %v3784_v0, 0.0 }
 0x82d   :  { %v11610_v39 = vpop.permute.xlu1 %5337  ;;  %v3852_v59 = vmax.f32 %v3754_v16, 0.0 }
 0x82e   :  { %v5333_v48 = vpop.permute.xlu0 %5332  ;;  %v5340_v52 = vunpack.i.h.bf16 %v11610_v39  ;;  %v5339_v58 = vunpack.i.l.bf16 %v11610_v39 }
 0x82f   :  { %v5335_v29 = vunpack.i.h.bf16 %v5333_v48  ;;  %v5334_v2 = vunpack.i.l.bf16 %v5333_v48 }
 0x831   :  { %v4067_v54 = vsel %vm3104_vm8, %v3832_v43, %v5335_v29  ;;  %v4095_v44 = vsel %vm3104_vm8, %v3840_v51, %v5334_v2  ;;  %v5358_v43 = vpop.permute.xlu2 %5357 }
 0x832   :  { %5149 = vmatmul.msk.f32.gmra.mxu3 %vm3104_vm8, %v3848_v32  ;;  %v4076_v60 = vsel %vm3516_vm15, %v4067_v54, %v5340_v52  ;;  %v4104_v26 = vsel %vm3516_vm15, %v4095_v44, %v5339_v58  ;;  %v3850_v32 = vmax.f32 %v3748_v47, 0.0  ;;  %v5360_v46 = vunpack.i.h.bf16 %v5358_v43 }
 0x833   :  { %v4086_v27 = vsel %vm4083_vm0, %v4076_v60, %v5345_v57  ;;  %v4113_v1 = vsel %vm4083_vm0, %v4104_v26, %v5344_v62  ;;  %v5359_v40 = vunpack.i.l.bf16 %v5358_v43  ;;  %v3760_v60 = vadd.f32 %v11091_v56, %v11058_v9 }
 0x834   :  { %4201 = vmatmul.f32.gmra.mxu1 %v4086_v27  ;;  %4245 = vmatmul.f32.gmra.mxu2 %v4113_v1 }
 0x835   :  { %v11629_v42 = vpop.permute.xlu1 %5352  ;;  %v3854_v1 = vmax.f32 %v3760_v60, 0.0 }
 0x836   :  { %v5348_v5 = vpop.permute.xlu0 %5347  ;;  %v5354_v20 = vunpack.i.l.bf16 %v11629_v42  ;;  %v5355_v39 = vunpack.i.h.bf16 %v11629_v42 }
 0x837   :  { %v5350_v6 = vunpack.i.h.bf16 %v5348_v5  ;;  %v5349_v50 = vunpack.i.l.bf16 %v5348_v5 }
 0x839   :  { %v4068_v25 = vsel %vm3104_vm8, %v3842_v11, %v5350_v6  ;;  %v4096_v61 = vsel %vm3104_vm8, %v3850_v32, %v5349_v50  ;;  %v5373_v44 = vpop.permute.xlu2 %5372 }
 0x83a   :  { %5150 = vmatmul.msk.f32.gmra.mxu3 %vm3104_vm8, %v11235_v13  ;;  %v4077_v17 = vsel %vm3516_vm15, %v4068_v25, %v5324_v14  ;;  %v4105_v35 = vsel %vm3516_vm15, %v4096_v61, %v5354_v20  ;;  %v3798_v24 = vpop.f32.mrf.mxu2  ;;  %v5375_v47 = vunpack.i.h.bf16 %v5373_v44  ;;  %v5374_v53 = vunpack.i.l.bf16 %v5373_v44 }
 0x83b   :  { %v4087_v31 = vsel %vm4083_vm0, %v4077_v17, %v5360_v46  ;;  %v4114_v63 = vsel %vm4083_vm0, %v4105_v35, %v5359_v40  ;;  %v11643_v19 = vadd.f32 %v11091_v56, %v3798_v24 }
 0x83c   :  { %4204 = vmatmul.f32.gmra.mxu1 %v4087_v31  ;;  %4248 = vmatmul.f32.gmra.mxu2 %v4114_v63  ;;  %v4070_v9 = vsel %vm3104_vm8, %v11200_v15, %v5375_v47  ;;  %v4098_v46 = vsel %vm3104_vm8, %v3854_v1, %v5374_v53 }
 0x83d   :  { %v3867_v36 = vmax.f32 %v11643_v19, 0.0  ;;  %v11717_v19 = vld [vmem:[%s12511_s4] ss:$0 sm:$0xff] }
 0x83e   :  { %v5363_v38 = vpop.permute.xlu0 %5362 }
 0x83f   :  { %v5401_v11 = vpack.i.bf16 %v3859_v41, %v3867_v36  ;;  %v5365_v41 = vunpack.i.h.bf16 %v5363_v38  ;;  %v5364_v10 = vunpack.i.l.bf16 %v5363_v38 }
 0x841   :  { %5402 = vrot.lane.b32.xlu2 %v5401_v11, %s5691_s26  ;;  %v4069_v4 = vsel %vm3104_vm8, %v11158_v30, %v5365_v41  ;;  %v4097_v51 = vsel %vm3104_vm8, %v3852_v59, %v5364_v10 }
 0x842   :  { %5151 = vmatmul.msk.f32.gmra.mxu3 %vm3104_vm8, %v11562_v37  ;;  %v3816_v14 = vpop.f32.mrf.mxu3  ;;  %v4078_v3 = vsel %vm3516_vm15, %v4069_v4, %v5339_v58 }
 0x843   :  { %v3817_v55 = vadd.f32 %v11091_v56, %v3816_v14  ;;  %v3790_v14 = vadd.f32 %v11091_v56, %v11320_v33 }
 0x844   :  { %v5388_v42 = vpop.permute.xlu2 %5387 }
 0x845   :  { %v3873_v21 = vmax.f32 %v3817_v55, 0.0  ;;  %v5390_v17 = vunpack.i.h.bf16 %v5388_v42  ;;  %v5389_v38 = vunpack.i.l.bf16 %v5388_v42 }
 0x847   :  { %v5406_v22 = vpack.i.bf16 %v3865_v12, %v3873_v21  ;;  %v4106_v12 = vsel %vm3516_vm15, %v4097_v51, %v5355_v39  ;;  %v4071_v63 = vsel %vm3104_vm8, %v3856_v49, %v5390_v17  ;;  %v3864_v21 = vmax.f32 %v3790_v14, 0.0  ;;  %v4363_v14 = vld [vmem:[%s12512_s5 + $0x68] sm:$0xff] }
 0x848   :  { %v4080_v0 = vsel %vm3516_vm15, %v4071_v63, %v5355_v39 }
 0x849   :  { %5407 = vrot.lane.b32.xlu0 %v5406_v22, %s5699_s17 }
 0x84a   :  { %5152 = vmatmul.msk.f32.gmra.mxu3 %vm3104_vm8, %v3862_v7 }
 0x84d   :  { %v5368_v48 = vpop.permute.xlu1 %5367 }
 0x84e   :  { %v5370_v18 = vunpack.i.h.bf16 %v5368_v48  ;;  %v5369_v52 = vunpack.i.l.bf16 %v5368_v48 }
 0x850   :  { %v4088_v29 = vsel %vm4083_vm0, %v4078_v3, %v5370_v18  ;;  %v4115_v2 = vsel %vm4083_vm0, %v4106_v12, %v5369_v52 }
 0x851   :  { %4207 = vmatmul.f32.gmra.mxu1 %v4088_v29  ;;  %4251 = vmatmul.f32.gmra.mxu2 %v4115_v2 }
 0x852   :  { %5153 = vmatmul.msk.f32.gmra.mxu3 %vm3104_vm8, %v3872_v28 }
 0x855   :  { %v5383_v26 = vpop.permute.xlu1 %5382 }
 0x856   :  { %v5385_v6 = vunpack.i.h.bf16 %v5383_v26  ;;  %v5384_v50 = vunpack.i.l.bf16 %v5383_v26 }
 0x863   :  { %v11676_v58 = vpop.f32.mrf.mxu2  ;;  %v5398_v31 = vpop.permute.xlu1 %5397 }
 0x864   :  { %v5399_v49 = vunpack.i.l.bf16 %v5398_v31 }
 0x86b   :  { %v3819_v30 = vpop.f32.mrf.mxu3 }
 0x86c   :  { %v3820_v57 = vadd.f32 %v11091_v56, %v3819_v30 }
 0x86e   :  { %v3874_v62 = vmax.f32 %v3820_v57, 0.0 }
 0x870   :  { %v5416_v54 = vpack.i.bf16 %v3862_v7, %v3874_v62  ;;  %5154 = vmatmul.msk.f32.gmra.mxu3 %vm3104_vm8, %v3874_v62  ;;  %v4099_v7 = vsel %vm3104_vm8, %v3864_v21, %v5389_v38  ;;  %v11728_v62 = vld [vmem:[%s12509_s2] ss:$0 sm:$0xff] }
 0x871   :  { %v4362_v38 = vld [vmem:[%s12512_s5 + $0x60] sm:$0xff] }
 0x872   :  { %5417 = vrot.lane.b32.xlu2 %v5416_v54, %s5700_s23  ;;  %v3796_v54 = vadd.f32 %v11728_v62, %v11625_v23 }
 0x884   :  { %v3804_v27 = vpop.f32.mrf.mxu2 }
 0x885   :  { %v3805_v28 = vadd.f32 %v11091_v56, %v3804_v27 }
 0x886   :  { %v11681_v43 = vpop.permute.xlu0 %5377 }
 0x887   :  { %v3869_v5 = vmax.f32 %v3805_v28, 0.0  ;;  %v5380_v32 = vunpack.i.h.bf16 %v11681_v43  ;;  %v5379_v20 = vunpack.i.l.bf16 %v11681_v43  ;;  %v3866_v28 = vmax.f32 %v3796_v54, 0.0 }
 0x889   :  { %v5411_v40 = vpack.i.bf16 %v3861_v45, %v3869_v5  ;;  %v4079_v25 = vsel %vm3516_vm15, %v4070_v9, %v5380_v32  ;;  %v4107_v61 = vsel %vm3516_vm15, %v4098_v46, %v5379_v20  ;;  %v5400_v45 = vunpack.i.h.bf16 %v5398_v31 }
 0x88a   :  { %v4089_v35 = vsel %vm4083_vm0, %v4079_v25, %v5385_v6  ;;  %v4116_v24 = vsel %vm4083_vm0, %v4107_v61, %v5384_v50 }
 0x88b   :  { %5412 = vrot.lane.b32.xlu1 %v5411_v40, %s5691_s26  ;;  %4210 = vmatmul.f32.gmra.mxu1 %v4089_v35  ;;  %v4090_v55 = vsel %vm4083_vm0, %v4080_v0, %v5400_v45  ;;  %v4364_v45 = vld [vmem:[%s12512_s5 + $0x70] sm:$0xff] }
 0x88c   :  { %4254 = vmatmul.f32.gmra.mxu2 %v4116_v24  ;;  %v3822_v15 = vpop.f32.mrf.mxu3 }
 0x88d   :  { %v3823_v34 = vadd.f32 %v11091_v56, %v3822_v15 }
 0x88f   :  { %v3875_v11 = vmax.f32 %v3823_v34, 0.0 }
 0x891   :  { %4054 = vrot.lane.b32.xlu0 %v3875_v11, %s5699_s17 }
 0x893   :  { %3974 = vrot.lane.b32.xlu1 %v3867_v36, %s5699_s17  ;;  %4213 = vmatmul.f32.gmra.mxu1 %v4090_v55 }
 0x895   :  { %v5393_v8 = vpop.permute.xlu0 %5392 }
 0x896   :  { %v5394_v16 = vunpack.i.l.bf16 %v5393_v8  ;;  %v5395_v32 = vunpack.i.h.bf16 %v5393_v8  ;;  %v4361_v8 = vld [vmem:[%s12512_s5 + $0x58] sm:$0xff] }
 0x898   :  { %v4108_v33 = vsel %vm3516_vm15, %v4099_v7, %v5394_v16  ;;  %v4359_v7 = vld [vmem:[%s12512_s5 + $0x48] sm:$0xff] }
 0x899   :  { %v4117_v22 = vsel %vm4083_vm0, %v4108_v33, %v5399_v49  ;;  %v4360_v49 = vld [vmem:[%s12512_s5 + $0x50] sm:$0xff]  ;;  %v4358_v33 = vld [vmem:[%s12512_s5 + $0x40] sm:$0xff] }
 0x89a   :  { %4257 = vmatmul.f32.gmra.mxu2 %v4117_v22  ;;  %v4357_v22 = vld [vmem:[%s12512_s5 + $0x38] sm:$0xff] }
 0x89b   :  { %v5403_v57 = vpop.permute.xlu2 %5402 }
 0x89c   :  { %v5405_v60 = vunpack.i.h.bf16 %v5403_v57  ;;  %v5404_v26 = vunpack.i.l.bf16 %v5403_v57 }
 0x89d   :  { %v3825_v41 = vpop.f32.mrf.mxu3 }
 0x89e   :  { %v3826_v10 = vadd.f32 %v11091_v56, %v3825_v41  ;;  %v4072_v5 = vsel %vm3104_vm8, %v11235_v13, %v5405_v60  ;;  %v4100_v23 = vsel %vm3104_vm8, %v3866_v28, %v5404_v26  ;;  %v4356_v41 = vld [vmem:[%s12512_s5 + $0x30] sm:$0xff] }
 0x89f   :  { %v4081_v25 = vsel %vm3516_vm15, %v4072_v5, %v5379_v20  ;;  %v4109_v61 = vsel %vm3516_vm15, %v4100_v23, %v5395_v32  ;;  %v4365_v20 = vld [vmem:[%s12512_s5 + $0x78] sm:$0xff] }
 0x8a0   :  { %v3876_v59 = vmax.f32 %v3826_v10, 0.0  ;;  %4386 = vmatpush.msra.mxu3 %v4365_v20  ;;  %v4355_v10 = vld [vmem:[%s12512_s5 + $0x28] sm:$0xff] }
 0x8a1   :  { %v4196_v4 = vpop.f32.mrf.mxu1 }
 0x8a2   :  { %5155 = vmatmul.msk.f32.gmra.mxu3 %vm3104_vm8, %v3876_v59  ;;  %v4197_v51 = vadd.f32 %v11717_v19, %v4196_v4  ;;  %v4354_v59 = vld [vmem:[%s12512_s5 + $0x20] sm:$0xff]  ;;  %v4353_v4 = vld [vmem:[%s12512_s5 + $0x18] sm:$0xff] }
 0x8a3   :  { %4387 = vmatpush.msra.mxu3 %v4364_v45  ;;  %v4373_v45 = vld [vmem:[%s12512_s5 + $0xb8] sm:$0xff] }
 0x8a5   :  { %v4284_v36 = vpop.f32.mrf.mxu3  ;;  %4388 = vmatpush.msra.mxu3 %v4363_v14  ;;  %v4371_v14 = vld [vmem:[%s12512_s5 + $0xa8] sm:$0xff] }
 0x8a7   :  { %v4240_v39 = vpop.f32.mrf.mxu2  ;;  %4389 = vmatpush.msra.mxu3 %v4362_v38  ;;  %v4368_v38 = vld [vmem:[%s12512_s5 + $0x90] sm:$0xff] }
 0x8a8   :  { %v4241_v48 = vadd.f32 %v4240_v39, %v4197_v51  ;;  %v4351_v51 = vld [vmem:[%s12512_s5 + $0x8] sm:$0xff]  ;;  %v4350_v39 = vld [vmem:[%s12512_s5] sm:$0xff] }
 0x8a9   :  { %v4199_v18 = vpop.f32.mrf.mxu1  ;;  %4390 = vmatpush.msra.mxu3 %v4361_v8  ;;  %v4367_v8 = vld [vmem:[%s12512_s5 + $0x88] sm:$0xff] }
 0x8aa   :  { %v11720_v52 = vadd.f32 %v4284_v36, %v4241_v48  ;;  %v4200_v56 = vadd.f32 %v11717_v19, %v4199_v18  ;;  %v4352_v36 = vld [vmem:[%s12512_s5 + $0x10] sm:$0xff]  ;;  %v3802_v48 = vadd.f32 %v11728_v62, %v11676_v58 }
 0x8ab   :  { %4391 = vmatpush.msra.mxu3 %v4360_v49  ;;  %v4366_v49 = vld [vmem:[%s12512_s5 + $0x80] sm:$0xff] }
 0x8ac   :  { %v4311_v5 = vmax.f32 %v11720_v52, 0.0  ;;  %v4379_v52 = vld [vmem:[%s12512_s5 + $0xe8] sm:$0xff] }
 0x8ad   :  { %v4287_v3 = vpop.f32.mrf.mxu3  ;;  %4392 = vmatpush.msra.mxu3 %v4359_v7 }
 0x8af   :  { %v4243_v12 = vpop.f32.mrf.mxu2  ;;  %4393 = vmatpush.msra.mxu3 %v4358_v33 }
 0x8b0   :  { %v4244_v29 = vadd.f32 %v4243_v12, %v4200_v56 }
 0x8b1   :  { %v4202_v2 = vpop.f32.mrf.mxu1  ;;  %4394 = vmatpush.msra.mxu3 %v4357_v22 }
 0x8b2   :  { %v11723_v30 = vadd.f32 %v4287_v3, %v4244_v29  ;;  %v4203_v47 = vadd.f32 %v11717_v19, %v4202_v2  ;;  %v3868_v3 = vmax.f32 %v3802_v48, 0.0 }
 0x8b3   :  { %4395 = vmatpush.msra.mxu3 %v4356_v41 }
 0x8b4   :  { %v4312_v44 = vmax.f32 %v11723_v30, 0.0 }
 0x8b5   :  { %v4290_v53 = vpop.f32.mrf.mxu3  ;;  %4396 = vmatpush.msra.mxu3 %v4355_v10 }
 0x8b6   :  { %4324 = vrot.lane.b32.xlu2 %v4312_v44, %s5700_s23 }
 0x8b7   :  { %v4246_v27 = vpop.f32.mrf.mxu2  ;;  %4397 = vmatpush.msra.mxu3 %v4354_v59 }
 0x8b8   :  { %v4247_v1 = vadd.f32 %v4246_v27, %v4203_v47 }
 0x8b9   :  { %v4205_v6 = vpop.f32.mrf.mxu1  ;;  %4398 = vmatpush.msra.mxu3 %v4353_v4 }
 0x8ba   :  { %v4291_v42 = vadd.f32 %v4290_v53, %v4247_v1  ;;  %v4206_v17 = vadd.f32 %v11717_v19, %v4205_v6  ;;  %v4381_v6 = vld [vmem:[%s12512_s5 + $0xf8] sm:$0xff] }
 0x8bb   :  { %v5408_v50 = vpop.permute.xlu0 %5407  ;;  %4399 = vmatpush.msra.mxu3 %v4352_v36  ;;  %4415 = vmatpush.msrb.mxu1 %v4381_v6  ;;  %v4480_v6 = vld [vmem:[%s12514_s7 + $0x90] sm:$0xff] }
 0x8bc   :  { %v4313_v9 = vmax.f32 %v4291_v42, 0.0  ;;  %v5410_v46 = vunpack.i.h.bf16 %v5408_v50  ;;  %v5409_v40 = vunpack.i.l.bf16 %v5408_v50 }
 0x8bd   :  { %v4293_v15 = vpop.f32.mrf.mxu3  ;;  %4400 = vmatpush.msra.mxu3 %v4351_v51 }
 0x8be   :  { %4326 = vrot.lane.b32.xlu1 %v4313_v9, %s5700_s23  ;;  %v4091_v13 = vsel %vm4083_vm0, %v4081_v25, %v5410_v46  ;;  %v4118_v35 = vsel %vm4083_vm0, %v4109_v61, %v5409_v40  ;;  %v4380_v46 = vld [vmem:[%s12512_s5 + $0xf0] sm:$0xff]  ;;  %v4378_v25 = vld [vmem:[%s12512_s5 + $0xe0] sm:$0xff]  ;;  %v4377_v61 = vld [vmem:[%s12512_s5 + $0xd8] sm:$0xff] }
 0x8bf   :  { %v4249_v24 = vpop.f32.mrf.mxu2  ;;  %4216 = vmatmul.f32.gmra.mxu1 %v4091_v13  ;;  %4260 = vmatmul.f32.gmra.mxu2 %v4118_v35  ;;  %v4376_v13 = vld [vmem:[%s12512_s5 + $0xd0] sm:$0xff] }
 0x8c0   :  { %v4250_v31 = vadd.f32 %v4249_v24, %v4206_v17  ;;  %4401 = vmatpush.msra.mxu3 %v4350_v39  ;;  %4416 = vmatpush.msrb.mxu1 %v4380_v46  ;;  %v4472_v46 = vld [vmem:[%s12514_s7 + $0x50] sm:$0xff] }
 0x8c2   :  { %v11748_v34 = vadd.f32 %v4293_v15, %v4250_v31  ;;  %4417 = vmatpush.msrb.mxu1 %v4379_v52  ;;  %v4375_v31 = vld [vmem:[%s12512_s5 + $0xc8] sm:$0xff]  ;;  %v4468_v52 = vld [vmem:[%s12514_s7 + $0x30] sm:$0xff] }
 0x8c4   :  { %4418 = vmatpush.msrb.mxu1 %v4378_v25  ;;  %v4314_v39 = vmax.f32 %v11748_v34, 0.0  ;;  %v5190_v25 = vld [vmem:[%s12514_s7 + $0x1f0] sm:$0xff] }
 0x8c5   :  { %v4296_v55 = vpop.f32.mrf.mxu3 }
 0x8c6   :  { %4419 = vmatpush.msrb.mxu1 %v4377_v61 }
 0x8c8   :  { %4420 = vmatpush.msrb.mxu1 %v4376_v13 }
 0x8ca   :  { %4421 = vmatpush.msrb.mxu1 %v4375_v31  ;;  %v5178_v31 = vld [vmem:[%s12514_s7 + $0x190] sm:$0xff] }
 0x8cc   :  { %v5418_v56 = vpop.permute.xlu2 %5417 }
 0x8cd   :  { %v5419_v57 = vunpack.i.l.bf16 %v5418_v56  ;;  %v5420_v60 = vunpack.i.h.bf16 %v5418_v56  ;;  %v4299_v23 = vpop.f32.mrf.mxu3 }
 0x8ce   :  { %v4208_v43 = vpop.f32.mrf.mxu1 }
 0x8cf   :  { %v4209_v63 = vadd.f32 %v11717_v19, %v4208_v43  ;;  %v4374_v43 = vld [vmem:[%s12512_s5 + $0xc0] sm:$0xff] }
 0x8d0   :  { %4422 = vmatpush.msrb.mxu1 %v4374_v43  ;;  %v11978_v43 = vld [vmem:[%s12513_s6] ss:$0 sm:$0xff] }
 0x8d2   :  { %4423 = vmatpush.msrb.mxu1 %v4373_v45 }
 0x8d4   :  { %v4252_v11 = vpop.f32.mrf.mxu2 }
 0x8d5   :  { %v4253_v0 = vadd.f32 %v4252_v11, %v4209_v63  ;;  %v4302_v20 = vpop.f32.mrf.mxu3  ;;  %v4372_v11 = vld [vmem:[%s12512_s5 + $0xb0] sm:$0xff] }
 0x8d6   :  { %4424 = vmatpush.msrb.mxu1 %v4372_v11 }
 0x8d7   :  { %v11763_v21 = vadd.f32 %v4296_v55, %v4253_v0  ;;  %v4370_v0 = vld [vmem:[%s12512_s5 + $0xa0] sm:$0xff]  ;;  %v4369_v55 = vld [vmem:[%s12512_s5 + $0x98] sm:$0xff] }
 0x8d8   :  { %4425 = vmatpush.msrb.mxu1 %v4371_v14  ;;  %v4491_v14 = vld [vmem:[%s12514_s7 + $0xe8] sm:$0xff] }
 0x8d9   :  { %v4315_v16 = vmax.f32 %v11763_v21, 0.0  ;;  %v4486_v21 = vld [vmem:[%s12514_s7 + $0xc0] sm:$0xff] }
 0x8da   :  { %4426 = vmatpush.msrb.mxu1 %v4370_v0  ;;  %v5170_v0 = vld [vmem:[%s12514_s7 + $0x150] sm:$0xff] }
 0x8db   :  { %4328 = vrot.lane.b32.xlu0 %v4315_v16, %s5700_s23 }
 0x8dc   :  { %4427 = vmatpush.msrb.mxu1 %v4369_v55 }
 0x8de   :  { %4428 = vmatpush.msrb.mxu1 %v4368_v38  ;;  %v5189_v38 = vld [vmem:[%s12514_s7 + $0x1e8] sm:$0xff] }
 0x8e0   :  { %4429 = vmatpush.msrb.mxu1 %v4367_v8  ;;  %v4487_v8 = vld [vmem:[%s12514_s7 + $0xc8] sm:$0xff] }
 0x8e2   :  { %4430 = vmatpush.msrb.mxu1 %v4366_v49  ;;  %v5166_v49 = vld [vmem:[%s12514_s7 + $0x130] sm:$0xff] }
 0x8e4   :  { %4525 = vmatpush.msra.mxu1 %v4491_v14  ;;  %v5219_v14 = vld [vmem:[%s12514_s7 + $0x2b8] sm:$0xff] }
 0x8e6   :  { %4526 = vmatpush.msra.mxu1 %v4487_v8  ;;  %v5210_v8 = vld [vmem:[%s12514_s7 + $0x270] sm:$0xff] }
 0x8f3   :  { %v4305_v4 = vpop.f32.mrf.mxu3 }
 0x8fd   :  { %v5413_v18 = vpop.permute.xlu1 %5412 }
 0x8fe   :  { %v5415_v12 = vunpack.i.h.bf16 %v5413_v18  ;;  %v5414_v29 = vunpack.i.l.bf16 %v5413_v18 }
 0x900   :  { %v4101_v2 = vsel %vm3104_vm8, %v3868_v3, %v5414_v29  ;;  %v4073_v54 = vsel %vm3104_vm8, %v11562_v37, %v5415_v12 }
 0x901   :  { %v4110_v47 = vsel %vm3516_vm15, %v4101_v2, %v5419_v57  ;;  %v4082_v58 = vsel %vm3516_vm15, %v4073_v54, %v5420_v60  ;;  %v4490_v54 = vld [vmem:[%s12514_s7 + $0xe0] sm:$0xff]  ;;  %v4489_v60 = vld [vmem:[%s12514_s7 + $0xd8] sm:$0xff] }
 0x902   :  { %4505 = vmatpush.msra.mxu2 %v4490_v54  ;;  %v5168_v54 = vld [vmem:[%s12514_s7 + $0x140] sm:$0xff] }
 0x903   :  { %v4055_v26 = vpop.permute.xlu0 %4054 }
 0x904   :  { %v4119_v53 = vsel %vm4083_vm0, %v4110_v47, %v4055_v26  ;;  %4506 = vmatpush.msra.mxu2 %v4486_v21  ;;  %v4478_v26 = vld [vmem:[%s12514_s7 + $0x80] sm:$0xff]  ;;  %v4485_v47 = vld [vmem:[%s12514_s7 + $0xb8] sm:$0xff] }
 0x905   :  { %v3975_v27 = vpop.permute.xlu1 %3974  ;;  %4263 = vmatmul.f32.gmra.mxu2 %v4119_v53  ;;  %v4474_v53 = vld [vmem:[%s12514_s7 + $0x60] sm:$0xff] }
 0x906   :  { %v4092_v62 = vsel %vm4083_vm0, %v4082_v58, %v3975_v27  ;;  %v4481_v27 = vld [vmem:[%s12514_s7 + $0x98] sm:$0xff]  ;;  %v4470_v58 = vld [vmem:[%s12514_s7 + $0x40] sm:$0xff] }
 0x907   :  { %4219 = vmatmul.f32.gmra.mxu1 %v4092_v62  ;;  %v4477_v62 = vld [vmem:[%s12514_s7 + $0x78] sm:$0xff]  ;;  %v5164_v21 = vld [vmem:[%s12514_s7 + $0x120] sm:$0xff] }
 0x908   :  { %v4211_v28 = vpop.f32.mrf.mxu1 }
 0x909   :  { %v4212_v1 = vadd.f32 %v11717_v19, %v4211_v28  ;;  %v4466_v28 = vld [vmem:[%s12514_s7 + $0x20] sm:$0xff] }
 0x90f   :  { %v4255_v42 = vpop.f32.mrf.mxu2 }
 0x910   :  { %v4256_v37 = vadd.f32 %v4255_v42, %v4212_v1  ;;  %v4325_v32 = vpop.permute.xlu2 %4324  ;;  %v4214_v17 = vpop.f32.mrf.mxu1  ;;  %v4462_v1 = vld [vmem:[%s12514_s7] sm:$0xff]  ;;  %v4492_v42 = vld [vmem:[%s12514_s7 + $0xf0] sm:$0xff] }
 0x911   :  { %v4344_v9 = vsel %vm3516_vm15, %v4311_v5, %v4325_v32  ;;  %v4215_v35 = vadd.f32 %v11717_v19, %v4214_v17  ;;  %v4488_v5 = vld [vmem:[%s12514_s7 + $0xd0] sm:$0xff]  ;;  %v4469_v32 = vld [vmem:[%s12514_s7 + $0x38] sm:$0xff] }
 0x912   :  { %v4300_v50 = vadd.f32 %v4299_v23, %v4256_v37  ;;  %4402 = vmatmul.f32.vlgmr.msra.gmra.mxu3 %v4344_v9  ;;  %v4473_v37 = vld [vmem:[%s12514_s7 + $0x58] sm:$0xff]  ;;  %v4484_v23 = vld [vmem:[%s12514_s7 + $0xb0] sm:$0xff] }
 0x913   :  { %v4476_v9 = vld [vmem:[%s12514_s7 + $0x70] sm:$0xff] }
 0x914   :  { %v4316_v40 = vmax.f32 %v4300_v50, 0.0  ;;  %v4465_v50 = vld [vmem:[%s12514_s7 + $0x18] sm:$0xff]  ;;  %v5186_v17 = vld [vmem:[%s12514_s7 + $0x1d0] sm:$0xff] }
 0x916   :  { %4330 = vrot.lane.b32.xlu2 %v4316_v40, %s5700_s23  ;;  %v4464_v40 = vld [vmem:[%s12514_s7 + $0x10] sm:$0xff] }
 0x91d   :  { %v4258_v24 = vpop.f32.mrf.mxu2 }
 0x91e   :  { %v4259_v15 = vadd.f32 %v4258_v24, %v4215_v35  ;;  %v5182_v35 = vld [vmem:[%s12514_s7 + $0x1b0] sm:$0xff] }
 0x920   :  { %v11846_v63 = vadd.f32 %v4302_v20, %v4259_v15  ;;  %v5174_v15 = vld [vmem:[%s12514_s7 + $0x170] sm:$0xff] }
 0x922   :  { %v4317_v61 = vmax.f32 %v11846_v63, 0.0 }
 0x925   :  { %v4308_v2 = vpop.f32.mrf.mxu3 }
 0x930   :  { %v4327_v7 = vpop.permute.xlu1 %4326 }
 0x931   :  { %v4345_v33 = vsel %vm3516_vm15, %v4312_v44, %v4327_v7  ;;  %v5185_v7 = vld [vmem:[%s12514_s7 + $0x1c8] sm:$0xff] }
 0x932   :  { %4405 = vmatmul.f32.gmra.mxu3 %v4345_v33  ;;  %v4483_v33 = vld [vmem:[%s12514_s7 + $0xa8] sm:$0xff] }
 0x933   :  { %4527 = vmatpush.msra.mxu1 %v4483_v33  ;;  %v5206_v33 = vld [vmem:[%s12514_s7 + $0x250] sm:$0xff] }
 0x93c   :  { %v4217_v22 = vpop.f32.mrf.mxu1 }
 0x93d   :  { %v4218_v41 = vadd.f32 %v11717_v19, %v4217_v22  ;;  %v5162_v22 = vld [vmem:[%s12514_s7 + $0x110] sm:$0xff] }
 0x942   :  { %v4261_v10 = vpop.f32.mrf.mxu2 }
 0x943   :  { %v4262_v59 = vadd.f32 %v4261_v10, %v4218_v41  ;;  %v5181_v41 = vld [vmem:[%s12514_s7 + $0x1a8] sm:$0xff] }
 0x944   :  { %v4479_v10 = vld [vmem:[%s12514_s7 + $0x88] sm:$0xff] }
 0x945   :  { %v11873_v36 = vadd.f32 %v4305_v4, %v4262_v59  ;;  %4528 = vmatpush.msra.mxu1 %v4479_v10  ;;  %v5177_v59 = vld [vmem:[%s12514_s7 + $0x188] sm:$0xff]  ;;  %v5199_v10 = vld [vmem:[%s12514_s7 + $0x218] sm:$0xff] }
 0x946   :  { %v4475_v4 = vld [vmem:[%s12514_s7 + $0x68] sm:$0xff] }
 0x947   :  { %v4318_v51 = vmax.f32 %v11873_v36, 0.0  ;;  %4529 = vmatpush.msra.mxu1 %v4475_v4  ;;  %v5196_v36 = vld [vmem:[%s12514_s7 + $0x200] sm:$0xff] }
 0x949   :  { %4338 = vrot.lane.b32.xlu0 %v4318_v51, %s5700_s23 }
 0x94d   :  { %v4329_v30 = vpop.permute.xlu0 %4328 }
 0x94e   :  { %v4346_v44 = vsel %vm3516_vm15, %v4314_v39, %v4329_v30  ;;  %v4471_v39 = vld [vmem:[%s12514_s7 + $0x48] sm:$0xff] }
 0x94f   :  { %4408 = vmatmul.f32.gmra.mxu3 %v4346_v44  ;;  %4431 = vmatmul.f32.vlgmr.msrb.gmra.mxu1 %v4346_v44  ;;  %v5173_v30 = vld [vmem:[%s12514_s7 + $0x168] sm:$0xff] }
 0x950   :  { %v4467_v44 = vld [vmem:[%s12514_s7 + $0x28] sm:$0xff]  ;;  %4530 = vmatpush.msra.mxu1 %v4471_v39 }
 0x952   :  { %4531 = vmatpush.msra.mxu1 %v4467_v44 }
 0x970   :  { %v4331_v48 = vpop.permute.xlu2 %4330 }
 0x971   :  { %v4347_v18 = vsel %vm3516_vm15, %v4315_v16, %v4331_v48  ;;  %v4493_v16 = vld [vmem:[%s12514_s7 + $0xf8] sm:$0xff]  ;;  %v5169_v48 = vld [vmem:[%s12514_s7 + $0x148] sm:$0xff] }
 0x972   :  { %4411 = vmatmul.f32.gmra.mxu3 %v4347_v18  ;;  %4434 = vmatmul.f32.gmra.mxu1 %v4347_v18  ;;  %v4463_v18 = vld [vmem:[%s12514_s7 + $0x8] sm:$0xff] }
 0x973   :  { %4565 = vmatpush.msrb.mxu3 %v4493_v16  ;;  %4532 = vmatpush.msra.mxu1 %v4463_v18  ;;  %v5160_v16 = vld [vmem:[%s12514_s7 + $0x100] sm:$0xff] }
 0x974   :  { %v5260_v18 = vld [vmem:[%s12514_s7 + $0x3e0] sm:$0xff] }
 0x975   :  { %4566 = vmatpush.msrb.mxu3 %v4489_v60 }
 0x977   :  { %4567 = vmatpush.msrb.mxu3 %v4485_v47 }
 0x979   :  { %4568 = vmatpush.msrb.mxu3 %v4481_v27  ;;  %v5224_v27 = vld [vmem:[%s12514_s7 + $0x2e0] sm:$0xff] }
 0x97b   :  { %4569 = vmatpush.msrb.mxu3 %v4477_v62  ;;  %v5225_v62 = vld [vmem:[%s12514_s7 + $0x2e8] sm:$0xff] }
 0x97d   :  { %4570 = vmatpush.msrb.mxu3 %v4473_v37  ;;  %v5213_v37 = vld [vmem:[%s12514_s7 + $0x288] sm:$0xff] }
 0x97f   :  { %4571 = vmatpush.msrb.mxu3 %v4469_v32  ;;  %v5208_v32 = vld [vmem:[%s12514_s7 + $0x260] sm:$0xff] }
 0x981   :  { %4572 = vmatpush.msrb.mxu3 %v4465_v50  ;;  %v5209_v50 = vld [vmem:[%s12514_s7 + $0x268] sm:$0xff] }
 0x983   :  { %4665 = vmatpush.msra.mxu3 %v5190_v25  ;;  %v5183_v25 = vld [vmem:[%s12514_s7 + $0x1b8] sm:$0xff] }
 0x984   :  { %v4220_v3 = vpop.f32.mrf.mxu1 }
 0x985   :  { %v4221_v56 = vadd.f32 %v11717_v19, %v4220_v3  ;;  %v4482_v19 = vld [vmem:[%s12514_s7 + $0xa0] sm:$0xff]  ;;  %4666 = vmatpush.msra.mxu3 %v5186_v17  ;;  %v5175_v17 = vld [vmem:[%s12514_s7 + $0x178] sm:$0xff] }
 0x986   :  { %4507 = vmatpush.msra.mxu2 %v4482_v19  ;;  %v5188_v3 = vld [vmem:[%s12514_s7 + $0x1e0] sm:$0xff] }
 0x987   :  { %4667 = vmatpush.msra.mxu3 %v5182_v35  ;;  %4625 = vmatpush.msrb.mxu1 %v5188_v3  ;;  %v5167_v35 = vld [vmem:[%s12514_s7 + $0x138] sm:$0xff]  ;;  %v5256_v3 = vld [vmem:[%s12514_s7 + $0x3c0] sm:$0xff] }
 0x988   :  { %v4264_v12 = vpop.f32.mrf.mxu2  ;;  %4508 = vmatpush.msra.mxu2 %v4478_v26 }
 0x989   :  { %v4265_v29 = vadd.f32 %v4264_v12, %v4221_v56  ;;  %4668 = vmatpush.msra.mxu3 %v5178_v31  ;;  %v5165_v56 = vld [vmem:[%s12514_s7 + $0x128] sm:$0xff]  ;;  %v5184_v12 = vld [vmem:[%s12514_s7 + $0x1c0] sm:$0xff]  ;;  %v5226_v31 = vld [vmem:[%s12514_s7 + $0x2f0] sm:$0xff] }
 0x98a   :  { %4509 = vmatpush.msra.mxu2 %v4474_v53  ;;  %4626 = vmatpush.msrb.mxu1 %v5184_v12  ;;  %v5248_v12 = vld [vmem:[%s12514_s7 + $0x380] sm:$0xff] }
 0x98b   :  { %v4309_v57 = vadd.f32 %v4308_v2, %v4265_v29  ;;  %4669 = vmatpush.msra.mxu3 %v5174_v15  ;;  %v5161_v29 = vld [vmem:[%s12514_s7 + $0x108] sm:$0xff]  ;;  %v5180_v2 = vld [vmem:[%s12514_s7 + $0x1a0] sm:$0xff]  ;;  %v5222_v15 = vld [vmem:[%s12514_s7 + $0x2d0] sm:$0xff] }
 0x98c   :  { %4510 = vmatpush.msra.mxu2 %v4470_v58  ;;  %4627 = vmatpush.msrb.mxu1 %v5180_v2  ;;  %v5220_v58 = vld [vmem:[%s12514_s7 + $0x2c0] sm:$0xff]  ;;  %v5262_v2 = vld [vmem:[%s12514_s7 + $0x3f0] sm:$0xff] }
 0x98d   :  { %v4319_v34 = vmax.f32 %v4309_v57, 0.0  ;;  %4670 = vmatpush.msra.mxu3 %v5170_v0  ;;  %v5176_v57 = vld [vmem:[%s12514_s7 + $0x180] sm:$0xff]  ;;  %v5197_v0 = vld [vmem:[%s12514_s7 + $0x208] sm:$0xff] }
 0x98e   :  { %4511 = vmatpush.msra.mxu2 %v4466_v28  ;;  %4628 = vmatpush.msrb.mxu1 %v5176_v57  ;;  %v5216_v28 = vld [vmem:[%s12514_s7 + $0x2a0] sm:$0xff] }
 0x98f   :  { %4340 = vrot.lane.b32.xlu1 %v4319_v34, %s5700_s23  ;;  %4671 = vmatpush.msra.mxu3 %v5166_v49  ;;  %v5172_v34 = vld [vmem:[%s12514_s7 + $0x160] sm:$0xff]  ;;  %v5211_v49 = vld [vmem:[%s12514_s7 + $0x278] sm:$0xff] }
 0x990   :  { %4512 = vmatpush.msra.mxu2 %v4462_v1  ;;  %4629 = vmatpush.msrb.mxu1 %v5172_v34  ;;  %v5221_v1 = vld [vmem:[%s12514_s7 + $0x2c8] sm:$0xff]  ;;  %v5244_v57 = vld [vmem:[%s12514_s7 + $0x360] sm:$0xff] }
 0x991   :  { %4672 = vmatpush.msra.mxu3 %v5162_v22  ;;  %v5203_v22 = vld [vmem:[%s12514_s7 + $0x238] sm:$0xff]  ;;  %v5257_v34 = vld [vmem:[%s12514_s7 + $0x3c8] sm:$0xff] }
 0x992   :  { %4545 = vmatpush.msrb.mxu2 %v4492_v42  ;;  %4630 = vmatpush.msrb.mxu1 %v5168_v54  ;;  %v5217_v42 = vld [vmem:[%s12514_s7 + $0x2a8] sm:$0xff]  ;;  %v5258_v54 = vld [vmem:[%s12514_s7 + $0x3d0] sm:$0xff] }
 0x994   :  { %4546 = vmatpush.msrb.mxu2 %v4488_v5  ;;  %4631 = vmatpush.msrb.mxu1 %v5164_v21  ;;  %v5212_v5 = vld [vmem:[%s12514_s7 + $0x280] sm:$0xff] }
 0x995   :  { %v4403_v20 = vpop.f32.mrf.mxu3  ;;  %v5240_v21 = vld [vmem:[%s12514_s7 + $0x340] sm:$0xff] }
 0x996   :  { %4547 = vmatpush.msrb.mxu2 %v4484_v23  ;;  %v4404_v45 = vadd.f32 %v11978_v43, %v4403_v20  ;;  %4632 = vmatpush.msrb.mxu1 %v5160_v16  ;;  %v5205_v20 = vld [vmem:[%s12514_s7 + $0x248] sm:$0xff]  ;;  %v5254_v16 = vld [vmem:[%s12514_s7 + $0x3b0] sm:$0xff] }
 0x998   :  { %4548 = vmatpush.msrb.mxu2 %v4480_v6 }
 0x99a   :  { %4549 = vmatpush.msrb.mxu2 %v4476_v9  ;;  %v5204_v9 = vld [vmem:[%s12514_s7 + $0x240] sm:$0xff] }
 0x99c   :  { %4550 = vmatpush.msrb.mxu2 %v4472_v46  ;;  %v5200_v46 = vld [vmem:[%s12514_s7 + $0x220] sm:$0xff] }
 0x99e   :  { %4551 = vmatpush.msrb.mxu2 %v4468_v52  ;;  %v5191_v52 = vld [vmem:[%s12514_s7 + $0x1f8] sm:$0xff] }
 0x9a0   :  { %4552 = vmatpush.msrb.mxu2 %v4464_v40  ;;  %v5187_v40 = vld [vmem:[%s12514_s7 + $0x1d8] sm:$0xff] }
 0x9b5   :  { %v4406_v19 = vpop.f32.mrf.mxu3 }
 0x9b6   :  { %v4407_v60 = vadd.f32 %v11978_v43, %v4406_v19  ;;  %v5253_v19 = vld [vmem:[%s12514_s7 + $0x3a8] sm:$0xff] }
 0x9bb   :  { %v4339_v13 = vpop.permute.xlu0 %4338 }
 0x9bc   :  { %v4348_v24 = vsel %vm3516_vm15, %v4317_v61, %v4339_v13  ;;  %v5179_v61 = vld [vmem:[%s12514_s7 + $0x198] sm:$0xff] }
 0x9bd   :  { %4437 = vmatmul.f32.gmra.mxu1 %v4348_v24  ;;  %v5171_v13 = vld [vmem:[%s12514_s7 + $0x158] sm:$0xff] }
 0x9be   :  { %v5163_v24 = vld [vmem:[%s12514_s7 + $0x118] sm:$0xff] }
 0x9cc   :  { %v4432_v63 = vpop.f32.mrf.mxu1 }
 0x9cd   :  { %v4433_v11 = vadd.f32 %v4432_v63, %v4404_v45  ;;  %v5223_v45 = vld [vmem:[%s12514_s7 + $0x2d8] sm:$0xff]  ;;  %v5218_v63 = vld [vmem:[%s12514_s7 + $0x2b0] sm:$0xff] }
 0x9cf   :  { %v11987_v55 = vmax.f32 %v4433_v11, 0.0  ;;  %v5201_v11 = vld [vmem:[%s12514_s7 + $0x228] sm:$0xff] }
 0x9d1   :  { %5156 = vmatmul.msk.f32.vlgmr.msra.gmra.mxu2 %vm3516_vm15, %v11987_v55  ;;  %5159 = vmatmul.msk.f32.vlgmr.msrb.gmra.mxu3 %vm3516_vm15, %v11987_v55 }
 0x9d2   :  { %4645 = vmatpush.msra.mxu2 %v5189_v38  ;;  %4765 = vmatpush.msrb.mxu3 %v5225_v62  ;;  %v5214_v38 = vld [vmem:[%s12514_s7 + $0x290] sm:$0xff]  ;;  %v4409_v4 = vpop.f32.mrf.mxu3  ;;  %v5263_v62 = vld [vmem:[%s12514_s7 + $0x3f8] sm:$0xff] }
 0x9d3   :  { %v4410_v39 = vadd.f32 %v11978_v43, %v4409_v4  ;;  %v4969_v4 = vld [vmem:[%s12516_s9 + $0xc0] sm:$0xff] }
 0x9d4   :  { %4646 = vmatpush.msra.mxu2 %v5185_v7  ;;  %4766 = vmatpush.msrb.mxu3 %v5221_v1  ;;  %v5207_v7 = vld [vmem:[%s12514_s7 + $0x258] sm:$0xff]  ;;  %v5242_v1 = vld [vmem:[%s12514_s7 + $0x350] sm:$0xff] }
 0x9d6   :  { %4647 = vmatpush.msra.mxu2 %v5181_v41  ;;  %4767 = vmatpush.msrb.mxu3 %v5217_v42  ;;  %v5202_v41 = vld [vmem:[%s12514_s7 + $0x230] sm:$0xff]  ;;  %v5259_v42 = vld [vmem:[%s12514_s7 + $0x3d8] sm:$0xff] }
 0x9d8   :  { %4648 = vmatpush.msra.mxu2 %v5177_v59  ;;  %4768 = vmatpush.msrb.mxu3 %v5213_v37  ;;  %v5198_v59 = vld [vmem:[%s12514_s7 + $0x210] sm:$0xff] }
 0x9d9   :  { %5158 = vmatmul.msk.f32.vlgmr.msrb.gmra.mxu2 %vm3516_vm15, %v11987_v55  ;;  %v5238_v37 = vld [vmem:[%s12514_s7 + $0x330] sm:$0xff] }
 0x9da   :  { %4649 = vmatpush.msra.mxu2 %v5173_v30  ;;  %4769 = vmatpush.msrb.mxu3 %v5209_v50  ;;  %v5251_v50 = vld [vmem:[%s12514_s7 + $0x398] sm:$0xff] }
 0x9dc   :  { %4650 = vmatpush.msra.mxu2 %v5169_v48  ;;  %4770 = vmatpush.msrb.mxu3 %v5205_v20  ;;  %v4974_v20 = vld [vmem:[%s12516_s9 + $0xe8] sm:$0xff] }
 0x9de   :  { %4651 = vmatpush.msra.mxu2 %v5165_v56  ;;  %4771 = vmatpush.msrb.mxu3 %v5201_v11  ;;  %v5252_v56 = vld [vmem:[%s12514_s7 + $0x3a0] sm:$0xff]  ;;  %v4991_v11 = vld [vmem:[%s12516_s9 + $0x170] sm:$0xff] }
 0x9e0   :  { %4652 = vmatpush.msra.mxu2 %v5161_v29  ;;  %4772 = vmatpush.msrb.mxu3 %v5197_v0  ;;  %v5261_v29 = vld [vmem:[%s12514_s7 + $0x3e8] sm:$0xff] }
 0x9e1   :  { %v4990_v0 = vld [vmem:[%s12516_s9 + $0x168] sm:$0xff] }
 0x9e2   :  { %4745 = vmatpush.msrb.mxu2 %v5224_v27  ;;  %v5245_v27 = vld [vmem:[%s12514_s7 + $0x368] sm:$0xff] }
 0x9e4   :  { %4746 = vmatpush.msrb.mxu2 %v5220_v58  ;;  %v5246_v58 = vld [vmem:[%s12514_s7 + $0x370] sm:$0xff] }
 0x9e6   :  { %4747 = vmatpush.msrb.mxu2 %v5216_v28  ;;  %v5241_v28 = vld [vmem:[%s12514_s7 + $0x348] sm:$0xff] }
 0x9e8   :  { %4748 = vmatpush.msrb.mxu2 %v5212_v5  ;;  %v5237_v5 = vld [vmem:[%s12514_s7 + $0x328] sm:$0xff] }
 0x9ea   :  { %4749 = vmatpush.msrb.mxu2 %v5208_v32  ;;  %v5233_v32 = vld [vmem:[%s12514_s7 + $0x308] sm:$0xff] }
 0x9ec   :  { %4750 = vmatpush.msrb.mxu2 %v5204_v9  ;;  %v5247_v9 = vld [vmem:[%s12514_s7 + $0x378] sm:$0xff] }
 0x9ee   :  { %4751 = vmatpush.msrb.mxu2 %v5200_v46  ;;  %v5243_v46 = vld [vmem:[%s12514_s7 + $0x358] sm:$0xff] }
 0x9ef   :  { %v4435_v26 = vpop.f32.mrf.mxu1 }
 0x9f0   :  { %v4436_v47 = vadd.f32 %v4435_v26, %v4407_v60  ;;  %4752 = vmatpush.msrb.mxu2 %v5196_v36  ;;  %v5236_v60 = vld [vmem:[%s12514_s7 + $0x320] sm:$0xff]  ;;  %v5249_v26 = vld [vmem:[%s12514_s7 + $0x388] sm:$0xff]  ;;  %v5239_v36 = vld [vmem:[%s12514_s7 + $0x338] sm:$0xff] }
 0x9f2   :  { %v4445_v53 = vmax.f32 %v4436_v47, 0.0  ;;  %v5250_v47 = vld [vmem:[%s12514_s7 + $0x390] sm:$0xff] }
 0x9f4   :  { %5193 = vmatmul.msk.f32.vlgmr.msra.gmra.mxu2 %vm3516_vm15, %v4445_v53  ;;  %5194 = vmatmul.msk.f32.vlgmr.msra.gmra.mxu3 %vm3516_vm15, %v4445_v53 }
 0x9f5   :  { %4865 = vmatpush.msra.mxu3 %v5260_v18  ;;  %v4950_v18 = vld [vmem:[%s12516_s9 + $0x28] sm:$0xff] }
 0x9f7   :  { %4866 = vmatpush.msra.mxu3 %v5256_v3  ;;  %v4967_v3 = vld [vmem:[%s12516_s9 + $0xb0] sm:$0xff] }
 0x9f9   :  { %4867 = vmatpush.msra.mxu3 %v5252_v56  ;;  %v4984_v56 = vld [vmem:[%s12516_s9 + $0x138] sm:$0xff] }
 0x9fb   :  { %4868 = vmatpush.msra.mxu3 %v5248_v12  ;;  %v4949_v12 = vld [vmem:[%s12516_s9 + $0x20] sm:$0xff] }
 0x9fd   :  { %4869 = vmatpush.msra.mxu3 %v5244_v57  ;;  %v4948_v57 = vld [vmem:[%s12516_s9 + $0x18] sm:$0xff] }
 0x9ff   :  { %4870 = vmatpush.msra.mxu3 %v5240_v21  ;;  %v4964_v21 = vld [vmem:[%s12516_s9 + $0x98] sm:$0xff] }
 0xa01   :  { %v4341_v23 = vpop.permute.xlu1 %4340  ;;  %4871 = vmatpush.msra.mxu3 %v5236_v60  ;;  %v5008_v60 = vld [vmem:[%s12516_s9 + $0x1f8] sm:$0xff] }
 0xa02   :  { %v4349_v6 = vsel %vm3516_vm15, %v4318_v51, %v4341_v23  ;;  %v5227_v51 = vld [vmem:[%s12514_s7 + $0x2f8] sm:$0xff] }
 0xa03   :  { %4440 = vmatmul.f32.gmra.mxu1 %v4349_v6  ;;  %4805 = vmatpush.msra.mxu2 %v5227_v51  ;;  %v5255_v23 = vld [vmem:[%s12514_s7 + $0x3b8] sm:$0xff]  ;;  %v5234_v6 = vld [vmem:[%s12514_s7 + $0x310] sm:$0xff] }
 0xa04   :  { %v5235_v51 = vld [vmem:[%s12514_s7 + $0x318] sm:$0xff] }
 0xa05   :  { %4806 = vmatpush.msra.mxu2 %v5223_v45  ;;  %v4992_v45 = vld [vmem:[%s12516_s9 + $0x178] sm:$0xff] }
 0xa07   :  { %4807 = vmatpush.msra.mxu2 %v5219_v14  ;;  %v4973_v14 = vld [vmem:[%s12516_s9 + $0xe0] sm:$0xff] }
 0xa0b   :  { %5157 = vmatmul.msk.f32.vlgmr.msra.gmra.mxu1 %vm3516_vm15, %v11987_v55  ;;  %v5215_v55 = vld [vmem:[%s12514_s7 + $0x298] sm:$0xff] }
 0xa0c   :  { %4685 = vmatpush.msra.mxu1 %v5191_v52  ;;  %4808 = vmatpush.msra.mxu2 %v5215_v55  ;;  %v4412_v52 = vpop.f32.mrf.mxu3  ;;  %v4955_v55 = vld [vmem:[%s12516_s9 + $0x50] sm:$0xff] }
 0xa0e   :  { %4686 = vmatpush.msra.mxu1 %v5187_v40  ;;  %4809 = vmatpush.msra.mxu2 %v5211_v49  ;;  %v4413_v40 = vadd.f32 %v11978_v43, %v4412_v52  ;;  %v4958_v43 = vld [vmem:[%s12516_s9 + $0x68] sm:$0xff]  ;;  %v4999_v52 = vld [vmem:[%s12516_s9 + $0x1b0] sm:$0xff] }
 0xa0f   :  { %v4954_v49 = vld [vmem:[%s12516_s9 + $0x48] sm:$0xff] }
 0xa10   :  { %4687 = vmatpush.msra.mxu1 %v5183_v25  ;;  %4810 = vmatpush.msra.mxu2 %v5207_v7  ;;  %v4971_v7 = vld [vmem:[%s12516_s9 + $0xd0] sm:$0xff] }
 0xa12   :  { %4688 = vmatpush.msra.mxu1 %v5179_v61  ;;  %4811 = vmatpush.msra.mxu2 %v5203_v22  ;;  %v4953_v22 = vld [vmem:[%s12516_s9 + $0x40] sm:$0xff] }
 0xa13   :  { %5192 = vmatmul.msk.f32.vlgmr.msrb.gmra.mxu1 %vm3516_vm15, %v4445_v53 }
 0xa14   :  { %4689 = vmatpush.msra.mxu1 %v5175_v17  ;;  %4812 = vmatpush.msra.mxu2 %v5199_v10  ;;  %v4987_v10 = vld [vmem:[%s12516_s9 + $0x150] sm:$0xff] }
 0xa16   :  { %4690 = vmatpush.msra.mxu1 %v5171_v13  ;;  %v4960_v13 = vld [vmem:[%s12516_s9 + $0x78] sm:$0xff] }
 0xa18   :  { %4691 = vmatpush.msra.mxu1 %v5167_v35  ;;  %v4959_v35 = vld [vmem:[%s12516_s9 + $0x70] sm:$0xff] }
 0xa1a   :  { %4692 = vmatpush.msra.mxu1 %v5163_v24  ;;  %v4976_v24 = vld [vmem:[%s12516_s9 + $0xf8] sm:$0xff] }
 0xa1b   :  { %5195 = vmatmul.msk.f32.vlgmr.msra.gmra.mxu1 %vm3516_vm15, %v4445_v53  ;;  %v5232_v53 = vld [vmem:[%s12514_s7 + $0x300] sm:$0xff] }
 0xa1c   :  { %4785 = vmatpush.msrb.mxu1 %v5226_v31  ;;  %4872 = vmatpush.msra.mxu3 %v5232_v53  ;;  %v4975_v31 = vld [vmem:[%s12516_s9 + $0xf0] sm:$0xff]  ;;  %v5005_v53 = vld [vmem:[%s12516_s9 + $0x1e0] sm:$0xff] }
 0xa1e   :  { %4786 = vmatpush.msrb.mxu1 %v5222_v15  ;;  %v4957_v15 = vld [vmem:[%s12516_s9 + $0x60] sm:$0xff] }
 0xa20   :  { %4787 = vmatpush.msrb.mxu1 %v5218_v63  ;;  %v4956_v63 = vld [vmem:[%s12516_s9 + $0x58] sm:$0xff] }
 0xa22   :  { %4788 = vmatpush.msrb.mxu1 %v5214_v38  ;;  %v4972_v38 = vld [vmem:[%s12516_s9 + $0xd8] sm:$0xff] }
 0xa24   :  { %4789 = vmatpush.msrb.mxu1 %v5210_v8  ;;  %v4989_v8 = vld [vmem:[%s12516_s9 + $0x160] sm:$0xff] }
 0xa26   :  { %4790 = vmatpush.msrb.mxu1 %v5206_v33  ;;  %v4988_v33 = vld [vmem:[%s12516_s9 + $0x158] sm:$0xff] }
 0xa28   :  { %4791 = vmatpush.msrb.mxu1 %v5202_v41  ;;  %v4970_v41 = vld [vmem:[%s12516_s9 + $0xc8] sm:$0xff] }
 0xa2a   :  { %4792 = vmatpush.msrb.mxu1 %v5198_v59  ;;  %v4952_v59 = vld [vmem:[%s12516_s9 + $0x38] sm:$0xff] }
 0xa2c   :  { %4885 = vmatpush.msra.mxu1 %v5261_v29  ;;  %v4966_v29 = vld [vmem:[%s12516_s9 + $0xa8] sm:$0xff] }
 0xa2e   :  { %4886 = vmatpush.msra.mxu1 %v5257_v34  ;;  %v4965_v34 = vld [vmem:[%s12516_s9 + $0xa0] sm:$0xff] }
 0xa30   :  { %4887 = vmatpush.msra.mxu1 %v5253_v19  ;;  %v4946_v19 = vld [vmem:[%s12516_s9 + $0x8] sm:$0xff] }
 0xa32   :  { %4888 = vmatpush.msra.mxu1 %v5249_v26  ;;  %v5007_v26 = vld [vmem:[%s12516_s9 + $0x1f0] sm:$0xff] }
 0xa34   :  { %4889 = vmatpush.msra.mxu1 %v5245_v27  ;;  %v5004_v27 = vld [vmem:[%s12516_s9 + $0x1d8] sm:$0xff] }
 0xa36   :  { %4890 = vmatpush.msra.mxu1 %v5241_v28 }
 0xa38   :  { %4891 = vmatpush.msra.mxu1 %v5237_v5  ;;  %v5002_v5 = vld [vmem:[%s12516_s9 + $0x1c8] sm:$0xff] }
 0xa3a   :  { %v4438_v30 = vpop.f32.mrf.mxu1  ;;  %4892 = vmatpush.msra.mxu1 %v5233_v32  ;;  %v5001_v32 = vld [vmem:[%s12516_s9 + $0x1c0] sm:$0xff] }
 0xa3b   :  { %v4439_v44 = vadd.f32 %v4438_v30, %v4410_v39  ;;  %v4986_v39 = vld [vmem:[%s12516_s9 + $0x148] sm:$0xff]  ;;  %v4951_v30 = vld [vmem:[%s12516_s9 + $0x30] sm:$0xff] }
 0xa3d   :  { %v4446_v48 = vmax.f32 %v4439_v44, 0.0  ;;  %v4968_v44 = vld [vmem:[%s12516_s9 + $0xb8] sm:$0xff] }
 0xa3f   :  { %5228 = vmatmul.msk.f32.vlgmr.msrb.gmra.mxu2 %vm3516_vm15, %v4446_v48  ;;  %5229 = vmatmul.msk.f32.vlgmr.msrb.gmra.mxu3 %vm3516_vm15, %v4446_v48 }
 0xa40   :  { %5230 = vmatmul.msk.f32.vlgmr.msrb.gmra.mxu1 %vm3516_vm15, %v4446_v48  ;;  %4905 = vmatpush.msrb.mxu2 %v5262_v2  ;;  %v4983_v2 = vld [vmem:[%s12516_s9 + $0x130] sm:$0xff] }
 0xa41   :  { %4925 = vmatpush.msrb.mxu3 %v5263_v62  ;;  %5013 = vmatpush.msrb.mxu1 %v4960_v13 }
 0xa42   :  { %4906 = vmatpush.msrb.mxu2 %v5258_v54  ;;  %v4947_v54 = vld [vmem:[%s12516_s9 + $0x10] sm:$0xff] }
 0xa43   :  { %4926 = vmatpush.msrb.mxu3 %v5259_v42  ;;  %5014 = vmatpush.msrb.mxu1 %v4959_v35  ;;  %v4982_v42 = vld [vmem:[%s12516_s9 + $0x128] sm:$0xff]  ;;  %v4996_v35 = vld [vmem:[%s12516_s9 + $0x198] sm:$0xff] }
 0xa44   :  { %4907 = vmatpush.msrb.mxu2 %v5254_v16  ;;  %v4945_v16 = vld [vmem:[%s12516_s9] sm:$0xff] }
 0xa45   :  { %4927 = vmatpush.msrb.mxu3 %v5255_v23  ;;  %5015 = vmatpush.msrb.mxu1 %v4958_v43  ;;  %v4981_v23 = vld [vmem:[%s12516_s9 + $0x120] sm:$0xff] }
 0xa46   :  { %4908 = vmatpush.msrb.mxu2 %v5250_v47  ;;  %v5006_v47 = vld [vmem:[%s12516_s9 + $0x1e8] sm:$0xff] }
 0xa47   :  { %5231 = vmatmul.msk.f32.vlgmr.msra.gmra.mxu2 %vm3516_vm15, %v4446_v48  ;;  %4928 = vmatpush.msrb.mxu3 %v5251_v50  ;;  %v4985_v48 = vld [vmem:[%s12516_s9 + $0x140] sm:$0xff]  ;;  %v4980_v50 = vld [vmem:[%s12516_s9 + $0x118] sm:$0xff] }
 0xa48   :  { %4909 = vmatpush.msrb.mxu2 %v5246_v58  ;;  %5016 = vmatpush.msrb.mxu1 %v4957_v15  ;;  %v5003_v58 = vld [vmem:[%s12516_s9 + $0x1d0] sm:$0xff]  ;;  %v4994_v15 = vld [vmem:[%s12516_s9 + $0x188] sm:$0xff] }
 0xa49   :  { %4929 = vmatpush.msrb.mxu3 %v5247_v9  ;;  %v5000_v9 = vld [vmem:[%s12516_s9 + $0x1b8] sm:$0xff] }
 0xa4a   :  { %4910 = vmatpush.msrb.mxu2 %v5242_v1  ;;  %5017 = vmatpush.msrb.mxu1 %v4956_v63  ;;  %v4963_v1 = vld [vmem:[%s12516_s9 + $0x90] sm:$0xff] }
 0xa4b   :  { %4930 = vmatpush.msrb.mxu3 %v5243_v46 }
 0xa4c   :  { %4911 = vmatpush.msrb.mxu2 %v5238_v37  ;;  %5018 = vmatpush.msrb.mxu1 %v4955_v55  ;;  %v4962_v37 = vld [vmem:[%s12516_s9 + $0x88] sm:$0xff] }
 0xa4d   :  { %4931 = vmatpush.msrb.mxu3 %v5239_v36 }
 0xa4e   :  { %4912 = vmatpush.msrb.mxu2 %v5234_v6  ;;  %5019 = vmatpush.msrb.mxu1 %v4954_v49  ;;  %v4961_v6 = vld [vmem:[%s12516_s9 + $0x80] sm:$0xff] }
 0xa4f   :  { %4932 = vmatpush.msrb.mxu3 %v5235_v51  ;;  %v4979_v51 = vld [vmem:[%s12516_s9 + $0x110] sm:$0xff] }
 0xa50   :  { %5033 = vmatpush.msra.mxu2 %v4976_v24  ;;  %5020 = vmatpush.msrb.mxu1 %v4953_v22  ;;  %v4995_v24 = vld [vmem:[%s12516_s9 + $0x190] sm:$0xff] }
 0xa52   :  { %5034 = vmatpush.msra.mxu2 %v4975_v31  ;;  %5021 = vmatpush.msrb.mxu1 %v4952_v59 }
 0xa54   :  { %5035 = vmatpush.msra.mxu2 %v4974_v20  ;;  %5022 = vmatpush.msrb.mxu1 %v4951_v30  ;;  %v4514_v62 = vpop.f32.mrf.mxu2  ;;  %v4574_v13 = vpop.f32.mrf.mxu3  ;;  %v4993_v20 = vld [vmem:[%s12516_s9 + $0x180] sm:$0xff] }
 0xa56   :  { %5036 = vmatpush.msra.mxu2 %v4973_v14  ;;  %5023 = vmatpush.msrb.mxu1 %v4950_v18 }
 0xa58   :  { %5037 = vmatpush.msra.mxu2 %v4972_v38  ;;  %5024 = vmatpush.msrb.mxu1 %v4949_v12 }
 0xa5a   :  { %5038 = vmatpush.msra.mxu2 %v4971_v7  ;;  %5025 = vmatpush.msrb.mxu1 %v4948_v57 }
 0xa5c   :  { %5039 = vmatpush.msra.mxu2 %v4970_v41  ;;  %5026 = vmatpush.msrb.mxu1 %v4947_v54  ;;  %v4554_v46 = vpop.f32.mrf.mxu2 }
 0xa5e   :  { %5040 = vmatpush.msra.mxu2 %v4969_v4  ;;  %5027 = vmatpush.msrb.mxu1 %v4946_v19 }
 0xa60   :  { %5041 = vmatpush.msra.mxu2 %v4968_v44  ;;  %5028 = vmatpush.msrb.mxu1 %v4945_v16 }
 0xa62   :  { %5042 = vmatpush.msra.mxu2 %v4967_v3 }
 0xa64   :  { %5043 = vmatpush.msra.mxu2 %v4966_v29 }
 0xa66   :  { %5044 = vmatpush.msra.mxu2 %v4965_v34 }
 0xa68   :  { %5045 = vmatpush.msra.mxu2 %v4964_v21 }
 0xa6a   :  { %5046 = vmatpush.msra.mxu2 %v4963_v1 }
 0xa6c   :  { %5047 = vmatpush.msra.mxu2 %v4962_v37 }
 0xa6e   :  { %5048 = vmatpush.msra.mxu2 %v4961_v6 }
 0xa77   :  { %v4654_v43 = vpop.f32.mrf.mxu2  ;;  %v4674_v63 = vpop.f32.mrf.mxu3 }
 0xa80   :  { %v4441_v25 = vpop.f32.mrf.mxu1 }
 0xa81   :  { %v4442_v61 = vadd.f32 %v4441_v25, %v4413_v40  ;;  %v4978_v40 = vld [vmem:[%s12516_s9 + $0x108] sm:$0xff] }
 0xa82   :  { %v4998_v25 = vld [vmem:[%s12516_s9 + $0x1a8] sm:$0xff] }
 0xa83   :  { %v4447_v17 = vmax.f32 %v4442_v61, 0.0  ;;  %v4977_v61 = vld [vmem:[%s12516_s9 + $0x100] sm:$0xff] }
 0xa85   :  { %5264 = vmatmul.msk.f32.vlgmr.msra.gmra.mxu3 %vm3516_vm15, %v4447_v17  ;;  %5265 = vmatmul.msk.f32.vlgmr.msra.gmra.mxu1 %vm3516_vm15, %v4447_v17 }
 0xa86   :  { %5266 = vmatmul.msk.f32.vlgmr.msrb.gmra.mxu2 %vm3516_vm15, %v4447_v17  ;;  %5053 = vmatpush.msra.mxu3 %v4992_v45  ;;  %v4448_v45 = vld [vmem:[%s12517_s8] sm:$0xf] }
 0xa87   :  { %5073 = vmatpush.msra.mxu1 %v5008_v60  ;;  %v4452_v7 = vperm.slane %v4448_v45, 2 }
 0xa88   :  { %5054 = vmatpush.msra.mxu3 %v4991_v11  ;;  %v4534_v28 = vpop.f32.mrf.mxu1  ;;  %v4451_v11 = vperm.slane %v4448_v45, 1 }
 0xa89   :  { %5074 = vmatpush.msra.mxu1 %v5007_v26  ;;  %v4579_v4 = vadd.f32 %v4554_v46, %v4452_v7 }
 0xa8a   :  { %5055 = vmatpush.msra.mxu3 %v4990_v0  ;;  %v4578_v55 = vadd.f32 %v4534_v28, %v4451_v11 }
 0xa8b   :  { %5075 = vmatpush.msra.mxu1 %v5006_v47  ;;  %v4699_v44 = vadd.f32 %v4674_v63, %v4579_v4  ;;  %v5424_v47 = vld [vmem:[%s12515_s10] ss:$0 sm:$0xff] }
 0xa8c   :  { %5056 = vmatpush.msra.mxu3 %v4989_v8  ;;  %v4450_v8 = vperm.slane %v4448_v45, 0  ;;  %v4698_v49 = vadd.f32 %v4654_v43, %v4578_v55 }
 0xa8d   :  { %5267 = vmatmul.msk.f32.vlgmr.msrb.gmra.mxu3 %vm3516_vm15, %v4447_v17  ;;  %5076 = vmatpush.msra.mxu1 %v5005_v53  ;;  %v4997_v17 = vld [vmem:[%s12516_s9 + $0x1a0] sm:$0xff] }
 0xa8e   :  { %5057 = vmatpush.msra.mxu3 %v4988_v33 }
 0xa8f   :  { %5077 = vmatpush.msra.mxu1 %v5004_v27 }
 0xa90   :  { %5058 = vmatpush.msra.mxu3 %v4987_v10  ;;  %v4634_v36 = vpop.f32.mrf.mxu1  ;;  %v4577_v10 = vadd.f32 %v4514_v62, %v4450_v8 }
 0xa91   :  { %5078 = vmatpush.msra.mxu1 %v5003_v58 }
 0xa92   :  { %5059 = vmatpush.msra.mxu3 %v4986_v39  ;;  %v4697_v39 = vadd.f32 %v4634_v36, %v4577_v10 }
 0xa93   :  { %5079 = vmatpush.msra.mxu1 %v5002_v5 }
 0xa94   :  { %5060 = vmatpush.msra.mxu3 %v4985_v48  ;;  %v4453_v48 = vperm.slane %v4448_v45, 3 }
 0xa95   :  { %5080 = vmatpush.msra.mxu1 %v5001_v32 }
 0xa96   :  { %5061 = vmatpush.msra.mxu3 %v4984_v56  ;;  %v4580_v57 = vadd.f32 %v4574_v13, %v4453_v48 }
 0xa97   :  { %5081 = vmatpush.msra.mxu1 %v5000_v9 }
 0xa98   :  { %5062 = vmatpush.msra.mxu3 %v4983_v2  ;;  %v4694_v31 = vpop.f32.mrf.mxu1 }
 0xa99   :  { %5082 = vmatpush.msra.mxu1 %v4999_v52  ;;  %v4700_v21 = vadd.f32 %v4694_v31, %v4580_v57 }
 0xa9a   :  { %5063 = vmatpush.msra.mxu3 %v4982_v42 }
 0xa9b   :  { %5083 = vmatpush.msra.mxu1 %v4998_v25 }
 0xa9c   :  { %5064 = vmatpush.msra.mxu3 %v4981_v23 }
 0xa9d   :  { %5084 = vmatpush.msra.mxu1 %v4997_v17 }
 0xa9e   :  { %5065 = vmatpush.msra.mxu3 %v4980_v50 }
 0xa9f   :  { %5085 = vmatpush.msra.mxu1 %v4996_v35 }
 0xaa0   :  { %5066 = vmatpush.msra.mxu3 %v4979_v51 }
 0xaa1   :  { %5086 = vmatpush.msra.mxu1 %v4995_v24 }
 0xaa2   :  { %5067 = vmatpush.msra.mxu3 %v4978_v40 }
 0xaa3   :  { %5087 = vmatpush.msra.mxu1 %v4994_v15 }
 0xaa4   :  { %5068 = vmatpush.msra.mxu3 %v4977_v61 }
 0xaa5   :  { %5088 = vmatpush.msra.mxu1 %v4993_v20 }
 0xabd   :  { %v4794_v0 = vpop.f32.mrf.mxu1 }
 0xabe   :  { %v4819_v3 = vadd.f32 %v4794_v0, %v4699_v44 }
 0xac2   :  { %v4754_v14 = vpop.f32.mrf.mxu2  ;;  %v4774_v38 = vpop.f32.mrf.mxu3 }
 0xac3   :  { %v4818_v33 = vadd.f32 %v4774_v38, %v4698_v49  ;;  %v4817_v18 = vadd.f32 %v4754_v14, %v4697_v39 }
 0xaca   :  { %v4814_v22 = vpop.f32.mrf.mxu2 }
 0xacb   :  { %v4820_v19 = vadd.f32 %v4814_v22, %v4700_v21 }
 0xb02   :  { %v4894_v41 = vpop.f32.mrf.mxu1 }
 0xb03   :  { %v4938_v59 = vadd.f32 %v4894_v41, %v4818_v33 }
 0xb05   :  { %v4942_v30 = vmax.f32 %v4938_v59, 0.0 }
 0xb07   :  { %5049 = vmatmul.f32.vlgmr.msra.gmra.mxu2 %v4942_v30 }
 0xb08   :  { %v4874_v56 = vpop.f32.mrf.mxu3 }
 0xb09   :  { %v4937_v12 = vadd.f32 %v4874_v56, %v4817_v18  ;;  %v4914_v29 = vpop.f32.mrf.mxu2 }
 0xb0a   :  { %v4939_v2 = vadd.f32 %v4914_v29, %v4819_v3 }
 0xb0b   :  { %v4941_v34 = vmax.f32 %v4937_v12, 0.0 }
 0xb0c   :  { %v4943_v54 = vmax.f32 %v4939_v2, 0.0 }
 0xb0d   :  { %5029 = vmatmul.f32.vlgmr.msrb.gmra.mxu1 %v4941_v34 }
 0xb0e   :  { %5069 = vmatmul.f32.vlgmr.msra.gmra.mxu3 %v4943_v54 }
 0xb10   :  { %v4934_v16 = vpop.f32.mrf.mxu3 }
 0xb11   :  { %v4940_v60 = vadd.f32 %v4934_v16, %v4820_v19 }
 0xb13   :  { %v4944_v26 = vmax.f32 %v4940_v60, 0.0 }
 0xb15   :  { %5089 = vmatmul.f32.vlgmr.msra.gmra.mxu1 %v4944_v26 }
 0xb8a   :  { %v5030_v53 = vpop.f32.mrf.mxu1  ;;  %v5050_v58 = vpop.f32.mrf.mxu2 }
 0xb8b   :  { %v5031_v27 = vadd.f32 %v5424_v47, %v5030_v53 }
 0xb8d   :  { %v5051_v62 = vadd.f32 %v5050_v58, %v5031_v27 }
 0xb91   :  { %v5070_v28 = vpop.f32.mrf.mxu3 }
 0xb92   :  { %v5071_v1 = vadd.f32 %v5070_v28, %v5051_v62  ;;  %v5090_v42 = vpop.f32.mrf.mxu1 }
 0xb94   :  { %v5091_v5 = vadd.f32 %v5090_v42, %v5071_v1 }
 0xb96   :  { %5093 = vst [vmem:[%s12518_s11] sm:$0xff] %v5091_v5 }

</bundles_post_ra>
